<compile_context>
chip_gen: v7x
topology: tpu7x:2x2x1
jax: 0.10.0
libtpu: 0.0.40
codegen_flags: <defaults>
</compile_context>

<pallas_src>
import functools
import itertools
import math

import jax
import jax.numpy as jnp
from jax import lax
from jax.experimental import pallas as pl
from jax.experimental.pallas import tpu as pltpu

RESO_3D = 8    # FLAGS.reso_3d
RESO_VOX = 32  # FLAGS.reso_vox
LEAKY_SLOPE = 0.2
IN_EPS = 1e-5


# --------------------------------------------------------------------------
# Pallas kernel 1: lane-dense GEMM  (R, K) @ (K, N*S)  with fused
# bias + InstanceNorm + LeakyReLU (or Tanh) epilogue.  Batch folded into the
# lane axis; InstanceNorm statistics segmented per sample when needed.
# --------------------------------------------------------------------------
def _in_scale_shift(rsum, rsq, gamma, beta, groups, C, inv_n):
    """Per-channel scale/shift from row sums (R, 1); rows ordered p*C + c."""
    if groups > 1:
        csum, csq = rsum[0:C, :], rsq[0:C, :]
        for p in range(1, groups):                            # static, tiny
            csum = csum + rsum[p * C:(p + 1) * C, :]
            csq = csq + rsq[p * C:(p + 1) * C, :]
    else:
        csum, csq = rsum, rsq
    mean = csum * inv_n
    var = csq * inv_n - mean * mean
    scale = lax.rsqrt(var + IN_EPS) * gamma                   # (C, 1)
    shift = beta - mean * scale
    if groups > 1:
        scale = jnp.concatenate([scale] * groups, axis=0)     # (R, 1)
        shift = jnp.concatenate([shift] * groups, axis=0)
    return scale, shift


def _gemm_epi_kernel(w_ref, a_ref, bias_ref, gamma_ref, beta_ref, o_ref, *,
                     epilogue, groups, ns, S):
    acc = jnp.dot(w_ref[...], a_ref[...],
                  preferred_element_type=jnp.float32)         # (R, Lb) f32
    acc = acc + bias_ref[...]                                 # (R, 1) bcast

    if epilogue == "in_leaky":
        R, Lb = acc.shape
        C = R // groups
        inv_n = 1.0 / float(groups * S)
        gamma = gamma_ref[...]
        beta = beta_ref[...]
        if ns == 1:
            rsum = jnp.sum(acc, axis=1, keepdims=True)
            rsq = jnp.sum(acc * acc, axis=1, keepdims=True)
            scale, shift = _in_scale_shift(rsum, rsq, gamma, beta,
                                           groups, C, inv_n)
            acc = acc * scale + shift
        else:
            # batch folded into lanes -> per-sample segmented statistics
            sq = acc * acc
            lane = lax.broadcasted_iota(jnp.int32, (1, Lb), 1)
            scale_f = jnp.zeros_like(acc)
            shift_f = jnp.zeros_like(acc)
            for n in range(ns):                               # static
                m = ((lane >= n * S) &
                     (lane < (n + 1) * S)).astype(jnp.float32)
                rsum = jnp.sum(acc * m, axis=1, keepdims=True)
                rsq = jnp.sum(sq * m, axis=1, keepdims=True)
                scale, shift = _in_scale_shift(rsum, rsq, gamma, beta,
                                               groups, C, inv_n)
                scale_f = scale_f + scale * m
                shift_f = shift_f + shift * m
            acc = acc * scale_f + shift_f
        acc = jnp.where(acc >= 0, acc, LEAKY_SLOPE * acc)
    elif epilogue == "tanh":
        acc = jnp.tanh(acc)

    o_ref[...] = acc.astype(o_ref.dtype)


def gemm_fused(w, a, bias, gamma, beta, *, epilogue="none", groups=1,
               samples=1, out_dtype=jnp.float32):
    """w: (R, K); a: (K, L = samples*S), sample-major lanes; bias: (R,);
    gamma/beta: (R//groups,) -> (R, L).  bf16 MXU operands, f32 accumulation."""
    R, K = w.shape
    K2, L = a.shape
    assert K == K2 and R % groups == 0 and L % samples == 0
    S = L // samples
    C = R // groups
    # one lane block per sample when each sample is lane-dense; otherwise a
    # single block holding all samples (segmented InstanceNorm).
    nb = samples if (samples > 1 and S % 128 == 0) else 1
    ns = samples // nb
    Lb = L // nb
    w_bf = w.astype(jnp.bfloat16)
    a_bf = a if a.dtype == jnp.bfloat16 else a.astype(jnp.bfloat16)
    bias = bias.reshape(R, 1).astype(jnp.float32)
    gamma = gamma.reshape(C, 1).astype(jnp.float32)
    beta = beta.reshape(C, 1).astype(jnp.float32)
    return pl.pallas_call(
        functools.partial(_gemm_epi_kernel, epilogue=epilogue, groups=groups,
                          ns=ns, S=S),
        out_shape=jax.ShapeDtypeStruct((R, L), out_dtype),
        grid_spec=pltpu.PrefetchScalarGridSpec(
            num_scalar_prefetch=0,
            grid=(nb,),
            in_specs=[
                pl.BlockSpec((R, K), lambda i: (0, 0)),
                pl.BlockSpec((K, Lb), lambda i: (0, i)),
                pl.BlockSpec((R, 1), lambda i: (0, 0)),
                pl.BlockSpec((C, 1), lambda i: (0, 0)),
                pl.BlockSpec((C, 1), lambda i: (0, 0)),
            ],
            out_specs=pl.BlockSpec((R, Lb), lambda i: (0, i)),
        ),
        compiler_params=pltpu.CompilerParams(
            dimension_semantics=("parallel",)),
    )(w_bf, a_bf, bias, gamma, beta)


# --------------------------------------------------------------------------
# In-kernel helpers shared by the fused occupancy kernels
# --------------------------------------------------------------------------
def _prob_from_occ(occ):
    """p_d = occ_d * prod_{k<d}(1 - occ_k) via a log-space Hillis-Steele scan
    (log2(D) steps, no serial depth chain, no per-row concat list)."""
    D, L = occ.shape
    lo = jnp.log(1.0 - jnp.minimum(occ, 1.0 - 1e-6))
    cs = lo
    k = 1
    while k < D:                                              # static steps
        sh = jnp.concatenate(
            [jnp.zeros((k, L), jnp.float32), cs[:D - k, :]], axis=0)
        cs = cs + sh
        k *= 2
    # cs = inclusive prefix sum; exclusive = cs - lo -> transmittance
    return occ * jnp.exp(cs - lo)


def _grad1d(occ, axis, step, first_m, last_m):
    """jnp.gradient-style central differences along `axis` (stride `step` in
    lane units for axis=1); one-sided at the (masked) boundaries."""
    n = occ.shape[axis]
    if axis == 0:
        nxt = jnp.concatenate([occ[step:, :], occ[n - step:, :]], axis=0)
        prv = jnp.concatenate([occ[:step, :], occ[:n - step, :]], axis=0)
    else:
        nxt = jnp.concatenate([occ[:, step:], occ[:, n - step:]], axis=1)
        prv = jnp.concatenate([occ[:, :step], occ[:, :n - step]], axis=1)
    return jnp.where(first_m, nxt - occ,
                     jnp.where(last_m, occ - prv, 0.5 * (nxt - prv)))


# --------------------------------------------------------------------------
# Pallas kernel 2: fused occupancy -> prob -> expectation of features
# --------------------------------------------------------------------------
def _expect_feat_kernel(occ_ref, v_ref, exp_ref, *, C):
    occ = occ_ref[...].astype(jnp.float32)                    # (D, Lb)
    D = occ.shape[0]
    prob = _prob_from_occ(occ)
    rows = []
    for c in range(C):                                        # static, small
        vc = v_ref[pl.ds(c * D, D), :].astype(jnp.float32)    # aligned (D, Lb)
        rows.append(jnp.sum(vc * prob, axis=0, keepdims=True))
    exp_ref[...] = jnp.concatenate(rows, axis=0)


def expected_features(occ_l, v_cd):
    """occ_l: (D, L); v_cd: (C*D, L) rows c*D + d -> E[v | occ] (C, L) f32."""
    D, L = occ_l.shape
    C = v_cd.shape[0] // D
    return pl.pallas_call(
        functools.partial(_expect_feat_kernel, C=C),
        out_shape=jax.ShapeDtypeStruct((C, L), jnp.float32),
        grid_spec=pltpu.PrefetchScalarGridSpec(
            num_scalar_prefetch=0, grid=(1,),
            in_specs=[pl.BlockSpec((D, L), lambda i: (0, 0)),
                      pl.BlockSpec((C * D, L), lambda i: (0, 0))],
            out_specs=pl.BlockSpec((C, L), lambda i: (0, 0))),
        compiler_params=pltpu.CompilerParams(
            dimension_semantics=("parallel",)),
    )(occ_l.astype(jnp.float32), v_cd)


# --------------------------------------------------------------------------
# Pallas kernel 3: fused occupancy -> prob -> (mask, E[-grad occ]) at reso_vox
# --------------------------------------------------------------------------
def _normal_mask_kernel(occ_ref, exp_ref, mask_ref, *, H, W):
    occ = occ_ref[...].astype(jnp.float32)                    # (D, Lb)
    D, Lb = occ.shape
    prob = _prob_from_occ(occ)
    mask_ref[...] = jnp.sum(prob, axis=0, keepdims=True)      # mask = sum_d p_d

    # grad_occ fused in-kernel: D shifts = sublane slices, H/W shifts = lane
    # slices; per-sample / volume boundaries handled via lane-position masks.
    row = lax.broadcasted_iota(jnp.int32, (D, Lb), 0)
    lane = lax.broadcasted_iota(jnp.int32, (D, Lb), 1)
    in_w = lane & (W - 1)                                     # W power of two
    in_hw = lane & (H * W - 1)
    gd = _grad1d(occ, 0, 1, row == 0, row == D - 1)
    gh = _grad1d(occ, 1, W, in_hw < W, in_hw >= H * W - W)
    gw = _grad1d(occ, 1, 1, in_w == 0, in_w == W - 1)

    # TODO(synk): exact finite-difference convention of the original grad_occ
    # is unknown; using -central-difference (one-sided at volume edges).
    rows = [jnp.sum(-g * prob, axis=0, keepdims=True) for g in (gd, gh, gw)]
    rows.append(jnp.zeros((5, Lb), jnp.float32))              # pad to 8 rows
    exp_ref[...] = jnp.concatenate(rows, axis=0)


def expected_normal_and_mask(occ_l, H, W, samples):
    """occ_l: (D, L = samples*H*W) -> (E[-grad occ | p] (3, L), mask (1, L))."""
    D, L = occ_l.shape
    assert H & (H - 1) == 0 and W & (W - 1) == 0, "H, W must be powers of two"
    S = L // samples
    nb = samples if (samples > 1 and S % 128 == 0) else 1
    Lb = L // nb
    exp8, mask = pl.pallas_call(
        functools.partial(_normal_mask_kernel, H=H, W=W),
        out_shape=(jax.ShapeDtypeStruct((8, L), jnp.float32),
                   jax.ShapeDtypeStruct((1, L), jnp.float32)),
        grid_spec=pltpu.PrefetchScalarGridSpec(
            num_scalar_prefetch=0, grid=(nb,),
            in_specs=[pl.BlockSpec((D, Lb), lambda i: (0, i))],
            out_specs=(pl.BlockSpec((8, Lb), lambda i: (0, i)),
                       pl.BlockSpec((1, Lb), lambda i: (0, i)))),
        compiler_params=pltpu.CompilerParams(
            dimension_semantics=("parallel",)),
    )(occ_l.astype(jnp.float32))
    return exp8[:3], mask


# --------------------------------------------------------------------------
# Layout helpers (plain-JAX glue around the lane-major kernels)
# --------------------------------------------------------------------------
def occ_to_lanes(voxel):
    """(N, 1, D, H, W) -> (D, N*H*W)."""
    N, _, D, H, W = voxel.shape
    return jnp.transpose(voxel[:, 0], (1, 0, 2, 3)).reshape(D, N * H * W)


def to_cd_lanes(v):
    """(N, C, D, H, W) -> (C*D, N*H*W), row order c*D + d."""
    N, C, D, H, W = v.shape
    return jnp.transpose(v, (1, 2, 0, 3, 4)).reshape(C * D, N * H * W)


def from_lanes(v_l, N, H, W):
    """(C, N*H*W) -> (N, C, H, W)."""
    C = v_l.shape[0]
    return jnp.transpose(v_l.reshape(C, N, H, W), (1, 0, 2, 3))


# --------------------------------------------------------------------------
# Convolutions (bf16 im2col glue in JAX, lane-dense GEMM + fused epilogue)
# --------------------------------------------------------------------------
def _im2col_lanes(x, k, pad):
    """x: (N, C, *sp) -> (C*k^nd, N*prod(out_sp)) stride-1 patches, lane-major.
    The channel/batch transpose happens on the small raw input (before the
    k^nd patch blow-up) and x is expected to already be bf16."""
    # TODO(synk): building the patch matrix inside the GEMM kernel (in-VMEM
    # im2col) would remove this HBM round trip entirely.
    nsp = x.ndim - 2
    N, C = x.shape[:2]
    xt = jnp.transpose(x, (1, 0) + tuple(range(2, x.ndim)))   # (C, N, *sp)
    xp = jnp.pad(xt, [(0, 0), (0, 0)] + [(pad, pad)] * nsp)
    out_sp = tuple(s + 2 * pad - k + 1 for s in x.shape[2:])
    cols = []
    for offs in itertools.product(range(k), repeat=nsp):
        sl = tuple(slice(o, o + out_sp[i]) for i, o in enumerate(offs))
        cols.append(xp[(slice(None), slice(None)) + sl])
    patches = jnp.stack(cols, axis=1)                         # (C, k^nd, N, *out)
    return patches.reshape(C * (k ** nsp), N * math.prod(out_sp)), out_sp


def conv_nd(x, w, b, gamma, beta, *, k, pad, epilogue, out_dtype=jnp.float32):
    """Stride-1 conv.  x: (N, Cin, *sp); w: (Cout, Cin, *[k]*nd)."""
    N = x.shape[0]
    Cout = w.shape[0]
    a, out_sp = _im2col_lanes(x.astype(jnp.bfloat16), k, pad)  # (K, N*S) bf16
    out = gemm_fused(w.reshape(Cout, -1), a, b, gamma, beta,
                     epilogue=epilogue, groups=1, samples=N,
                     out_dtype=out_dtype)                      # (Cout, N*S)
    out = out.reshape((Cout, N) + out_sp)
    return jnp.transpose(out, (1, 0) + tuple(range(2, 2 + len(out_sp))))


# ConvTranspose2d(k=4, s=2, p=1) sub-pixel decomposition:
#   y[2m+ph, 2n+pw] uses kernel taps kh in {3,1} (ph=0) / {2,0} (ph=1) applied
#   to a 3x3 stride-1 patch of the *undilated* input.  (tap_index, kernel_index):
_PHASE_TAPS = {0: ((0, 3), (1, 1)), 1: ((1, 2), (2, 0))}


def _convT_phase_weight(w):
    """ConvTranspose2d weight (Cin, Cout, 4, 4) -> phase GEMM weight
    (4*Cout, Cin*9) acting on stride-1 3x3 patches of the undilated input."""
    Cin, Cout = w.shape[0], w.shape[1]
    Wm = jnp.zeros((2, 2, Cout, Cin, 3, 3), w.dtype)
    for ph in (0, 1):
        for pw in (0, 1):
            for th, kh in _PHASE_TAPS[ph]:
                for tw, kw in _PHASE_TAPS[pw]:
                    Wm = Wm.at[ph, pw, :, :, th, tw].set(w[:, :, kh, kw].T)
    return Wm.reshape(4 * Cout, Cin * 9)


def conv_transpose2d_block(x, w, b, gamma, beta, out_dtype=jnp.bfloat16):
    """ConvTranspose2d(4, stride=2, pad=1) + InstanceNorm + LeakyReLU fused
    into one lane-dense GEMM; pixel-shuffle interleave in the wrapper."""
    N, Cin, H, W = x.shape
    Cout = w.shape[1]
    a, _ = _im2col_lanes(x.astype(jnp.bfloat16), 3, 1)        # (Cin*9, N*H*W)
    wm = _convT_phase_weight(w)                               # (4*Cout, Cin*9)
    b4 = jnp.tile(b.reshape(Cout), (4,))                      # row order p*Cout+c
    out = gemm_fused(wm, a, b4, gamma, beta, epilogue="in_leaky", groups=4,
                     samples=N, out_dtype=out_dtype)          # (4*Cout, N*H*W)
    out = out.reshape(2, 2, Cout, N, H, W)
    out = jnp.transpose(out, (3, 2, 4, 0, 5, 1))              # (N,Cout,H,ph,W,pw)
    return out.reshape(N, Cout, 2 * H, 2 * W)


# --------------------------------------------------------------------------
# Remaining module pieces (plain JAX)
# --------------------------------------------------------------------------
def perspective_project(vol, view, reso):
    # TODO(synk): Perspective3d's view-dependent camera transform + perspective
    # grid_sample is unavailable; only identity-view trilinear resampling.
    del view
    N, C = vol.shape[:2]
    if vol.shape[2:] == (reso, reso, reso):
        return vol
    return jax.image.resize(vol, (N, C, reso, reso, reso), method="trilinear")


# --------------------------------------------------------------------------
# Forward pass
# --------------------------------------------------------------------------
def sim_struct_render_forward(params, x, voxel, view, z, *, reso_3d, reso_vox):
    del z  # SimStructRender ignores batch_z (adain=False)
    N = x.shape[0]

    # ---- 3D branch: 2 x (Conv3d + InstanceNorm + LeakyReLU), fused ----
    x = perspective_project(x, view, reso_3d)
    for blk in params["gblock3d"]:
        x = conv_nd(x, blk["w"], blk["b"], blk["gamma"], blk["beta"],
                    k=3, pad=1, epilogue="in_leaky", out_dtype=jnp.bfloat16)

    # ---- expectation of features over depth at reso_3d (one fused kernel) --
    voxel_3d = perspective_project(voxel, view, reso_3d)
    x2d = expected_features(occ_to_lanes(voxel_3d), to_cd_lanes(x))
    x = from_lanes(x2d, N, reso_3d, reso_3d)                  # (N, C, r3, r3)
    feat2d = x

    # ---- reso_vox: prob + mask + grad_occ + expected normal, one kernel ----
    voxel_trans = perspective_project(voxel, view, reso_vox)
    exp_n_l, mask_l = expected_normal_and_mask(
        occ_to_lanes(voxel_trans), reso_vox, reso_vox, N)
    mask = from_lanes(mask_l, N, reso_vox, reso_vox)          # (N, 1, rv, rv)
    exp_normal = from_lanes(exp_n_l, N, reso_vox, reso_vox)   # (N, 3, rv, rv)
    nrm = jnp.sqrt(jnp.sum(exp_normal ** 2, axis=1, keepdims=True))
    exp_normal = exp_normal / jnp.maximum(nrm, 1e-8)

    # ---- 2D upsampling (ConvTranspose2d + IN + LeakyReLU, fused) ----
    for blk in params["gblock2d"]:
        x = conv_transpose2d_block(x, blk["w"], blk["b"],
                                   blk["gamma"], blk["beta"])

    # ---- head: stride-1 ConvTranspose2d(k=3, p=1) + Tanh (as flipped conv);
    #      output channels zero-padded to 8 rows for a tile-full store ----
    wh = params["head"]["w"]                                  # (Cin, c_dim, 3, 3)
    c_dim = wh.shape[1]
    w_fwd = jnp.transpose(wh, (1, 0, 2, 3))[:, :, ::-1, ::-1]
    rpad = (-c_dim) % 8
    w_pad = jnp.pad(w_fwd, ((0, rpad), (0, 0), (0, 0), (0, 0)))
    b_pad = jnp.pad(params["head"]["b"], (0, rpad))
    cpad = c_dim + rpad
    image = conv_nd(x, w_pad, b_pad, jnp.ones((cpad,), jnp.float32),
                    jnp.zeros((cpad,), jnp.float32), k=3, pad=1,
                    epilogue="tanh", out_dtype=jnp.float32)[:, :c_dim]

    return {"mask": mask, "image": image, "3d_view": voxel_trans,
            "normal": exp_normal, "feat2d": feat2d}


# --------------------------------------------------------------------------
# Deterministic synthetic parameters (shapes dictated by __init__)
# --------------------------------------------------------------------------
def init_params(key, inp_dim, num_layers, c_dim):
    keys = iter(jax.random.split(key, 8))
    params = {"gblock3d": [], "gblock2d": [], "head": {}}
    for _ in range(2):  # gblock3d_2: inp_dim -> inp_dim, Conv3d(k=3, s=1, p=1)
        params["gblock3d"].append(dict(
            w=0.1 * jax.random.normal(next(keys), (inp_dim, inp_dim, 3, 3, 3),
                                      jnp.float32),
            b=jnp.zeros((inp_dim,), jnp.float32),
            gamma=jnp.ones((inp_dim,), jnp.float32),
            beta=jnp.zeros((inp_dim,), jnp.float32)))
    dims = [inp_dim // (2 ** i) for i in range(num_layers + 1)]
    for i in range(num_layers):  # gblock2d_2: ConvTranspose2d(k=4, s=2, p=1)
        params["gblock2d"].append(dict(
            w=0.1 * jax.random.normal(next(keys), (dims[i], dims[i + 1], 4, 4),
                                      jnp.float32),        # PyTorch (Cin,Cout,k,k)
            b=jnp.zeros((dims[i + 1],), jnp.float32),
            gamma=jnp.ones((dims[i + 1],), jnp.float32),
            beta=jnp.zeros((dims[i + 1],), jnp.float32)))
    params["head"] = dict(  # ConvTranspose2d(dims[-1] -> c_dim, k=3, s=1, p=1)
        w=0.1 * jax.random.normal(next(keys), (dims[-1], c_dim, 3, 3),
                                  jnp.float32),
        b=jnp.zeros((c_dim,), jnp.float32))
    return params


if __name__ == "__main__":
    N, inp_dim, num_layers, c_dim, z_dim = 2, 8, 2, 3, 16

    key = jax.random.PRNGKey(0)
    kp, kx, kv, kview, kz = jax.random.split(key, 5)
    params = init_params(kp, inp_dim, num_layers, c_dim)

    x = jax.random.normal(kx, (N, inp_dim, 8, 8, 8), jnp.float32)         # feat3d
    voxel = jax.nn.sigmoid(jax.random.normal(kv, (N, 1, 16, 16, 16)))     # occupancy
    view = jax.random.normal(kview, (N, 7), jnp.float32)
    z = jax.random.normal(kz, (N, z_dim), jnp.float32)

    fwd = jax.jit(functools.partial(sim_struct_render_forward,
                                    reso_3d=RESO_3D, reso_vox=RESO_VOX))
    out = fwd(params, x, voxel, view, z)
    out = jax.tree_util.tree_map(jax.block_until_ready, out)

    assert out["image"].shape == (N, c_dim, 32, 32)
    assert out["mask"].shape == (N, 1, 32, 32)
    assert out["normal"].shape == (N, 3, 32, 32)
    assert out["3d_view"].shape == (N, 1, 32, 32, 32)
    assert out["feat2d"].shape == (N, inp_dim, RESO_3D, RESO_3D)
    print("KERNEL_OK")
</pallas_src>

<mosaic_0001>
module attributes {stable_mosaic.version = 11 : i64} {
  func.func @_gemm_epi_kernel(%arg0: i32, %arg1: memref<8x216xbf16, #tpu.memory_space<vmem>>, %arg2: memref<216x512xbf16, #tpu.memory_space<vmem>>, %arg3: memref<8x1xf32, #tpu.memory_space<vmem>>, %arg4: memref<8x1xf32, #tpu.memory_space<vmem>>, %arg5: memref<8x1xf32, #tpu.memory_space<vmem>>, %arg6: memref<8x512xbf16, #tpu.memory_space<vmem>>) attributes {dimension_semantics = [#tpu.dimension_semantics<parallel>], iteration_bounds = array<i64: 2>, scalar_prefetch = 0 : i64, scratch_operands = 0 : i64, tpu.core_type = #tpu.core_type<tc>, window_params = [{pipeline_mode = #tpu.pipeline_mode<synchronous>, transform_indices = @transform_0, window_bounds = array<i64: 8, 216>}, {transform_indices = @transform_1, window_bounds = array<i64: 216, 512>}, {pipeline_mode = #tpu.pipeline_mode<synchronous>, transform_indices = @transform_2, window_bounds = array<i64: 8, 1>}, {pipeline_mode = #tpu.pipeline_mode<synchronous>, transform_indices = @transform_3, window_bounds = array<i64: 8, 1>}, {pipeline_mode = #tpu.pipeline_mode<synchronous>, transform_indices = @transform_4, window_bounds = array<i64: 8, 1>}, {transform_indices = @transform_5, window_bounds = array<i64: 8, 512>}]} {
    %c0 = arith.constant 0 : index
    %c0_0 = arith.constant 0 : index
    %0 = vector.load %arg1[%c0, %c0_0] : memref<8x216xbf16, #tpu.memory_space<vmem>>, vector<8x216xbf16>
    %c0_1 = arith.constant 0 : index
    %c0_2 = arith.constant 0 : index
    %1 = vector.load %arg2[%c0_1, %c0_2] : memref<216x512xbf16, #tpu.memory_space<vmem>>, vector<216x512xbf16>
    %cst = arith.constant dense<0.000000e+00> : vector<8x512xf32>
    %2 = tpu.matmul %0, %1, %cst {dimension_numbers = #tpu.dot_dimension_numbers<[1], [0], [0], [1], [0, 0, 1, 1], [], []>} : vector<8x216xbf16>, vector<216x512xbf16>, vector<8x512xf32> -> vector<8x512xf32>
    %c0_3 = arith.constant 0 : index
    %c0_4 = arith.constant 0 : index
    %3 = vector.load %arg3[%c0_3, %c0_4] : memref<8x1xf32, #tpu.memory_space<vmem>>, vector<8x1xf32>
    %4 = vector.broadcast %3 : vector<8x1xf32> to vector<8x512xf32>
    %5 = arith.addf %2, %4 : vector<8x512xf32>
    %c0_5 = arith.constant 0 : index
    %c0_6 = arith.constant 0 : index
    %6 = vector.load %arg4[%c0_5, %c0_6] : memref<8x1xf32, #tpu.memory_space<vmem>>, vector<8x1xf32>
    %c0_7 = arith.constant 0 : index
    %c0_8 = arith.constant 0 : index
    %7 = vector.load %arg5[%c0_7, %c0_8] : memref<8x1xf32, #tpu.memory_space<vmem>>, vector<8x1xf32>
    %cst_9 = arith.constant dense<0.000000e+00> : vector<8xf32>
    %8 = vector.multi_reduction <add>, %5, %cst_9 [1] : vector<8x512xf32> to vector<8xf32>
    %9 = vector.shape_cast %8 : vector<8xf32> to vector<8x1xf32>
    %10 = arith.mulf %5, %5 : vector<8x512xf32>
    %cst_10 = arith.constant dense<0.000000e+00> : vector<8xf32>
    %11 = vector.multi_reduction <add>, %10, %cst_10 [1] : vector<8x512xf32> to vector<8xf32>
    %12 = vector.shape_cast %11 : vector<8xf32> to vector<8x1xf32>
    %cst_11 = arith.constant 0.001953125 : f32
    %13 = vector.broadcast %cst_11 : f32 to vector<8x1xf32>
    %14 = arith.mulf %9, %13 : vector<8x1xf32>
    %cst_12 = arith.constant 0.001953125 : f32
    %15 = vector.broadcast %cst_12 : f32 to vector<8x1xf32>
    %16 = arith.mulf %12, %15 : vector<8x1xf32>
    %17 = arith.mulf %14, %14 : vector<8x1xf32>
    %18 = arith.subf %16, %17 : vector<8x1xf32>
    %cst_13 = arith.constant 9.99999974E-6 : f32
    %19 = vector.broadcast %cst_13 : f32 to vector<8x1xf32>
    %20 = arith.addf %18, %19 : vector<8x1xf32>
    %21 = math.rsqrt %20 : vector<8x1xf32>
    %22 = arith.mulf %21, %6 : vector<8x1xf32>
    %23 = arith.mulf %14, %22 : vector<8x1xf32>
    %24 = arith.subf %7, %23 : vector<8x1xf32>
    %25 = vector.broadcast %22 : vector<8x1xf32> to vector<8x512xf32>
    %26 = arith.mulf %5, %25 : vector<8x512xf32>
    %27 = vector.broadcast %24 : vector<8x1xf32> to vector<8x512xf32>
    %28 = arith.addf %26, %27 : vector<8x512xf32>
    %cst_14 = arith.constant 0.000000e+00 : f32
    %29 = vector.broadcast %cst_14 : f32 to vector<8x512xf32>
    %30 = arith.cmpf oge, %28, %29 : vector<8x512xf32>
    %cst_15 = arith.constant 2.000000e-01 : f32
    %31 = vector.broadcast %cst_15 : f32 to vector<8x512xf32>
    %32 = arith.mulf %31, %28 : vector<8x512xf32>
    %33 = arith.select %30, %28, %32 : vector<8x512xi1>, vector<8x512xf32>
    %34 = arith.truncf %33 : vector<8x512xf32> to vector<8x512xbf16>
    %c0_16 = arith.constant 0 : index
    %c0_17 = arith.constant 0 : index
    %35 = vector.load %arg6[%c0_16, %c0_17] : memref<8x512xbf16, #tpu.memory_space<vmem>>, vector<8x512xbf16>
    tpu.vector_store %arg6[%c0_16, %c0_17], %34 {strides = array<i32>} : memref<8x512xbf16, #tpu.memory_space<vmem>>, vector<8x512xbf16>,
    return
  }
  func.func @transform_0(%arg0: i32) -> (i32, i32) {
    %c0_i32 = arith.constant 0 : i32
    %c0_i32_0 = arith.constant 0 : i32
    %c0_i32_1 = arith.constant 0 : i32
    return %c0_i32, %c0_i32_0 : i32, i32
  }
  func.func @transform_1(%arg0: i32) -> (i32, i32) {
    %c0_i32 = arith.constant 0 : i32
    %c0_i32_0 = arith.constant 0 : i32
    return %c0_i32, %arg0 : i32, i32
  }
  func.func @transform_2(%arg0: i32) -> (i32, i32) {
    %c0_i32 = arith.constant 0 : i32
    %c0_i32_0 = arith.constant 0 : i32
    %c0_i32_1 = arith.constant 0 : i32
    return %c0_i32, %c0_i32_0 : i32, i32
  }
  func.func @transform_3(%arg0: i32) -> (i32, i32) {
    %c0_i32 = arith.constant 0 : i32
    %c0_i32_0 = arith.constant 0 : i32
    %c0_i32_1 = arith.constant 0 : i32
    return %c0_i32, %c0_i32_0 : i32, i32
  }
  func.func @transform_4(%arg0: i32) -> (i32, i32) {
    %c0_i32 = arith.constant 0 : i32
    %c0_i32_0 = arith.constant 0 : i32
    %c0_i32_1 = arith.constant 0 : i32
    return %c0_i32, %c0_i32_0 : i32, i32
  }
  func.func @transform_5(%arg0: i32) -> (i32, i32) {
    %c0_i32 = arith.constant 0 : i32
    %c0_i32_0 = arith.constant 0 : i32
    return %c0_i32, %arg0 : i32, i32
  }
}

module attributes {stable_mosaic.version = 11 : i64} {
  func.func @_expect_feat_kernel(%arg0: i32, %arg1: memref<8x128xf32, #tpu.memory_space<vmem>>, %arg2: memref<64x128xbf16, #tpu.memory_space<vmem>>, %arg3: memref<8x128xf32, #tpu.memory_space<vmem>>) attributes {dimension_semantics = [#tpu.dimension_semantics<parallel>], iteration_bounds = array<i64: 1>, scalar_prefetch = 0 : i64, scratch_operands = 0 : i64, tpu.core_type = #tpu.core_type<tc>, window_params = [{pipeline_mode = #tpu.pipeline_mode<synchronous>, transform_indices = @transform_0, window_bounds = array<i64: 8, 128>}, {pipeline_mode = #tpu.pipeline_mode<synchronous>, transform_indices = @transform_1, window_bounds = array<i64: 64, 128>}, {pipeline_mode = #tpu.pipeline_mode<synchronous>, transform_indices = @transform_2, window_bounds = array<i64: 8, 128>}]} {
    %c0 = arith.constant 0 : index
    %c0_0 = arith.constant 0 : index
    %0 = vector.load %arg1[%c0, %c0_0] : memref<8x128xf32, #tpu.memory_space<vmem>>, vector<8x128xf32>
    %cst = arith.constant 0.999998986 : f32
    %1 = vector.broadcast %cst : f32 to vector<8x128xf32>
    %2 = arith.minimumf %0, %1 : vector<8x128xf32>
    %cst_1 = arith.constant 1.000000e+00 : f32
    %3 = vector.broadcast %cst_1 : f32 to vector<8x128xf32>
    %4 = arith.subf %3, %2 : vector<8x128xf32>
    %5 = math.log %4 : vector<8x128xf32>
    %cst_2 = arith.constant 0.000000e+00 : f32
    %6 = vector.broadcast %cst_2 : f32 to vector<1x128xf32>
    %7 = vector.extract_strided_slice %5 {offsets = [0, 0], sizes = [7, 128], strides = [1, 1]} : vector<8x128xf32> to vector<7x128xf32>
    %8 = tpu.concatenate %6, %7 in 0 : vector<1x128xf32>, vector<7x128xf32> -> vector<8x128xf32>
    %9 = arith.addf %5, %8 : vector<8x128xf32>
    %cst_3 = arith.constant 0.000000e+00 : f32
    %10 = vector.broadcast %cst_3 : f32 to vector<2x128xf32>
    %11 = vector.extract_strided_slice %9 {offsets = [0, 0], sizes = [6, 128], strides = [1, 1]} : vector<8x128xf32> to vector<6x128xf32>
    %12 = tpu.concatenate %10, %11 in 0 : vector<2x128xf32>, vector<6x128xf32> -> vector<8x128xf32>
    %13 = arith.addf %9, %12 : vector<8x128xf32>
    %cst_4 = arith.constant 0.000000e+00 : f32
    %14 = vector.broadcast %cst_4 : f32 to vector<4x128xf32>
    %15 = vector.extract_strided_slice %13 {offsets = [0, 0], sizes = [4, 128], strides = [1, 1]} : vector<8x128xf32> to vector<4x128xf32>
    %16 = tpu.concatenate %14, %15 in 0 : vector<4x128xf32>, vector<4x128xf32> -> vector<8x128xf32>
    %17 = arith.addf %13, %16 : vector<8x128xf32>
    %18 = arith.subf %17, %5 : vector<8x128xf32>
    %19 = math.exp %18 : vector<8x128xf32>
    %20 = arith.mulf %0, %19 : vector<8x128xf32>
    %c0_5 = arith.constant 0 : index
    %c0_6 = arith.constant 0 : index
    %21 = vector.load %arg2[%c0_5, %c0_6] : memref<64x128xbf16, #tpu.memory_space<vmem>>, vector<8x128xbf16>
    %22 = arith.extf %21 : vector<8x128xbf16> to vector<8x128xf32>
    %23 = arith.mulf %22, %20 : vector<8x128xf32>
    %cst_7 = arith.constant dense<0.000000e+00> : vector<128xf32>
    %24 = vector.multi_reduction <add>, %23, %cst_7 [0] : vector<8x128xf32> to vector<128xf32>
    %25 = vector.shape_cast %24 : vector<128xf32> to vector<1x128xf32>
    %c8 = arith.constant 8 : index
    %c0_8 = arith.constant 0 : index
    %26 = vector.load %arg2[%c8, %c0_8] : memref<64x128xbf16, #tpu.memory_space<vmem>>, vector<8x128xbf16>
    %27 = arith.extf %26 : vector<8x128xbf16> to vector<8x128xf32>
    %28 = arith.mulf %27, %20 : vector<8x128xf32>
    %cst_9 = arith.constant dense<0.000000e+00> : vector<128xf32>
    %29 = vector.multi_reduction <add>, %28, %cst_9 [0] : vector<8x128xf32> to vector<128xf32>
    %30 = vector.shape_cast %29 : vector<128xf32> to vector<1x128xf32>
    %c16 = arith.constant 16 : index
    %c0_10 = arith.constant 0 : index
    %31 = vector.load %arg2[%c16, %c0_10] : memref<64x128xbf16, #tpu.memory_space<vmem>>, vector<8x128xbf16>
    %32 = arith.extf %31 : vector<8x128xbf16> to vector<8x128xf32>
    %33 = arith.mulf %32, %20 : vector<8x128xf32>
    %cst_11 = arith.constant dense<0.000000e+00> : vector<128xf32>
    %34 = vector.multi_reduction <add>, %33, %cst_11 [0] : vector<8x128xf32> to vector<128xf32>
    %35 = vector.shape_cast %34 : vector<128xf32> to vector<1x128xf32>
    %c24 = arith.constant 24 : index
    %c0_12 = arith.constant 0 : index
    %36 = vector.load %arg2[%c24, %c0_12] : memref<64x128xbf16, #tpu.memory_space<vmem>>, vector<8x128xbf16>
    %37 = arith.extf %36 : vector<8x128xbf16> to vector<8x128xf32>
    %38 = arith.mulf %37, %20 : vector<8x128xf32>
    %cst_13 = arith.constant dense<0.000000e+00> : vector<128xf32>
    %39 = vector.multi_reduction <add>, %38, %cst_13 [0] : vector<8x128xf32> to vector<128xf32>
    %40 = vector.shape_cast %39 : vector<128xf32> to vector<1x128xf32>
    %c32 = arith.constant 32 : index
    %c0_14 = arith.constant 0 : index
    %41 = vector.load %arg2[%c32, %c0_14] : memref<64x128xbf16, #tpu.memory_space<vmem>>, vector<8x128xbf16>
    %42 = arith.extf %41 : vector<8x128xbf16> to vector<8x128xf32>
    %43 = arith.mulf %42, %20 : vector<8x128xf32>
    %cst_15 = arith.constant dense<0.000000e+00> : vector<128xf32>
    %44 = vector.multi_reduction <add>, %43, %cst_15 [0] : vector<8x128xf32> to vector<128xf32>
    %45 = vector.shape_cast %44 : vector<128xf32> to vector<1x128xf32>
    %c40 = arith.constant 40 : index
    %c0_16 = arith.constant 0 : index
    %46 = vector.load %arg2[%c40, %c0_16] : memref<64x128xbf16, #tpu.memory_space<vmem>>, vector<8x128xbf16>
    %47 = arith.extf %46 : vector<8x128xbf16> to vector<8x128xf32>
    %48 = arith.mulf %47, %20 : vector<8x128xf32>
    %cst_17 = arith.constant dense<0.000000e+00> : vector<128xf32>
    %49 = vector.multi_reduction <add>, %48, %cst_17 [0] : vector<8x128xf32> to vector<128xf32>
    %50 = vector.shape_cast %49 : vector<128xf32> to vector<1x128xf32>
    %c48 = arith.constant 48 : index
    %c0_18 = arith.constant 0 : index
    %51 = vector.load %arg2[%c48, %c0_18] : memref<64x128xbf16, #tpu.memory_space<vmem>>, vector<8x128xbf16>
    %52 = arith.extf %51 : vector<8x128xbf16> to vector<8x128xf32>
    %53 = arith.mulf %52, %20 : vector<8x128xf32>
    %cst_19 = arith.constant dense<0.000000e+00> : vector<128xf32>
    %54 = vector.multi_reduction <add>, %53, %cst_19 [0] : vector<8x128xf32> to vector<128xf32>
    %55 = vector.shape_cast %54 : vector<128xf32> to vector<1x128xf32>
    %c56 = arith.constant 56 : index
    %c0_20 = arith.constant 0 : index
    %56 = vector.load %arg2[%c56, %c0_20] : memref<64x128xbf16, #tpu.memory_space<vmem>>, vector<8x128xbf16>
    %57 = arith.extf %56 : vector<8x128xbf16> to vector<8x128xf32>
    %58 = arith.mulf %57, %20 : vector<8x128xf32>
    %cst_21 = arith.constant dense<0.000000e+00> : vector<128xf32>
    %59 = vector.multi_reduction <add>, %58, %cst_21 [0] : vector<8x128xf32> to vector<128xf32>
    %60 = vector.shape_cast %59 : vector<128xf32> to vector<1x128xf32>
    %61 = tpu.concatenate %25, %30, %35, %40, %45, %50, %55, %60 in 0 : vector<1x128xf32>, vector<1x128xf32>, vector<1x128xf32>, vector<1x128xf32>, vector<1x128xf32>, vector<1x128xf32>, vector<1x128xf32>, vector<1x128xf32> -> vector<8x128xf32>
    %c0_22 = arith.constant 0 : index
    %c0_23 = arith.constant 0 : index
    %62 = vector.load %arg3[%c0_22, %c0_23] : memref<8x128xf32, #tpu.memory_space<vmem>>, vector<8x128xf32>
    tpu.vector_store %arg3[%c0_22, %c0_23], %61 {strides = array<i32>} : memref<8x128xf32, #tpu.memory_space<vmem>>, vector<8x128xf32>,
    return
  }
  func.func @transform_0(%arg0: i32) -> (i32, i32) {
    %c0_i32 = arith.constant 0 : i32
    %c0_i32_0 = arith.constant 0 : i32
    %c0_i32_1 = arith.constant 0 : i32
    return %c0_i32, %c0_i32_0 : i32, i32
  }
  func.func @transform_1(%arg0: i32) -> (i32, i32) {
    %c0_i32 = arith.constant 0 : i32
    %c0_i32_0 = arith.constant 0 : i32
    %c0_i32_1 = arith.constant 0 : i32
    return %c0_i32, %c0_i32_0 : i32, i32
  }
  func.func @transform_2(%arg0: i32) -> (i32, i32) {
    %c0_i32 = arith.constant 0 : i32
    %c0_i32_0 = arith.constant 0 : i32
    %c0_i32_1 = arith.constant 0 : i32
    return %c0_i32, %c0_i32_0 : i32, i32
  }
}

module attributes {stable_mosaic.version = 11 : i64} {
  func.func @_gemm_epi_kernel(%arg0: i32, %arg1: memref<16x72xbf16, #tpu.memory_space<vmem>>, %arg2: memref<72x128xbf16, #tpu.memory_space<vmem>>, %arg3: memref<16x1xf32, #tpu.memory_space<vmem>>, %arg4: memref<4x1xf32, #tpu.memory_space<vmem>>, %arg5: memref<4x1xf32, #tpu.memory_space<vmem>>, %arg6: memref<16x128xbf16, #tpu.memory_space<vmem>>) attributes {dimension_semantics = [#tpu.dimension_semantics<parallel>], iteration_bounds = array<i64: 1>, scalar_prefetch = 0 : i64, scratch_operands = 0 : i64, tpu.core_type = #tpu.core_type<tc>, window_params = [{pipeline_mode = #tpu.pipeline_mode<synchronous>, transform_indices = @transform_0, window_bounds = array<i64: 16, 72>}, {transform_indices = @transform_1, window_bounds = array<i64: 72, 128>}, {pipeline_mode = #tpu.pipeline_mode<synchronous>, transform_indices = @transform_2, window_bounds = array<i64: 16, 1>}, {pipeline_mode = #tpu.pipeline_mode<synchronous>, transform_indices = @transform_3, window_bounds = array<i64: 4, 1>}, {pipeline_mode = #tpu.pipeline_mode<synchronous>, transform_indices = @transform_4, window_bounds = array<i64: 4, 1>}, {transform_indices = @transform_5, window_bounds = array<i64: 16, 128>}]} {
    %c0 = arith.constant 0 : index
    %c0_0 = arith.constant 0 : index
    %0 = vector.load %arg1[%c0, %c0_0] : memref<16x72xbf16, #tpu.memory_space<vmem>>, vector<16x72xbf16>
    %c0_1 = arith.constant 0 : index
    %c0_2 = arith.constant 0 : index
    %1 = vector.load %arg2[%c0_1, %c0_2] : memref<72x128xbf16, #tpu.memory_space<vmem>>, vector<72x128xbf16>
    %cst = arith.constant dense<0.000000e+00> : vector<16x128xf32>
    %2 = tpu.matmul %0, %1, %cst {dimension_numbers = #tpu.dot_dimension_numbers<[1], [0], [0], [1], [0, 0, 1, 1], [], []>} : vector<16x72xbf16>, vector<72x128xbf16>, vector<16x128xf32> -> vector<16x128xf32>
    %c0_3 = arith.constant 0 : index
    %c0_4 = arith.constant 0 : index
    %3 = vector.load %arg3[%c0_3, %c0_4] : memref<16x1xf32, #tpu.memory_space<vmem>>, vector<16x1xf32>
    %4 = vector.broadcast %3 : vector<16x1xf32> to vector<16x128xf32>
    %5 = arith.addf %2, %4 : vector<16x128xf32>
    %c0_5 = arith.constant 0 : index
    %c0_6 = arith.constant 0 : index
    %6 = vector.load %arg4[%c0_5, %c0_6] : memref<4x1xf32, #tpu.memory_space<vmem>>, vector<4x1xf32>
    %c0_7 = arith.constant 0 : index
    %c0_8 = arith.constant 0 : index
    %7 = vector.load %arg5[%c0_7, %c0_8] : memref<4x1xf32, #tpu.memory_space<vmem>>, vector<4x1xf32>
    %8 = arith.mulf %5, %5 : vector<16x128xf32>
    %9 = tpu.iota {dimensions = array<i32: 1>} : vector<1x128xi32>
    %cst_9 = arith.constant 0.000000e+00 : f32
    %10 = vector.broadcast %cst_9 : f32 to vector<16x128xf32>
    %cst_10 = arith.constant 0.000000e+00 : f32
    %11 = vector.broadcast %cst_10 : f32 to vector<16x128xf32>
    %c0_i32 = arith.constant 0 : i32
    %12 = vector.broadcast %c0_i32 : i32 to vector<1x128xi32>
    %13 = arith.cmpi sge, %9, %12 : vector<1x128xi32>
    %c64_i32 = arith.constant 64 : i32
    %14 = vector.broadcast %c64_i32 : i32 to vector<1x128xi32>
    %15 = arith.cmpi slt, %9, %14 : vector<1x128xi32>
    %16 = arith.andi %13, %15 : vector<1x128xi1>
    %17 = arith.extui %16 : vector<1x128xi1> to vector<1x128xi32>
    %18 = arith.sitofp %17 : vector<1x128xi32> to vector<1x128xf32>
    %19 = vector.broadcast %18 : vector<1x128xf32> to vector<16x128xf32>
    %20 = arith.mulf %5, %19 : vector<16x128xf32>
    %cst_11 = arith.constant dense<0.000000e+00> : vector<16xf32>
    %21 = vector.multi_reduction <add>, %20, %cst_11 [1] : vector<16x128xf32> to vector<16xf32>
    %22 = vector.shape_cast %21 : vector<16xf32> to vector<16x1xf32>
    %23 = vector.broadcast %18 : vector<1x128xf32> to vector<16x128xf32>
    %24 = arith.mulf %8, %23 : vector<16x128xf32>
    %cst_12 = arith.constant dense<0.000000e+00> : vector<16xf32>
    %25 = vector.multi_reduction <add>, %24, %cst_12 [1] : vector<16x128xf32> to vector<16xf32>
    %26 = vector.shape_cast %25 : vector<16xf32> to vector<16x1xf32>
    %27 = vector.extract_strided_slice %22 {offsets = [0, 0], sizes = [4, 1], strides = [1, 1]} : vector<16x1xf32> to vector<4x1xf32>
    %28 = vector.extract_strided_slice %26 {offsets = [0, 0], sizes = [4, 1], strides = [1, 1]} : vector<16x1xf32> to vector<4x1xf32>
    %29 = vector.extract_strided_slice %22 {offsets = [4, 0], sizes = [4, 1], strides = [1, 1]} : vector<16x1xf32> to vector<4x1xf32>
    %30 = arith.addf %27, %29 : vector<4x1xf32>
    %31 = vector.extract_strided_slice %26 {offsets = [4, 0], sizes = [4, 1], strides = [1, 1]} : vector<16x1xf32> to vector<4x1xf32>
    %32 = arith.addf %28, %31 : vector<4x1xf32>
    %33 = vector.extract_strided_slice %22 {offsets = [8, 0], sizes = [4, 1], strides = [1, 1]} : vector<16x1xf32> to vector<4x1xf32>
    %34 = arith.addf %30, %33 : vector<4x1xf32>
    %35 = vector.extract_strided_slice %26 {offsets = [8, 0], sizes = [4, 1], strides = [1, 1]} : vector<16x1xf32> to vector<4x1xf32>
    %36 = arith.addf %32, %35 : vector<4x1xf32>
    %37 = vector.extract_strided_slice %22 {offsets = [12, 0], sizes = [4, 1], strides = [1, 1]} : vector<16x1xf32> to vector<4x1xf32>
    %38 = arith.addf %34, %37 : vector<4x1xf32>
    %39 = vector.extract_strided_slice %26 {offsets = [12, 0], sizes = [4, 1], strides = [1, 1]} : vector<16x1xf32> to vector<4x1xf32>
    %40 = arith.addf %36, %39 : vector<4x1xf32>
    %cst_13 = arith.constant 3.906250e-03 : f32
    %41 = vector.broadcast %cst_13 : f32 to vector<4x1xf32>
    %42 = arith.mulf %38, %41 : vector<4x1xf32>
    %cst_14 = arith.constant 3.906250e-03 : f32
    %43 = vector.broadcast %cst_14 : f32 to vector<4x1xf32>
    %44 = arith.mulf %40, %43 : vector<4x1xf32>
    %45 = arith.mulf %42, %42 : vector<4x1xf32>
    %46 = arith.subf %44, %45 : vector<4x1xf32>
    %cst_15 = arith.constant 9.99999974E-6 : f32
    %47 = vector.broadcast %cst_15 : f32 to vector<4x1xf32>
    %48 = arith.addf %46, %47 : vector<4x1xf32>
    %49 = math.rsqrt %48 : vector<4x1xf32>
    %50 = arith.mulf %49, %6 : vector<4x1xf32>
    %51 = arith.mulf %42, %50 : vector<4x1xf32>
    %52 = arith.subf %7, %51 : vector<4x1xf32>
    %53 = tpu.concatenate %50, %50, %50, %50 in 0 : vector<4x1xf32>, vector<4x1xf32>, vector<4x1xf32>, vector<4x1xf32> -> vector<16x1xf32>
    %54 = tpu.concatenate %52, %52, %52, %52 in 0 : vector<4x1xf32>, vector<4x1xf32>, vector<4x1xf32>, vector<4x1xf32> -> vector<16x1xf32>
    %55 = vector.broadcast %53 : vector<16x1xf32> to vector<16x128xf32>
    %56 = vector.broadcast %18 : vector<1x128xf32> to vector<16x128xf32>
    %57 = arith.mulf %55, %56 : vector<16x128xf32>
    %58 = arith.addf %10, %57 : vector<16x128xf32>
    %59 = vector.broadcast %54 : vector<16x1xf32> to vector<16x128xf32>
    %60 = vector.broadcast %18 : vector<1x128xf32> to vector<16x128xf32>
    %61 = arith.mulf %59, %60 : vector<16x128xf32>
    %62 = arith.addf %11, %61 : vector<16x128xf32>
    %c64_i32_16 = arith.constant 64 : i32
    %63 = vector.broadcast %c64_i32_16 : i32 to vector<1x128xi32>
    %64 = arith.cmpi sge, %9, %63 : vector<1x128xi32>
    %c128_i32 = arith.constant 128 : i32
    %65 = vector.broadcast %c128_i32 : i32 to vector<1x128xi32>
    %66 = arith.cmpi slt, %9, %65 : vector<1x128xi32>
    %67 = arith.andi %64, %66 : vector<1x128xi1>
    %68 = arith.extui %67 : vector<1x128xi1> to vector<1x128xi32>
    %69 = arith.sitofp %68 : vector<1x128xi32> to vector<1x128xf32>
    %70 = vector.broadcast %69 : vector<1x128xf32> to vector<16x128xf32>
    %71 = arith.mulf %5, %70 : vector<16x128xf32>
    %cst_17 = arith.constant dense<0.000000e+00> : vector<16xf32>
    %72 = vector.multi_reduction <add>, %71, %cst_17 [1] : vector<16x128xf32> to vector<16xf32>
    %73 = vector.shape_cast %72 : vector<16xf32> to vector<16x1xf32>
    %74 = vector.broadcast %69 : vector<1x128xf32> to vector<16x128xf32>
    %75 = arith.mulf %8, %74 : vector<16x128xf32>
    %cst_18 = arith.constant dense<0.000000e+00> : vector<16xf32>
    %76 = vector.multi_reduction <add>, %75, %cst_18 [1] : vector<16x128xf32> to vector<16xf32>
    %77 = vector.shape_cast %76 : vector<16xf32> to vector<16x1xf32>
    %78 = vector.extract_strided_slice %73 {offsets = [0, 0], sizes = [4, 1], strides = [1, 1]} : vector<16x1xf32> to vector<4x1xf32>
    %79 = vector.extract_strided_slice %77 {offsets = [0, 0], sizes = [4, 1], strides = [1, 1]} : vector<16x1xf32> to vector<4x1xf32>
    %80 = vector.extract_strided_slice %73 {offsets = [4, 0], sizes = [4, 1], strides = [1, 1]} : vector<16x1xf32> to vector<4x1xf32>
    %81 = arith.addf %78, %80 : vector<4x1xf32>
    %82 = vector.extract_strided_slice %77 {offsets = [4, 0], sizes = [4, 1], strides = [1, 1]} : vector<16x1xf32> to vector<4x1xf32>
    %83 = arith.addf %79, %82 : vector<4x1xf32>
    %84 = vector.extract_strided_slice %73 {offsets = [8, 0], sizes = [4, 1], strides = [1, 1]} : vector<16x1xf32> to vector<4x1xf32>
    %85 = arith.addf %81, %84 : vector<4x1xf32>
    %86 = vector.extract_strided_slice %77 {offsets = [8, 0], sizes = [4, 1], strides = [1, 1]} : vector<16x1xf32> to vector<4x1xf32>
    %87 = arith.addf %83, %86 : vector<4x1xf32>
    %88 = vector.extract_strided_slice %73 {offsets = [12, 0], sizes = [4, 1], strides = [1, 1]} : vector<16x1xf32> to vector<4x1xf32>
    %89 = arith.addf %85, %88 : vector<4x1xf32>
    %90 = vector.extract_strided_slice %77 {offsets = [12, 0], sizes = [4, 1], strides = [1, 1]} : vector<16x1xf32> to vector<4x1xf32>
    %91 = arith.addf %87, %90 : vector<4x1xf32>
    %cst_19 = arith.constant 3.906250e-03 : f32
    %92 = vector.broadcast %cst_19 : f32 to vector<4x1xf32>
    %93 = arith.mulf %89, %92 : vector<4x1xf32>
    %cst_20 = arith.constant 3.906250e-03 : f32
    %94 = vector.broadcast %cst_20 : f32 to vector<4x1xf32>
    %95 = arith.mulf %91, %94 : vector<4x1xf32>
    %96 = arith.mulf %93, %93 : vector<4x1xf32>
    %97 = arith.subf %95, %96 : vector<4x1xf32>
    %cst_21 = arith.constant 9.99999974E-6 : f32
    %98 = vector.broadcast %cst_21 : f32 to vector<4x1xf32>
    %99 = arith.addf %97, %98 : vector<4x1xf32>
    %100 = math.rsqrt %99 : vector<4x1xf32>
    %101 = arith.mulf %100, %6 : vector<4x1xf32>
    %102 = arith.mulf %93, %101 : vector<4x1xf32>
    %103 = arith.subf %7, %102 : vector<4x1xf32>
    %104 = tpu.concatenate %101, %101, %101, %101 in 0 : vector<4x1xf32>, vector<4x1xf32>, vector<4x1xf32>, vector<4x1xf32> -> vector<16x1xf32>
    %105 = tpu.concatenate %103, %103, %103, %103 in 0 : vector<4x1xf32>, vector<4x1xf32>, vector<4x1xf32>, vector<4x1xf32> -> vector<16x1xf32>
    %106 = vector.broadcast %104 : vector<16x1xf32> to vector<16x128xf32>
    %107 = vector.broadcast %69 : vector<1x128xf32> to vector<16x128xf32>
    %108 = arith.mulf %106, %107 : vector<16x128xf32>
    %109 = arith.addf %58, %108 : vector<16x128xf32>
    %110 = vector.broadcast %105 : vector<16x1xf32> to vector<16x128xf32>
    %111 = vector.broadcast %69 : vector<1x128xf32> to vector<16x128xf32>
    %112 = arith.mulf %110, %111 : vector<16x128xf32>
    %113 = arith.addf %62, %112 : vector<16x128xf32>
    %114 = arith.mulf %5, %109 : vector<16x128xf32>
    %115 = arith.addf %114, %113 : vector<16x128xf32>
    %cst_22 = arith.constant 0.000000e+00 : f32
    %116 = vector.broadcast %cst_22 : f32 to vector<16x128xf32>
    %117 = arith.cmpf oge, %115, %116 : vector<16x128xf32>
    %cst_23 = arith.constant 2.000000e-01 : f32
    %118 = vector.broadcast %cst_23 : f32 to vector<16x128xf32>
    %119 = arith.mulf %118, %115 : vector<16x128xf32>
    %120 = arith.select %117, %115, %119 : vector<16x128xi1>, vector<16x128xf32>
    %121 = arith.truncf %120 : vector<16x128xf32> to vector<16x128xbf16>
    %c0_24 = arith.constant 0 : index
    %c0_25 = arith.constant 0 : index
    %122 = vector.load %arg6[%c0_24, %c0_25] : memref<16x128xbf16, #tpu.memory_space<vmem>>, vector<16x128xbf16>
    tpu.vector_store %arg6[%c0_24, %c0_25], %121 {strides = array<i32>} : memref<16x128xbf16, #tpu.memory_space<vmem>>, vector<16x128xbf16>,
    return
  }
  func.func @transform_0(%arg0: i32) -> (i32, i32) {
    %c0_i32 = arith.constant 0 : i32
    %c0_i32_0 = arith.constant 0 : i32
    %c0_i32_1 = arith.constant 0 : i32
    return %c0_i32, %c0_i32_0 : i32, i32
  }
  func.func @transform_1(%arg0: i32) -> (i32, i32) {
    %c0_i32 = arith.constant 0 : i32
    %c0_i32_0 = arith.constant 0 : i32
    return %c0_i32, %arg0 : i32, i32
  }
  func.func @transform_2(%arg0: i32) -> (i32, i32) {
    %c0_i32 = arith.constant 0 : i32
    %c0_i32_0 = arith.constant 0 : i32
    %c0_i32_1 = arith.constant 0 : i32
    return %c0_i32, %c0_i32_0 : i32, i32
  }
  func.func @transform_3(%arg0: i32) -> (i32, i32) {
    %c0_i32 = arith.constant 0 : i32
    %c0_i32_0 = arith.constant 0 : i32
    %c0_i32_1 = arith.constant 0 : i32
    return %c0_i32, %c0_i32_0 : i32, i32
  }
  func.func @transform_4(%arg0: i32) -> (i32, i32) {
    %c0_i32 = arith.constant 0 : i32
    %c0_i32_0 = arith.constant 0 : i32
    %c0_i32_1 = arith.constant 0 : i32
    return %c0_i32, %c0_i32_0 : i32, i32
  }
  func.func @transform_5(%arg0: i32) -> (i32, i32) {
    %c0_i32 = arith.constant 0 : i32
    %c0_i32_0 = arith.constant 0 : i32
    return %c0_i32, %arg0 : i32, i32
  }
}

module attributes {stable_mosaic.version = 11 : i64} {
  func.func @_gemm_epi_kernel(%arg0: i32, %arg1: memref<8x36xbf16, #tpu.memory_space<vmem>>, %arg2: memref<36x256xbf16, #tpu.memory_space<vmem>>, %arg3: memref<8x1xf32, #tpu.memory_space<vmem>>, %arg4: memref<2x1xf32, #tpu.memory_space<vmem>>, %arg5: memref<2x1xf32, #tpu.memory_space<vmem>>, %arg6: memref<8x256xbf16, #tpu.memory_space<vmem>>) attributes {dimension_semantics = [#tpu.dimension_semantics<parallel>], iteration_bounds = array<i64: 2>, scalar_prefetch = 0 : i64, scratch_operands = 0 : i64, tpu.core_type = #tpu.core_type<tc>, window_params = [{pipeline_mode = #tpu.pipeline_mode<synchronous>, transform_indices = @transform_0, window_bounds = array<i64: 8, 36>}, {transform_indices = @transform_1, window_bounds = array<i64: 36, 256>}, {pipeline_mode = #tpu.pipeline_mode<synchronous>, transform_indices = @transform_2, window_bounds = array<i64: 8, 1>}, {pipeline_mode = #tpu.pipeline_mode<synchronous>, transform_indices = @transform_3, window_bounds = array<i64: 2, 1>}, {pipeline_mode = #tpu.pipeline_mode<synchronous>, transform_indices = @transform_4, window_bounds = array<i64: 2, 1>}, {transform_indices = @transform_5, window_bounds = array<i64: 8, 256>}]} {
    %c0 = arith.constant 0 : index
    %c0_0 = arith.constant 0 : index
    %0 = vector.load %arg1[%c0, %c0_0] : memref<8x36xbf16, #tpu.memory_space<vmem>>, vector<8x36xbf16>
    %c0_1 = arith.constant 0 : index
    %c0_2 = arith.constant 0 : index
    %1 = vector.load %arg2[%c0_1, %c0_2] : memref<36x256xbf16, #tpu.memory_space<vmem>>, vector<36x256xbf16>
    %cst = arith.constant dense<0.000000e+00> : vector<8x256xf32>
    %2 = tpu.matmul %0, %1, %cst {dimension_numbers = #tpu.dot_dimension_numbers<[1], [0], [0], [1], [0, 0, 1, 1], [], []>} : vector<8x36xbf16>, vector<36x256xbf16>, vector<8x256xf32> -> vector<8x256xf32>
    %c0_3 = arith.constant 0 : index
    %c0_4 = arith.constant 0 : index
    %3 = vector.load %arg3[%c0_3, %c0_4] : memref<8x1xf32, #tpu.memory_space<vmem>>, vector<8x1xf32>
    %4 = vector.broadcast %3 : vector<8x1xf32> to vector<8x256xf32>
    %5 = arith.addf %2, %4 : vector<8x256xf32>
    %c0_5 = arith.constant 0 : index
    %c0_6 = arith.constant 0 : index
    %6 = vector.load %arg4[%c0_5, %c0_6] : memref<2x1xf32, #tpu.memory_space<vmem>>, vector<2x1xf32>
    %c0_7 = arith.constant 0 : index
    %c0_8 = arith.constant 0 : index
    %7 = vector.load %arg5[%c0_7, %c0_8] : memref<2x1xf32, #tpu.memory_space<vmem>>, vector<2x1xf32>
    %cst_9 = arith.constant dense<0.000000e+00> : vector<8xf32>
    %8 = vector.multi_reduction <add>, %5, %cst_9 [1] : vector<8x256xf32> to vector<8xf32>
    %9 = vector.shape_cast %8 : vector<8xf32> to vector<8x1xf32>
    %10 = arith.mulf %5, %5 : vector<8x256xf32>
    %cst_10 = arith.constant dense<0.000000e+00> : vector<8xf32>
    %11 = vector.multi_reduction <add>, %10, %cst_10 [1] : vector<8x256xf32> to vector<8xf32>
    %12 = vector.shape_cast %11 : vector<8xf32> to vector<8x1xf32>
    %13 = vector.extract_strided_slice %9 {offsets = [0, 0], sizes = [2, 1], strides = [1, 1]} : vector<8x1xf32> to vector<2x1xf32>
    %14 = vector.extract_strided_slice %12 {offsets = [0, 0], sizes = [2, 1], strides = [1, 1]} : vector<8x1xf32> to vector<2x1xf32>
    %15 = vector.extract_strided_slice %9 {offsets = [2, 0], sizes = [2, 1], strides = [1, 1]} : vector<8x1xf32> to vector<2x1xf32>
    %16 = arith.addf %13, %15 : vector<2x1xf32>
    %17 = vector.extract_strided_slice %12 {offsets = [2, 0], sizes = [2, 1], strides = [1, 1]} : vector<8x1xf32> to vector<2x1xf32>
    %18 = arith.addf %14, %17 : vector<2x1xf32>
    %19 = vector.extract_strided_slice %9 {offsets = [4, 0], sizes = [2, 1], strides = [1, 1]} : vector<8x1xf32> to vector<2x1xf32>
    %20 = arith.addf %16, %19 : vector<2x1xf32>
    %21 = vector.extract_strided_slice %12 {offsets = [4, 0], sizes = [2, 1], strides = [1, 1]} : vector<8x1xf32> to vector<2x1xf32>
    %22 = arith.addf %18, %21 : vector<2x1xf32>
    %23 = vector.extract_strided_slice %9 {offsets = [6, 0], sizes = [2, 1], strides = [1, 1]} : vector<8x1xf32> to vector<2x1xf32>
    %24 = arith.addf %20, %23 : vector<2x1xf32>
    %25 = vector.extract_strided_slice %12 {offsets = [6, 0], sizes = [2, 1], strides = [1, 1]} : vector<8x1xf32> to vector<2x1xf32>
    %26 = arith.addf %22, %25 : vector<2x1xf32>
    %cst_11 = arith.constant 9.765625E-4 : f32
    %27 = vector.broadcast %cst_11 : f32 to vector<2x1xf32>
    %28 = arith.mulf %24, %27 : vector<2x1xf32>
    %cst_12 = arith.constant 9.765625E-4 : f32
    %29 = vector.broadcast %cst_12 : f32 to vector<2x1xf32>
    %30 = arith.mulf %26, %29 : vector<2x1xf32>
    %31 = arith.mulf %28, %28 : vector<2x1xf32>
    %32 = arith.subf %30, %31 : vector<2x1xf32>
    %cst_13 = arith.constant 9.99999974E-6 : f32
    %33 = vector.broadcast %cst_13 : f32 to vector<2x1xf32>
    %34 = arith.addf %32, %33 : vector<2x1xf32>
    %35 = math.rsqrt %34 : vector<2x1xf32>
    %36 = arith.mulf %35, %6 : vector<2x1xf32>
    %37 = arith.mulf %28, %36 : vector<2x1xf32>
    %38 = arith.subf %7, %37 : vector<2x1xf32>
    %39 = tpu.concatenate %36, %36, %36, %36 in 0 : vector<2x1xf32>, vector<2x1xf32>, vector<2x1xf32>, vector<2x1xf32> -> vector<8x1xf32>
    %40 = tpu.concatenate %38, %38, %38, %38 in 0 : vector<2x1xf32>, vector<2x1xf32>, vector<2x1xf32>, vector<2x1xf32> -> vector<8x1xf32>
    %41 = vector.broadcast %39 : vector<8x1xf32> to vector<8x256xf32>
    %42 = arith.mulf %5, %41 : vector<8x256xf32>
    %43 = vector.broadcast %40 : vector<8x1xf32> to vector<8x256xf32>
    %44 = arith.addf %42, %43 : vector<8x256xf32>
    %cst_14 = arith.constant 0.000000e+00 : f32
    %45 = vector.broadcast %cst_14 : f32 to vector<8x256xf32>
    %46 = arith.cmpf oge, %44, %45 : vector<8x256xf32>
    %cst_15 = arith.constant 2.000000e-01 : f32
    %47 = vector.broadcast %cst_15 : f32 to vector<8x256xf32>
    %48 = arith.mulf %47, %44 : vector<8x256xf32>
    %49 = arith.select %46, %44, %48 : vector<8x256xi1>, vector<8x256xf32>
    %50 = arith.truncf %49 : vector<8x256xf32> to vector<8x256xbf16>
    %c0_16 = arith.constant 0 : index
    %c0_17 = arith.constant 0 : index
    %51 = vector.load %arg6[%c0_16, %c0_17] : memref<8x256xbf16, #tpu.memory_space<vmem>>, vector<8x256xbf16>
    tpu.vector_store %arg6[%c0_16, %c0_17], %50 {strides = array<i32>} : memref<8x256xbf16, #tpu.memory_space<vmem>>, vector<8x256xbf16>,
    return
  }
  func.func @transform_0(%arg0: i32) -> (i32, i32) {
    %c0_i32 = arith.constant 0 : i32
    %c0_i32_0 = arith.constant 0 : i32
    %c0_i32_1 = arith.constant 0 : i32
    return %c0_i32, %c0_i32_0 : i32, i32
  }
  func.func @transform_1(%arg0: i32) -> (i32, i32) {
    %c0_i32 = arith.constant 0 : i32
    %c0_i32_0 = arith.constant 0 : i32
    return %c0_i32, %arg0 : i32, i32
  }
  func.func @transform_2(%arg0: i32) -> (i32, i32) {
    %c0_i32 = arith.constant 0 : i32
    %c0_i32_0 = arith.constant 0 : i32
    %c0_i32_1 = arith.constant 0 : i32
    return %c0_i32, %c0_i32_0 : i32, i32
  }
  func.func @transform_3(%arg0: i32) -> (i32, i32) {
    %c0_i32 = arith.constant 0 : i32
    %c0_i32_0 = arith.constant 0 : i32
    %c0_i32_1 = arith.constant 0 : i32
    return %c0_i32, %c0_i32_0 : i32, i32
  }
  func.func @transform_4(%arg0: i32) -> (i32, i32) {
    %c0_i32 = arith.constant 0 : i32
    %c0_i32_0 = arith.constant 0 : i32
    %c0_i32_1 = arith.constant 0 : i32
    return %c0_i32, %c0_i32_0 : i32, i32
  }
  func.func @transform_5(%arg0: i32) -> (i32, i32) {
    %c0_i32 = arith.constant 0 : i32
    %c0_i32_0 = arith.constant 0 : i32
    return %c0_i32, %arg0 : i32, i32
  }
}

module attributes {stable_mosaic.version = 11 : i64} {
  func.func @_gemm_epi_kernel(%arg0: i32, %arg1: memref<8x18xbf16, #tpu.memory_space<vmem>>, %arg2: memref<18x1024xbf16, #tpu.memory_space<vmem>>, %arg3: memref<8x1xf32, #tpu.memory_space<vmem>>, %arg4: memref<8x1xf32, #tpu.memory_space<vmem>>, %arg5: memref<8x1xf32, #tpu.memory_space<vmem>>, %arg6: memref<8x1024xf32, #tpu.memory_space<vmem>>) attributes {dimension_semantics = [#tpu.dimension_semantics<parallel>], iteration_bounds = array<i64: 2>, scalar_prefetch = 0 : i64, scratch_operands = 0 : i64, tpu.core_type = #tpu.core_type<tc>, window_params = [{pipeline_mode = #tpu.pipeline_mode<synchronous>, transform_indices = @transform_0, window_bounds = array<i64: 8, 18>}, {transform_indices = @transform_1, window_bounds = array<i64: 18, 1024>}, {pipeline_mode = #tpu.pipeline_mode<synchronous>, transform_indices = @transform_2, window_bounds = array<i64: 8, 1>}, {pipeline_mode = #tpu.pipeline_mode<synchronous>, transform_indices = @transform_3, window_bounds = array<i64: 8, 1>}, {pipeline_mode = #tpu.pipeline_mode<synchronous>, transform_indices = @transform_4, window_bounds = array<i64: 8, 1>}, {transform_indices = @transform_5, window_bounds = array<i64: 8, 1024>}]} {
    %c0 = arith.constant 0 : index
    %c0_0 = arith.constant 0 : index
    %0 = vector.load %arg1[%c0, %c0_0] : memref<8x18xbf16, #tpu.memory_space<vmem>>, vector<8x18xbf16>
    %c0_1 = arith.constant 0 : index
    %c0_2 = arith.constant 0 : index
    %1 = vector.load %arg2[%c0_1, %c0_2] : memref<18x1024xbf16, #tpu.memory_space<vmem>>, vector<18x1024xbf16>
    %cst = arith.constant dense<0.000000e+00> : vector<8x1024xf32>
    %2 = tpu.matmul %0, %1, %cst {dimension_numbers = #tpu.dot_dimension_numbers<[1], [0], [0], [1], [0, 0, 1, 1], [], []>} : vector<8x18xbf16>, vector<18x1024xbf16>, vector<8x1024xf32> -> vector<8x1024xf32>
    %c0_3 = arith.constant 0 : index
    %c0_4 = arith.constant 0 : index
    %3 = vector.load %arg3[%c0_3, %c0_4] : memref<8x1xf32, #tpu.memory_space<vmem>>, vector<8x1xf32>
    %4 = vector.broadcast %3 : vector<8x1xf32> to vector<8x1024xf32>
    %5 = arith.addf %2, %4 : vector<8x1024xf32>
    %6 = math.tanh %5 : vector<8x1024xf32>
    %c0_5 = arith.constant 0 : index
    %c0_6 = arith.constant 0 : index
    %7 = vector.load %arg6[%c0_5, %c0_6] : memref<8x1024xf32, #tpu.memory_space<vmem>>, vector<8x1024xf32>
    tpu.vector_store %arg6[%c0_5, %c0_6], %6 {strides = array<i32>} : memref<8x1024xf32, #tpu.memory_space<vmem>>, vector<8x1024xf32>,
    return
  }
  func.func @transform_0(%arg0: i32) -> (i32, i32) {
    %c0_i32 = arith.constant 0 : i32
    %c0_i32_0 = arith.constant 0 : i32
    %c0_i32_1 = arith.constant 0 : i32
    return %c0_i32, %c0_i32_0 : i32, i32
  }
  func.func @transform_1(%arg0: i32) -> (i32, i32) {
    %c0_i32 = arith.constant 0 : i32
    %c0_i32_0 = arith.constant 0 : i32
    return %c0_i32, %arg0 : i32, i32
  }
  func.func @transform_2(%arg0: i32) -> (i32, i32) {
    %c0_i32 = arith.constant 0 : i32
    %c0_i32_0 = arith.constant 0 : i32
    %c0_i32_1 = arith.constant 0 : i32
    return %c0_i32, %c0_i32_0 : i32, i32
  }
  func.func @transform_3(%arg0: i32) -> (i32, i32) {
    %c0_i32 = arith.constant 0 : i32
    %c0_i32_0 = arith.constant 0 : i32
    %c0_i32_1 = arith.constant 0 : i32
    return %c0_i32, %c0_i32_0 : i32, i32
  }
  func.func @transform_4(%arg0: i32) -> (i32, i32) {
    %c0_i32 = arith.constant 0 : i32
    %c0_i32_0 = arith.constant 0 : i32
    %c0_i32_1 = arith.constant 0 : i32
    return %c0_i32, %c0_i32_0 : i32, i32
  }
  func.func @transform_5(%arg0: i32) -> (i32, i32) {
    %c0_i32 = arith.constant 0 : i32
    %c0_i32_0 = arith.constant 0 : i32
    return %c0_i32, %arg0 : i32, i32
  }
}

module attributes {stable_mosaic.version = 11 : i64} {
  func.func @_normal_mask_kernel(%arg0: i32, %arg1: memref<32x1024xf32, #tpu.memory_space<vmem>>, %arg2: memref<8x1024xf32, #tpu.memory_space<vmem>>, %arg3: memref<1x1024xf32, #tpu.memory_space<vmem>>) attributes {dimension_semantics = [#tpu.dimension_semantics<parallel>], iteration_bounds = array<i64: 2>, scalar_prefetch = 0 : i64, scratch_operands = 0 : i64, tpu.core_type = #tpu.core_type<tc>, window_params = [{transform_indices = @transform_0, window_bounds = array<i64: 32, 1024>}, {transform_indices = @transform_1, window_bounds = array<i64: 8, 1024>}, {transform_indices = @transform_2, window_bounds = array<i64: 1, 1024>}]} {
    %c0 = arith.constant 0 : index
    %c0_0 = arith.constant 0 : index
    %0 = vector.load %arg1[%c0, %c0_0] : memref<32x1024xf32, #tpu.memory_space<vmem>>, vector<32x1024xf32>
    %cst = arith.constant 0.999998986 : f32
    %1 = vector.broadcast %cst : f32 to vector<32x1024xf32>
    %2 = arith.minimumf %0, %1 : vector<32x1024xf32>
    %cst_1 = arith.constant 1.000000e+00 : f32
    %3 = vector.broadcast %cst_1 : f32 to vector<32x1024xf32>
    %4 = arith.subf %3, %2 : vector<32x1024xf32>
    %5 = math.log %4 : vector<32x1024xf32>
    %cst_2 = arith.constant 0.000000e+00 : f32
    %6 = vector.broadcast %cst_2 : f32 to vector<1x1024xf32>
    %7 = vector.extract_strided_slice %5 {offsets = [0, 0], sizes = [31, 1024], strides = [1, 1]} : vector<32x1024xf32> to vector<31x1024xf32>
    %8 = tpu.concatenate %6, %7 in 0 : vector<1x1024xf32>, vector<31x1024xf32> -> vector<32x1024xf32>
    %9 = arith.addf %5, %8 : vector<32x1024xf32>
    %cst_3 = arith.constant 0.000000e+00 : f32
    %10 = vector.broadcast %cst_3 : f32 to vector<2x1024xf32>
    %11 = vector.extract_strided_slice %9 {offsets = [0, 0], sizes = [30, 1024], strides = [1, 1]} : vector<32x1024xf32> to vector<30x1024xf32>
    %12 = tpu.concatenate %10, %11 in 0 : vector<2x1024xf32>, vector<30x1024xf32> -> vector<32x1024xf32>
    %13 = arith.addf %9, %12 : vector<32x1024xf32>
    %cst_4 = arith.constant 0.000000e+00 : f32
    %14 = vector.broadcast %cst_4 : f32 to vector<4x1024xf32>
    %15 = vector.extract_strided_slice %13 {offsets = [0, 0], sizes = [28, 1024], strides = [1, 1]} : vector<32x1024xf32> to vector<28x1024xf32>
    %16 = tpu.concatenate %14, %15 in 0 : vector<4x1024xf32>, vector<28x1024xf32> -> vector<32x1024xf32>
    %17 = arith.addf %13, %16 : vector<32x1024xf32>
    %cst_5 = arith.constant 0.000000e+00 : f32
    %18 = vector.broadcast %cst_5 : f32 to vector<8x1024xf32>
    %19 = vector.extract_strided_slice %17 {offsets = [0, 0], sizes = [24, 1024], strides = [1, 1]} : vector<32x1024xf32> to vector<24x1024xf32>
    %20 = tpu.concatenate %18, %19 in 0 : vector<8x1024xf32>, vector<24x1024xf32> -> vector<32x1024xf32>
    %21 = arith.addf %17, %20 : vector<32x1024xf32>
    %cst_6 = arith.constant 0.000000e+00 : f32
    %22 = vector.broadcast %cst_6 : f32 to vector<16x1024xf32>
    %23 = vector.extract_strided_slice %21 {offsets = [0, 0], sizes = [16, 1024], strides = [1, 1]} : vector<32x1024xf32> to vector<16x1024xf32>
    %24 = tpu.concatenate %22, %23 in 0 : vector<16x1024xf32>, vector<16x1024xf32> -> vector<32x1024xf32>
    %25 = arith.addf %21, %24 : vector<32x1024xf32>
    %26 = arith.subf %25, %5 : vector<32x1024xf32>
    %27 = math.exp %26 : vector<32x1024xf32>
    %28 = arith.mulf %0, %27 : vector<32x1024xf32>
    %cst_7 = arith.constant dense<0.000000e+00> : vector<1024xf32>
    %29 = vector.multi_reduction <add>, %28, %cst_7 [0] : vector<32x1024xf32> to vector<1024xf32>
    %30 = vector.shape_cast %29 : vector<1024xf32> to vector<1x1024xf32>
    %c0_8 = arith.constant 0 : index
    %c0_9 = arith.constant 0 : index
    %31 = vector.load %arg3[%c0_8, %c0_9] : memref<1x1024xf32, #tpu.memory_space<vmem>>, vector<1x1024xf32>
    tpu.vector_store %arg3[%c0_8, %c0_9], %30 {strides = array<i32>} : memref<1x1024xf32, #tpu.memory_space<vmem>>, vector<1x1024xf32>,
    %32 = tpu.iota {dimensions = array<i32: 0>} : vector<32x1024xi32>
    %33 = tpu.iota {dimensions = array<i32: 1>} : vector<32x1024xi32>
    %c31_i32 = arith.constant 31 : i32
    %34 = vector.broadcast %c31_i32 : i32 to vector<32x1024xi32>
    %35 = arith.andi %33, %34 : vector<32x1024xi32>
    %c1023_i32 = arith.constant 1023 : i32
    %36 = vector.broadcast %c1023_i32 : i32 to vector<32x1024xi32>
    %37 = arith.andi %33, %36 : vector<32x1024xi32>
    %c0_i32 = arith.constant 0 : i32
    %38 = vector.broadcast %c0_i32 : i32 to vector<32x1024xi32>
    %39 = arith.cmpi eq, %32, %38 : vector<32x1024xi32>
    %c31_i32_10 = arith.constant 31 : i32
    %40 = vector.broadcast %c31_i32_10 : i32 to vector<32x1024xi32>
    %41 = arith.cmpi eq, %32, %40 : vector<32x1024xi32>
    %42 = vector.extract_strided_slice %0 {offsets = [1, 0], sizes = [31, 1024], strides = [1, 1]} : vector<32x1024xf32> to vector<31x1024xf32>
    %43 = vector.extract_strided_slice %0 {offsets = [31, 0], sizes = [1, 1024], strides = [1, 1]} : vector<32x1024xf32> to vector<1x1024xf32>
    %44 = tpu.concatenate %42, %43 in 0 : vector<31x1024xf32>, vector<1x1024xf32> -> vector<32x1024xf32>
    %45 = vector.extract_strided_slice %0 {offsets = [0, 0], sizes = [1, 1024], strides = [1, 1]} : vector<32x1024xf32> to vector<1x1024xf32>
    %46 = vector.extract_strided_slice %0 {offsets = [0, 0], sizes = [31, 1024], strides = [1, 1]} : vector<32x1024xf32> to vector<31x1024xf32>
    %47 = tpu.concatenate %45, %46 in 0 : vector<1x1024xf32>, vector<31x1024xf32> -> vector<32x1024xf32>
    %48 = arith.subf %44, %0 : vector<32x1024xf32>
    %49 = arith.subf %0, %47 : vector<32x1024xf32>
    %50 = arith.subf %44, %47 : vector<32x1024xf32>
    %cst_11 = arith.constant 5.000000e-01 : f32
    %51 = vector.broadcast %cst_11 : f32 to vector<32x1024xf32>
    %52 = arith.mulf %51, %50 : vector<32x1024xf32>
    %53 = arith.select %41, %49, %52 : vector<32x1024xi1>, vector<32x1024xf32>
    %54 = arith.select %39, %48, %53 : vector<32x1024xi1>, vector<32x1024xf32>
    %c32_i32 = arith.constant 32 : i32
    %55 = vector.broadcast %c32_i32 : i32 to vector<32x1024xi32>
    %56 = arith.cmpi slt, %37, %55 : vector<32x1024xi32>
    %c992_i32 = arith.constant 992 : i32
    %57 = vector.broadcast %c992_i32 : i32 to vector<32x1024xi32>
    %58 = arith.cmpi sge, %37, %57 : vector<32x1024xi32>
    %59 = vector.extract_strided_slice %0 {offsets = [0, 32], sizes = [32, 992], strides = [1, 1]} : vector<32x1024xf32> to vector<32x992xf32>
    %60 = vector.extract_strided_slice %0 {offsets = [0, 992], sizes = [32, 32], strides = [1, 1]} : vector<32x1024xf32> to vector<32x32xf32>
    %61 = tpu.concatenate %59, %60 in 1 : vector<32x992xf32>, vector<32x32xf32> -> vector<32x1024xf32>
    %62 = vector.extract_strided_slice %0 {offsets = [0, 0], sizes = [32, 32], strides = [1, 1]} : vector<32x1024xf32> to vector<32x32xf32>
    %63 = vector.extract_strided_slice %0 {offsets = [0, 0], sizes = [32, 992], strides = [1, 1]} : vector<32x1024xf32> to vector<32x992xf32>
    %64 = tpu.concatenate %62, %63 in 1 : vector<32x32xf32>, vector<32x992xf32> -> vector<32x1024xf32>
    %65 = arith.subf %61, %0 : vector<32x1024xf32>
    %66 = arith.subf %0, %64 : vector<32x1024xf32>
    %67 = arith.subf %61, %64 : vector<32x1024xf32>
    %cst_12 = arith.constant 5.000000e-01 : f32
    %68 = vector.broadcast %cst_12 : f32 to vector<32x1024xf32>
    %69 = arith.mulf %68, %67 : vector<32x1024xf32>
    %70 = arith.select %58, %66, %69 : vector<32x1024xi1>, vector<32x1024xf32>
    %71 = arith.select %56, %65, %70 : vector<32x1024xi1>, vector<32x1024xf32>
    %c0_i32_13 = arith.constant 0 : i32
    %72 = vector.broadcast %c0_i32_13 : i32 to vector<32x1024xi32>
    %73 = arith.cmpi eq, %35, %72 : vector<32x1024xi32>
    %c31_i32_14 = arith.constant 31 : i32
    %74 = vector.broadcast %c31_i32_14 : i32 to vector<32x1024xi32>
    %75 = arith.cmpi eq, %35, %74 : vector<32x1024xi32>
    %76 = vector.extract_strided_slice %0 {offsets = [0, 1], sizes = [32, 1023], strides = [1, 1]} : vector<32x1024xf32> to vector<32x1023xf32>
    %77 = vector.extract_strided_slice %0 {offsets = [0, 1023], sizes = [32, 1], strides = [1, 1]} : vector<32x1024xf32> to vector<32x1xf32>
    %78 = tpu.concatenate %76, %77 in 1 : vector<32x1023xf32>, vector<32x1xf32> -> vector<32x1024xf32>
    %79 = vector.extract_strided_slice %0 {offsets = [0, 0], sizes = [32, 1], strides = [1, 1]} : vector<32x1024xf32> to vector<32x1xf32>
    %80 = vector.extract_strided_slice %0 {offsets = [0, 0], sizes = [32, 1023], strides = [1, 1]} : vector<32x1024xf32> to vector<32x1023xf32>
    %81 = tpu.concatenate %79, %80 in 1 : vector<32x1xf32>, vector<32x1023xf32> -> vector<32x1024xf32>
    %82 = arith.subf %78, %0 : vector<32x1024xf32>
    %83 = arith.subf %0, %81 : vector<32x1024xf32>
    %84 = arith.subf %78, %81 : vector<32x1024xf32>
    %cst_15 = arith.constant 5.000000e-01 : f32
    %85 = vector.broadcast %cst_15 : f32 to vector<32x1024xf32>
    %86 = arith.mulf %85, %84 : vector<32x1024xf32>
    %87 = arith.select %75, %83, %86 : vector<32x1024xi1>, vector<32x1024xf32>
    %88 = arith.select %73, %82, %87 : vector<32x1024xi1>, vector<32x1024xf32>
    %cst_16 = arith.constant 0.000000e+00 : f32
    %89 = vector.broadcast %cst_16 : f32 to vector<32x1024xf32>
    %90 = arith.subf %89, %54 : vector<32x1024xf32>
    %91 = arith.mulf %90, %28 : vector<32x1024xf32>
    %cst_17 = arith.constant dense<0.000000e+00> : vector<1024xf32>
    %92 = vector.multi_reduction <add>, %91, %cst_17 [0] : vector<32x1024xf32> to vector<1024xf32>
    %93 = vector.shape_cast %92 : vector<1024xf32> to vector<1x1024xf32>
    %cst_18 = arith.constant 0.000000e+00 : f32
    %94 = vector.broadcast %cst_18 : f32 to vector<32x1024xf32>
    %95 = arith.subf %94, %71 : vector<32x1024xf32>
    %96 = arith.mulf %95, %28 : vector<32x1024xf32>
    %cst_19 = arith.constant dense<0.000000e+00> : vector<1024xf32>
    %97 = vector.multi_reduction <add>, %96, %cst_19 [0] : vector<32x1024xf32> to vector<1024xf32>
    %98 = vector.shape_cast %97 : vector<1024xf32> to vector<1x1024xf32>
    %cst_20 = arith.constant 0.000000e+00 : f32
    %99 = vector.broadcast %cst_20 : f32 to vector<32x1024xf32>
    %100 = arith.subf %99, %88 : vector<32x1024xf32>
    %101 = arith.mulf %100, %28 : vector<32x1024xf32>
    %cst_21 = arith.constant dense<0.000000e+00> : vector<1024xf32>
    %102 = vector.multi_reduction <add>, %101, %cst_21 [0] : vector<32x1024xf32> to vector<1024xf32>
    %103 = vector.shape_cast %102 : vector<1024xf32> to vector<1x1024xf32>
    %cst_22 = arith.constant 0.000000e+00 : f32
    %104 = vector.broadcast %cst_22 : f32 to vector<5x1024xf32>
    %105 = tpu.concatenate %93, %98, %103, %104 in 0 : vector<1x1024xf32>, vector<1x1024xf32>, vector<1x1024xf32>, vector<5x1024xf32> -> vector<8x1024xf32>
    %c0_23 = arith.constant 0 : index
    %c0_24 = arith.constant 0 : index
    %106 = vector.load %arg2[%c0_23, %c0_24] : memref<8x1024xf32, #tpu.memory_space<vmem>>, vector<8x1024xf32>
    tpu.vector_store %arg2[%c0_23, %c0_24], %105 {strides = array<i32>} : memref<8x1024xf32, #tpu.memory_space<vmem>>, vector<8x1024xf32>,
    return
  }
  func.func @transform_0(%arg0: i32) -> (i32, i32) {
    %c0_i32 = arith.constant 0 : i32
    %c0_i32_0 = arith.constant 0 : i32
    return %c0_i32, %arg0 : i32, i32
  }
  func.func @transform_1(%arg0: i32) -> (i32, i32) {
    %c0_i32 = arith.constant 0 : i32
    %c0_i32_0 = arith.constant 0 : i32
    return %c0_i32, %arg0 : i32, i32
  }
  func.func @transform_2(%arg0: i32) -> (i32, i32) {
    %c0_i32 = arith.constant 0 : i32
    %c0_i32_0 = arith.constant 0 : i32
    return %c0_i32, %arg0 : i32, i32
  }
}

</mosaic_0001>

<bundles_post_ra>
// kernel: sim_struct_render_forward.7
= control target key start
LH: loop header
LB: loop body
LE: loop exit
PB: predicated region body
PF: predicated region fallthrough
CT: control target
= control target key end

     0   :  { %s1173_s18 = smov 0   ;;  %s1175_s19 = smov 0   ;;  %s1411_s0 = inlined_call_operand.vmem [shape: bf16[8,216], index: 0, kind: input, shape index: {}]   ;;  %s1412_s1 = inlined_call_operand.vmem [shape: bf16[216,1024], index: 1, kind: input, shape index: {}]   ;;  %s1413_s2 = inlined_call_operand.vmem [shape: f32[8,1], index: 2, kind: input, shape index: {}]   ;;  %s1414_s3 = inlined_call_operand.vmem [shape: f32[8,1], index: 3, kind: input, shape index: {}]   ;;  %s1415_s4 = inlined_call_operand.vmem [shape: f32[8,1], index: 4, kind: input, shape index: {}]   ;;  %s1416_s5 = inlined_call_operand.vmem [shape: bf16[8,1024], index: 5, kind: output, shape index: {}]  }
   0x1   :  { %s1177_s20 = smov 0  }
   0x2 LB: > { %s925_s21 = sadd.s32 4294967295, %s1140_s20   ;;  %s1190_s22 = sadd.s32 1, %s1140_s20   ;;  %s1140_s20 = sphi %s1177_s20, %s1419_s20   ;;  %s1136_s19 = sphi %s1175_s19, %s1418_s19   ;;  %s1132_s18 = sphi %s1173_s18, %s1417_s18  }
   0x3   : > { %s40_s23 = ssub.s32 %s1140_s20, %s1190_s22  ;;  %s43_s24 = sadd.s32 1, %s1136_s19 }
   0x4   : > { %p41_p0 = scmp.eq.s32.totalorder %s40_s23, 0  ;;  %p50_p1 = scmp.ne.s32.totalorder %s1136_s19, %s1132_s18 }
   0x5   : > { %p51_p2 = scmp.eq.s32.totalorder %s1140_s20, 0  ;;  %p928_p4 = scmp.ge.s32.totalorder %s1140_s20, 2 }
   0x6   : > { %s1199_s25 = scalar_select %p41_p0, %s1136_s19, %s43_s24  }
   0x7   : > { %p52_p3 = por %p51_p2, %p50_p1  ;;  %177 = sbr.rel (%p928_p4) target bundleno = 45 (0x2d), region = 32 }
   0xe   : > { %180 = sbr.rel (!%p52_p3) target bundleno = 45 (0x2d), region = 36  ;;  %s182_s26 = sand.u32 (%p52_p3), 1, %s1136_s19  }
   0xf   : > { %s1000_s27 = sshll.u32 (%p52_p3), %s1140_s20, 4  ;;  %s1003_s28 = smul.u32 (%p52_p3), 432, %s182_s26 }
  0x10   : > { %s1207_s6 = scalar_lea.vmem (%p52_p3), %s1412_s1, %s1000_s27 }
  0x11   : > { %v200_v0 = vld [vmem:[%s1207_s6] sm:$0xff] (%p52_p3)  ;;  %v202_v1 = vld [vmem:[%s1207_s6 + $0x8] sm:$0xff] (%p52_p3)  ;;  %s1215_s7 = scalar_lea.vmem (%p52_p3), [#allocation2], %s1003_s28 }
  0x12   : > { %v204_v2 = vld [vmem:[%s1207_s6 + $0x20] sm:$0xff] (%p52_p3)  ;;  %v206_v3 = vld [vmem:[%s1207_s6 + $0x28] sm:$0xff] (%p52_p3)  ;;  %201 = vst [vmem:[%s1215_s7] sm:$0xff] (%p52_p3), %v200_v0  ;;  %203 = vst [vmem:[%s1215_s7 + $0x8] sm:$0xff] (%p52_p3), %v202_v1 }
  0x13   : > { %v208_v4 = vld [vmem:[%s1207_s6 + $0x40] sm:$0xff] (%p52_p3)  ;;  %v210_v5 = vld [vmem:[%s1207_s6 + $0x48] sm:$0xff] (%p52_p3)  ;;  %205 = vst [vmem:[%s1215_s7 + $0x10] sm:$0xff] (%p52_p3), %v204_v2  ;;  %207 = vst [vmem:[%s1215_s7 + $0x18] sm:$0xff] (%p52_p3), %v206_v3 }
  0x14   : > { %209 = vst [vmem:[%s1215_s7 + $0x20] sm:$0xff] (%p52_p3), %v208_v4  ;;  %211 = vst [vmem:[%s1215_s7 + $0x28] sm:$0xff] (%p52_p3), %v210_v5  ;;  %v212_v6 = vld [vmem:[%s1207_s6 + $0x60] sm:$0xff] (%p52_p3)  ;;  %v214_v7 = vld [vmem:[%s1207_s6 + $0x68] sm:$0xff] (%p52_p3) }
  0x15   : > { %v216_v8 = vld [vmem:[%s1207_s6 + $0x80] sm:$0xff]  ;;  %213 = vst [vmem:[%s1215_s7 + $0x30] sm:$0xff] %v212_v6  ;;  %215 = vst [vmem:[%s1215_s7 + $0x38] sm:$0xff] %v214_v7  ;;  %v218_v9 = vld [vmem:[%s1207_s6 + $0x88] sm:$0xff] }
  0x16   : > { %217 = vst [vmem:[%s1215_s7 + $0x40] sm:$0xff] %v216_v8  ;;  %v220_v10 = vld [vmem:[%s1207_s6 + $0xa0] sm:$0xff]  ;;  %v222_v11 = vld [vmem:[%s1207_s6 + $0xa8] sm:$0xff]  ;;  %219 = vst [vmem:[%s1215_s7 + $0x48] sm:$0xff] %v218_v9 }
  0x17   : > { %221 = vst [vmem:[%s1215_s7 + $0x50] sm:$0xff] %v220_v10  ;;  %223 = vst [vmem:[%s1215_s7 + $0x58] sm:$0xff] %v222_v11  ;;  %v224_v12 = vld [vmem:[%s1207_s6 + $0xc0] sm:$0xff]  ;;  %v226_v13 = vld [vmem:[%s1207_s6 + $0xc8] sm:$0xff] }
  0x18   : > { %v228_v14 = vld [vmem:[%s1207_s6 + $0xe0] sm:$0xff]  ;;  %225 = vst [vmem:[%s1215_s7 + $0x60] sm:$0xff] %v224_v12  ;;  %227 = vst [vmem:[%s1215_s7 + $0x68] sm:$0xff] %v226_v13  ;;  %v230_v15 = vld [vmem:[%s1207_s6 + $0xe8] sm:$0xff] }
  0x19   : > { %229 = vst [vmem:[%s1215_s7 + $0x70] sm:$0xff] %v228_v14  ;;  %v232_v16 = vld [vmem:[%s1207_s6 + $0x100] sm:$0xff]  ;;  %v234_v17 = vld [vmem:[%s1207_s6 + $0x108] sm:$0xff]  ;;  %231 = vst [vmem:[%s1215_s7 + $0x78] sm:$0xff] %v230_v15 }
  0x1a   : > { %233 = vst [vmem:[%s1215_s7 + $0x80] sm:$0xff] %v232_v16  ;;  %235 = vst [vmem:[%s1215_s7 + $0x88] sm:$0xff] %v234_v17  ;;  %v236_v18 = vld [vmem:[%s1207_s6 + $0x120] sm:$0xff]  ;;  %v238_v19 = vld [vmem:[%s1207_s6 + $0x128] sm:$0xff] }
  0x1b   : > { %v240_v20 = vld [vmem:[%s1207_s6 + $0x140] sm:$0xff]  ;;  %237 = vst [vmem:[%s1215_s7 + $0x90] sm:$0xff] %v236_v18  ;;  %239 = vst [vmem:[%s1215_s7 + $0x98] sm:$0xff] %v238_v19  ;;  %v242_v21 = vld [vmem:[%s1207_s6 + $0x148] sm:$0xff] }
  0x1c   : > { %241 = vst [vmem:[%s1215_s7 + $0xa0] sm:$0xff] %v240_v20  ;;  %v244_v22 = vld [vmem:[%s1207_s6 + $0x160] sm:$0xff]  ;;  %v246_v23 = vld [vmem:[%s1207_s6 + $0x168] sm:$0xff]  ;;  %243 = vst [vmem:[%s1215_s7 + $0xa8] sm:$0xff] %v242_v21 }
  0x1d   : > { %245 = vst [vmem:[%s1215_s7 + $0xb0] sm:$0xff] %v244_v22  ;;  %247 = vst [vmem:[%s1215_s7 + $0xb8] sm:$0xff] %v246_v23  ;;  %v248_v24 = vld [vmem:[%s1207_s6 + $0x180] sm:$0xff]  ;;  %v250_v25 = vld [vmem:[%s1207_s6 + $0x188] sm:$0xff] }
  0x1e   : > { %v252_v26 = vld [vmem:[%s1207_s6 + $0x1a0] sm:$0xff]  ;;  %249 = vst [vmem:[%s1215_s7 + $0xc0] sm:$0xff] %v248_v24  ;;  %251 = vst [vmem:[%s1215_s7 + $0xc8] sm:$0xff] %v250_v25  ;;  %v254_v27 = vld [vmem:[%s1207_s6 + $0x1a8] sm:$0xff] }
  0x1f   : > { %253 = vst [vmem:[%s1215_s7 + $0xd0] sm:$0xff] %v252_v26  ;;  %v256_v28 = vld [vmem:[%s1207_s6 + $0x1c0] sm:$0xff]  ;;  %v258_v29 = vld [vmem:[%s1207_s6 + $0x1c8] sm:$0xff]  ;;  %255 = vst [vmem:[%s1215_s7 + $0xd8] sm:$0xff] %v254_v27 }
  0x20   : > { %257 = vst [vmem:[%s1215_s7 + $0xe0] sm:$0xff] %v256_v28  ;;  %259 = vst [vmem:[%s1215_s7 + $0xe8] sm:$0xff] %v258_v29  ;;  %v260_v30 = vld [vmem:[%s1207_s6 + $0x1e0] sm:$0xff]  ;;  %v262_v31 = vld [vmem:[%s1207_s6 + $0x1e8] sm:$0xff] }
  0x21   : > { %v264_v32 = vld [vmem:[%s1207_s6 + $0x200] sm:$0xff]  ;;  %261 = vst [vmem:[%s1215_s7 + $0xf0] sm:$0xff] %v260_v30  ;;  %263 = vst [vmem:[%s1215_s7 + $0xf8] sm:$0xff] %v262_v31  ;;  %v266_v33 = vld [vmem:[%s1207_s6 + $0x208] sm:$0xff] }
  0x22   : > { %265 = vst [vmem:[%s1215_s7 + $0x100] sm:$0xff] %v264_v32  ;;  %v268_v34 = vld [vmem:[%s1207_s6 + $0x220] sm:$0xff]  ;;  %v270_v35 = vld [vmem:[%s1207_s6 + $0x228] sm:$0xff]  ;;  %267 = vst [vmem:[%s1215_s7 + $0x108] sm:$0xff] %v266_v33 }
  0x23   : > { %269 = vst [vmem:[%s1215_s7 + $0x110] sm:$0xff] %v268_v34  ;;  %271 = vst [vmem:[%s1215_s7 + $0x118] sm:$0xff] %v270_v35  ;;  %v272_v36 = vld [vmem:[%s1207_s6 + $0x240] sm:$0xff]  ;;  %v274_v37 = vld [vmem:[%s1207_s6 + $0x248] sm:$0xff] }
  0x24   : > { %v276_v38 = vld [vmem:[%s1207_s6 + $0x260] sm:$0xff]  ;;  %273 = vst [vmem:[%s1215_s7 + $0x120] sm:$0xff] %v272_v36  ;;  %275 = vst [vmem:[%s1215_s7 + $0x128] sm:$0xff] %v274_v37  ;;  %v278_v39 = vld [vmem:[%s1207_s6 + $0x268] sm:$0xff] }
  0x25   : > { %277 = vst [vmem:[%s1215_s7 + $0x130] sm:$0xff] %v276_v38  ;;  %v280_v40 = vld [vmem:[%s1207_s6 + $0x280] sm:$0xff]  ;;  %v282_v41 = vld [vmem:[%s1207_s6 + $0x288] sm:$0xff]  ;;  %279 = vst [vmem:[%s1215_s7 + $0x138] sm:$0xff] %v278_v39 }
  0x26   : > { %281 = vst [vmem:[%s1215_s7 + $0x140] sm:$0xff] %v280_v40  ;;  %283 = vst [vmem:[%s1215_s7 + $0x148] sm:$0xff] %v282_v41  ;;  %v284_v42 = vld [vmem:[%s1207_s6 + $0x2a0] sm:$0xff]  ;;  %v286_v43 = vld [vmem:[%s1207_s6 + $0x2a8] sm:$0xff] }
  0x27   : > { %v288_v44 = vld [vmem:[%s1207_s6 + $0x2c0] sm:$0xff]  ;;  %285 = vst [vmem:[%s1215_s7 + $0x150] sm:$0xff] %v284_v42  ;;  %287 = vst [vmem:[%s1215_s7 + $0x158] sm:$0xff] %v286_v43  ;;  %v290_v45 = vld [vmem:[%s1207_s6 + $0x2c8] sm:$0xff] }
  0x28   : > { %289 = vst [vmem:[%s1215_s7 + $0x160] sm:$0xff] %v288_v44  ;;  %v292_v46 = vld [vmem:[%s1207_s6 + $0x2e0] sm:$0xff]  ;;  %v294_v47 = vld [vmem:[%s1207_s6 + $0x2e8] sm:$0xff]  ;;  %291 = vst [vmem:[%s1215_s7 + $0x168] sm:$0xff] %v290_v45 }
  0x29   : > { %293 = vst [vmem:[%s1215_s7 + $0x170] sm:$0xff] %v292_v46  ;;  %295 = vst [vmem:[%s1215_s7 + $0x178] sm:$0xff] %v294_v47  ;;  %v296_v48 = vld [vmem:[%s1207_s6 + $0x300] sm:$0xff]  ;;  %v298_v49 = vld [vmem:[%s1207_s6 + $0x308] sm:$0xff] }
  0x2a   : > { %v300_v50 = vld [vmem:[%s1207_s6 + $0x320] sm:$0xff]  ;;  %297 = vst [vmem:[%s1215_s7 + $0x180] sm:$0xff] %v296_v48  ;;  %299 = vst [vmem:[%s1215_s7 + $0x188] sm:$0xff] %v298_v49  ;;  %v302_v51 = vld [vmem:[%s1207_s6 + $0x328] sm:$0xff] }
  0x2b   : > { %301 = vst [vmem:[%s1215_s7 + $0x190] sm:$0xff] %v300_v50  ;;  %v304_v52 = vld [vmem:[%s1207_s6 + $0x340] sm:$0xff]  ;;  %v306_v53 = vld [vmem:[%s1207_s6 + $0x348] sm:$0xff]  ;;  %303 = vst [vmem:[%s1215_s7 + $0x198] sm:$0xff] %v302_v51 }
  0x2c   : > { %305 = vst [vmem:[%s1215_s7 + $0x1a0] sm:$0xff] %v304_v52  ;;  %307 = vst [vmem:[%s1215_s7 + $0x1a8] sm:$0xff] %v306_v53 }
  0x2d PF: > { %p931_p5 = scmp.ge.s32.totalorder %s1140_s20, 1  ;;  %p312_p6 = scmp.lt.s32.totalorder %s1140_s20, 3 }
  0x2f   : > { %p313_p7 = pnand %p931_p5, %p312_p6 }
  0x30   : > { %s319_s8 = sand.u32 (!%p313_p7), 1, %s1132_s18   ;;  %v1325_v54 = vld [vmem:[%s1411_s0] sm:$0xff] (!%p313_p7)  ;;  %vm691_vm0 = vcmask (!%p313_p7), 719872   ;;  %v1142_v57 = vmov (!%p313_p7), 0   ;;  %vm695_vm1 = vcmask (!%p313_p7), 1043456   ;;  %s932_s23 = sshll.u32 (!%p313_p7), %s925_s21, 2 }
  0x31   : > { %316 = sbr.rel (%p313_p7) target bundleno = 636 (0x27c), region = 59  ;;  %v409_v55 = vld [vmem:[%s1413_s2] sm:$0xff] (!%p313_p7)  ;;  %v935_v56 = vcombine.high (!%p313_p7), %v1325_v54, %v1325_v54  ;;  %1030 = vset.pattern.permute.xlu0 (!%p313_p7), %v1142_v57  ;;  %1031 = vset.pattern.permute.xlu1 (!%p313_p7), %v1142_v57  ;;  %p348_p8 = scmp.lt.s32.totalorder (!%p313_p7), %s932_s23, 7 }
  0x32   : > { %s1004_s13 = smul.u32 (!%p313_p7), 432, %s319_s8  ;;  %412 = vperm.xlu0 (!%p313_p7), %1030, %v409_v55   ;;  %v934_v55 = vcombine.low (!%p313_p7), %v1325_v54, %v1325_v54 }
  0x33   : > { %993 = vmatprep.mubr.msk.bf16.mxu0 (!%p313_p7), %vm691_vm0, %v935_v56  ;;  %995 = vmatprep.mubr.msk.bf16.mxu1 (!%p313_p7), %vm691_vm0, %v935_v56 }
  0x34   : > { %s1332_s14 = scalar_lea.vmem (!%p313_p7), [#allocation2], %s1004_s13 }
  0x35   : > { %v1032_v58 = vld [vmem:[%s1332_s14 + $0x4] ss:$16 sps:$4 sm:$0xff] (!%p313_p7)   ;;  %v1034_v59 = vld [vmem:[%s1332_s14 + $0xc] ss:$16 sps:$4 sm:$0xff] (!%p313_p7)   ;;  %v1036_v60 = vld [vmem:[%s1332_s14] ss:$16 sps:$4 sm:$0xff] (!%p313_p7)  }
  0x36   : > { %708 = vmatprep.subr.bf16.mxu0 (!%p313_p7), %v1032_v58  ;;  %v1037_v61 = vld [vmem:[%s1332_s14 + $0x8] ss:$16 sps:$4 sm:$0xff] (!%p313_p7)   ;;  %749 = vmatprep.subr.bf16.mxu1 (!%p313_p7), %v1034_v59  ;;  %v1038_v62 = vld [vmem:[%s1332_s14 + $0x24] ss:$16 sps:$4 sm:$0xff] (!%p313_p7)   ;;  %v1040_v63 = vld [vmem:[%s1332_s14 + $0x2c] ss:$16 sps:$4 sm:$0xff] (!%p313_p7)  }
  0x37   : > { %709 = vmatpush1.bf16.msra.mxu0 (!%p313_p7), %v1036_v60  ;;  %750 = vmatpush1.bf16.msra.mxu1 (!%p313_p7), %v1037_v61  ;;  %v1042_v0 = vld [vmem:[%s1332_s14 + $0x20] ss:$16 sps:$4 sm:$0xff] (!%p313_p7)   ;;  %v1043_v1 = vld [vmem:[%s1332_s14 + $0x28] ss:$16 sps:$4 sm:$0xff] (!%p313_p7)   ;;  %v1044_v2 = vld [vmem:[%s1332_s14 + $0x44] ss:$16 sps:$4 sm:$0xff] (!%p313_p7)  }
  0x38   : > { %710 = vmatprep.subr.bf16.mxu0 %v1038_v62  ;;  %751 = vmatprep.subr.bf16.mxu1 %v1040_v63  ;;  %v1046_v3 = vld [vmem:[%s1332_s14 + $0x4c] ss:$16 sps:$4 sm:$0xff]   ;;  %v1048_v4 = vld [vmem:[%s1332_s14 + $0x40] ss:$16 sps:$4 sm:$0xff]   ;;  %v1049_v5 = vld [vmem:[%s1332_s14 + $0x48] ss:$16 sps:$4 sm:$0xff]  }
  0x39   : > { %v1050_v6 = vld [vmem:[%s1332_s14 + $0x64] ss:$16 sps:$4 sm:$0xff]   ;;  %v1052_v7 = vld [vmem:[%s1332_s14 + $0x6c] ss:$16 sps:$4 sm:$0xff]   ;;  %v1054_v8 = vld [vmem:[%s1332_s14 + $0x60] ss:$16 sps:$4 sm:$0xff]  }
  0x3a   : > { %v1055_v9 = vld [vmem:[%s1332_s14 + $0x68] ss:$16 sps:$4 sm:$0xff]   ;;  %v1056_v10 = vld [vmem:[%s1332_s14 + $0x84] ss:$16 sps:$4 sm:$0xff]   ;;  %v1058_v11 = vld [vmem:[%s1332_s14 + $0x8c] ss:$16 sps:$4 sm:$0xff]  }
  0x3b   : > { %711 = vmatpush1.bf16.msra.mxu0 %v1042_v0  ;;  %752 = vmatpush1.bf16.msra.mxu1 %v1043_v1  ;;  %v1060_v12 = vld [vmem:[%s1332_s14 + $0x80] ss:$16 sps:$4 sm:$0xff]   ;;  %v1061_v13 = vld [vmem:[%s1332_s14 + $0x88] ss:$16 sps:$4 sm:$0xff]   ;;  %v1062_v14 = vld [vmem:[%s1332_s14 + $0xa4] ss:$16 sps:$4 sm:$0xff]  }
  0x3c   : > { %712 = vmatprep.subr.bf16.mxu0 %v1044_v2  ;;  %753 = vmatprep.subr.bf16.mxu1 %v1046_v3  ;;  %v1064_v15 = vld [vmem:[%s1332_s14 + $0xac] ss:$16 sps:$4 sm:$0xff]   ;;  %v1066_v16 = vld [vmem:[%s1332_s14 + $0xa0] ss:$16 sps:$4 sm:$0xff]   ;;  %v1067_v17 = vld [vmem:[%s1332_s14 + $0xa8] ss:$16 sps:$4 sm:$0xff]  }
  0x3d   : > { %v1068_v18 = vld [vmem:[%s1332_s14 + $0xc4] ss:$16 sps:$4 sm:$0xff]   ;;  %v1070_v19 = vld [vmem:[%s1332_s14 + $0xcc] ss:$16 sps:$4 sm:$0xff]   ;;  %v1072_v20 = vld [vmem:[%s1332_s14 + $0xc0] ss:$16 sps:$4 sm:$0xff]  }
  0x3e   : > { %v1073_v21 = vld [vmem:[%s1332_s14 + $0xc8] ss:$16 sps:$4 sm:$0xff]   ;;  %v1074_v22 = vld [vmem:[%s1332_s14 + $0xe4] ss:$16 sps:$4 sm:$0xff]   ;;  %v1076_v23 = vld [vmem:[%s1332_s14 + $0xec] ss:$16 sps:$4 sm:$0xff]  }
  0x3f   : > { %713 = vmatpush1.bf16.msra.mxu0 %v1048_v4  ;;  %754 = vmatpush1.bf16.msra.mxu1 %v1049_v5  ;;  %v1078_v24 = vld [vmem:[%s1332_s14 + $0xe0] ss:$16 sps:$4 sm:$0xff]   ;;  %v1079_v25 = vld [vmem:[%s1332_s14 + $0xe8] ss:$16 sps:$4 sm:$0xff]   ;;  %v1080_v26 = vld [vmem:[%s1332_s14 + $0x104] ss:$16 sps:$4 sm:$0xff]  }
  0x40   : > { %714 = vmatprep.subr.bf16.mxu0 %v1050_v6  ;;  %755 = vmatprep.subr.bf16.mxu1 %v1052_v7  ;;  %v1082_v27 = vld [vmem:[%s1332_s14 + $0x10c] ss:$16 sps:$4 sm:$0xff]   ;;  %v1084_v28 = vld [vmem:[%s1332_s14 + $0x100] ss:$16 sps:$4 sm:$0xff]   ;;  %v1085_v29 = vld [vmem:[%s1332_s14 + $0x108] ss:$16 sps:$4 sm:$0xff]  }
  0x41   : > { %v1086_v30 = vld [vmem:[%s1332_s14 + $0x124] ss:$16 sps:$4 sm:$0xff]   ;;  %v1088_v31 = vld [vmem:[%s1332_s14 + $0x12c] ss:$16 sps:$4 sm:$0xff]   ;;  %v1090_v32 = vld [vmem:[%s1332_s14 + $0x120] ss:$16 sps:$4 sm:$0xff]  }
  0x42   : > { %v1091_v33 = vld [vmem:[%s1332_s14 + $0x128] ss:$16 sps:$4 sm:$0xff]   ;;  %v1092_v34 = vld [vmem:[%s1332_s14 + $0x144] ss:$16 sps:$4 sm:$0xff]   ;;  %v1094_v35 = vld [vmem:[%s1332_s14 + $0x14c] ss:$16 sps:$4 sm:$0xff]  }
  0x43   : > { %715 = vmatpush1.bf16.msra.mxu0 %v1054_v8  ;;  %756 = vmatpush1.bf16.msra.mxu1 %v1055_v9  ;;  %v1096_v36 = vld [vmem:[%s1332_s14 + $0x140] ss:$16 sps:$4 sm:$0xff]   ;;  %v1097_v37 = vld [vmem:[%s1332_s14 + $0x148] ss:$16 sps:$4 sm:$0xff]   ;;  %v1098_v38 = vld [vmem:[%s1332_s14 + $0x164] ss:$16 sps:$4 sm:$0xff]  }
  0x44   : > { %716 = vmatprep.subr.bf16.mxu0 %v1056_v10  ;;  %757 = vmatprep.subr.bf16.mxu1 %v1058_v11  ;;  %v1100_v39 = vld [vmem:[%s1332_s14 + $0x16c] ss:$16 sps:$4 sm:$0xff]   ;;  %v1102_v40 = vld [vmem:[%s1332_s14 + $0x160] ss:$16 sps:$4 sm:$0xff]   ;;  %v1103_v41 = vld [vmem:[%s1332_s14 + $0x168] ss:$16 sps:$4 sm:$0xff]  }
  0x45   : > { %v1104_v42 = vld [vmem:[%s1332_s14 + $0x184] ss:$16 sps:$4 sm:$0xff]   ;;  %v1106_v43 = vld [vmem:[%s1332_s14 + $0x18c] ss:$16 sps:$4 sm:$0xff]   ;;  %v1108_v46 = vld [vmem:[%s1332_s14 + $0x180] ss:$16 sps:$4 sm:$0xff]  }
  0x46   : > { %v407_v44 = vld [vmem:[%s1332_s14 + $0x1a0] sm:$0xff]  ;;  %v408_v45 = vld [vmem:[%s1332_s14 + $0x1a8] sm:$0xff]  ;;  %s1421_s23 = smov (!%p348_p8, %s932_s23), 7 }
  0x47   : > { %717 = vmatpush1.bf16.msra.mxu0 %v1060_v12  ;;  %758 = vmatpush1.bf16.msra.mxu1 %v1061_v13  ;;  %v1109_v47 = vld [vmem:[%s1332_s14 + $0x188] ss:$16 sps:$4 sm:$0xff]   ;;  %v989_v48 = vcombine.high %v407_v44, %v407_v44  ;;  %v991_v49 = vcombine.high %v408_v45, %v408_v45  ;;  %v988_v50 = vcombine.low %v407_v44, %v407_v44  ;;  %s933_s24 = sshll.u32 %s1421_s23, 2 }
  0x48   : > { %718 = vmatprep.subr.bf16.mxu0 %v1062_v14  ;;  %759 = vmatprep.subr.bf16.mxu1 %v1064_v15  ;;  %v990_v51 = vcombine.low %v408_v45, %v408_v45  ;;  %s351_s26 = scalar_lea.vmem %s1416_s5, %s933_s24 }
  0x49   : > { %v697_v52 = vsel %vm695_vm1, %v988_v50, 0 }
  0x4a   : > { %v703_v53 = vsel %vm695_vm1, %v990_v51, 0 }
  0x4b   : > { %719 = vmatpush1.bf16.msra.mxu0 %v1066_v16  ;;  %760 = vmatpush1.bf16.msra.mxu1 %v1067_v17 }
  0x4c   : > { %720 = vmatprep.subr.bf16.mxu0 %v1068_v18  ;;  %761 = vmatprep.subr.bf16.mxu1 %v1070_v19 }
  0x4f   : > { %721 = vmatpush1.bf16.msra.mxu0 %v1072_v20  ;;  %762 = vmatpush1.bf16.msra.mxu1 %v1073_v21  ;;  %v790_v21 = vld [vmem:[%s1414_s3] sm:$0xff] }
  0x50   : > { %722 = vmatprep.subr.bf16.mxu0 %v1074_v22  ;;  %763 = vmatprep.subr.bf16.mxu1 %v1076_v23 }
  0x53   : > { %723 = vmatpush1.bf16.msra.mxu0 %v1078_v24  ;;  %764 = vmatpush1.bf16.msra.mxu1 %v1079_v25  ;;  %v791_v24 = vld [vmem:[%s1415_s4] sm:$0xff] }
  0x54   : > { %724 = vmatprep.subr.bf16.mxu0 %v1080_v26  ;;  %765 = vmatprep.subr.bf16.mxu1 %v1082_v27 }
  0x57   : > { %725 = vmatpush1.bf16.msra.mxu0 %v1084_v28  ;;  %766 = vmatpush1.bf16.msra.mxu1 %v1085_v29 }
  0x58   : > { %726 = vmatprep.subr.bf16.mxu0 %v1086_v30  ;;  %767 = vmatprep.subr.bf16.mxu1 %v1088_v31 }
  0x5b   : > { %727 = vmatpush1.bf16.msra.mxu0 %v1090_v32  ;;  %768 = vmatpush1.bf16.msra.mxu1 %v1091_v33 }
  0x5c   : > { %728 = vmatprep.subr.bf16.mxu0 %v1092_v34  ;;  %769 = vmatprep.subr.bf16.mxu1 %v1094_v35 }
  0x5f   : > { %729 = vmatpush1.bf16.msra.mxu0 %v1096_v36  ;;  %770 = vmatpush1.bf16.msra.mxu1 %v1097_v37 }
  0x60   : > { %730 = vmatprep.subr.bf16.mxu0 %v1098_v38  ;;  %771 = vmatprep.subr.bf16.mxu1 %v1100_v39 }
  0x63   : > { %731 = vmatpush1.bf16.msra.mxu0 %v1102_v40  ;;  %772 = vmatpush1.bf16.msra.mxu1 %v1103_v41 }
  0x64   : > { %732 = vmatprep.subr.bf16.mxu0 %v1104_v42  ;;  %773 = vmatprep.subr.bf16.mxu1 %v1106_v43 }
  0x67   : > { %733 = vmatpush1.bf16.msra.mxu0 %v1108_v46  ;;  %774 = vmatpush1.bf16.msra.mxu1 %v1109_v47 }
  0x68   : > { %992 = vmatprep.subr.msk.bf16.mxu0 %vm695_vm1, %v989_v48  ;;  %994 = vmatprep.subr.msk.bf16.mxu1 %vm695_vm1, %v991_v49 }
  0x6b   : > { %735 = vmatpush1.bf16.msra.mxu0 %v697_v52  ;;  %776 = vmatpush1.bf16.msra.mxu1 %v703_v53 }
  0x6e   : > { %741 = vmatmul.mubr.bf16.vlgmr.msra.gmra.mrb[0].mxu0 %v934_v55  ;;  %782 = vmatmul.mubr.bf16.vlgmr.msra.gmra.mrb[0].mxu1 %v934_v55 }
  0xb1   : > { %v413_v56 = vpop.permute.xlu0 %412 }
 0x141   : > { %v742_v57 = vpop.f32.mrb[0].mxu0  ;;  %v783_v58 = vpop.f32.mrb[0].mxu1 }
 0x142   : > { %v743_v59 = vadd.f32 %v742_v57, %v413_v56  ;;  %v744_v60 = vpop.f32.mrb[1].mxu0  ;;  %v785_v61 = vpop.f32.mrb[1].mxu1  ;;  %v784_v62 = vadd.f32 %v783_v58, %v413_v56 }
 0x143   : > { %v745_v63 = vadd.f32 %v744_v60, %v413_v56  ;;  %v746_v0 = vpop.f32.mrb[2].mxu0  ;;  %v787_v1 = vpop.f32.mrb[2].mxu1  ;;  %v786_v54 = vadd.f32 %v785_v61, %v413_v56 }
 0x144   : > { %v797_v2 = vmul.f32 %v743_v59, %v743_v59  ;;  %v747_v3 = vpop.f32.mrb[3].mxu0  ;;  %v788_v4 = vpop.f32.mrb[3].mxu1  ;;  %v799_v8 = vmul.f32 %v784_v62, %v784_v62 }
 0x145   : > { %v792_v5 = vadd.f32 %v745_v63, %v743_v59  ;;  %v798_v6 = vmul.f32 %v745_v63, %v745_v63  ;;  %v800_v11 = vmul.f32 %v786_v54, %v786_v54 }
 0x147   : > { %v793_v7 = vadd.f32 %v792_v5, %v784_v62  ;;  %v801_v9 = vadd.f32 %v798_v6, %v797_v2 }
 0x149   : > { %v794_v10 = vadd.f32 %v793_v7, %v786_v54  ;;  %v802_v12 = vadd.f32 %v801_v9, %v799_v8 }
 0x14b   : > { %795 = vadd.xlane.f32.xlu0 %v794_v10  ;;  %v803_v13 = vadd.f32 %v802_v12, %v800_v11 }
 0x14d   : > { %804 = vadd.xlane.f32.xlu1 %v803_v13 }
 0x1d8   : > { %v796_v14 = vpop.xlane.xlu0 %795 }
 0x1d9   : > { %v806_v15 = vmul.f32 0.001953125, %v796_v14 }
 0x1da   : > { %v805_v16 = vpop.xlane.xlu1 %804 }
 0x1db   : > { %v808_v17 = vmul.f32 %v806_v15, %v806_v15  ;;  %v807_v18 = vmul.f32 0.001953125, %v805_v16 }
 0x1dd   : > { %v809_v19 = vsub.f32 %v807_v18, %v808_v17 }
 0x1df   : > { %v810_v20 = vadd.f32 1e-05, %v809_v19 }
 0x1e1   : > { %1116 = vrsqrt.f32 %v810_v20 }
 0x1eb   : > { %v1117_v22 = vpop.eup %1116 }
 0x1ec   : > { %v812_v23 = vmul.f32 %v1117_v22, %v790_v21 }
 0x1ee   : > { %817 = vperm.xlu1 %1031, %v812_v23   ;;  %v813_v25 = vmul.f32 %v812_v23, %v806_v15 }
 0x1f0   : > { %v814_v26 = vsub.f32 %v791_v24, %v813_v25 }
 0x1f2   : > { %826 = vperm.xlu1 %1031, %v814_v26  }
 0x26d   : > { %v818_v27 = vpop.permute.xlu1 %817 }
 0x26e   : > { %v820_v28 = vmul.f32 %v818_v27, %v743_v59  ;;  %v821_v29 = vmul.f32 %v818_v27, %v745_v63  ;;  %v822_v30 = vmul.f32 %v818_v27, %v784_v62  ;;  %v823_v31 = vmul.f32 %v818_v27, %v786_v54 }
 0x271   : > { %v827_v32 = vpop.permute.xlu1 %826 }
 0x272   : > { %v829_v33 = vadd.f32 %v827_v32, %v820_v28  ;;  %v830_v34 = vadd.f32 %v827_v32, %v821_v29  ;;  %v831_v35 = vadd.f32 %v827_v32, %v822_v30  ;;  %v832_v36 = vadd.f32 %v827_v32, %v823_v31 }
 0x274   : > { %vm833_vm2 = vcmp.ge.f32.partialorder %v829_v33, 0.0  ;;  %vm834_vm3 = vcmp.ge.f32.partialorder %v830_v34, 0.0  ;;  %vm835_vm4 = vcmp.ge.f32.partialorder %v831_v35, 0.0  ;;  %vm836_vm5 = vcmp.ge.f32.partialorder %v832_v36, 0.0 }
 0x275   : > { %v837_v37 = vmul.f32 0.2, %v829_v33  ;;  %v838_v38 = vmul.f32 0.2, %v830_v34  ;;  %v839_v39 = vmul.f32 0.2, %v831_v35 }
 0x276   : > { %v840_v40 = vmul.f32 0.2, %v832_v36 }
 0x277   : > { %v841_v41 = vsel %vm833_vm2, %v829_v33, %v837_v37  ;;  %v842_v42 = vsel %vm834_vm3, %v830_v34, %v838_v38  ;;  %v843_v43 = vsel %vm835_vm4, %v831_v35, %v839_v39 }
 0x278   : > { %v844_v44 = vsel %vm836_vm5, %v832_v36, %v840_v40  ;;  %v1001_v45 = vpack.c.bf16 %v842_v42, %v841_v41 }
 0x279   : > { %v1002_v46 = vpack.c.bf16 %v844_v44, %v843_v43 }
 0x27a   : > { %861 = vst [vmem:[%s351_s26] sm:$0xff] %v1001_v45 }
 0x27b   : > { %862 = vst [vmem:[%s351_s26 + $0x8] sm:$0xff] %v1002_v46 }
 0x27c PF: > { %p12_p9 = scmp.ge.s32.totalorder %s1190_s22, 4   ;;  %s1417_s18 = smov %s1136_s19 }
 0x27d   : > { %s1418_s19 = smov %s1199_s25  ;;  %s1419_s20 = smov %s1190_s22 }
 0x27e   :  { %14 = sbr.rel (!%p12_p9) target bundleno = 2 (0x2), region = 98 }

// kernel: sim_struct_render_forward.9
= control target key start
LH: loop header
LB: loop body
LE: loop exit
PB: predicated region body
PF: predicated region fallthrough
CT: control target
= control target key end

     0   :  { %vm19_vm0 = vcmask 1040384   ;;  %vm25_vm1 = vcmask 1041408   ;;  %vm31_vm2 = vcmask 1043456   ;;  %vm112_vm3 = vcmask 1042432   ;;  %s169_s0 = inlined_call_operand.vmem [shape: f32[8,128], index: 0, kind: input, shape index: {}]   ;;  %s170_s1 = inlined_call_operand.vmem [shape: bf16[64,128], index: 1, kind: input, shape index: {}]   ;;  %s171_s2 = inlined_call_operand.vmem [shape: f32[8,128], index: 2, kind: output, shape index: {}]  }
   0x1   :  { %v11_v0 = vld [vmem:[%s169_s0] sm:$0xff]  ;;  %v56_v17 = vld [vmem:[%s170_s1 + $0x8] sm:$0xff]   ;;  %v74_v18 = vld [vmem:[%s170_s1 + $0x10] sm:$0xff]   ;;  %vm115_vm4 = vcmask 1044480   ;;  %vm117_vm5 = vcmask 1045504   ;;  %vm119_vm6 = vcmask 1046528  }
   0x2   :  { %v12_v1 = vmin.f32 %v11_v0, 0.999999  ;;  %v38_v16 = vld [vmem:[%s170_s1] sm:$0xff]   ;;  %v92_v19 = vld [vmem:[%s170_s1 + $0x18] sm:$0xff]   ;;  %v57_v22 = vunpack.c.l.bf16 %v56_v17  ;;  %v66_v23 = vunpack.c.h.bf16 %v56_v17  ;;  %v75_v25 = vunpack.c.l.bf16 %v74_v18 }
   0x3   :  { %v39_v20 = vunpack.c.l.bf16 %v38_v16  ;;  %v48_v21 = vunpack.c.h.bf16 %v38_v16  ;;  %v84_v26 = vunpack.c.h.bf16 %v74_v18  ;;  %v93_v27 = vunpack.c.l.bf16 %v92_v19 }
   0x4   :  { %v13_v2 = vsub.f32 1.0, %v12_v1  ;;  %v102_v28 = vunpack.c.h.bf16 %v92_v19 }
   0x6   :  { %126 = vlog2.f32 %v13_v2 }
  0x10   :  { %v127_v3 = vpop.eup %126 }
  0x11   :  { %v15_v4 = vmul.f32 0.6931472, %v127_v3 }
  0x13   :  { %v17_v5 = vrot.slane %v15_v4, 7 }
  0x15   :  { %v20_v6 = vsel %vm19_vm0, 0.0, %v17_v5 }
  0x16   :  { %v21_v7 = vadd.f32 %v20_v6, %v15_v4 }
  0x18   :  { %v23_v8 = vrot.slane %v21_v7, 6 }
  0x1a   :  { %v26_v9 = vsel %vm25_vm1, 0.0, %v23_v8 }
  0x1b   :  { %v27_v10 = vadd.f32 %v26_v9, %v21_v7 }
  0x1d   :  { %v29_v11 = vrot.slane %v27_v10, 4 }
  0x1f   :  { %v32_v12 = vsel %vm31_vm2, 0.0, %v29_v11 }
  0x20   :  { %v33_v13 = vadd.f32 %v32_v12, %v27_v10 }
  0x22   :  { %v34_v14 = vsub.f32 %v33_v13, %v15_v4 }
  0x24   :  { %v35_v15 = vmul.f32 1.442695, %v34_v14 }
  0x26   :  { %128 = vpow2.f32 %v35_v15 }
  0x30   :  { %v129_v24 = vpop.eup %128 }
  0x31   :  { %v37_v29 = vmul.f32 %v129_v24, %v11_v0 }
  0x33   :  { %v40_v30 = vmul.f32 %v39_v20, %v37_v29  ;;  %v49_v31 = vmul.f32 %v48_v21, %v37_v29  ;;  %v58_v32 = vmul.f32 %v57_v22, %v37_v29  ;;  %v67_v33 = vmul.f32 %v66_v23, %v37_v29 }
  0x34   :  { %v76_v34 = vmul.f32 %v75_v25, %v37_v29  ;;  %v85_v35 = vmul.f32 %v84_v26, %v37_v29  ;;  %v94_v36 = vmul.f32 %v93_v27, %v37_v29  ;;  %v103_v37 = vmul.f32 %v102_v28, %v37_v29 }
  0x35   :  { %v41_v38 = vrot.slane %v40_v30, 4  ;;  %v50_v39 = vrot.slane %v49_v31, 4  ;;  %v59_v40 = vrot.slane %v58_v32, 4  ;;  %v68_v41 = vrot.slane %v67_v33, 4 }
  0x36   :  { %v77_v42 = vrot.slane %v76_v34, 4  ;;  %v86_v43 = vrot.slane %v85_v35, 4  ;;  %v95_v44 = vrot.slane %v94_v36, 4  ;;  %v104_v45 = vrot.slane %v103_v37, 4 }
  0x37   :  { %v42_v46 = vadd.f32 %v41_v38, %v40_v30  ;;  %v51_v47 = vadd.f32 %v50_v39, %v49_v31  ;;  %v60_v48 = vadd.f32 %v59_v40, %v58_v32  ;;  %v69_v49 = vadd.f32 %v68_v41, %v67_v33 }
  0x38   :  { %v78_v50 = vadd.f32 %v77_v42, %v76_v34  ;;  %v87_v51 = vadd.f32 %v86_v43, %v85_v35  ;;  %v96_v52 = vadd.f32 %v95_v44, %v94_v36  ;;  %v105_v53 = vadd.f32 %v104_v45, %v103_v37 }
  0x39   :  { %v43_v54 = vrot.slane %v42_v46, 2  ;;  %v52_v55 = vrot.slane %v51_v47, 2  ;;  %v61_v56 = vrot.slane %v60_v48, 2  ;;  %v70_v57 = vrot.slane %v69_v49, 2 }
  0x3a   :  { %v79_v58 = vrot.slane %v78_v50, 2  ;;  %v88_v59 = vrot.slane %v87_v51, 2  ;;  %v97_v60 = vrot.slane %v96_v52, 2  ;;  %v106_v61 = vrot.slane %v105_v53, 2 }
  0x3b   :  { %v44_v62 = vadd.f32 %v43_v54, %v42_v46  ;;  %v53_v63 = vadd.f32 %v52_v55, %v51_v47  ;;  %v62_v0 = vadd.f32 %v61_v56, %v60_v48  ;;  %v71_v1 = vadd.f32 %v70_v57, %v69_v49 }
  0x3c   :  { %v80_v2 = vadd.f32 %v79_v58, %v78_v50  ;;  %v89_v3 = vadd.f32 %v88_v59, %v87_v51  ;;  %v98_v4 = vadd.f32 %v97_v60, %v96_v52  ;;  %v107_v5 = vadd.f32 %v106_v61, %v105_v53 }
  0x3d   :  { %v45_v6 = vrot.slane %v44_v62, 1  ;;  %v54_v7 = vrot.slane %v53_v63, 1  ;;  %v63_v8 = vrot.slane %v62_v0, 1  ;;  %v72_v9 = vrot.slane %v71_v1, 1 }
  0x3e   :  { %v81_v10 = vrot.slane %v80_v2, 1  ;;  %v90_v11 = vrot.slane %v89_v3, 1  ;;  %v99_v12 = vrot.slane %v98_v4, 1  ;;  %v108_v13 = vrot.slane %v107_v5, 1 }
  0x3f   :  { %v46_v14 = vadd.f32 %v45_v6, %v44_v62  ;;  %v55_v15 = vadd.f32 %v54_v7, %v53_v63  ;;  %v64_v16 = vadd.f32 %v63_v8, %v62_v0  ;;  %v73_v17 = vadd.f32 %v72_v9, %v71_v1 }
  0x40   :  { %v82_v18 = vadd.f32 %v81_v10, %v80_v2  ;;  %v91_v19 = vadd.f32 %v90_v11, %v89_v3  ;;  %v100_v21 = vadd.f32 %v99_v12, %v98_v4  ;;  %v109_v23 = vadd.f32 %v108_v13, %v107_v5 }
  0x41   :  { %v110_v20 = vsel %vm19_vm0, %v46_v14, %v55_v15 }
  0x42   :  { %v111_v22 = vsel %vm25_vm1, %v110_v20, %v64_v16 }
  0x43   :  { %v113_v24 = vsel %vm112_vm3, %v111_v22, %v73_v17 }
  0x44   :  { %v114_v25 = vsel %vm31_vm2, %v113_v24, %v82_v18 }
  0x45   :  { %v116_v26 = vsel %vm115_vm4, %v114_v25, %v91_v19 }
  0x46   :  { %v118_v27 = vsel %vm117_vm5, %v116_v26, %v100_v21 }
  0x47   :  { %v120_v28 = vsel %vm119_vm6, %v118_v27, %v109_v23 }
  0x48   :  { %121 = vst [vmem:[%s171_s2] sm:$0xff] %v120_v28 }

// kernel: tile.13
= control target key start
LH: loop header
LB: loop body
LE: loop exit
PB: predicated region body
PF: predicated region fallthrough
CT: control target
= control target key end

     0   :  { %s22_s0 = inlined_call_operand.vmem [shape: f32[4], index: 0, kind: input, shape index: {}]   ;;  %s23_s1 = inlined_call_operand.vmem [shape: f32[4,4], index: 1, kind: output, shape index: {}]  }
   0x1   :  { %v4_v0 = vld [vmem:[%s22_s0] ss:$0 sm:$0xff] }
   0x2   :  { %5 = vst [vmem:[%s23_s1] sm:$0xf] %v4_v0 }

// kernel: tile.0
= control target key start
LH: loop header
LB: loop body
LE: loop exit
PB: predicated region body
PF: predicated region fallthrough
CT: control target
= control target key end

     0   :  { %s34_s8 = smov 125   ;;  %vm7_vm0 = vcmask 7168   ;;  %s35_s11 = smov 126   ;;  %s61_s0 = inlined_call_operand.vmem [shape: f32[4,4], index: 0, kind: input, shape index: {}]   ;;  %s62_s1 = inlined_call_operand.vmem [shape: f32[16,1], index: 1, kind: output, shape index: {}]  }
   0x1   :  { %v4_v0 = vld [vmem:[%s61_s0] sm:$0xf]  ;;  %s33_s0 = smov 127  }
   0x2   :  { %5 = vst [vmem:[#allocation0] sm:$0xf] %v4_v0 }
   0x9   :  { %v9_v1 = vld [vmem:[#allocation0] sm:$0xf]  }
   0xa   :  { %v21_v2 = vld [vmem:[#allocation0] sm:$0xf]   ;;  %10 = vrot.lane.b32.xlu0 %v9_v1, %s33_s0 }
   0xb   :  { %22 = vrot.lane.b32.xlu1 %v21_v2, %s34_s8  ;;  %v6_v3 = vld [vmem:[#allocation0] sm:$0xf]  }
   0xc   :  { %v15_v4 = vld [vmem:[#allocation0] sm:$0xf]   ;;  %8 = vst.msk [vmem:[%s62_s1] ss:$4 sm:$0xf] %vm7_vm0, %v6_v3  }
   0xe   :  { %16 = vrot.lane.b32.xlu0 %v15_v4, %s35_s11 }
  0x7c   :  { %v11_v5 = vpop.permute.xlu0 %10  }
  0x7d   :  { %v23_v6 = vpop.permute.xlu1 %22   ;;  %27 = vst.msk [vmem:[%s62_s1 + $0x1] ss:$4 sm:$0xf] %vm7_vm0, %v11_v5  }
  0x7e   :  { %29 = vst.msk [vmem:[%s62_s1 + $0x3] ss:$4 sm:$0xf] %vm7_vm0, %v23_v6  }
  0x80   :  { %v17_v7 = vpop.permute.xlu0 %16  }
  0x81   :  { %28 = vst.msk [vmem:[%s62_s1 + $0x2] ss:$4 sm:$0xf] %vm7_vm0, %v17_v7  }

// kernel: sim_struct_render_forward.11
= control target key start
LH: loop header
LB: loop body
LE: loop exit
PB: predicated region body
PF: predicated region fallthrough
CT: control target
= control target key end

     0   :  { %v340_v0 = vmov 0.0   ;;  %vm341_vm0 = vmmov 0   ;;  %v342_v2 = vmov 0   ;;  %vm80_vm1 = vcmask 1043456   ;;  %s441_s1 = inlined_call_operand.vmem [shape: bf16[72,128], index: 1, kind: input, shape index: {}]   ;;  %s442_s2 = inlined_call_operand.vmem [shape: f32[16,1], index: 2, kind: input, shape index: {}]   ;;  %s443_s0 = inlined_call_operand.vmem [shape: bf16[16,72], index: 0, kind: input, shape index: {}]   ;;  %s444_s3 = inlined_call_operand.vmem [shape: f32[4,1], index: 3, kind: input, shape index: {}]   ;;  %s445_s4 = inlined_call_operand.vmem [shape: f32[4,1], index: 4, kind: input, shape index: {}]   ;;  %s446_s5 = inlined_call_operand.vmem [shape: bf16[16,128], index: 5, kind: output, shape index: {}]  }
   0x1   :  { %311 = vmatprep.subr.bf16.mxu0 %v340_v0  ;;  %v330_v1 = vld [vmem:[%s441_s1] sm:$0xff]   ;;  %321 = vmatprep.mubr.msk.bf16.mxu0 %vm341_vm0, %v340_v0  ;;  %v331_v3 = vld [vmem:[%s441_s1 + $0x8] sm:$0xff]   ;;  %v332_v5 = vld [vmem:[%s441_s1 + $0x10] sm:$0xff]   ;;  %vm76_vm2 = vcmask 588800   ;;  %v129_v11 = vlaneseq }
   0x2   :  { %328 = vset.pattern.permute.xlu0 %v342_v2  ;;  %329 = vset.pattern.permute.xlu1 %v342_v2  ;;  %v32_v4 = vld [vmem:[%s442_s2] sm:$0xff]  ;;  %v33_v6 = vld [vmem:[%s442_s2 + $0x8] sm:$0xff]  ;;  %v333_v7 = vld [vmem:[%s441_s1 + $0x18] sm:$0xff]  }
   0x3   :  { %312 = vmatpush3.bf16.msra.mxu0 %v330_v1  ;;  %36 = vperm.xlu0 %328, %v32_v4   ;;  %v334_v8 = vld [vmem:[%s441_s1 + $0x20] ss:$0 sps:$4 sm:$0xff]   ;;  %v130_v12 = vand.u32 127, %v129_v11 }
   0x4   :  { %313 = vmatprep.subr.bf16.mxu0 %v340_v0  ;;  %v82_v9 = vsel %vm80_vm1, %v334_v8, 0  ;;  %v335_v10 = vld [vmem:[%s443_s0] sm:$0xff]  }
   0x5   :  { %vm132_vm3 = vcmp.lt.s32.totalorder %v130_v12, 64  ;;  %vm197_vm4 = vcmp.ge.s32.totalorder %v130_v12, 64 }
   0x6   :  { %v398_v15 = vsel %vm132_vm3, 1.0, %v340_v0  ;;  %v406_v22 = vsel %vm197_vm4, 1.0, %v340_v0 }
   0x7   :  { %314 = vmatpush3.bf16.msra.mxu0 %v331_v3  ;;  %41 = vperm.xlu0 %328, %v33_v6  }
   0x8   :  { %315 = vmatprep.subr.bf16.mxu0 %v340_v0 }
   0xb   :  { %316 = vmatpush3.bf16.msra.mxu0 %v332_v5 }
   0xc   :  { %317 = vmatprep.subr.bf16.mxu0 %v340_v0 }
   0xf   :  { %318 = vmatpush3.bf16.msra.mxu0 %v333_v7  ;;  %v125_v7 = vld [vmem:[%s444_s3] sm:$0xf] }
  0x10   :  { %319 = vmatprep.subr.bf16.mxu0 %v340_v0 }
  0x13   :  { %320 = vmatpush3.bf16.msra.mxu0 %v82_v9 }
  0x16   :  { %322 = vmatmul.mubr.msk.bf16.vlgmr.msra.gmra.mrb[0].mxu0 %vm76_vm2, %v335_v10  ;;  %v126_v10 = vld [vmem:[%s445_s4] sm:$0xf] }
  0x82   :  { %v37_v13 = vpop.permute.xlu0 %36 }
  0x86   :  { %v42_v25 = vpop.permute.xlu0 %41 }
  0xe9   :  { %v118_v14 = vpop.f32.mrb[0].mxu0 }
  0xea   :  { %v400_v16 = vadd.f32 %v118_v14, %v37_v13  ;;  %v323_v17 = vpop.f32.mrb[1].mxu0 }
  0xeb   :  { %v121_v18 = vpop.f32.mrb[2].mxu0 }
  0xec   :  { %v324_v19 = vpop.f32.mrb[3].mxu0  ;;  %v136_v20 = vmul.f32 %v398_v15, %v400_v16  ;;  %v127_v21 = vmul.f32 %v400_v16, %v400_v16  ;;  %v202_v24 = vmul.f32 %v406_v22, %v400_v16  ;;  %v411_v26 = vadd.f32 %v121_v18, %v42_v25 }
  0xee   :  { %138 = vadd.xlane.f32.xlu1 %v136_v20  ;;  %v142_v23 = vmul.f32 %v398_v15, %v127_v21  ;;  %v208_v27 = vmul.f32 %v406_v22, %v127_v21  ;;  %v137_v28 = vmul.f32 %v398_v15, %v411_v26  ;;  %v203_v29 = vmul.f32 %v406_v22, %v411_v26 }
  0xef   :  { %v128_v30 = vmul.f32 %v411_v26, %v411_v26 }
  0xf0   :  { %144 = vadd.xlane.f32.xlu0 %v142_v23 }
  0xf1   :  { %v143_v31 = vmul.f32 %v398_v15, %v128_v30  ;;  %v209_v32 = vmul.f32 %v406_v22, %v128_v30 }
  0xf2   :  { %204 = vadd.xlane.f32.xlu1 %v202_v24 }
  0xf6   :  { %210 = vadd.xlane.f32.xlu1 %v208_v27 }
  0xfa   :  { %140 = vadd.xlane.f32.xlu1 %v137_v28 }
  0xfe   :  { %206 = vadd.xlane.f32.xlu1 %v203_v29 }
 0x102   :  { %146 = vadd.xlane.f32.xlu1 %v143_v31 }
 0x106   :  { %212 = vadd.xlane.f32.xlu1 %v209_v32 }
 0x17b   :  { %v139_v33 = vpop.xlane.xlu1 %138 }
 0x17c   :  { %v149_v35 = vrot.slane %v139_v33, 4 }
 0x17d   :  { %v145_v39 = vpop.xlane.xlu0 %144 }
 0x17e   :  { %v151_v37 = vadd.f32 %v149_v35, %v139_v33  ;;  %v153_v43 = vrot.slane %v145_v39, 4 }
 0x17f   :  { %v205_v34 = vpop.xlane.xlu1 %204 }
 0x180   :  { %v215_v38 = vrot.slane %v205_v34, 4  ;;  %v155_v49 = vadd.f32 %v153_v43, %v145_v39 }
 0x182   :  { %v217_v44 = vadd.f32 %v215_v38, %v205_v34 }
 0x183   :  { %v211_v36 = vpop.xlane.xlu1 %210 }
 0x184   :  { %v219_v50 = vrot.slane %v211_v36, 4 }
 0x186   :  { %v221_v56 = vadd.f32 %v219_v50, %v211_v36 }
 0x187   :  { %v141_v40 = vpop.xlane.xlu1 %140 }
 0x188   :  { %v156_v41 = vadd.f32 %v151_v37, %v141_v40  ;;  %v159_v42 = vrot.slane %v141_v40, 4 }
 0x18a   :  { %v161_v45 = vadd.f32 %v159_v42, %v156_v41 }
 0x18b   :  { %v207_v46 = vpop.xlane.xlu1 %206 }
 0x18c   :  { %v222_v47 = vadd.f32 %v217_v44, %v207_v46  ;;  %v225_v48 = vrot.slane %v207_v46, 4  ;;  %v166_v51 = vmul.f32 0.00390625, %v161_v45 }
 0x18e   :  { %v227_v53 = vadd.f32 %v225_v48, %v222_v47  ;;  %v168_v58 = vmul.f32 %v166_v51, %v166_v51 }
 0x18f   :  { %v147_v52 = vpop.xlane.xlu1 %146 }
 0x190   :  { %v157_v54 = vadd.f32 %v155_v49, %v147_v52  ;;  %v163_v55 = vrot.slane %v147_v52, 4  ;;  %v232_v60 = vmul.f32 0.00390625, %v227_v53 }
 0x192   :  { %v165_v57 = vadd.f32 %v163_v55, %v157_v54  ;;  %v234_v2 = vmul.f32 %v232_v60, %v232_v60 }
 0x193   :  { %v213_v59 = vpop.xlane.xlu1 %212 }
 0x194   :  { %v167_v61 = vmul.f32 0.00390625, %v165_v57  ;;  %v223_v62 = vadd.f32 %v221_v56, %v213_v59  ;;  %v229_v63 = vrot.slane %v213_v59, 4 }
 0x196   :  { %v169_v0 = vsub.f32 %v167_v61, %v168_v58  ;;  %v231_v1 = vadd.f32 %v229_v63, %v223_v62 }
 0x198   :  { %v170_v3 = vadd.f32 1e-05, %v169_v0  ;;  %v233_v4 = vmul.f32 0.00390625, %v231_v1 }
 0x19a   :  { %336 = vrsqrt.f32 %v170_v3  ;;  %v235_v5 = vsub.f32 %v233_v4, %v234_v2 }
 0x19c   :  { %v236_v6 = vadd.f32 1e-05, %v235_v5 }
 0x19e   :  { %338 = vrsqrt.f32 %v236_v6 }
 0x1a4   :  { %v337_v8 = vpop.eup %336 }
 0x1a5   :  { %v172_v9 = vmul.f32 %v337_v8, %v125_v7 }
 0x1a7   :  { %v176_v11 = vrot.slane %v172_v9, 4  ;;  %v173_v12 = vmul.f32 %v172_v9, %v166_v51 }
 0x1a8   :  { %v339_v13 = vpop.eup %338 }
 0x1a9   :  { %v178_v14 = vsel %vm80_vm1, %v172_v9, %v176_v11  ;;  %v174_v17 = vsub.f32 %v126_v10, %v173_v12  ;;  %v238_v18 = vmul.f32 %v339_v13, %v125_v7 }
 0x1aa   :  { %185 = vperm.xlu1 %329, %v178_v14  }
 0x1ab   :  { %v180_v19 = vrot.slane %v174_v17, 4  ;;  %v242_v20 = vrot.slane %v238_v18, 4  ;;  %v239_v21 = vmul.f32 %v238_v18, %v232_v60 }
 0x1ad   :  { %v182_v23 = vsel %vm80_vm1, %v174_v17, %v180_v19  ;;  %v244_v24 = vsel %vm80_vm1, %v238_v18, %v242_v20  ;;  %v240_v25 = vsub.f32 %v126_v10, %v239_v21 }
 0x1ae   :  { %192 = vperm.xlu1 %329, %v182_v23   ;;  %251 = vperm.xlu0 %328, %v244_v24  }
 0x1af   :  { %v246_v27 = vrot.slane %v240_v25, 4 }
 0x1b1   :  { %v248_v28 = vsel %vm80_vm1, %v240_v25, %v246_v27 }
 0x1b2   :  { %258 = vperm.xlu1 %329, %v248_v28  }
 0x229   :  { %v186_v29 = vpop.permute.xlu1 %185 }
 0x22a   :  { %v188_v32 = vmul.f32 %v398_v15, %v186_v29 }
 0x22d   :  { %v252_v30 = vpop.permute.xlu0 %251  ;;  %v193_v31 = vpop.permute.xlu1 %192 }
 0x22e   :  { %v254_v33 = vmul.f32 %v406_v22, %v252_v30  ;;  %v195_v36 = vmul.f32 %v398_v15, %v193_v31 }
 0x230   :  { %v255_v34 = vadd.f32 %v254_v33, %v188_v32 }
 0x231   :  { %v259_v35 = vpop.permute.xlu1 %258 }
 0x232   :  { %v261_v37 = vmul.f32 %v406_v22, %v259_v35  ;;  %v263_v38 = vmul.f32 %v255_v34, %v400_v16  ;;  %v264_v39 = vmul.f32 %v255_v34, %v411_v26 }
 0x234   :  { %v262_v40 = vadd.f32 %v261_v37, %v195_v36 }
 0x236   :  { %v265_v41 = vadd.f32 %v263_v38, %v262_v40  ;;  %v266_v42 = vadd.f32 %v264_v39, %v262_v40 }
 0x238   :  { %vm267_vm5 = vcmp.ge.f32.partialorder %v265_v41, 0.0  ;;  %vm268_vm6 = vcmp.ge.f32.partialorder %v266_v42, 0.0  ;;  %v269_v43 = vmul.f32 0.2, %v265_v41  ;;  %v270_v44 = vmul.f32 0.2, %v266_v42 }
 0x23a   :  { %v271_v45 = vsel %vm267_vm5, %v265_v41, %v269_v43  ;;  %v272_v46 = vsel %vm268_vm6, %v266_v42, %v270_v44 }
 0x23b   :  { %v303_v47 = vpack.c.bf16 %v272_v46, %v271_v45 }
 0x23d   :  { %304 = vst [vmem:[%s446_s5] sm:$0xff] %v303_v47  }

// kernel: tile.18
= control target key start
LH: loop header
LB: loop body
LE: loop exit
PB: predicated region body
PF: predicated region fallthrough
CT: control target
= control target key end

     0   :  { %s22_s0 = inlined_call_operand.vmem [shape: f32[2], index: 0, kind: input, shape index: {}]   ;;  %s23_s1 = inlined_call_operand.vmem [shape: f32[4,2], index: 1, kind: output, shape index: {}]  }
   0x1   :  { %v4_v0 = vld [vmem:[%s22_s0] ss:$0 sm:$0xff] }
   0x2   :  { %5 = vst [vmem:[%s23_s1] sm:$0xf] %v4_v0 }

// kernel: tile.1
= control target key start
LH: loop header
LB: loop body
LE: loop exit
PB: predicated region body
PF: predicated region fallthrough
CT: control target
= control target key end

     0   :  { %vm7_vm0 = vcmask 7168   ;;  %s37_s0 = inlined_call_operand.vmem [shape: f32[4,2], index: 0, kind: input, shape index: {}]   ;;  %s38_s1 = inlined_call_operand.vmem [shape: f32[8,1], index: 1, kind: output, shape index: {}]  }
   0x1   :  { %v4_v0 = vld [vmem:[%s37_s0] sm:$0xf]  ;;  %s17_s0 = smov 127  }
   0x2   :  { %5 = vst [vmem:[#allocation0] sm:$0xf] %v4_v0 }
   0x9   :  { %v9_v1 = vld [vmem:[#allocation0] sm:$0xf]  }
   0xa   :  { %v6_v2 = vld [vmem:[#allocation0] sm:$0xf]   ;;  %10 = vrot.lane.b32.xlu0 %v9_v1, %s17_s0 }
   0xb   :  { %8 = vst.msk [vmem:[%s38_s1] ss:$2 sm:$0xf] %vm7_vm0, %v6_v2  }
  0x7c   :  { %v11_v3 = vpop.permute.xlu0 %10  }
  0x7d   :  { %15 = vst.msk [vmem:[%s38_s1 + $0x1] ss:$2 sm:$0xf] %vm7_vm0, %v11_v3  }

// kernel: sim_struct_render_forward.12
= control target key start
LH: loop header
LB: loop body
LE: loop exit
PB: predicated region body
PF: predicated region fallthrough
CT: control target
= control target key end

     0   :  { %s636_s18 = smov 0   ;;  %s638_s19 = smov 0   ;;  %s704_s0 = inlined_call_operand.vmem [shape: bf16[8,36], index: 0, kind: input, shape index: {}]   ;;  %s705_s1 = inlined_call_operand.vmem [shape: bf16[36,512], index: 1, kind: input, shape index: {}]   ;;  %s706_s2 = inlined_call_operand.vmem [shape: f32[8,1], index: 2, kind: input, shape index: {}]   ;;  %s707_s3 = inlined_call_operand.vmem [shape: f32[2,1], index: 3, kind: input, shape index: {}]   ;;  %s708_s4 = inlined_call_operand.vmem [shape: f32[2,1], index: 4, kind: input, shape index: {}]   ;;  %s709_s5 = inlined_call_operand.vmem [shape: bf16[8,512], index: 5, kind: output, shape index: {}]  }
   0x1   :  { %s640_s20 = smov 0  }
   0x2 LB: > { %s520_s21 = sadd.s32 4294967295, %s603_s20   ;;  %s653_s22 = sadd.s32 1, %s603_s20   ;;  %s603_s20 = sphi %s640_s20, %s712_s20   ;;  %s599_s19 = sphi %s638_s19, %s711_s19   ;;  %s595_s18 = sphi %s636_s18, %s710_s18  }
   0x3   : > { %s40_s23 = ssub.s32 %s603_s20, %s653_s22  ;;  %s43_s24 = sadd.s32 1, %s599_s19 }
   0x4   : > { %p41_p0 = scmp.eq.s32.totalorder %s40_s23, 0  ;;  %p50_p1 = scmp.ne.s32.totalorder %s599_s19, %s595_s18 }
   0x5   : > { %p51_p2 = scmp.eq.s32.totalorder %s603_s20, 0  ;;  %p523_p4 = scmp.ge.s32.totalorder %s603_s20, 2 }
   0x6   : > { %s662_s25 = scalar_select %p41_p0, %s599_s19, %s43_s24  }
   0x7   : > { %p52_p3 = por %p51_p2, %p50_p1  ;;  %177 = sbr.rel (%p523_p4) target bundleno = 21 (0x15), region = 32 }
   0xe   : > { %180 = sbr.rel (!%p52_p3) target bundleno = 21 (0x15), region = 36  ;;  %s182_s26 = sand.u32 (%p52_p3), 1, %s599_s19  }
   0xf   : > { %s540_s27 = sshll.u32 (%p52_p3), %s603_s20, 3  ;;  %s542_s28 = smul.u32 (%p52_p3), 40, %s182_s26 }
  0x10   : > { %s187_s6 = scalar_lea.vmem (%p52_p3), %s705_s1, %s540_s27 }
  0x11   : > { %v223_v0 = vld [vmem:[%s187_s6] sm:$0xff] (%p52_p3)  ;;  %v225_v1 = vld [vmem:[%s187_s6 + $0x10] sm:$0xff] (%p52_p3)  ;;  %s184_s7 = scalar_lea.vmem (%p52_p3), [#allocation2], %s542_s28 }
  0x12   : > { %v227_v2 = vld [vmem:[%s187_s6 + $0x20] sm:$0xff] (%p52_p3)  ;;  %v229_v3 = vld [vmem:[%s187_s6 + $0x30] sm:$0xff] (%p52_p3)  ;;  %224 = vst [vmem:[%s184_s7] sm:$0xff] (%p52_p3), %v223_v0  ;;  %226 = vst [vmem:[%s184_s7 + $0x8] sm:$0xff] (%p52_p3), %v225_v1 }
  0x13   : > { %v231_v4 = vld [vmem:[%s187_s6 + $0x40] sm:$0xff] (%p52_p3)  ;;  %228 = vst [vmem:[%s184_s7 + $0x10] sm:$0xff] (%p52_p3), %v227_v2  ;;  %230 = vst [vmem:[%s184_s7 + $0x18] sm:$0xff] (%p52_p3), %v229_v3 }
  0x14   : > { %232 = vst [vmem:[%s184_s7 + $0x20] sm:$0xff] (%p52_p3), %v231_v4 }
  0x15 PF: > { %p526_p5 = scmp.ge.s32.totalorder %s603_s20, 1  ;;  %p237_p6 = scmp.lt.s32.totalorder %s603_s20, 3 }
  0x17   : > { %p238_p7 = pnand %p526_p5, %p237_p6 }
  0x18   : > { %s244_s8 = sand.u32 (!%p238_p7), 1, %s595_s18   ;;  %v605_v5 = vmov (!%p238_p7), 0   ;;  %v285_v6 = vld [vmem:[%s706_s2] sm:$0xff] (!%p238_p7)  ;;  %vm320_vm0 = vcmask (!%p238_p7), 1041408   ;;  %vm316_vm1 = vcmask (!%p238_p7), 293888   ;;  %vm415_vm2 = vcmask (!%p238_p7), 1043456  }
  0x19   : > { %241 = sbr.rel (%p238_p7) target bundleno = 575 (0x23f), region = 74  ;;  %359 = vmatprep.mubr.bf16.mxu0 (!%p238_p7), %v605_v5  ;;  %569 = vset.pattern.permute.xlu0 (!%p238_p7), %v605_v5  ;;  %v279_v15 = vld [vmem:[%s704_s0] sm:$0xf] (!%p238_p7)  ;;  %vm417_vm3 = vcmask (!%p238_p7), 1045504   ;;  %s527_s23 = sshll.u32 (!%p238_p7), %s520_s21, 1 }
  0x1a   : > { %s543_s9 = smul.u32 (!%p238_p7), 40, %s244_s8  ;;  %288 = vperm.xlu0 (!%p238_p7), %569, %v285_v6   ;;  %570 = vset.pattern.permute.xlu1 (!%p238_p7), %v605_v5  ;;  %v368_v46 = vld [vmem:[%s707_s3] sm:$0x3] (!%p238_p7)  ;;  %p273_p8 = scmp.lt.s32.totalorder (!%p238_p7), %s527_s23, 3 }
  0x1b   : > { %v369_v49 = vld [vmem:[%s708_s4] sm:$0x3] (!%p238_p7) }
  0x1c   : > { %s246_s12 = scalar_lea.vmem (!%p238_p7), [#allocation2], %s543_s9 }
  0x1d   : > { %v571_v7 = vld [vmem:[%s246_s12 + $0x4] ss:$8 sps:$4 sm:$0xff] (!%p238_p7)   ;;  %v573_v8 = vld [vmem:[%s246_s12] ss:$8 sps:$4 sm:$0xff] (!%p238_p7)   ;;  %v574_v9 = vld [vmem:[%s246_s12 + $0x14] ss:$8 sps:$4 sm:$0xff] (!%p238_p7)  }
  0x1e   : > { %327 = vmatprep.subr.bf16.mxu0 (!%p238_p7), %v571_v7  ;;  %v284_v10 = vld [vmem:[%s246_s12 + $0x20] sm:$0x33] (!%p238_p7)  ;;  %v576_v11 = vld [vmem:[%s246_s12 + $0x10] ss:$8 sps:$4 sm:$0xff] (!%p238_p7)  }
  0x1f   : > { %328 = vmatpush1.bf16.msra.mxu0 (!%p238_p7), %v573_v8  ;;  %v534_v12 = vcombine.high (!%p238_p7), %v284_v10, %v284_v10  ;;  %v533_v13 = vcombine.low (!%p238_p7), %v284_v10, %v284_v10 }
  0x20   : > { %329 = vmatprep.subr.bf16.mxu0 %v574_v9  ;;  %s714_s23 = smov (!%p273_p8, %s527_s23), 3 }
  0x21   : > { %v322_v14 = vsel %vm320_vm0, %v533_v13, 0  ;;  %s528_s24 = sshll.u32 %s714_s23, 2 }
  0x22   : > { %s276_s28 = scalar_lea.vmem %s709_s5, %s528_s24 }
  0x23   : > { %330 = vmatpush1.bf16.msra.mxu0 %v576_v11 }
  0x24   : > { %535 = vmatprep.subr.msk.bf16.mxu0 %vm320_vm0, %v534_v12 }
  0x27   : > { %332 = vmatpush1.bf16.msra.mxu0 %v322_v14 }
  0x2a   : > { %536 = vmatmul.mubr.msk.bf16.vlgmr.msra.gmra.mrb[0].mxu0 %vm316_vm1, %v279_v15 }
  0x99   : > { %v289_v16 = vpop.permute.xlu0 %288 }
  0xfd   : > { %v361_v17 = vpop.f32.mrb[0].mxu0 }
  0xfe   : > { %v362_v18 = vadd.f32 %v361_v17, %v289_v16  ;;  %v363_v19 = vpop.f32.mrb[1].mxu0 }
  0xff   : > { %v364_v20 = vadd.f32 %v363_v19, %v289_v16  ;;  %v365_v21 = vpop.f32.mrb[2].mxu0 }
 0x100   : > { %v366_v22 = vpop.f32.mrb[3].mxu0  ;;  %v373_v23 = vmul.f32 %v362_v18, %v362_v18 }
 0x101   : > { %v370_v24 = vadd.f32 %v364_v20, %v362_v18  ;;  %v374_v25 = vmul.f32 %v364_v20, %v364_v20 }
 0x103   : > { %371 = vadd.xlane.f32.xlu0 %v370_v24  ;;  %v375_v26 = vadd.f32 %v374_v25, %v373_v23 }
 0x105   : > { %376 = vadd.xlane.f32.xlu1 %v375_v26 }
 0x190   : > { %v372_v27 = vpop.xlane.xlu0 %371 }
 0x191   : > { %v379_v28 = vrot.slane %v372_v27, 2  ;;  %v386_v31 = vrot.slane %v372_v27, 4  ;;  %v392_v34 = vrot.slane %v372_v27, 6 }
 0x192   : > { %v377_v29 = vpop.xlane.xlu1 %376 }
 0x193   : > { %v381_v30 = vadd.f32 %v379_v28, %v372_v27  ;;  %v383_v32 = vrot.slane %v377_v29, 2  ;;  %v389_v36 = vrot.slane %v377_v29, 4  ;;  %v395_v39 = vrot.slane %v377_v29, 6 }
 0x195   : > { %v388_v33 = vadd.f32 %v386_v31, %v381_v30  ;;  %v385_v35 = vadd.f32 %v383_v32, %v377_v29 }
 0x197   : > { %v394_v37 = vadd.f32 %v392_v34, %v388_v33  ;;  %v391_v38 = vadd.f32 %v389_v36, %v385_v35 }
 0x199   : > { %v398_v40 = vmul.f32 0.0009765625, %v394_v37  ;;  %v397_v41 = vadd.f32 %v395_v39, %v391_v38 }
 0x19b   : > { %v400_v42 = vmul.f32 %v398_v40, %v398_v40  ;;  %v399_v43 = vmul.f32 0.0009765625, %v397_v41 }
 0x19d   : > { %v401_v44 = vsub.f32 %v399_v43, %v400_v42 }
 0x19f   : > { %v402_v45 = vadd.f32 1e-05, %v401_v44 }
 0x1a1   : > { %579 = vrsqrt.f32 %v402_v45 }
 0x1ab   : > { %v580_v47 = vpop.eup %579 }
 0x1ac   : > { %v404_v48 = vmul.f32 %v580_v47, %v368_v46 }
 0x1ae   : > { %v408_v50 = vrot.slane %v404_v48, 6  ;;  %v410_v51 = vrot.slane %v404_v48, 4  ;;  %v405_v52 = vmul.f32 %v404_v48, %v398_v40  ;;  %v412_v53 = vrot.slane %v404_v48, 2 }
 0x1b0   : > { %v414_v54 = vsel %vm320_vm0, %v404_v48, %v408_v50  ;;  %v406_v55 = vsub.f32 %v369_v49, %v405_v52 }
 0x1b1   : > { %v416_v56 = vsel %vm415_vm2, %v414_v54, %v410_v51 }
 0x1b2   : > { %v418_v57 = vsel %vm417_vm3, %v416_v56, %v412_v53  ;;  %v420_v58 = vrot.slane %v406_v55, 6  ;;  %v422_v59 = vrot.slane %v406_v55, 4  ;;  %v424_v60 = vrot.slane %v406_v55, 2 }
 0x1b3   : > { %431 = vperm.xlu1 %570, %v418_v57  }
 0x1b4   : > { %v426_v61 = vsel %vm320_vm0, %v406_v55, %v420_v58 }
 0x1b5   : > { %v427_v62 = vsel %vm415_vm2, %v426_v61, %v422_v59 }
 0x1b6   : > { %v428_v63 = vsel %vm417_vm3, %v427_v62, %v424_v60 }
 0x1b7   : > { %438 = vperm.xlu1 %570, %v428_v63  }
 0x232   : > { %v432_v0 = vpop.permute.xlu1 %431 }
 0x233   : > { %v434_v1 = vmul.f32 %v432_v0, %v362_v18  ;;  %v435_v2 = vmul.f32 %v432_v0, %v364_v20 }
 0x236   : > { %v439_v3 = vpop.permute.xlu1 %438 }
 0x237   : > { %v441_v4 = vadd.f32 %v439_v3, %v434_v1  ;;  %v442_v5 = vadd.f32 %v439_v3, %v435_v2 }
 0x239   : > { %vm443_vm4 = vcmp.ge.f32.partialorder %v441_v4, 0.0  ;;  %vm444_vm5 = vcmp.ge.f32.partialorder %v442_v5, 0.0  ;;  %v445_v6 = vmul.f32 0.2, %v441_v4  ;;  %v446_v7 = vmul.f32 0.2, %v442_v5 }
 0x23b   : > { %v447_v8 = vsel %vm443_vm4, %v441_v4, %v445_v6  ;;  %v448_v9 = vsel %vm444_vm5, %v442_v5, %v446_v7 }
 0x23c   : > { %v541_v10 = vpack.c.bf16 %v448_v9, %v447_v8 }
 0x23e   : > { %457 = vst [vmem:[%s276_s28] sm:$0xff] %v541_v10 }
 0x23f PF: > { %p12_p9 = scmp.ge.s32.totalorder %s653_s22, 4   ;;  %s710_s18 = smov %s599_s19 }
 0x240   : > { %s711_s19 = smov %s662_s25  ;;  %s712_s20 = smov %s653_s22 }
 0x241   :  { %14 = sbr.rel (!%p12_p9) target bundleno = 2 (0x2), region = 113 }

// kernel: sim_struct_render_forward.13
= control target key start
LH: loop header
LB: loop body
LE: loop exit
PB: predicated region body
PF: predicated region fallthrough
CT: control target
= control target key end

     0   :  { %s763_s18 = smov 0   ;;  %s765_s19 = smov 0   ;;  %s847_s0 = inlined_call_operand.vmem [shape: bf16[8,18], index: 0, kind: input, shape index: {}]   ;;  %s848_s1 = inlined_call_operand.vmem [shape: bf16[18,2048], index: 1, kind: input, shape index: {}]   ;;  %s849_s2 = inlined_call_operand.vmem [shape: f32[8,1], index: 2, kind: input, shape index: {}]   ;;  %s850_s3 = inlined_call_operand.vmem [shape: f32[8,1], index: 3, kind: input, shape index: {}]   ;;  %s851_s4 = inlined_call_operand.vmem [shape: f32[8,1], index: 4, kind: input, shape index: {}]   ;;  %s852_s5 = inlined_call_operand.vmem [shape: f32[8,2048], index: 5, kind: output, shape index: {}]  }
   0x1   :  { %s767_s20 = smov 0  }
   0x2 LB: > { %s620_s3 = sadd.s32 4294967295, %s730_s20   ;;  %s780_s4 = sadd.s32 1, %s730_s20   ;;  %s730_s20 = sphi %s767_s20, %s855_s20   ;;  %s726_s19 = sphi %s765_s19, %s854_s19   ;;  %s722_s18 = sphi %s763_s18, %s853_s18  }
   0x3   : > { %s40_s21 = ssub.s32 %s730_s20, %s780_s4  ;;  %s43_s22 = sadd.s32 1, %s726_s19 }
   0x4   : > { %p41_p0 = scmp.eq.s32.totalorder %s40_s21, 0  ;;  %p50_p1 = scmp.ne.s32.totalorder %s726_s19, %s722_s18 }
   0x5   : > { %p51_p2 = scmp.eq.s32.totalorder %s730_s20, 0  ;;  %p623_p4 = scmp.ge.s32.totalorder %s730_s20, 2 }
   0x6   : > { %s789_s23 = scalar_select %p41_p0, %s726_s19, %s43_s22  }
   0x7   : > { %p52_p3 = por %p51_p2, %p50_p1  ;;  %177 = sbr.rel (%p623_p4) target bundleno = 25 (0x19), region = 32 }
   0xe   : > { %180 = sbr.rel (!%p52_p3) target bundleno = 25 (0x19), region = 36  ;;  %s182_s24 = sand.u32 (%p52_p3), 1, %s726_s19  }
   0xf   : > { %s655_s25 = sshll.u32 (%p52_p3), %s730_s20, 5  ;;  %s656_s26 = smul.u32 (%p52_p3), 96, %s182_s24 }
  0x10   : > { %s187_s29 = scalar_lea.vmem (%p52_p3), %s848_s1, %s655_s25 }
  0x11   : > { %v200_v0 = vld [vmem:[%s187_s29] sm:$0xff] (%p52_p3)  ;;  %v202_v1 = vld [vmem:[%s187_s29 + $0x8] sm:$0xff] (%p52_p3)  ;;  %v204_v2 = vld [vmem:[%s187_s29 + $0x10] sm:$0xff] (%p52_p3)  ;;  %s184_s30 = scalar_lea.vmem (%p52_p3), [#allocation2], %s656_s26 }
  0x12   : > { %v206_v3 = vld [vmem:[%s187_s29 + $0x18] sm:$0xff] (%p52_p3)  ;;  %v208_v4 = vld [vmem:[%s187_s29 + $0x40] sm:$0xff] (%p52_p3)  ;;  %v210_v5 = vld [vmem:[%s187_s29 + $0x48] sm:$0xff] (%p52_p3)  ;;  %201 = vst [vmem:[%s184_s30] sm:$0xff] (%p52_p3), %v200_v0 }
  0x13   : > { %203 = vst [vmem:[%s184_s30 + $0x8] sm:$0xff] (%p52_p3), %v202_v1  ;;  %205 = vst [vmem:[%s184_s30 + $0x10] sm:$0xff] (%p52_p3), %v204_v2  ;;  %v212_v6 = vld [vmem:[%s187_s29 + $0x50] sm:$0xff] (%p52_p3)  ;;  %v214_v7 = vld [vmem:[%s187_s29 + $0x58] sm:$0xff] (%p52_p3) }
  0x14   : > { %207 = vst [vmem:[%s184_s30 + $0x18] sm:$0xff] (%p52_p3), %v206_v3  ;;  %209 = vst [vmem:[%s184_s30 + $0x20] sm:$0xff] (%p52_p3), %v208_v4  ;;  %v216_v8 = vld [vmem:[%s187_s29 + $0x80] sm:$0xff] (%p52_p3)  ;;  %v218_v9 = vld [vmem:[%s187_s29 + $0x88] sm:$0xff] (%p52_p3) }
  0x15   : > { %211 = vst [vmem:[%s184_s30 + $0x28] sm:$0xff] %v210_v5  ;;  %213 = vst [vmem:[%s184_s30 + $0x30] sm:$0xff] %v212_v6  ;;  %v220_v10 = vld [vmem:[%s187_s29 + $0x90] sm:$0xff]  ;;  %v222_v11 = vld [vmem:[%s187_s29 + $0x98] sm:$0xff] }
  0x16   : > { %215 = vst [vmem:[%s184_s30 + $0x38] sm:$0xff] %v214_v7  ;;  %217 = vst [vmem:[%s184_s30 + $0x40] sm:$0xff] %v216_v8 }
  0x17   : > { %219 = vst [vmem:[%s184_s30 + $0x48] sm:$0xff] %v218_v9  ;;  %221 = vst [vmem:[%s184_s30 + $0x50] sm:$0xff] %v220_v10 }
  0x18   : > { %223 = vst [vmem:[%s184_s30 + $0x58] sm:$0xff] %v222_v11 }
  0x19 PF: > { %p626_p5 = scmp.ge.s32.totalorder %s730_s20, 1  ;;  %p228_p6 = scmp.lt.s32.totalorder %s730_s20, 3 }
  0x1b   : > { %p229_p7 = pnand %p626_p5, %p228_p6 }
  0x1c   : > { %s235_s6 = sand.u32 (!%p229_p7), 1, %s722_s18   ;;  %v732_v12 = vmov (!%p229_p7), 0   ;;  %v283_v13 = vld [vmem:[%s849_s2] sm:$0xff] (!%p229_p7)  ;;  %vm353_vm0 = vcmask (!%p229_p7), 1040384   ;;  %vm349_vm1 = vcmask (!%p229_p7), 146432   ;;  %s627_s13 = sshll.u32 (!%p229_p7), %s620_s3, 3 }
  0x1d   : > { %232 = sbr.rel (%p229_p7) target bundleno = 282 (0x11a), region = 59  ;;  %410 = vmatprep.mubr.bf16.mxu0 (!%p229_p7), %v732_v12  ;;  %451 = vmatprep.mubr.bf16.mxu1 (!%p229_p7), %v732_v12  ;;  %v270_v38 = vld [vmem:[%s847_s0] sm:$0xf] (!%p229_p7)  ;;  %p264_p8 = scmp.lt.s32.totalorder (!%p229_p7), %s627_s13, 15 }
  0x1e   : > { %s657_s7 = smul.u32 (!%p229_p7), 96, %s235_s6  ;;  %683 = vset.pattern.permute.xlu0 (!%p229_p7), %v732_v12 }
  0x1f   : > { %286 = vperm.xlu0 (!%p229_p7), %683, %v283_v13  }
  0x20   : > { %s803_s10 = scalar_lea.vmem (!%p229_p7), [#allocation2], %s657_s7 }
  0x21   : > { %v271_v14 = vld [vmem:[%s803_s10] sm:$0xff] (!%p229_p7)  ;;  %v272_v16 = vld [vmem:[%s803_s10 + $0x8] sm:$0xff] (!%p229_p7)  ;;  %v273_v26 = vld [vmem:[%s803_s10 + $0x10] sm:$0xff] (!%p229_p7) }
  0x22   : > { %v275_v15 = vld [vmem:[%s803_s10 + $0x20] sm:$0xff] (!%p229_p7)  ;;  %v276_v18 = vld [vmem:[%s803_s10 + $0x28] sm:$0xff] (!%p229_p7)  ;;  %v277_v27 = vld [vmem:[%s803_s10 + $0x30] sm:$0xff] (!%p229_p7) }
  0x23   : > { %v630_v17 = vcombine.high (!%p229_p7), %v271_v14, %v275_v15  ;;  %v629_v19 = vcombine.low (!%p229_p7), %v271_v14, %v275_v15  ;;  %v279_v20 = vld [vmem:[%s803_s10 + $0x40] sm:$0x11] (!%p229_p7)  ;;  %v280_v21 = vld [vmem:[%s803_s10 + $0x48] sm:$0x11] (!%p229_p7)  ;;  %v632_v22 = vcombine.high (!%p229_p7), %v272_v16, %v276_v18  ;;  %v631_v23 = vcombine.low (!%p229_p7), %v272_v16, %v276_v18  ;;  %v274_v30 = vld [vmem:[%s803_s10 + $0x18] sm:$0xff] (!%p229_p7) }
  0x24   : > { %v638_v24 = vcombine.high %v279_v20, %v279_v20  ;;  %v640_v25 = vcombine.high %v280_v21, %v280_v21  ;;  %v637_v28 = vcombine.low %v279_v20, %v279_v20  ;;  %v639_v29 = vcombine.low %v280_v21, %v280_v21  ;;  %v278_v31 = vld [vmem:[%s803_s10 + $0x38] sm:$0xff]  ;;  %v281_v36 = vld [vmem:[%s803_s10 + $0x50] sm:$0x11]  ;;  %s857_s13 = smov (!%p264_p8, %s627_s13), 15 }
  0x25   : > { %378 = vmatprep.subr.bf16.mxu0 %v630_v17  ;;  %419 = vmatprep.subr.bf16.mxu1 %v632_v22  ;;  %v634_v33 = vcombine.high %v273_v26, %v277_v27  ;;  %v636_v35 = vcombine.high %v274_v30, %v278_v31  ;;  %v282_v37 = vld [vmem:[%s803_s10 + $0x58] sm:$0x11]  ;;  %v633_v39 = vcombine.low %v273_v26, %v277_v27  ;;  %s628_s14 = sshll.u32 %s857_s13, 3 }
  0x26   : > { %379 = vmatpush1.bf16.msra.mxu0 %v629_v19  ;;  %420 = vmatpush1.bf16.msra.mxu1 %v631_v23  ;;  %v355_v32 = vsel %vm353_vm0, %v637_v28, 0  ;;  %v361_v34 = vsel %vm353_vm0, %v639_v29, 0  ;;  %v635_v40 = vcombine.low %v274_v30, %v278_v31  ;;  %v642_v41 = vcombine.high %v281_v36, %v281_v36  ;;  %s267_s17 = scalar_lea.vmem %s852_s5, %s628_s14 }
  0x27   : > { %645 = vmatprep.subr.msk.bf16.mxu0 %vm353_vm0, %v638_v24  ;;  %647 = vmatprep.subr.msk.bf16.mxu1 %vm353_vm0, %v640_v25  ;;  %v641_v42 = vcombine.low %v281_v36, %v281_v36  ;;  %v644_v43 = vcombine.high %v282_v37, %v282_v37  ;;  %v643_v44 = vcombine.low %v282_v37, %v282_v37 }
  0x29   : > { %v367_v45 = vsel %vm353_vm0, %v641_v42, 0  ;;  %v373_v46 = vsel %vm353_vm0, %v643_v44, 0 }
  0x2a   : > { %381 = vmatpush1.bf16.msra.mxu0 %v355_v32  ;;  %422 = vmatpush1.bf16.msra.mxu1 %v361_v34 }
  0x2b   : > { %460 = vmatprep.subr.bf16.mxu0 %v634_v33  ;;  %501 = vmatprep.subr.bf16.mxu1 %v636_v35 }
  0x2d   : > { %646 = vmatmul.mubr.msk.bf16.vlgmr.msra.gmra.mrb[0].mxu0 %vm349_vm1, %v270_v38  ;;  %648 = vmatmul.mubr.msk.bf16.vlgmr.msra.gmra.mrb[0].mxu1 %vm349_vm1, %v270_v38 }
  0x2e   : > { %461 = vmatpush1.bf16.msra.mxu0 %v633_v39  ;;  %502 = vmatpush1.bf16.msra.mxu1 %v635_v40 }
  0x2f   : > { %649 = vmatprep.subr.msk.bf16.mxu0 %vm353_vm0, %v642_v41  ;;  %651 = vmatprep.subr.msk.bf16.mxu1 %vm353_vm0, %v644_v43 }
  0x30   : > { %492 = vmatprep.mubr.bf16.mxu0 %v732_v12  ;;  %533 = vmatprep.mubr.bf16.mxu1 %v732_v12 }
  0x32   : > { %463 = vmatpush1.bf16.msra.mxu0 %v367_v45  ;;  %504 = vmatpush1.bf16.msra.mxu1 %v373_v46 }
  0x35   : > { %650 = vmatmul.mubr.msk.bf16.vlgmr.msra.gmra.mrb[4].mxu0 %vm349_vm1, %v270_v38  ;;  %652 = vmatmul.mubr.msk.bf16.vlgmr.msra.gmra.mrb[4].mxu1 %vm349_vm1, %v270_v38 }
  0x9e   : > { %v287_v47 = vpop.permute.xlu0 %286 }
 0x100   : > { %v412_v48 = vpop.f32.mrb[0].mxu0  ;;  %v453_v49 = vpop.f32.mrb[0].mxu1 }
 0x101   : > { %v413_v50 = vadd.f32 %v412_v48, %v287_v47  ;;  %v414_v51 = vpop.f32.mrb[1].mxu0  ;;  %v454_v52 = vadd.f32 %v453_v49, %v287_v47  ;;  %v455_v54 = vpop.f32.mrb[1].mxu1 }
 0x102   : > { %v415_v53 = vadd.f32 %v414_v51, %v287_v47  ;;  %v416_v55 = vpop.f32.mrb[2].mxu0  ;;  %v456_v56 = vadd.f32 %v455_v54, %v287_v47  ;;  %v457_v57 = vpop.f32.mrb[2].mxu1 }
 0x103   : > { %692 = vtanh.f32 %v413_v50  ;;  %v417_v58 = vpop.f32.mrb[3].mxu0  ;;  %v458_v59 = vpop.f32.mrb[3].mxu1 }
 0x104   : > { %694 = vtanh.f32 %v454_v52 }
 0x105   : > { %696 = vtanh.f32 %v415_v53 }
 0x106   : > { %698 = vtanh.f32 %v456_v56 }
 0x108   : > { %v494_v60 = vpop.f32.mrb[4].mxu0  ;;  %v535_v62 = vpop.f32.mrb[4].mxu1 }
 0x109   : > { %v495_v61 = vadd.f32 %v494_v60, %v287_v47  ;;  %v496_v63 = vpop.f32.mrb[5].mxu0  ;;  %v536_v0 = vadd.f32 %v535_v62, %v287_v47  ;;  %v537_v2 = vpop.f32.mrb[5].mxu1 }
 0x10a   : > { %v497_v1 = vadd.f32 %v496_v63, %v287_v47  ;;  %v498_v3 = vpop.f32.mrb[6].mxu0  ;;  %v538_v4 = vadd.f32 %v537_v2, %v287_v47  ;;  %v539_v5 = vpop.f32.mrb[6].mxu1 }
 0x10b   : > { %700 = vtanh.f32 %v495_v61  ;;  %v499_v6 = vpop.f32.mrb[7].mxu0  ;;  %v540_v7 = vpop.f32.mrb[7].mxu1 }
 0x10c   : > { %702 = vtanh.f32 %v536_v0 }
 0x10d   : > { %v693_v8 = vpop.eup %692  ;;  %704 = vtanh.f32 %v497_v1 }
 0x10e   : > { %v695_v9 = vpop.eup %694  ;;  %550 = vst [vmem:[%s267_s17] sm:$0xff] %v693_v8  ;;  %706 = vtanh.f32 %v538_v4 }
 0x10f   : > { %v697_v10 = vpop.eup %696  ;;  %552 = vst [vmem:[%s267_s17 + $0x10] sm:$0xff] %v695_v9 }
 0x110   : > { %v699_v11 = vpop.eup %698  ;;  %551 = vst [vmem:[%s267_s17 + $0x8] sm:$0xff] %v697_v10 }
 0x111   : > { %553 = vst [vmem:[%s267_s17 + $0x18] sm:$0xff] %v699_v11 }
 0x115   : > { %v701_v12 = vpop.eup %700 }
 0x116   : > { %v703_v13 = vpop.eup %702  ;;  %554 = vst [vmem:[%s267_s17 + $0x20] sm:$0xff] %v701_v12 }
 0x117   : > { %v705_v14 = vpop.eup %704  ;;  %556 = vst [vmem:[%s267_s17 + $0x30] sm:$0xff] %v703_v13 }
 0x118   : > { %v707_v15 = vpop.eup %706  ;;  %555 = vst [vmem:[%s267_s17 + $0x28] sm:$0xff] %v705_v14 }
 0x119   : > { %557 = vst [vmem:[%s267_s17 + $0x38] sm:$0xff] %v707_v15 }
 0x11a PF: > { %p12_p9 = scmp.ge.s32.totalorder %s780_s4, 4   ;;  %s853_s18 = smov %s726_s19 }
 0x11b   : > { %s854_s19 = smov %s789_s23  ;;  %s855_s20 = smov %s780_s4 }
 0x11c   :  { %14 = sbr.rel (!%p12_p9) target bundleno = 2 (0x2), region = 98 }

// kernel: sim_struct_render_forward.10
= control target key start
LH: loop header
LB: loop body
LE: loop exit
PB: predicated region body
PF: predicated region fallthrough
CT: control target
= control target key end

     0   :  { %s3410_s9 = smov 0   ;;  %s3412_s10 = smov 0   ;;  %s7337_s0 = inlined_call_operand.vmem [shape: f32[32,2048], index: 0, kind: input, shape index: {}]   ;;  %s7338_s1 = inlined_call_operand.vmem [shape: f32[8,2048], index: 1, kind: output, shape index: {0}]   ;;  %s7339_s2 = inlined_call_operand.vmem [shape: f32[1,2048], index: 2, kind: output, shape index: {1}]  }
   0x1   :  { %s3414_s11 = smov 0  }
   0x2 LB: > { %s3124_s12 = sadd.s32 4294967295, %s3388_s11   ;;  %s3427_s13 = sadd.s32 1, %s3388_s11   ;;  %s3388_s11 = sphi %s3414_s11, %s8560_s11   ;;  %s3384_s10 = sphi %s3412_s10, %s8559_s10   ;;  %s3380_s9 = sphi %s3410_s9, %s8558_s9  }
   0x3   : > { %s17_s14 = ssub.s32 %s3388_s11, %s3427_s13  ;;  %s20_s15 = sadd.s32 1, %s3384_s10 }
   0x4   : > { %p18_p0 = scmp.eq.s32.totalorder %s17_s14, 0  ;;  %p27_p1 = scmp.ne.s32.totalorder %s3384_s10, %s3380_s9 }
   0x5   : > { %p28_p2 = scmp.eq.s32.totalorder %s3388_s11, 0  ;;  %p3127_p4 = scmp.ge.s32.totalorder %s3388_s11, 2 }
   0x6   : > { %s3436_s16 = scalar_select %p18_p0, %s3384_s10, %s20_s15  }
   0x7   : > { %p29_p3 = por %p28_p2, %p27_p1  ;;  %105 = sbr.rel (%p3127_p4) target bundleno = 34 (0x22), region = 16 }
   0xe   : > { %108 = sbr.rel (!%p29_p3) target bundleno = 34 (0x22), region = 20  ;;  %s110_s17 = sand.u32 (%p29_p3), 1, %s3384_s10  }
   0xf   : > { %s3138_s18 = sshll.u32 (%p29_p3), %s3388_s11, 6  ;;  %s3128_s19 = sshll.u32 (%p29_p3), %s110_s17, 8 }
  0x10   : > { %s3444_s22 = scalar_lea.vmem (%p29_p3), %s7337_s0, %s3138_s18  ;;  %s3449_s23 = scalar_lea.vmem (%p29_p3), [#allocation2], %s3128_s19 }
  0x11   : > { %v128_v0 = vld [vmem:[%s3444_s22] sm:$0xff] (%p29_p3)  ;;  %v130_v1 = vld [vmem:[%s3444_s22 + $0x8] sm:$0xff] (%p29_p3)  ;;  %v132_v2 = vld [vmem:[%s3444_s22 + $0x10] sm:$0xff] (%p29_p3) }
  0x12   : > { %129 = vst [vmem:[%s3449_s23] sm:$0xff] (%p29_p3), %v128_v0  ;;  %131 = vst [vmem:[%s3449_s23 + $0x8] sm:$0xff] (%p29_p3), %v130_v1  ;;  %v134_v3 = vld [vmem:[%s3444_s22 + $0x18] sm:$0xff] (%p29_p3)  ;;  %v136_v4 = vld [vmem:[%s3444_s22 + $0x20] sm:$0xff] (%p29_p3) }
  0x13   : > { %133 = vst [vmem:[%s3449_s23 + $0x10] sm:$0xff] (%p29_p3), %v132_v2  ;;  %v138_v5 = vld [vmem:[%s3444_s22 + $0x28] sm:$0xff] (%p29_p3)  ;;  %135 = vst [vmem:[%s3449_s23 + $0x18] sm:$0xff] (%p29_p3), %v134_v3  ;;  %v140_v6 = vld [vmem:[%s3444_s22 + $0x30] sm:$0xff] (%p29_p3) }
  0x14   : > { %137 = vst [vmem:[%s3449_s23 + $0x20] sm:$0xff] (%p29_p3), %v136_v4  ;;  %139 = vst [vmem:[%s3449_s23 + $0x28] sm:$0xff] (%p29_p3), %v138_v5  ;;  %v142_v7 = vld [vmem:[%s3444_s22 + $0x38] sm:$0xff] (%p29_p3)  ;;  %v144_v8 = vld [vmem:[%s3444_s22 + $0x80] sm:$0xff] (%p29_p3) }
  0x15   : > { %141 = vst [vmem:[%s3449_s23 + $0x30] sm:$0xff] %v140_v6  ;;  %143 = vst [vmem:[%s3449_s23 + $0x38] sm:$0xff] %v142_v7  ;;  %v146_v9 = vld [vmem:[%s3444_s22 + $0x88] sm:$0xff]  ;;  %v148_v10 = vld [vmem:[%s3444_s22 + $0x90] sm:$0xff] }
  0x16   : > { %145 = vst [vmem:[%s3449_s23 + $0x40] sm:$0xff] %v144_v8  ;;  %v150_v11 = vld [vmem:[%s3444_s22 + $0x98] sm:$0xff]  ;;  %147 = vst [vmem:[%s3449_s23 + $0x48] sm:$0xff] %v146_v9  ;;  %v152_v12 = vld [vmem:[%s3444_s22 + $0xa0] sm:$0xff] }
  0x17   : > { %149 = vst [vmem:[%s3449_s23 + $0x50] sm:$0xff] %v148_v10  ;;  %151 = vst [vmem:[%s3449_s23 + $0x58] sm:$0xff] %v150_v11  ;;  %v154_v13 = vld [vmem:[%s3444_s22 + $0xa8] sm:$0xff]  ;;  %v156_v14 = vld [vmem:[%s3444_s22 + $0xb0] sm:$0xff] }
  0x18   : > { %153 = vst [vmem:[%s3449_s23 + $0x60] sm:$0xff] %v152_v12  ;;  %155 = vst [vmem:[%s3449_s23 + $0x68] sm:$0xff] %v154_v13  ;;  %v158_v15 = vld [vmem:[%s3444_s22 + $0xb8] sm:$0xff]  ;;  %v160_v16 = vld [vmem:[%s3444_s22 + $0x100] sm:$0xff] }
  0x19   : > { %157 = vst [vmem:[%s3449_s23 + $0x70] sm:$0xff] %v156_v14  ;;  %v162_v17 = vld [vmem:[%s3444_s22 + $0x108] sm:$0xff]  ;;  %159 = vst [vmem:[%s3449_s23 + $0x78] sm:$0xff] %v158_v15  ;;  %v164_v18 = vld [vmem:[%s3444_s22 + $0x110] sm:$0xff] }
  0x1a   : > { %161 = vst [vmem:[%s3449_s23 + $0x80] sm:$0xff] %v160_v16  ;;  %163 = vst [vmem:[%s3449_s23 + $0x88] sm:$0xff] %v162_v17  ;;  %v166_v19 = vld [vmem:[%s3444_s22 + $0x118] sm:$0xff]  ;;  %v168_v20 = vld [vmem:[%s3444_s22 + $0x120] sm:$0xff] }
  0x1b   : > { %165 = vst [vmem:[%s3449_s23 + $0x90] sm:$0xff] %v164_v18  ;;  %167 = vst [vmem:[%s3449_s23 + $0x98] sm:$0xff] %v166_v19  ;;  %v170_v21 = vld [vmem:[%s3444_s22 + $0x128] sm:$0xff]  ;;  %v172_v22 = vld [vmem:[%s3444_s22 + $0x130] sm:$0xff] }
  0x1c   : > { %169 = vst [vmem:[%s3449_s23 + $0xa0] sm:$0xff] %v168_v20  ;;  %v174_v23 = vld [vmem:[%s3444_s22 + $0x138] sm:$0xff]  ;;  %171 = vst [vmem:[%s3449_s23 + $0xa8] sm:$0xff] %v170_v21  ;;  %v176_v24 = vld [vmem:[%s3444_s22 + $0x180] sm:$0xff] }
  0x1d   : > { %173 = vst [vmem:[%s3449_s23 + $0xb0] sm:$0xff] %v172_v22  ;;  %175 = vst [vmem:[%s3449_s23 + $0xb8] sm:$0xff] %v174_v23  ;;  %v178_v25 = vld [vmem:[%s3444_s22 + $0x188] sm:$0xff]  ;;  %v180_v26 = vld [vmem:[%s3444_s22 + $0x190] sm:$0xff] }
  0x1e   : > { %177 = vst [vmem:[%s3449_s23 + $0xc0] sm:$0xff] %v176_v24  ;;  %179 = vst [vmem:[%s3449_s23 + $0xc8] sm:$0xff] %v178_v25  ;;  %v182_v27 = vld [vmem:[%s3444_s22 + $0x198] sm:$0xff]  ;;  %v184_v28 = vld [vmem:[%s3444_s22 + $0x1a0] sm:$0xff] }
  0x1f   : > { %181 = vst [vmem:[%s3449_s23 + $0xd0] sm:$0xff] %v180_v26  ;;  %v186_v29 = vld [vmem:[%s3444_s22 + $0x1a8] sm:$0xff]  ;;  %183 = vst [vmem:[%s3449_s23 + $0xd8] sm:$0xff] %v182_v27  ;;  %v188_v30 = vld [vmem:[%s3444_s22 + $0x1b0] sm:$0xff] }
  0x20   : > { %185 = vst [vmem:[%s3449_s23 + $0xe0] sm:$0xff] %v184_v28  ;;  %187 = vst [vmem:[%s3449_s23 + $0xe8] sm:$0xff] %v186_v29  ;;  %v190_v31 = vld [vmem:[%s3444_s22 + $0x1b8] sm:$0xff] }
  0x21   : > { %189 = vst [vmem:[%s3449_s23 + $0xf0] sm:$0xff] %v188_v30  ;;  %191 = vst [vmem:[%s3449_s23 + $0xf8] sm:$0xff] %v190_v31 }
  0x22 PF: > { %p3131_p5 = scmp.ge.s32.totalorder %s3388_s11, 1  ;;  %p196_p6 = scmp.lt.s32.totalorder %s3388_s11, 3 }
  0x24   : > { %p197_p7 = pnand %p3131_p5, %p196_p6 }
  0x26   : > { %200 = sbr.rel (%p197_p7) target bundleno = 567 (0x237), region = 43 }
  0x2d   : > { %s203_s24 = sand.u32 1, %s3380_s9   ;;  %s3390_s27 = smov 96   ;;  %vm7640_vm0 = vcmask 1040384   ;;  %vm7641_vm1 = vcmask 1041408   ;;  %vm754_vm2 = vcmask 1043456   ;;  %vm1276_vm3 = vcmask 1046528  }
  0x2e   : > { %s3132_s25 = sshll.u32 %s203_s24, 8  ;;  %s3392_s28 = smov 32   ;;  %vm1741_vm5 = vcmask 785408   ;;  %vm1870_vm6 = vcmask 261120   ;;  %vm7642_vm10 = vcmask 1039360   ;;  %vm7649_vm11 = vcmask 7168  }
  0x2f   : > { %s3515_s26 = scalar_lea.vmem [#allocation2], %s3132_s25  ;;  %s3393_s29 = smov 127  }
  0x30   : > { %v3518_v32 = vld [vmem:[%s3515_s26 + $0x10] sm:$0xff]  ;;  %v3521_v33 = vld [vmem:[%s3515_s26] sm:$0xff]  ;;  %v3528_v34 = vld [vmem:[%s3515_s26 + $0x18] sm:$0xff]  ;;  %s3394_s30 = smov 1   ;;  %s6562_s3 = sshll.u32 %s3124_s12, 3 }
  0x31   : > { %1681 = vrot.lane.b32.xlu1 %v3518_v32, %s3390_s27  ;;  %1677 = vrot.lane.b32.xlu0 %v3521_v33, %s3390_s27  ;;  %v3531_v35 = vld [vmem:[%s3515_s26 + $0x8] sm:$0xff]  ;;  %v3541_v37 = vld [vmem:[%s3515_s26 + $0x20] sm:$0xff]  ;;  %v272_v41 = vmin.f32 %v3521_v33, 0.999999  ;;  %v274_v46 = vmin.f32 %v3518_v32, 0.999999 }
  0x32   : > { %v3538_v36 = vld [vmem:[%s3515_s26 + $0x28] sm:$0xff]  ;;  %v3548_v38 = vld [vmem:[%s3515_s26 + $0x38] sm:$0xff]  ;;  %v3551_v39 = vld [vmem:[%s3515_s26 + $0x30] sm:$0xff]  ;;  %v273_v40 = vmin.f32 %v3531_v35, 0.999999  ;;  %p230_p8 = scmp.lt.s32.totalorder %s6562_s3, 15 }
  0x33   : > { %v304_v43 = vsub.f32 1.0, %v272_v41  ;;  %v3560_v44 = vld [vmem:[%s3515_s26 + $0x48] sm:$0xff]  ;;  %v3563_v45 = vld [vmem:[%s3515_s26 + $0x40] sm:$0xff]  ;;  %v275_v47 = vmin.f32 %v3528_v34, 0.999999  ;;  %v306_v48 = vsub.f32 1.0, %v274_v46 }
  0x34   : > { %v305_v42 = vsub.f32 1.0, %v273_v40  ;;  %v3572_v50 = vld [vmem:[%s3515_s26 + $0x58] sm:$0xff]  ;;  %v3575_v51 = vld [vmem:[%s3515_s26 + $0x50] sm:$0xff]  ;;  %v276_v52 = vmin.f32 %v3541_v37, 0.999999  ;;  %v3584_v56 = vld [vmem:[%s3515_s26 + $0x68] sm:$0xff] }
  0x35   : > { %1683 = vrot.lane.b32.xlu1 %v3528_v34, %s3390_s27  ;;  %1679 = vrot.lane.b32.xlu0 %v3531_v35, %s3390_s27  ;;  %v307_v49 = vsub.f32 1.0, %v275_v47  ;;  %7663 = vst [vmem:[#allocation3_spill] sm:$0xff] %v3572_v50  ;;  %v277_v53 = vmin.f32 %v3538_v36, 0.999999  ;;  %7664 = vst [vmem:[#allocation4_spill] sm:$0xff] %v3584_v56  ;;  %v3587_v57 = vld [vmem:[%s3515_s26 + $0x60] sm:$0xff] }
  0x36   : > { %3168 = vlog2.f32 %v305_v42  ;;  %v308_v54 = vsub.f32 1.0, %v276_v52  ;;  %7665 = vst [vmem:[#allocation5_spill] sm:$0xff] %v3587_v57  ;;  %v278_v58 = vmin.f32 %v3551_v39, 0.999999  ;;  %v279_v59 = vmin.f32 %v3548_v38, 0.999999 }
  0x37   : > { %3170 = vlog2.f32 %v304_v43  ;;  %v309_v55 = vsub.f32 1.0, %v277_v53  ;;  %v3598_v63 = vld [vmem:[%s3515_s26 + $0x78] sm:$0xff]  ;;  %v3601_v0 = vld [vmem:[%s3515_s26 + $0x70] sm:$0xff]  ;;  %v3617_v10 = vld [vmem:[%s3515_s26 + $0x88] sm:$0xff]  ;;  %v281_v20 = vmin.f32 %v3560_v44, 0.999999 }
  0x38   : > { %3172 = vlog2.f32 %v306_v48  ;;  %7666 = vst [vmem:[#allocation6_spill] sm:$0xff] %v3598_v63  ;;  %7667 = vst [vmem:[#allocation7_spill] sm:$0xff] %v3601_v0  ;;  %v310_v2 = vsub.f32 1.0, %v278_v58  ;;  %v311_v4 = vsub.f32 1.0, %v279_v59  ;;  %v3620_v11 = vld [vmem:[%s3515_s26 + $0x80] sm:$0xff]  ;;  %v3648_v25 = vld [vmem:[%s3515_s26 + $0x98] sm:$0xff] }
  0x39   : > { %1687 = vrot.lane.b32.xlu1 %v3538_v36, %s3390_s27  ;;  %1685 = vrot.lane.b32.xlu0 %v3541_v37, %s3390_s27  ;;  %3174 = vlog2.f32 %v307_v49  ;;  %7669 = vst [vmem:[#allocation9_spill] sm:$0xff] %v3620_v11  ;;  %7672 = vst [vmem:[#allocation12_spill] sm:$0xff] %v3648_v25  ;;  %v3651_v26 = vld [vmem:[%s3515_s26 + $0x90] sm:$0xff]  ;;  %v280_v48 = vmin.f32 %v3563_v45, 0.999999  ;;  %v3693_v58 = vld [vmem:[%s3515_s26 + $0xa0] sm:$0xff] }
  0x3a   : > { %3176 = vlog2.f32 %v308_v54  ;;  %v313_v54 = vsub.f32 1.0, %v281_v20  ;;  %7677 = vst [vmem:[#allocation17_spill] sm:$0xff] %v3693_v58  ;;  %s8562_s3 = smov (!%p230_p8, %s6562_s3), 15 }
  0x3b   : > { %3178 = vlog2.f32 %v309_v55  ;;  %v3690_v55 = vld [vmem:[%s3515_s26 + $0xa8] sm:$0xff]  ;;  %s238_s6 = scalar_lea.vmem %s7339_s2, %s8562_s3  ;;  %s3134_s7 = sshll.u32 %s8562_s3, 3 }
  0x3c   : > { %3180 = vlog2.f32 %v310_v2  ;;  %7676 = vst [vmem:[#allocation16_spill] sm:$0xff] %v3690_v55  ;;  %s7276_s11 = scalar_lea.vmem %s7338_s1, %s3134_s7 }
  0x3d   : > { %1691 = vrot.lane.b32.xlu1 %v3548_v38, %s3390_s27  ;;  %1689 = vrot.lane.b32.xlu0 %v3551_v39, %s3390_s27  ;;  %3182 = vlog2.f32 %v311_v4 }
  0x3e   : > { %3184 = vlog2.f32 %v313_v54 }
  0x40   : > { %v3169_v60 = vpop.eup %3168 }
  0x41   : > { %1695 = vrot.lane.b32.xlu1 %v3560_v44, %s3390_s27  ;;  %1693 = vrot.lane.b32.xlu0 %v3563_v45, %s3390_s27  ;;  %v3171_v61 = vpop.eup %3170  ;;  %v3595_v62 = vmul.f32 0.6931472, %v3169_v60 }
  0x42   : > { %v3603_v1 = vmul.f32 0.6931472, %v3171_v61  ;;  %v3173_v5 = vpop.eup %3172 }
  0x43   : > { %v7355_v3 = vrot.slane %v3595_v62, 7  ;;  %v3175_v7 = vpop.eup %3174  ;;  %v3614_v9 = vmul.f32 0.6931472, %v3173_v5 }
  0x44   : > { %v7354_v6 = vrot.slane %v3603_v1, 7  ;;  %v3628_v14 = vmul.f32 0.6931472, %v3175_v7  ;;  %v3177_v17 = vpop.eup %3176 }
  0x45   : > { %1699 = vrot.lane.b32.xlu1 %v3572_v50, %s3390_s27  ;;  %1697 = vrot.lane.b32.xlu0 %v3575_v51, %s3390_s27  ;;  %v522_v8 = vsel %vm7640_vm0, 0.0, %v7355_v3  ;;  %7668 = vst [vmem:[#allocation8_spill] sm:$0xff] %v3614_v9  ;;  %v7348_v16 = vrot.slane %v3614_v9, 7  ;;  %v3179_v21 = vpop.eup %3178  ;;  %v3645_v24 = vmul.f32 0.6931472, %v3177_v17  ;;  %v3824_v3 = vld [vmem:[%s3515_s26 + $0xe8] sm:$0xff] }
  0x46   : > { %v3623_v12 = vadd.f32 %v522_v8, %v3595_v62  ;;  %v521_v13 = vsel %vm7640_vm0, 0.0, %v7354_v6  ;;  %7670 = vst [vmem:[#allocation10_spill] sm:$0xff] %v3628_v14  ;;  %v7347_v19 = vrot.slane %v3628_v14, 7  ;;  %v3662_v30 = vmul.f32 0.6931472, %v3179_v21  ;;  %v3181_v8 = vpop.eup %3180  ;;  %7696 = vst [vmem:[#allocation34_spill] sm:$0xff] %v3824_v3 }
  0x47   : > { %v3631_v15 = vadd.f32 %v521_v13, %v3603_v1  ;;  %v523_v23 = vsel %vm7640_vm0, 0.0, %v7348_v16  ;;  %7671 = vst [vmem:[#allocation11_spill] sm:$0xff] %v3645_v24  ;;  %v7341_v42 = vrot.slane %v3645_v24, 7 }
  0x48   : > { %v7353_v18 = vrot.slane %v3623_v12, 6  ;;  %v524_v28 = vsel %vm7640_vm0, 0.0, %v7347_v19  ;;  %v3660_v29 = vadd.f32 %v523_v23, %v3614_v9  ;;  %7674 = vst [vmem:[#allocation14_spill] sm:$0xff] %v3662_v30  ;;  %v7340_v47 = vrot.slane %v3662_v30, 7  ;;  %v3183_v23 = vpop.eup %3182 }
  0x49   : > { %1703 = vrot.lane.b32.xlu1 %v3584_v56, %s3390_s27  ;;  %1701 = vrot.lane.b32.xlu0 %v3587_v57, %s3390_s27  ;;  %v7351_v22 = vrot.slane %v3631_v15, 6  ;;  %v3671_v41 = vadd.f32 %v524_v28, %v3628_v14  ;;  %v525_v53 = vsel %vm7640_vm0, 0.0, %v7341_v42 }
  0x4a   : > { %v683_v27 = vsel %vm7641_vm1, 0.0, %v7353_v18  ;;  %7673 = vst [vmem:[#allocation13_spill] sm:$0xff] %v3660_v29  ;;  %v7343_v46 = vrot.slane %v3660_v29, 6  ;;  %v526_v61 = vsel %vm7640_vm0, 0.0, %v7340_v47  ;;  %v3712_v7 = vadd.f32 %v525_v53, %v3645_v24  ;;  %v3733_v53 = vld [vmem:[%s3515_s26 + $0xb8] sm:$0xff] }
  0x4b   : > { %v3665_v31 = vadd.f32 %v683_v27, %v3623_v12  ;;  %v682_v40 = vsel %vm7641_vm1, 0.0, %v7351_v22  ;;  %7675 = vst [vmem:[#allocation15_spill] sm:$0xff] %v3671_v41  ;;  %v7342_v52 = vrot.slane %v3671_v41, 6  ;;  %v3724_v21 = vadd.f32 %v526_v61, %v3662_v30  ;;  %7683 = vst [vmem:[#allocation23_spill] sm:$0xff] %v3733_v53 }
  0x4c   : > { %v3675_v43 = vadd.f32 %v682_v40, %v3631_v15  ;;  %v684_v60 = vsel %vm7641_vm1, 0.0, %v7343_v46  ;;  %7679 = vst [vmem:[#allocation19_spill] sm:$0xff] %v3712_v7  ;;  %v7345_v28 = vrot.slane %v3712_v7, 6  ;;  %v312_v40 = vsub.f32 1.0, %v280_v48 }
  0x4d   : > { %1707 = vrot.lane.b32.xlu1 %v3598_v63, %s3390_s27  ;;  %1705 = vrot.lane.b32.xlu0 %v3601_v0, %s3390_s27  ;;  %v7350_v49 = vrot.slane %v3665_v31, 4  ;;  %v685_v4 = vsel %vm7641_vm1, 0.0, %v7342_v52  ;;  %v3709_v5 = vadd.f32 %v684_v60, %v3660_v29  ;;  %7682 = vst [vmem:[#allocation22_spill] sm:$0xff] %v3724_v21  ;;  %v3736_v60 = vld [vmem:[%s3515_s26 + $0xb0] sm:$0xff]  ;;  %v3751_v52 = vmul.f32 0.6931472, %v3181_v8 }
  0x4e   : > { %v7349_v59 = vrot.slane %v3675_v43, 4  ;;  %v3721_v20 = vadd.f32 %v685_v4, %v3671_v41  ;;  %7684 = vst [vmem:[#allocation24_spill] sm:$0xff] %v3736_v60  ;;  %v7346_v4 = vrot.slane %v3724_v21, 6  ;;  %v686_v42 = vsel %vm7641_vm1, 0.0, %v7345_v28 }
  0x4f   : > { %v844_v2 = vsel %vm754_vm2, 0.0, %v7350_v49  ;;  %7678 = vst [vmem:[#allocation18_spill] sm:$0xff] %v3709_v5  ;;  %v7344_v27 = vrot.slane %v3709_v5, 4  ;;  %v3756_v46 = vmul.f32 0.6931472, %v3183_v23  ;;  %3186 = vlog2.f32 %v312_v40  ;;  %v3771_v23 = vld [vmem:[%s3515_s26 + $0xc0] sm:$0xff] }
  0x50   : > { %v3715_v13 = vadd.f32 %v844_v2, %v3665_v31  ;;  %v843_v17 = vsel %vm754_vm2, 0.0, %v7349_v59  ;;  %7681 = vst [vmem:[#allocation21_spill] sm:$0xff] %v3721_v20  ;;  %v7352_v61 = vrot.slane %v3721_v20, 4  ;;  %v282_v8 = vmin.f32 %v3575_v51, 0.999999  ;;  %7688 = vst [vmem:[#allocation28_spill] sm:$0xff] %v3771_v23 }
  0x51   : > { %1711 = vrot.lane.b32.xlu1 %v3617_v10, %s3390_s27  ;;  %1709 = vrot.lane.b32.xlu0 %v3620_v11, %s3390_s27  ;;  %v3739_v2 = vadd.f32 %v843_v17, %v3675_v43  ;;  %v845_v48 = vsel %vm754_vm2, 0.0, %v7344_v27  ;;  %v687_v17 = vsel %vm7641_vm1, 0.0, %v7346_v4  ;;  %v3763_v27 = vadd.f32 %v686_v42, %v3712_v7  ;;  %v3768_v4 = vld [vmem:[%s3515_s26 + $0xc8] sm:$0xff] }
  0x52   : > { %7680 = vst [vmem:[#allocation20_spill] sm:$0xff] %v3715_v13  ;;  %v948_v47 = vsub.f32 %v3715_v13, %v3595_v62  ;;  %v283_v28 = vmin.f32 %v3572_v50, 0.999999  ;;  %7687 = vst [vmem:[#allocation27_spill] sm:$0xff] %v3768_v4  ;;  %v846_v19 = vsel %vm754_vm2, 0.0, %v7352_v61  ;;  %v3779_v42 = vadd.f32 %v845_v48, %v3709_v5 }
  0x53   : > { %7685 = vst [vmem:[#allocation25_spill] sm:$0xff] %v3739_v2  ;;  %7686 = vst [vmem:[#allocation26_spill] sm:$0xff] %v3763_v27  ;;  %v947_v54 = vsub.f32 %v3739_v2, %v3603_v1  ;;  %v3782_v40 = vadd.f32 %v687_v17, %v3724_v21  ;;  %v7358_v59 = vrot.slane %v3751_v52, 7  ;;  %v3792_v61 = vadd.f32 %v846_v19, %v3721_v20  ;;  %v3797_v17 = vld [vmem:[%s3515_s26 + $0xd8] sm:$0xff] }
  0x54   : > { %7689 = vst [vmem:[#allocation29_spill] sm:$0xff] %v3779_v42  ;;  %v981_v16 = vmul.f32 1.442695, %v948_v47  ;;  %v3794_v48 = vsub.f32 1.0, %v282_v8  ;;  %7692 = vst [vmem:[#allocation32_spill] sm:$0xff] %v3797_v17  ;;  %v3800_v47 = vld [vmem:[%s3515_s26 + $0xd0] sm:$0xff]  ;;  %v949_v6 = vsub.f32 %v3779_v42, %v3614_v9  ;;  %v3185_v42 = vpop.eup %3184  ;;  %v1162_v5 = vlaneseq }
  0x55   : > { %1715 = vrot.lane.b32.xlu1 %v3648_v25, %s3390_s27  ;;  %1713 = vrot.lane.b32.xlu0 %v3651_v26, %s3390_s27  ;;  %7690 = vst [vmem:[#allocation30_spill] sm:$0xff] %v3782_v40  ;;  %7691 = vst [vmem:[#allocation31_spill] sm:$0xff] %v3792_v61  ;;  %v979_v18 = vmul.f32 1.442695, %v947_v54  ;;  %v3805_v22 = vsub.f32 1.0, %v283_v28  ;;  %v1280_v19 = vrot.slane %v3531_v35, 1 }
  0x56   : > { %7693 = vst [vmem:[#allocation33_spill] sm:$0xff] %v3800_v47  ;;  %3188 = vpow2.f32 %v981_v16  ;;  %v527_v8 = vsel %vm7640_vm0, 0.0, %v7358_v59  ;;  %v7694_v21 = vrot.slane %v3763_v27, 4  ;;  %v7695_v28 = vrot.slane %v3756_v46, 7 }
  0x57   : > { %v1277_v49 = vrot.slane %v3521_v33, 1  ;;  %v983_v20 = vmul.f32 1.442695, %v949_v6  ;;  %v7700_v54 = vrot.slane %v3531_v35, 7  ;;  %3190 = vpow2.f32 %v979_v18  ;;  %v3864_v18 = vld [vmem:[%s3515_s26 + $0xf8] sm:$0xff] }
  0x58   : > { %v847_v7 = vsel %vm754_vm2, 0.0, %v7694_v21  ;;  %v528_v16 = vsel %vm7640_vm0, 0.0, %v7695_v28  ;;  %v950_v21 = vsub.f32 %v3792_v61, %v3628_v14  ;;  %v3832_v28 = vld [vmem:[%s3515_s26 + $0xe0] sm:$0xff]  ;;  %v7702_v41 = vrot.slane %v3563_v45, 1  ;;  %7704 = vst [vmem:[#allocation37_spill] sm:$0xff] %v3864_v18 }
  0x59   : > { %1719 = vrot.lane.b32.xlu1 %v3690_v55, %s3390_s27  ;;  %1717 = vrot.lane.b32.xlu0 %v3693_v58, %s3390_s27  ;;  %7697 = vst [vmem:[#allocation35_spill] sm:$0xff] %v3832_v28  ;;  %v1462_v61 = vsel %vm7640_vm0, %v3531_v35, %v7700_v54  ;;  %3192 = vpow2.f32 %v983_v20  ;;  %v1286_v20 = vrot.slane %v3528_v34, 1 }
  0x5a   : > { %v3850_v6 = vsel %vm1276_vm3, %v1277_v49, %v7702_v41  ;;  %v3391_v41 = vmov 1966171168  }
  0x5b   : > { %v3869_v49 = vunpack.c.l.s4 %v3391_v41 }
  0x5d   : > { %1723 = vrot.lane.b32.xlu1 %v3733_v53, %s3390_s27  ;;  %1721 = vrot.lane.b32.xlu0 %v3736_v60, %s3390_s27  ;;  %v3845_v60 = vadd.f32 %v847_v7, %v3763_v27  ;;  %v3867_v7 = vld [vmem:[%s3515_s26 + $0xf0] sm:$0xff] }
  0x5e   : > { %7705 = vst [vmem:[#allocation38_spill] sm:$0xff] %v3867_v7 }
  0x5f   : > { %7701 = vst [vmem:[#allocation36_spill] sm:$0xff] %v3845_v60  ;;  %v951_v55 = vsub.f32 %v3845_v60, %v3645_v24  ;;  %v7393_v60 = vrot.slane %v3528_v34, 7  ;;  %v7403_v24 = vrot.slane %v3538_v36, 7 }
  0x61   : > { %1727 = vrot.lane.b32.xlu1 %v3768_v4, %s3390_s27  ;;  %1725 = vrot.lane.b32.xlu0 %v3771_v23, %s3390_s27  ;;  %v7699_v23 = vrot.slane %v3782_v40, 4  ;;  %v3187_v4 = vpop.eup %3186 }
  0x62   : > { %v3879_v27 = vmul.f32 0.6931472, %v3187_v4  ;;  %v3189_v4 = vpop.eup %3188 }
  0x63   : > { %v848_v59 = vsel %vm754_vm2, 0.0, %v7699_v23 }
  0x64   : > { %v3874_v54 = vadd.f32 %v848_v59, %v3782_v40  ;;  %v1283_v40 = vrot.slane %v3518_v32, 1 }
  0x65   : > { %1731 = vrot.lane.b32.xlu1 %v3797_v17, %s3390_s27  ;;  %1729 = vrot.lane.b32.xlu0 %v3800_v47, %s3390_s27  ;;  %v7698_v17 = vrot.slane %v3560_v44, 1 }
  0x66   : > { %7707 = vst [vmem:[#allocation40_spill] sm:$0xff] %v3874_v54 }
  0x67   : > { %v1282_v47 = vsel %vm1276_vm3, %v1280_v19, %v7698_v17  ;;  %v7703_v17 = vrot.slane %v3521_v33, 7  ;;  %v3857_v19 = vadd.f32 %v527_v8, %v3751_v52  ;;  %v3877_v8 = vadd.f32 %v528_v16, %v3756_v46 }
  0x68   : > { %v1534_v53 = vsub.f32 %v1282_v47, %v1462_v61  ;;  %v3871_v61 = vshrl.u32 %v1162_v5, 7  ;;  %v1470_v29 = vsub.f32 %v1282_v47, %v3531_v35  ;;  %v7392_v16 = vrot.slane %v3575_v51, 1 }
  0x69   : > { %v1461_v23 = vsel %vm7640_vm0, %v3521_v33, %v7703_v17  ;;  %1735 = vrot.lane.b32.xlu1 %v3824_v3, %s3390_s27  ;;  %1733 = vrot.lane.b32.xlu0 %v3832_v28, %s3390_s27  ;;  %7708 = vst [vmem:[#allocation41_spill] sm:$0xff] %v3877_v8  ;;  %v985_v17 = vmul.f32 1.442695, %v950_v21  ;;  %v3881_v28 = vmul.f32 0.6931472, %v3185_v42  ;;  %v3883_v3 = vand.u32 127, %v1162_v5 }
  0x6a   : > { %7706 = vst [vmem:[#allocation39_spill] sm:$0xff] %v3871_v61  ;;  %v1533_v41 = vsub.f32 %v3850_v6, %v1461_v23  ;;  %v1566_v59 = vmul.f32 0.5, %v1534_v53  ;;  %v1161_v5 = vunpack.c.0.s8 %v3869_v49  ;;  %vm1236_vm4 = vcmp.eq.s32.totalorder %v3871_v61, 0 }
  0x6b   : > { %7709 = vst [vmem:[#allocation42_spill] sm:$0xff] %v3883_v3  ;;  %v7390_v42 = vrot.slane %v3572_v50, 1  ;;  %v952_v53 = vsub.f32 %v3874_v54, %v3662_v30  ;;  %v1469_v47 = vsub.f32 %v3850_v6, %v3521_v33  ;;  %v1285_v21 = vsel %vm1276_vm3, %v1283_v40, %v7392_v16 }
  0x6c   : > { %v7391_v23 = vrot.slane %v3518_v32, 7  ;;  %3194 = vpow2.f32 %v985_v17  ;;  %v1630_v54 = vsel %vm1236_vm4, %v1470_v29, %v1566_v59  ;;  %v1464_v6 = vsel %vm7640_vm0, %v3528_v34, %v7393_v60 }
  0x6d   : > { %1739 = vrot.lane.b32.xlu1 %v3864_v18, %s3390_s27  ;;  %1737 = vrot.lane.b32.xlu0 %v3867_v7, %s3390_s27  ;;  %v1565_v7 = vmul.f32 0.5, %v1533_v41  ;;  %v1288_v49 = vsel %vm1276_vm3, %v1286_v20, %v7390_v42  ;;  %v987_v17 = vmul.f32 1.442695, %v951_v55  ;;  %v3191_v41 = vpop.eup %3190  ;;  %v989_v20 = vmul.f32 1.442695, %v952_v53 }
  0x6e   : > { %v1463_v40 = vsel %vm7640_vm0, %v3518_v32, %v7391_v23  ;;  %v1536_v59 = vsub.f32 %v1288_v49, %v1464_v6  ;;  %v1289_v42 = vrot.slane %v3541_v37, 1  ;;  %v7399_v23 = vrot.slane %v3587_v57, 1  ;;  %v3193_v6 = vpop.eup %3192 }
  0x6f   : > { %v1535_v29 = vsub.f32 %v1285_v21, %v1463_v40  ;;  %v1292_v16 = vrot.slane %v3538_v36, 1  ;;  %v7397_v60 = vrot.slane %v3584_v56, 1  ;;  %v7398_v55 = vrot.slane %v3541_v37, 7 }
  0x70   : > { %v3932_v18 = vmul.f32 %v3189_v4, %v3531_v35  ;;  %v2594_v30 = vsub.f32 0.0, %v1630_v54  ;;  %3196 = vpow2.f32 %v987_v17  ;;  %v1291_v53 = vsel %vm1276_vm3, %v1289_v42, %v7399_v23 }
  0x71   : > { %1808 = vrot.lane.b32.xlu1 %v3531_v35, %s3392_s28  ;;  %1806 = vrot.lane.b32.xlu0 %v3521_v33, %s3392_s28  ;;  %v1294_v14 = vsel %vm1276_vm3, %v1292_v16, %v7397_v60  ;;  %v1465_v4 = vsel %vm7640_vm0, %v3541_v37, %v7398_v55  ;;  %v1629_v54 = vsel %vm1236_vm4, %v1469_v47, %v1565_v7  ;;  %v7711_v17 = vrot.slane %v3857_v19, 6 }
  0x72   : > { %7710 = vst [vmem:[#allocation43_spill] sm:$0xff] %v3932_v18  ;;  %v1471_v42 = vsub.f32 %v1285_v21, %v3518_v32  ;;  %v1466_v16 = vsel %vm7640_vm0, %v3538_v36, %v7403_v24  ;;  %v1472_v55 = vsub.f32 %v1288_v49, %v3528_v34  ;;  %v1567_v23 = vmul.f32 0.5, %v1535_v29 }
  0x73   : > { %v688_v60 = vsel %vm7641_vm1, 0.0, %v7711_v17  ;;  %v1568_v40 = vmul.f32 0.5, %v1536_v59  ;;  %3198 = vpow2.f32 %v989_v20  ;;  %v1537_v58 = vsub.f32 %v1291_v53, %v1465_v4 }
  0x74   : > { %v1538_v9 = vsub.f32 %v1294_v14, %v1466_v16  ;;  %v7712_v7 = vrot.slane %v3877_v8, 6  ;;  %v3965_v21 = vadd.f32 %v688_v60, %v3857_v19  ;;  %v3968_v24 = vsub.s32 %v1161_v5, %v3871_v61 }
  0x75   : > { %1812 = vrot.lane.b32.xlu1 %v3528_v34, %s3392_s28  ;;  %1810 = vrot.lane.b32.xlu0 %v3518_v32, %s3392_s28  ;;  %v3972_v17 = vmul.f32 %v3191_v41, %v3521_v33  ;;  %v3982_v60 = vmul.f32 %v2594_v30, %v3932_v18  ;;  %v2593_v5 = vsub.f32 0.0, %v1629_v54  ;;  %v3985_v59 = vmul.f32 %v3193_v6, %v3518_v32 }
  0x76   : > { %v689_v47 = vsel %vm7641_vm1, 0.0, %v7712_v7  ;;  %7713 = vst [vmem:[#allocation44_spill] sm:$0xff] %v3968_v24  ;;  %v3195_v29 = vpop.eup %3194  ;;  %v7407_v41 = vrot.slane %v3965_v21, 4  ;;  %v1631_v20 = vsel %vm1236_vm4, %v1471_v42, %v1567_v23  ;;  %v1632_v4 = vsel %vm1236_vm4, %v1472_v55, %v1568_v40 }
  0x77   : > { %7714 = vst [vmem:[#allocation45_spill] sm:$0xff] %v3972_v17  ;;  %v3975_v49 = vadd.f32 %v689_v47, %v3877_v8  ;;  %7716 = vst [vmem:[#allocation47_spill] sm:$0xff] %v3985_v59  ;;  %v1473_v16 = vsub.f32 %v1291_v53, %v3541_v37  ;;  %v1474_v47 = vsub.f32 %v1294_v14, %v3538_v36  ;;  %v1569_v30 = vmul.f32 0.5, %v1537_v58 }
  0x78   : > { %v1570_v2 = vmul.f32 0.5, %v1538_v9  ;;  %v849_v6 = vsel %vm754_vm2, 0.0, %v7407_v41  ;;  %v1295_v23 = vrot.slane %v3551_v39, 1  ;;  %v1298_v40 = vrot.slane %v3548_v38, 1 }
  0x79   : > { %7715 = vst [vmem:[#allocation46_spill] sm:$0xff] %v3975_v49  ;;  %1816 = vrot.lane.b32.xlu1 %v3538_v36, %s3392_s28  ;;  %1814 = vrot.lane.b32.xlu0 %v3541_v37, %s3392_s28  ;;  %v7406_v7 = vrot.slane %v3975_v49, 4  ;;  %v2595_v9 = vsub.f32 0.0, %v1631_v20  ;;  %v2596_v14 = vsub.f32 0.0, %v1632_v4  ;;  %v4014_v41 = vadd.f32 %v849_v6, %v3965_v21 }
  0x7a   : > { %v3197_v42 = vpop.eup %3196  ;;  %v4017_v55 = vadd.s32 896, %v3883_v3  ;;  %v4021_v8 = vmul.f32 %v3195_v29, %v3528_v34  ;;  %v1633_v20 = vsel %vm1236_vm4, %v1473_v16, %v1569_v30  ;;  %v1634_v4 = vsel %vm1236_vm4, %v1474_v47, %v1570_v2 }
  0x7b   : > { %v850_v54 = vsel %vm754_vm2, 0.0, %v7406_v7  ;;  %v4011_v7 = vmul.f32 %v2593_v5, %v3972_v17  ;;  %7717 = vst [vmem:[#allocation48_spill] sm:$0xff] %v4014_v41  ;;  %v7721_v6 = vrot.slane %v3601_v0, 1  ;;  %v7722_v3 = vrot.slane %v3598_v63, 1 }
  0x7c   : > { %7718 = vst [vmem:[#allocation49_spill] sm:$0xff] %v4017_v55  ;;  %7719 = vst [vmem:[#allocation50_spill] sm:$0xff] %v4021_v8  ;;  %v4028_v5 = vadd.f32 %v850_v54, %v3975_v49  ;;  %v7723_v29 = vrot.slane %v3551_v39, 7  ;;  %v7724_v30 = vrot.slane %v3548_v38, 7  ;;  %v4049_v47 = vmul.f32 %v2595_v9, %v3985_v59 }
  0x7d   : > { %1820 = vrot.lane.b32.xlu1 %v3548_v38, %s3392_s28  ;;  %1818 = vrot.lane.b32.xlu0 %v3551_v39, %s3392_s28  ;;  %v3199_v53 = vpop.eup %3198  ;;  %v1297_v58 = vsel %vm1276_vm3, %v1295_v23, %v7721_v6  ;;  %v1300_v24 = vsel %vm1276_vm3, %v1298_v40, %v7722_v3  ;;  %v4052_v3 = vmul.f32 %v2596_v14, %v4021_v8  ;;  %v2597_v40 = vsub.f32 0.0, %v1633_v20 }
  0x7e   : > { %7720 = vst [vmem:[#allocation51_spill] sm:$0xff] %v4028_v5  ;;  %v1467_v16 = vsel %vm7640_vm0, %v3551_v39, %v7723_v29  ;;  %v1468_v2 = vsel %vm7640_vm0, %v3548_v38, %v7724_v30  ;;  %7725 = vst [vmem:[#allocation52_spill] sm:$0xff] %v4049_v47  ;;  %v4055_v54 = vmul.f32 %v3197_v42, %v3541_v37  ;;  %v7413_v30 = vrot.slane %v3881_v28, 7 }
  0x7f   : > { %7726 = vst [vmem:[#allocation53_spill] sm:$0xff] %v4052_v3  ;;  %v953_v6 = vsub.f32 %v4014_v41, %v3751_v52  ;;  %v4063_v49 = vmul.f32 %v3199_v53, %v3538_v36  ;;  %v2598_v9 = vsub.f32 0.0, %v1634_v4  ;;  %v1539_v47 = vsub.f32 %v1297_v58, %v1467_v16 }
  0x80   : > { %7727 = vst [vmem:[#allocation54_spill] sm:$0xff] %v4055_v54  ;;  %v1540_v14 = vsub.f32 %v1300_v24, %v1468_v2  ;;  %v954_v42 = vsub.f32 %v4028_v5, %v3756_v46  ;;  %v7729_v20 = vrot.slane %v3595_v62, 7  ;;  %3200 = vlog2.f32 %v3794_v48 }
  0x81   : > { %1824 = vrot.lane.b32.xlu1 %v3560_v44, %s3392_s28  ;;  %1822 = vrot.lane.b32.xlu0 %v3563_v45, %s3392_s28  ;;  %7728 = vst [vmem:[#allocation55_spill] sm:$0xff] %v4063_v49  ;;  %v991_v62 = vmul.f32 1.442695, %v953_v6  ;;  %v1475_v2 = vsub.f32 %v1297_v58, %v3551_v39  ;;  %v7731_v29 = vrot.slane %v3603_v1, 7  ;;  %v1571_v55 = vmul.f32 0.5, %v1539_v47 }
  0x82   : > { %v444_v23 = vsel %vm7640_vm0, %v7729_v20, %v7413_v30  ;;  %v1476_v20 = vsub.f32 %v1300_v24, %v3548_v38  ;;  %v7730_v30 = vrot.slane %v3879_v27, 7  ;;  %v993_v16 = vmul.f32 1.442695, %v954_v42 }
  0x83   : > { %v4079_v53 = vadd.f32 %v444_v23, %v3881_v28  ;;  %v1572_v23 = vmul.f32 0.5, %v1540_v14  ;;  %v7732_v48 = vrot.slane %v3617_v10, 1  ;;  %v7733_v58 = vrot.slane %v3560_v44, 1 }
  0x84   : > { %v442_v3 = vsel %vm7640_vm0, %v7731_v29, %v7730_v30  ;;  %v7734_v6 = vrot.slane %v3560_v44, 7  ;;  %v7735_v1 = vrot.slane %v3531_v35, 7  ;;  %3202 = vlog2.f32 %v3805_v22 }
  0x85   : > { %1828 = vrot.lane.b32.xlu1 %v3572_v50, %s3392_s28  ;;  %1826 = vrot.lane.b32.xlu0 %v3575_v51, %s3392_s28  ;;  %v7418_v8 = vrot.slane %v4079_v53, 6  ;;  %v4093_v4 = vadd.f32 %v442_v3, %v3879_v27  ;;  %v1304_v24 = vsel %vm1276_vm3, %v7733_v58, %v7732_v48  ;;  %v7736_v47 = vrot.slane %v3623_v12, 6 }
  0x86   : > { %v1384_v29 = vsel %vm7640_vm0, %v7735_v1, %v7734_v6  ;;  %v7737_v30 = vrot.slane %v3620_v11, 1  ;;  %v7738_v35 = vrot.slane %v3563_v45, 1  ;;  %v7739_v42 = vrot.slane %v3563_v45, 7 }
  0x87   : > { %v605_v3 = vsel %vm7641_vm1, %v7736_v47, %v7418_v8  ;;  %v7420_v22 = vrot.slane %v4093_v4, 6  ;;  %v7740_v48 = vrot.slane %v3521_v33, 7  ;;  %v4127_v6 = vmul.f32 %v2597_v40, %v4055_v54 }
  0x88   : > { %v1302_v14 = vsel %vm1276_vm3, %v7738_v35, %v7737_v30  ;;  %v4130_v12 = vmul.f32 %v2598_v9, %v4063_v49  ;;  %3204 = vpow2.f32 %v991_v62  ;;  %v4133_v1 = vadd.f32 %v605_v3, %v4079_v53 }
  0x89   : > { %1832 = vrot.lane.b32.xlu1 %v3584_v56, %s3392_s28  ;;  %1830 = vrot.lane.b32.xlu0 %v3587_v57, %s3392_s28  ;;  %v1382_v58 = vsel %vm7640_vm0, %v7740_v48, %v7739_v42  ;;  %7741 = vst [vmem:[#allocation56_spill] sm:$0xff] %v4127_v6  ;;  %v4137_v47 = vsel %vm1236_vm4, %v1475_v2, %v1571_v55  ;;  %v7744_v40 = vrot.slane %v3631_v15, 6  ;;  %v7421_v55 = vrot.slane %v3651_v26, 1  ;;  %v7765_v6 = vld [vmem:[#allocation16_spill] sm:$0xff] }
  0x8a   : > { %7742 = vst [vmem:[#allocation57_spill] sm:$0xff] %v4130_v12  ;;  %7743 = vst [vmem:[#allocation58_spill] sm:$0xff] %v4133_v1  ;;  %v4141_v30 = vsel %vm1236_vm4, %v1476_v20, %v1572_v23  ;;  %v1542_v33 = vsub.f32 %v1304_v24, %v1384_v29  ;;  %v7419_v62 = vrot.slane %v4133_v1, 4  ;;  %v1541_v35 = vsub.f32 %v1302_v14, %v1382_v58  ;;  %v3201_v48 = vpop.eup %3200  ;;  %v7754_v23 = vld [vmem:[#allocation25_spill] sm:$0xff] }
  0x8b   : > { %v603_v9 = vsel %vm7641_vm1, %v7744_v40, %v7420_v22  ;;  %3206 = vpow2.f32 %v993_v16  ;;  %v7423_v2 = vrot.slane %v3648_v25, 1  ;;  %v284_v15 = vmin.f32 %v3587_v57, 0.999999 }
  0x8c   : > { %v4150_v3 = vadd.f32 %v603_v9, %v4093_v4  ;;  %v285_v20 = vmin.f32 %v3584_v56, 0.999999  ;;  %v7745_v24 = vrot.slane %v3665_v31, 4  ;;  %v7424_v42 = vrot.slane %v3575_v51, 7 }
  0x8d   : > { %1836 = vrot.lane.b32.xlu1 %v3598_v63, %s3392_s28  ;;  %1834 = vrot.lane.b32.xlu0 %v3601_v0, %s3392_s28  ;;  %v4172_v40 = vmul.f32 0.5, %v1542_v33  ;;  %v316_v9 = vsub.f32 1.0, %v284_v15  ;;  %v7747_v8 = vrot.slane %v3675_v43, 4  ;;  %v7749_v22 = vrot.slane %v3575_v51, 1 }
  0x8e   : > { %v766_v29 = vsel %vm754_vm2, %v7745_v24, %v7419_v62  ;;  %v7422_v14 = vrot.slane %v4150_v3, 4  ;;  %v4179_v24 = vmul.f32 0.5, %v1541_v35  ;;  %v4181_v62 = vmul.f32 0.6931472, %v3201_v48  ;;  %v3203_v15 = vpop.eup %3202 }
  0x8f   : > { %v4170_v58 = vadd.f32 %v766_v29, %v4133_v1  ;;  %v4188_v29 = vsel %vm1276_vm3, %v7749_v22, %v7421_v55  ;;  %v7752_v33 = vrot.slane %v3572_v50, 1  ;;  %v317_v35 = vsub.f32 1.0, %v285_v20 }
  0x90   : > { %v764_v31 = vsel %vm754_vm2, %v7747_v8, %v7422_v14  ;;  %7748 = vst [vmem:[#allocation60_spill] sm:$0xff] %v4181_v62  ;;  %v7753_v55 = vrot.slane %v3518_v32, 7  ;;  %3208 = vlog2.f32 %v316_v9  ;;  %v4223_v20 = vmul.f32 0.6931472, %v3203_v15  ;;  %v7759_v9 = vld [vmem:[#allocation17_spill] sm:$0xff] }
  0x91   : > { %7746 = vst [vmem:[#allocation59_spill] sm:$0xff] %v4170_v58  ;;  %1840 = vrot.lane.b32.xlu1 %v3617_v10, %s3392_s28  ;;  %1838 = vrot.lane.b32.xlu0 %v3620_v11, %s3392_s28  ;;  %v4196_v43 = vadd.f32 %v4170_v58, %v3715_v13  ;;  %v4199_v8 = vadd.f32 %v764_v31, %v4150_v3  ;;  %3210 = vlog2.f32 %v317_v35  ;;  %v7756_v32 = vrot.slane %v4181_v62, 7 }
  0x92   : > { %v4206_v22 = vsel %vm1276_vm3, %v7752_v33, %v7423_v2  ;;  %v4214_v14 = vsel %vm7640_vm0, %v7753_v55, %v7424_v42  ;;  %v3205_v2 = vpop.eup %3204  ;;  %v7757_v55 = vld [vmem:[#allocation8_spill] sm:$0xff]  ;;  %v7431_v48 = vrot.slane %v4223_v20, 7 }
  0x93   : > { %7750 = vst [vmem:[#allocation61_spill] sm:$0xff] %v4196_v43  ;;  %7751 = vst [vmem:[#allocation62_spill] sm:$0xff] %v4199_v8  ;;  %v956_v16 = vsub.f32 %v4196_v43, %v3881_v28  ;;  %v4221_v33 = vadd.f32 %v4199_v8, %v7754_v23  ;;  %v7758_v42 = vrot.slane %v7757_v55, 7  ;;  %v7762_v43 = vrot.slane %v3528_v34, 7 }
  0x94   : > { %v1543_v13 = vsub.f32 %v4188_v29, %v4214_v14  ;;  %v7767_v14 = vrot.slane %v7759_v9, 1  ;;  %v7768_v29 = vrot.slane %v3587_v57, 1  ;;  %v7772_v34 = vrot.slane %v3541_v37, 7 }
  0x95   : > { %7755 = vst [vmem:[#allocation63_spill] sm:$0xff] %v4221_v33  ;;  %v446_v31 = vsel %vm7640_vm0, %v7758_v42, %v7756_v32  ;;  %1844 = vrot.lane.b32.xlu1 %v3648_v25, %s3392_s28  ;;  %1842 = vrot.lane.b32.xlu0 %v3651_v26, %s3392_s28  ;;  %v997_v35 = vmul.f32 1.442695, %v956_v16  ;;  %v955_v15 = vsub.f32 %v4221_v33, %v3879_v27  ;;  %v7761_v32 = vrot.slane %v3572_v50, 7  ;;  %v3207_v23 = vpop.eup %3206  ;;  %v7763_v33 = vld [vmem:[#allocation10_spill] sm:$0xff] }
  0x96   : > { %v4241_v55 = vadd.f32 %v446_v31, %v4181_v62  ;;  %v286_v16 = vmin.f32 %v3601_v0, 0.999999  ;;  %v7764_v12 = vrot.slane %v7763_v33, 7  ;;  %v287_v33 = vmin.f32 %v3598_v63, 0.999999  ;;  %v7820_v25 = vld [vmem:[#allocation22_spill] sm:$0xff] }
  0x97   : > { %v1388_v61 = vsel %vm7640_vm0, %v7762_v43, %v7761_v32  ;;  %v995_v8 = vmul.f32 1.442695, %v955_v15  ;;  %v1310_v32 = vsel %vm1276_vm3, %v7768_v29, %v7767_v14  ;;  %3212 = vpow2.f32 %v997_v35 }
  0x98   : > { %7760 = vst [vmem:[#allocation8_spill] sm:$0xff] %v4241_v55  ;;  %v448_v31 = vsel %vm7640_vm0, %v7764_v12, %v7431_v48  ;;  %v7434_v42 = vrot.slane %v4241_v55, 6  ;;  %v7769_v12 = vld [vmem:[#allocation13_spill] sm:$0xff]  ;;  %v7771_v48 = vrot.slane %v3587_v57, 7  ;;  %v318_v29 = vsub.f32 1.0, %v286_v16 }
  0x99   : > { %v4261_v43 = vadd.f32 %v448_v31, %v4223_v20  ;;  %1848 = vrot.lane.b32.xlu1 %v7765_v6, %s3392_s28  ;;  %1846 = vrot.lane.b32.xlu0 %v7759_v9, %s3392_s28  ;;  %v7770_v15 = vrot.slane %v7769_v12, 6  ;;  %v4284_v58 = vmul.f32 %v3205_v2, %v3551_v39  ;;  %v319_v9 = vsub.f32 1.0, %v287_v33  ;;  %v7779_v33 = vld [vmem:[#allocation15_spill] sm:$0xff] }
  0x9a   : > { %v1390_v14 = vsel %vm7640_vm0, %v7772_v34, %v7771_v48  ;;  %v1544_v12 = vsub.f32 %v4206_v22, %v1388_v61  ;;  %v7777_v48 = vrot.slane %v3584_v56, 7  ;;  %v7778_v16 = vrot.slane %v3538_v36, 7  ;;  %v3209_v34 = vpop.eup %3208  ;;  %v7782_v36 = vld [vmem:[#allocation24_spill] sm:$0xff] }
  0x9b   : > { %7766 = vst [vmem:[#allocation10_spill] sm:$0xff] %v4261_v43  ;;  %v607_v31 = vsel %vm7641_vm1, %v7770_v15, %v7434_v42  ;;  %7773 = vst [vmem:[#allocation13_spill] sm:$0xff] %v4284_v58  ;;  %v7437_v50 = vrot.slane %v4261_v43, 6  ;;  %v7775_v15 = vrot.slane %v7765_v6, 1  ;;  %v7776_v42 = vrot.slane %v3584_v56, 1  ;;  %v3211_v6 = vpop.eup %3210 }
  0x9c   : > { %v4288_v35 = vadd.f32 %v607_v31, %v4241_v55  ;;  %v1392_v2 = vsel %vm7640_vm0, %v7778_v16, %v7777_v48  ;;  %3214 = vlog2.f32 %v318_v29  ;;  %v7780_v31 = vrot.slane %v7779_v33, 6 }
  0x9d   : > { %v1312_v37 = vsel %vm1276_vm3, %v7776_v42, %v7775_v15  ;;  %3216 = vpow2.f32 %v995_v8  ;;  %v1545_v57 = vsub.f32 %v1310_v32, %v1390_v14  ;;  %v7781_v42 = vld [vmem:[#allocation23_spill] sm:$0xff]  ;;  %1850 = vrot.lane.b32.xlu0 %v7782_v36, %s3392_s28  ;;  %v4312_v29 = vmul.f32 %v3207_v23, %v3548_v38  ;;  %v7787_v14 = vld [vmem:[#allocation18_spill] sm:$0xff] }
  0x9e   : > { %7774 = vst [vmem:[#allocation64_spill] sm:$0xff] %v4288_v35  ;;  %v609_v61 = vsel %vm7641_vm1, %v7780_v31, %v7437_v50  ;;  %v7439_v22 = vrot.slane %v4288_v35, 4  ;;  %1852 = vrot.lane.b32.xlu1 %v7781_v42, %s3392_s28  ;;  %v4317_v15 = vmul.f32 0.6931472, %v3209_v34  ;;  %3218 = vlog2.f32 %v319_v9 }
  0x9f   : > { %7783 = vst [vmem:[#allocation15_spill] sm:$0xff] %v4312_v29  ;;  %v4315_v8 = vadd.f32 %v609_v61, %v4261_v43  ;;  %v7785_v48 = vsub.f32 0.0, %v4137_v47  ;;  %v7788_v16 = vrot.slane %v7787_v14, 4  ;;  %v4329_v31 = vmul.f32 0.6931472, %v3211_v6  ;;  %v7791_v6 = vld [vmem:[#allocation27_spill] sm:$0xff] }
  0xa0   : > { %v1546_v23 = vsub.f32 %v1312_v37, %v1392_v2  ;;  %v4335_v9 = vmul.f32 0.5, %v1543_v13  ;;  %v7445_v47 = vrot.slane %v4317_v15, 7  ;;  %v4341_v56 = vmul.f32 0.5, %v1545_v57  ;;  %v7792_v37 = vld [vmem:[#allocation28_spill] sm:$0xff]  ;;  %v7793_v13 = vld [vmem:[#allocation21_spill] sm:$0xff]  ;;  %v7797_v57 = vld [vmem:[#allocation11_spill] sm:$0xff] }
  0xa1   : > { %7784 = vst [vmem:[#allocation65_spill] sm:$0xff] %v4315_v8  ;;  %v4322_v32 = vmul.f32 %v7785_v48, %v4284_v58  ;;  %v768_v33 = vsel %vm754_vm2, %v7788_v16, %v7439_v22  ;;  %v7443_v61 = vrot.slane %v4315_v8, 4  ;;  %v4338_v48 = vmul.f32 0.5, %v1544_v12  ;;  %1854 = vrot.lane.b32.xlu0 %v7792_v37, %s3392_s28  ;;  %v7795_v12 = vld [vmem:[#allocation29_spill] sm:$0xff] }
  0xa2   : > { %v4333_v34 = vadd.f32 %v768_v33, %v4288_v35  ;;  %7790 = vst [vmem:[#allocation67_spill] sm:$0xff] %v4341_v56  ;;  %1856 = vrot.lane.b32.xlu1 %v7791_v6, %s3392_s28  ;;  %v7794_v2 = vrot.slane %v7793_v13, 4  ;;  %v7798_v22 = vrot.slane %v7797_v57, 7  ;;  %v7800_v43 = vrot.slane %v4329_v31, 7  ;;  %v7801_v13 = vld [vmem:[#allocation14_spill] sm:$0xff] }
  0xa3   : > { %7786 = vst [vmem:[#allocation66_spill] sm:$0xff] %v4322_v32  ;;  %v7802_v55 = vrot.slane %v7801_v13, 7  ;;  %v4376_v57 = vpop.permute.xlu1 %1681  ;;  %v7812_v50 = vrot.slane %v3601_v0, 1 }
  0xa4   : > { %7789 = vst [vmem:[#allocation18_spill] sm:$0xff] %v4333_v34  ;;  %v770_v16 = vsel %vm754_vm2, %v7794_v2, %v7443_v61  ;;  %v4355_v33 = vadd.f32 %v4333_v34, %v7795_v12  ;;  %v450_v14 = vsel %vm7640_vm0, %v7798_v22, %v7445_v47  ;;  %v4374_v12 = vmul.f32 0.5, %v1546_v23  ;;  %v3213_v34 = vpop.eup %3212  ;;  %v4378_v22 = vpop.permute.xlu0 %1677  ;;  %v7807_v23 = vld [vmem:[#allocation31_spill] sm:$0xff] }
  0xa5   : > { %v4364_v35 = vadd.f32 %v770_v16, %v4315_v8  ;;  %v452_v2 = vsel %vm7640_vm0, %v7802_v55, %v7800_v43  ;;  %v4372_v61 = vadd.f32 %v450_v14, %v4317_v15  ;;  %v7804_v16 = vsub.f32 0.0, %v4141_v30 }
  0xa6   : > { %7796 = vst [vmem:[#allocation21_spill] sm:$0xff] %v4355_v33  ;;  %7803 = vst [vmem:[#allocation14_spill] sm:$0xff] %v4374_v12  ;;  %v957_v13 = vsub.f32 %v4355_v33, %v4181_v62  ;;  %v4389_v43 = vadd.f32 %v452_v2, %v4329_v31  ;;  %v7810_v33 = vld [vmem:[#allocation33_spill] sm:$0xff]  ;;  %v7813_v30 = vrot.slane %v3601_v0, 7  ;;  %v4419_v62 = vmul.f32 %v3213_v34, %v3560_v44 }
  0xa7   : > { %7799 = vst [vmem:[#allocation11_spill] sm:$0xff] %v4364_v35  ;;  %v4383_v47 = vmul.f32 %v7804_v16, %v4312_v29  ;;  %v4393_v14 = vadd.f32 %v4364_v35, %v7807_v23  ;;  %v3215_v16 = vpop.eup %3214  ;;  %1858 = vrot.lane.b32.xlu0 %v7810_v33, %s3392_s28  ;;  %v7811_v23 = vrot.slane %v7782_v36, 1  ;;  %v7814_v35 = vrot.slane %v3551_v39, 7 }
  0xa8   : > { %7806 = vst [vmem:[#allocation69_spill] sm:$0xff] %v4389_v43  ;;  %v3217_v32 = vpop.eup %3216  ;;  %v288_v36 = vmin.f32 %v3620_v11, 0.999999  ;;  %v999_v0 = vmul.f32 1.442695, %v957_v13  ;;  %v7816_v39 = vrot.slane %v4372_v61, 6 }
  0xa9   : > { %7805 = vst [vmem:[#allocation68_spill] sm:$0xff] %v4383_v47  ;;  %7808 = vst [vmem:[#allocation70_spill] sm:$0xff] %v4393_v14  ;;  %v7809_v47 = vld [vmem:[#allocation32_spill] sm:$0xff]  ;;  %v4409_v8 = vsel %vm1276_vm3, %v7812_v50, %v7811_v23  ;;  %v3219_v29 = vpop.eup %3218  ;;  %v4424_v50 = vpop.permute.xlu1 %1683  ;;  %v7819_v34 = vrot.slane %v4389_v43, 6  ;;  %v7821_v55 = vrot.slane %v7820_v25, 6  ;;  %v958_v1 = vsub.f32 %v4393_v14, %v4223_v20  ;;  %v7838_v14 = vld [vmem:[#allocation26_spill] sm:$0xff] }
  0xaa   : > { %1860 = vrot.lane.b32.xlu1 %v7809_v47, %s3392_s28  ;;  %v4416_v47 = vsel %vm7640_vm0, %v7814_v35, %v7813_v30  ;;  %7815 = vst [vmem:[#allocation32_spill] sm:$0xff] %v4419_v62  ;;  %v4426_v23 = vpop.permute.xlu0 %1679  ;;  %v7817_v35 = vld [vmem:[#allocation19_spill] sm:$0xff]  ;;  %v4438_v49 = vmul.f32 0.6931472, %v3215_v16  ;;  %v7823_v12 = vrot.slane %v7781_v42, 1  ;;  %v7824_v13 = vrot.slane %v3598_v63, 1 }
  0xab   : > { %v7818_v30 = vrot.slane %v7817_v35, 6  ;;  %v613_v2 = vsel %vm7641_vm1, %v7821_v55, %v7819_v34  ;;  %v7825_v35 = vrot.slane %v3598_v63, 7  ;;  %v1547_v25 = vsub.f32 %v4409_v8, %v4416_v47  ;;  %v7827_v55 = vld [vmem:[#allocation34_spill] sm:$0xff]  ;;  %v7828_v16 = vld [vmem:[#allocation35_spill] sm:$0xff]  ;;  %v7836_v42 = vld [vmem:[#allocation37_spill] sm:$0xff] }
  0xac   : > { %7822 = vst [vmem:[#allocation19_spill] sm:$0xff] %v4438_v49  ;;  %v1316_v56 = vsel %vm1276_vm3, %v7824_v13, %v7823_v12  ;;  %1862 = vrot.lane.b32.xlu0 %v7828_v16, %s3392_s28  ;;  %v4460_v34 = vadd.f32 %v4419_v62, %v3932_v18  ;;  %v289_v13 = vmin.f32 %v3617_v10, 0.999999  ;;  %v7832_v8 = vsub.f32 0.0, %v4172_v40 }
  0xad   : > { %v611_v58 = vsel %vm7641_vm1, %v7818_v30, %v7816_v39  ;;  %v7826_v39 = vrot.slane %v3548_v38, 7  ;;  %v4466_v38 = vadd.f32 %v613_v2, %v4389_v43  ;;  %v4478_v16 = vpop.permute.xlu1 %1687  ;;  %3220 = vpow2.f32 %v999_v0  ;;  %v7837_v0 = vld [vmem:[#allocation38_spill] sm:$0xff] }
  0xae   : > { %1864 = vrot.lane.b32.xlu1 %v7827_v55, %s3392_s28  ;;  %7829 = vst [vmem:[#allocation22_spill] sm:$0xff] %v4460_v34  ;;  %v4463_v12 = vadd.f32 %v611_v58, %v4372_v61  ;;  %v2634_v47 = vmul.f32 %v7832_v8, %v4419_v62  ;;  %v7470_v55 = vrot.slane %v4438_v49, 7  ;;  %v1686_v58 = vpop.permute.xlu0 %1685  ;;  %v320_v63 = vsub.f32 1.0, %v288_v36 }
  0xaf   : > { %v1396_v30 = vsel %vm7640_vm0, %v7826_v39, %v7825_v35  ;;  %7831 = vst [vmem:[#allocation35_spill] sm:$0xff] %v4466_v38  ;;  %v4473_v35 = vmul.f32 %v3217_v32, %v3563_v45  ;;  %v4475_v39 = vmul.f32 0.6931472, %v3219_v29  ;;  %v1001_v34 = vmul.f32 1.442695, %v958_v1 }
  0xb0   : > { %7830 = vst [vmem:[#allocation34_spill] sm:$0xff] %v4463_v12  ;;  %v7471_v2 = vrot.slane %v4463_v12, 4  ;;  %v7835_v40 = vrot.slane %v3751_v52, 7  ;;  %v1548_v8 = vsub.f32 %v1316_v56, %v1396_v30  ;;  %1866 = vrot.lane.b32.xlu0 %v7837_v0, %s3392_s28  ;;  %v7839_v36 = vrot.slane %v7838_v14, 4  ;;  %v7841_v52 = vld [vmem:[#allocation30_spill] sm:$0xff] }
  0xb1   : > { %7833 = vst [vmem:[#allocation71_spill] sm:$0xff] %v4473_v35  ;;  %7834 = vst [vmem:[#allocation72_spill] sm:$0xff] %v4475_v39  ;;  %v7469_v29 = vrot.slane %v4475_v39, 7  ;;  %v7840_v62 = vrot.slane %v4466_v38, 4  ;;  %v7842_v18 = vrot.slane %v7841_v52, 4  ;;  %v4507_v30 = vadd.f32 %v2634_v47, %v3982_v60 }
  0xb2   : > { %v454_v32 = vsel %vm7640_vm0, %v7835_v40, %v7470_v55  ;;  %1868 = vrot.lane.b32.xlu1 %v7836_v42, %s3392_s28  ;;  %v772_v1 = vsel %vm754_vm2, %v7839_v36, %v7471_v2  ;;  %v1690_v36 = vpop.permute.xlu0 %1689  ;;  %v321_v47 = vsub.f32 1.0, %v289_v13  ;;  %3222 = vlog2.f32 %v320_v63  ;;  %v4542_v63 = vld [vmem:[%s3515_s26] sm:$0xff] }
  0xb3   : > { %v774_v40 = vsel %vm754_vm2, %v7842_v18, %v7840_v62  ;;  %v4503_v56 = vadd.f32 %v454_v32, %v4438_v49  ;;  %7844 = vst [vmem:[#allocation38_spill] sm:$0xff] %v4507_v30  ;;  %v4510_v0 = vadd.f32 %v772_v1, %v4463_v12  ;;  %v7847_v18 = vrot.slane %v3756_v46, 7  ;;  %v1692_v32 = vpop.permute.xlu1 %1691 }
  0xb4   : > { %v4513_v14 = vadd.f32 %v774_v40, %v4466_v38  ;;  %v4527_v1 = vsel %vm1741_vm5, %v4378_v22, %v4426_v23  ;;  %v7849_v40 = vsub.f32 0.0, %v4179_v24  ;;  %3224 = vpow2.f32 %v1001_v34  ;;  %2143 = vrot.lane.b32.xlu0 %v4542_v63, %s3393_s29  ;;  %v7852_v22 = vld [vmem:[#allocation40_spill] sm:$0xff] }
  0xb5   : > { %7843 = vst [vmem:[#allocation37_spill] sm:$0xff] %v4503_v56  ;;  %7845 = vst [vmem:[#allocation26_spill] sm:$0xff] %v4510_v0  ;;  %v456_v62 = vsel %vm7640_vm0, %v7847_v18, %v7469_v29  ;;  %v7472_v60 = vrot.slane %v4503_v56, 6  ;;  %v7850_v18 = vld [vmem:[#allocation36_spill] sm:$0xff]  ;;  %v7854_v34 = vrot.slane %v3857_v19, 6  ;;  %3226 = vlog2.f32 %v321_v47 }
  0xb6   : > { %7846 = vst [vmem:[#allocation30_spill] sm:$0xff] %v4513_v14  ;;  %v4521_v52 = vadd.f32 %v456_v62, %v4475_v39  ;;  %v2633_v46 = vmul.f32 %v7849_v40, %v4473_v35  ;;  %v4534_v29 = vadd.f32 %v4510_v0, %v7850_v18  ;;  %v4537_v62 = vld [vmem:[%s3515_s26 + $0x8] sm:$0xff]  ;;  %v4548_v24 = vadd.f32 %v4513_v14, %v7852_v22 }
  0xb7   : > { %2145 = vrot.lane.b32.xlu1 %v4537_v62, %s3393_s29  ;;  %v615_v13 = vsel %vm7641_vm1, %v7854_v34, %v7472_v60  ;;  %v4561_v42 = vmul.f32 0.5, %v1547_v25  ;;  %v4563_v30 = vmul.f32 0.5, %v1548_v8  ;;  %v4568_v19 = vsel %vm1741_vm5, %v4376_v57, %v4424_v50  ;;  %v4575_v34 = vpop.permute.xlu1 %1695  ;;  %v1694_v60 = vpop.permute.xlu0 %1693  ;;  %v7857_v8 = vld [vmem:[#allocation41_spill] sm:$0xff] }
  0xb8   : > { %7848 = vst [vmem:[#allocation73_spill] sm:$0xff] %v4521_v52  ;;  %7851 = vst [vmem:[#allocation74_spill] sm:$0xff] %v4534_v29  ;;  %v7475_v40 = vrot.slane %v4521_v52, 6  ;;  %v959_v55 = vsub.f32 %v4534_v29, %v4317_v15  ;;  %v4559_v2 = vadd.f32 %v615_v13, %v4503_v56  ;;  %v4573_v47 = vsel %vm1741_vm5, %v4426_v23, %v4376_v57 }
  0xb9   : > { %7853 = vst [vmem:[#allocation75_spill] sm:$0xff] %v4548_v24  ;;  %v4579_v25 = vadd.f32 %v4473_v35, %v3972_v17  ;;  %v7858_v13 = vrot.slane %v7857_v8, 6  ;;  %v4590_v57 = vsel %vm1741_vm5, %v4424_v50, %v1686_v58  ;;  %v4593_v23 = vadd.f32 %v2633_v46, %v4011_v7  ;;  %v4602_v8 = vld [vmem:[%s3515_s26 + $0x18] sm:$0xff] }
  0xba   : > { %7855 = vst [vmem:[#allocation76_spill] sm:$0xff] %v4559_v2  ;;  %7859 = vst [vmem:[#allocation41_spill] sm:$0xff] %v4590_v57  ;;  %v960_v22 = vsub.f32 %v4548_v24, %v4329_v31  ;;  %v4599_v18 = vsel %vm1741_vm5, %v1686_v58, %v4478_v16  ;;  %v4617_v58 = vld [vmem:[%s3515_s26 + $0x38] sm:$0xff]  ;;  %v1003_v56 = vmul.f32 1.442695, %v959_v55  ;;  %v4630_v50 = vsel %vm1741_vm5, %v1690_v36, %v1692_v32 }
  0xbb   : > { %7856 = vst [vmem:[#allocation77_spill] sm:$0xff] %v4579_v25  ;;  %v617_v29 = vsel %vm7641_vm1, %v7858_v13, %v7475_v40  ;;  %7860 = vst [vmem:[#allocation78_spill] sm:$0xff] %v4593_v23  ;;  %v3221_v25 = vpop.eup %3220  ;;  %2149 = vrot.lane.b32.xlu1 %v4602_v8, %s3393_s29  ;;  %v4607_v13 = vld [vmem:[%s3515_s26 + $0x10] sm:$0xff]  ;;  %v4621_v40 = vsel %vm1741_vm5, %v1692_v32, %v4617_v58  ;;  %v4632_v46 = vpop.permute.xlu1 %1699  ;;  %v7866_v14 = vrot.slane %v4559_v2, 4  ;;  %v7867_v55 = vrot.slane %v3965_v21, 4 }
  0xbc   : > { %7861 = vst [vmem:[#allocation79_spill] sm:$0xff] %v4599_v18  ;;  %2147 = vrot.lane.b32.xlu0 %v4607_v13, %s3393_s29  ;;  %v4612_v7 = vadd.f32 %v617_v29, %v4521_v52  ;;  %7863 = vst [vmem:[#allocation81_spill] sm:$0xff] %v4621_v40  ;;  %v4627_v29 = vsel %vm1741_vm5, %v4478_v16, %v1690_v36  ;;  %v4634_v52 = vpop.permute.xlu0 %1697  ;;  %v4644_v23 = vsel %vm1741_vm5, %v1694_v60, %v4575_v34  ;;  %v4647_v16 = vld [vmem:[%s3515_s26 + $0x50] sm:$0xff]  ;;  %v4663_v60 = vld [vmem:[%s3515_s26 + $0x20] sm:$0xff] }
  0xbd   : > { %7864 = vst [vmem:[#allocation82_spill] sm:$0xff] %v4627_v29  ;;  %7865 = vst [vmem:[#allocation83_spill] sm:$0xff] %v4630_v50  ;;  %v776_v24 = vsel %vm754_vm2, %v7867_v55, %v7866_v14  ;;  %v4650_v32 = vmul.f32 %v4647_v16, %v3221_v25  ;;  %v1005_v36 = vmul.f32 1.442695, %v960_v22  ;;  %v7869_v0 = vrot.slane %v7792_v37, 1  ;;  %v3223_v14 = vpop.eup %3222  ;;  %v4658_v55 = vld [vmem:[%s3515_s26 + $0x28] sm:$0xff] }
  0xbe   : > { %7862 = vst [vmem:[#allocation80_spill] sm:$0xff] %v4612_v7  ;;  %v7488_v35 = vrot.slane %v4612_v7, 4  ;;  %v7870_v38 = vrot.slane %v3620_v11, 1  ;;  %v7871_v22 = vld [vmem:[#allocation46_spill] sm:$0xff]  ;;  %v7874_v40 = vrot.slane %v3620_v11, 7  ;;  %v7875_v12 = vrot.slane %v3563_v45, 7  ;;  %v3225_v17 = vpop.eup %3224 }
  0xbf   : > { %7868 = vst [vmem:[#allocation84_spill] sm:$0xff] %v4650_v32  ;;  %2153 = vrot.lane.b32.xlu1 %v4658_v55, %s3393_s29  ;;  %v7872_v25 = vrot.slane %v7871_v22, 4  ;;  %3228 = vpow2.f32 %v1003_v56  ;;  %v4684_v22 = vmul.f32 0.6931472, %v3223_v14  ;;  %v4694_v45 = vadd.f32 %v4650_v32, %v3985_v59 }
  0xc0   : > { %v1318_v21 = vsel %vm1276_vm3, %v7870_v38, %v7869_v0  ;;  %2151 = vrot.lane.b32.xlu0 %v4663_v60, %s3393_s29  ;;  %v4673_v38 = vadd.f32 %v776_v24, %v4559_v2  ;;  %v1398_v50 = vsel %vm7640_vm0, %v7875_v12, %v7874_v40  ;;  %v4690_v0 = vpop.permute.xlu1 %1703  ;;  %v1702_v11 = vpop.permute.xlu0 %1701  ;;  %v4704_v40 = vld [vmem:[%s3515_s26 + $0x90] sm:$0xff]  ;;  %3230 = vpow2.f32 %v1005_v36 }
  0xc1   : > { %v778_v37 = vsel %vm754_vm2, %v7872_v25, %v7488_v35  ;;  %7877 = vst [vmem:[#allocation86_spill] sm:$0xff] %v4684_v22  ;;  %v4687_v25 = vld [vmem:[%s3515_s26 + $0x88] sm:$0xff]  ;;  %v3227_v35 = vpop.eup %3226  ;;  %7878 = vst [vmem:[#allocation87_spill] sm:$0xff] %v4694_v45  ;;  %v290_v14 = vmin.f32 %v4704_v40, 0.999999  ;;  %v1549_v45 = vsub.f32 %v1318_v21, %v1398_v50  ;;  %v4730_v50 = vld [vmem:[%s3515_s26 + $0x98] sm:$0xff] }
  0xc2   : > { %7873 = vst [vmem:[#allocation46_spill] sm:$0xff] %v4673_v38  ;;  %v4682_v43 = vadd.f32 %v778_v37, %v4612_v7  ;;  %v7879_v37 = vsub.f32 0.0, %v4335_v9  ;;  %v4701_v56 = vadd.f32 %v4673_v38, %v4014_v41  ;;  %v4711_v7 = vmul.f32 0.6931472, %v3227_v35  ;;  %v4716_v9 = vld [vmem:[%s3515_s26 + $0x30] sm:$0xff] }
  0xc3   : > { %2157 = vrot.lane.b32.xlu1 %v4617_v58, %s3393_s29  ;;  %v291_v21 = vmin.f32 %v4730_v50, 0.999999  ;;  %v7884_v38 = vrot.slane %v7791_v6, 1  ;;  %v7887_v35 = vrot.slane %v3560_v44, 7  ;;  %v7888_v29 = vsub.f32 0.0, %v4338_v48  ;;  %v4765_v48 = vld [vmem:[%s3515_s26 + $0x48] sm:$0xff] }
  0xc4   : > { %7876 = vst [vmem:[#allocation85_spill] sm:$0xff] %v4682_v43  ;;  %v2635_v12 = vmul.f32 %v7879_v37, %v4650_v32  ;;  %7880 = vst [vmem:[#allocation88_spill] sm:$0xff] %v4701_v56  ;;  %v4709_v24 = vadd.f32 %v4682_v43, %v4028_v5  ;;  %2155 = vrot.lane.b32.xlu0 %v4716_v9, %s3393_s29  ;;  %v4721_v37 = vld [vmem:[%s3515_s26 + $0x58] sm:$0xff]  ;;  %v961_v5 = vsub.f32 %v4701_v56, %v4438_v49  ;;  %v1708_v49 = vpop.permute.xlu1 %1707  ;;  %v1706_v59 = vpop.permute.xlu0 %1705 }
  0xc5   : > { %7882 = vst [vmem:[#allocation90_spill] sm:$0xff] %v4711_v7  ;;  %v4724_v36 = vmul.f32 %v4721_v37, %v3225_v17  ;;  %v7885_v17 = vrot.slane %v3617_v10, 1  ;;  %v7886_v56 = vrot.slane %v4687_v25, 7  ;;  %v7889_v41 = vrot.slane %v4684_v22, 7 }
  0xc6   : > { %7881 = vst [vmem:[#allocation89_spill] sm:$0xff] %v4709_v24  ;;  %v962_v43 = vsub.f32 %v4709_v24, %v4475_v39  ;;  %v1007_v39 = vmul.f32 1.442695, %v961_v5  ;;  %v7890_v6 = vrot.slane %v3879_v27, 7  ;;  %v4762_v57 = vmul.f32 0.5, %v1549_v45 }
  0xc7   : > { %7883 = vst [vmem:[#allocation91_spill] sm:$0xff] %v4724_v36  ;;  %v1320_v2 = vsel %vm1276_vm3, %v7885_v17, %v7884_v38  ;;  %v1400_v32 = vsel %vm7640_vm0, %v7887_v35, %v7886_v56  ;;  %v2636_v24 = vmul.f32 %v7888_v29, %v4724_v36  ;;  %v322_v38 = vsub.f32 1.0, %v290_v14  ;;  %v4755_v17 = vld [vmem:[%s3515_s26 + $0x40] sm:$0xff]  ;;  %v7891_v56 = vld [vmem:[#allocation52_spill] sm:$0xff]  ;;  %2161 = vrot.lane.b32.xlu1 %v4765_v48, %s3393_s29 }
  0xc8   : > { %v458_v10 = vsel %vm7640_vm0, %v7890_v6, %v7889_v41  ;;  %v4760_v35 = vadd.f32 %v2635_v12, %v7891_v56  ;;  %v1009_v18 = vmul.f32 1.442695, %v962_v43  ;;  %7893 = vst [vmem:[#allocation92_spill] sm:$0xff] %v4762_v57  ;;  %2159 = vrot.lane.b32.xlu0 %v4755_v17, %s3393_s29  ;;  %v7894_v27 = vrot.slane %v4711_v7, 7  ;;  %v4792_v14 = vpop.permute.xlu1 %1711  ;;  %v7899_v56 = vld [vmem:[#allocation50_spill] sm:$0xff] }
  0xc9   : > { %v7895_v41 = vrot.slane %v3881_v28, 7  ;;  %v4777_v6 = vadd.f32 %v458_v10, %v4684_v22  ;;  %v1550_v43 = vsub.f32 %v1320_v2, %v1400_v32  ;;  %v323_v29 = vsub.f32 1.0, %v291_v21  ;;  %v1710_v10 = vpop.permute.xlu0 %1709  ;;  %v7901_v32 = vld [vmem:[#allocation53_spill] sm:$0xff] }
  0xca   : > { %7892 = vst [vmem:[#allocation52_spill] sm:$0xff] %v4760_v35  ;;  %v4782_v45 = vsel %vm1741_vm5, %v4575_v34, %v4634_v52  ;;  %v4787_v12 = vsel %vm1741_vm5, %v4634_v52, %v4632_v46  ;;  %3232 = vpow2.f32 %v1007_v39  ;;  %v4796_v2 = vadd.f32 %v4724_v36, %v7899_v56  ;;  %v3229_v52 = vpop.eup %3228  ;;  %v7928_v36 = vld [vmem:[#allocation58_spill] sm:$0xff] }
  0xcb   : > { %v460_v5 = vsel %vm7640_vm0, %v7895_v41, %v7894_v27  ;;  %7896 = vst [vmem:[#allocation93_spill] sm:$0xff] %v4777_v6  ;;  %7897 = vst [vmem:[#allocation94_spill] sm:$0xff] %v4787_v12  ;;  %v4799_v34 = vadd.f32 %v2636_v24, %v7901_v32  ;;  %v7505_v21 = vrot.slane %v4777_v6, 6  ;;  %3234 = vlog2.f32 %v322_v38  ;;  %2165 = vrot.lane.b32.xlu1 %v4721_v37, %s3393_s29 }
  0xcc   : > { %v4790_v28 = vadd.f32 %v460_v5, %v4711_v7  ;;  %7900 = vst [vmem:[#allocation96_spill] sm:$0xff] %v4796_v2  ;;  %v4804_v39 = vsel %vm1741_vm5, %v4632_v46, %v1702_v11  ;;  %v4808_v27 = vsel %vm1741_vm5, %v1702_v11, %v4690_v0  ;;  %3236 = vpow2.f32 %v1009_v18  ;;  %2163 = vrot.lane.b32.xlu0 %v4647_v16, %s3393_s29  ;;  %v3231_v18 = vpop.eup %3230  ;;  %v4824_v5 = vld [vmem:[%s3515_s26 + $0x78] sm:$0xff] }
  0xcd   : > { %7902 = vst [vmem:[#allocation53_spill] sm:$0xff] %v4799_v34  ;;  %7903 = vst [vmem:[#allocation97_spill] sm:$0xff] %v4804_v39  ;;  %v4815_v24 = vmul.f32 0.5, %v1550_v43  ;;  %v7906_v46 = vrot.slane %v4093_v4, 6  ;;  %3238 = vlog2.f32 %v323_v29  ;;  %v4828_v32 = vsel %vm1741_vm5, %v1708_v49, %v4824_v5  ;;  %v1714_v44 = vpop.permute.xlu0 %1713  ;;  %v4844_v34 = vld [vmem:[%s3515_s26 + $0x60] sm:$0xff] }
  0xce   : > { %7898 = vst [vmem:[#allocation95_spill] sm:$0xff] %v4790_v28  ;;  %7904 = vst [vmem:[#allocation98_spill] sm:$0xff] %v4808_v27  ;;  %v7506_v41 = vrot.slane %v4790_v28, 6  ;;  %v7908_v43 = vrot.slane %v4079_v53, 6  ;;  %v4847_v35 = vmul.f32 %v4844_v34, %v3229_v52  ;;  %v4864_v52 = vsel %vm1741_vm5, %v1710_v10, %v4792_v14  ;;  %v7931_v39 = vld [vmem:[#allocation55_spill] sm:$0xff] }
  0xcf   : > { %7905 = vst [vmem:[#allocation99_spill] sm:$0xff] %v4815_v24  ;;  %v619_v11 = vsel %vm7641_vm1, %v7906_v46, %v7505_v21  ;;  %7907 = vst [vmem:[#allocation100_spill] sm:$0xff] %v4828_v32  ;;  %v4841_v46 = vsel %vm1741_vm5, %v4690_v0, %v1706_v59  ;;  %v1716_v21 = vpop.permute.xlu1 %1715  ;;  %v4858_v0 = vld [vmem:[%s3515_s26 + $0xd8] sm:$0xff]  ;;  %v7918_v10 = vrot.slane %v4150_v3, 4  ;;  %v7922_v57 = vrot.slane %v3575_v51, 7 }
  0xd0   : > { %v621_v38 = vsel %vm7641_vm1, %v7908_v43, %v7506_v41  ;;  %v4836_v4 = vadd.f32 %v619_v11, %v4777_v6  ;;  %7910 = vst [vmem:[#allocation102_spill] sm:$0xff] %v4841_v46  ;;  %7911 = vst [vmem:[#allocation103_spill] sm:$0xff] %v4847_v35  ;;  %v4854_v11 = vsel %vm1741_vm5, %v1706_v59, %v1708_v49  ;;  %2167 = vrot.lane.b32.xlu0 %v4844_v34, %s3393_s29  ;;  %v4897_v6 = vld [vmem:[%s3515_s26 + $0xa0] sm:$0xff] }
  0xd1   : > { %v4850_v53 = vadd.f32 %v621_v38, %v4790_v28  ;;  %7913 = vst [vmem:[#allocation105_spill] sm:$0xff] %v4854_v11  ;;  %7914 = vst [vmem:[#allocation106_spill] sm:$0xff] %v4858_v0  ;;  %v4867_v38 = vld [vmem:[%s3515_s26 + $0x68] sm:$0xff]  ;;  %v4878_v59 = vadd.f32 %v4847_v35, %v4055_v54  ;;  %v7919_v43 = vrot.slane %v7810_v33, 1  ;;  %v7920_v28 = vrot.slane %v3651_v26, 1  ;;  %v4934_v54 = vld [vmem:[%s3515_s26 + $0x80] sm:$0xff] }
  0xd2   : > { %7909 = vst [vmem:[#allocation101_spill] sm:$0xff] %v4836_v4  ;;  %v7510_v41 = vrot.slane %v4836_v4, 4  ;;  %7915 = vst [vmem:[#allocation107_spill] sm:$0xff] %v4864_v52  ;;  %2169 = vrot.lane.b32.xlu1 %v4867_v38, %s3393_s29  ;;  %v4874_v49 = vmul.f32 %v4867_v38, %v3231_v18  ;;  %v7921_v18 = vrot.slane %v4704_v40, 7  ;;  %v292_v32 = vmin.f32 %v4897_v6, 0.999999 }
  0xd3   : > { %7912 = vst [vmem:[#allocation104_spill] sm:$0xff] %v4850_v53  ;;  %7917 = vst [vmem:[#allocation109_spill] sm:$0xff] %v4878_v59  ;;  %v1322_v2 = vsel %vm1276_vm3, %v7920_v28, %v7919_v43  ;;  %v4900_v3 = vpop.permute.xlu1 %1719  ;;  %v7925_v28 = vld [vmem:[#allocation14_spill] sm:$0xff]  ;;  %v7927_v51 = vrot.slane %v4850_v53, 4 }
  0xd4   : > { %7916 = vst [vmem:[#allocation108_spill] sm:$0xff] %v4874_v49  ;;  %v780_v29 = vsel %vm754_vm2, %v7918_v10, %v7510_v41  ;;  %v1402_v59 = vsel %vm7640_vm0, %v7922_v57, %v7921_v18  ;;  %v1718_v10 = vpop.permute.xlu0 %1717  ;;  %v7923_v41 = vld [vmem:[#allocation67_spill] sm:$0xff]  ;;  %v7926_v43 = vsub.f32 0.0, %v7925_v28  ;;  %v7929_v57 = vrot.slane %v7928_v36, 4  ;;  %v3233_v27 = vpop.eup %3232  ;;  %v7935_v28 = vld [vmem:[#allocation12_spill] sm:$0xff] }
  0xd5   : > { %v7924_v26 = vsub.f32 0.0, %v7923_v41  ;;  %v4914_v46 = vadd.f32 %v780_v29, %v4836_v4  ;;  %v4918_v12 = vadd.f32 %v4874_v49, %v7931_v39 }
  0xd6   : > { %v2638_v11 = vmul.f32 %v7926_v43, %v4874_v49  ;;  %v782_v18 = vsel %vm754_vm2, %v7929_v57, %v7927_v51  ;;  %v7936_v43 = vrot.slane %v7935_v28, 1  ;;  %v7937_v51 = vrot.slane %v4730_v50, 7  ;;  %v7938_v57 = vld [vmem:[#allocation3_spill] sm:$0xff]  ;;  %2173 = vrot.lane.b32.xlu1 %v4824_v5, %s3393_s29  ;;  %v7940_v28 = vld [vmem:[#allocation62_spill] sm:$0xff] }
  0xd7   : > { %v2637_v33 = vmul.f32 %v7924_v26, %v4847_v35  ;;  %7930 = vst [vmem:[#allocation67_spill] sm:$0xff] %v4914_v46  ;;  %7932 = vst [vmem:[#allocation14_spill] sm:$0xff] %v4918_v12  ;;  %v4921_v41 = vadd.f32 %v782_v18, %v4850_v53  ;;  %v7934_v26 = vrot.slane %v4858_v0, 1  ;;  %v7939_v29 = vrot.slane %v7938_v57, 7  ;;  %v3235_v35 = vpop.eup %3234  ;;  %v4941_v18 = vld [vmem:[%s3515_s26 + $0x70] sm:$0xff]  ;;  %v4953_v0 = vld [vmem:[%s3515_s26 + $0xa8] sm:$0xff]  ;;  %v1724_v24 = vpop.permute.xlu1 %1723 }
  0xd8   : > { %2171 = vrot.lane.b32.xlu0 %v4941_v18, %s3393_s29  ;;  %v3237_v57 = vpop.eup %3236  ;;  %v4950_v12 = vmul.f32 0.6931472, %v3235_v35  ;;  %v293_v52 = vmin.f32 %v4953_v0, 0.999999  ;;  %v324_v49 = vsub.f32 1.0, %v292_v32  ;;  %v4973_v32 = vmul.f32 %v4941_v18, %v3233_v27  ;;  %v7955_v27 = vld [vmem:[#allocation20_spill] sm:$0xff] }
  0xd9   : > { %7933 = vst [vmem:[#allocation58_spill] sm:$0xff] %v4921_v41  ;;  %v1324_v36 = vsel %vm1276_vm3, %v7936_v43, %v7934_v26  ;;  %v1404_v4 = vsel %vm7640_vm0, %v7939_v29, %v7937_v51  ;;  %v899_v43 = vadd.f32 %v4914_v46, %v7940_v28  ;;  %v1551_v51 = vsub.f32 %v1322_v2, %v1402_v59  ;;  %v7941_v29 = vld [vmem:[#allocation59_spill] sm:$0xff]  ;;  %v3239_v39 = vpop.eup %3238  ;;  %v1722_v28 = vpop.permute.xlu0 %1721  ;;  %v7943_v2 = vld [vmem:[#allocation56_spill] sm:$0xff]  ;;  %v7945_v46 = vld [vmem:[#allocation57_spill] sm:$0xff] }
  0xda   : > { %v900_v53 = vadd.f32 %v4921_v41, %v7941_v29  ;;  %v4958_v26 = vsel %vm1741_vm5, %v4792_v14, %v1714_v44  ;;  %v4961_v59 = vadd.f32 %v2637_v33, %v7943_v2  ;;  %v4964_v56 = vadd.f32 %v2638_v11, %v7945_v46  ;;  %7949 = vst [vmem:[#allocation57_spill] sm:$0xff] %v4973_v32  ;;  %v4976_v14 = vld [vmem:[%s3515_s26 + $0xe0] sm:$0xff] }
  0xdb   : > { %7942 = vst [vmem:[#allocation12_spill] sm:$0xff] %v4958_v26  ;;  %v1552_v35 = vsub.f32 %v1324_v36, %v1404_v4  ;;  %v4967_v29 = vsel %vm1741_vm5, %v1714_v44, %v1716_v21  ;;  %v4970_v41 = vsel %vm1741_vm5, %v1716_v21, %v1718_v10  ;;  %7950 = vst [vmem:[#allocation110_spill] sm:$0xff] %v4976_v14  ;;  %2177 = vrot.lane.b32.xlu1 %v4687_v25, %s3393_s29  ;;  %v7952_v44 = vld [vmem:[#allocation25_spill] sm:$0xff] }
  0xdc   : > { %7944 = vst [vmem:[#allocation3_spill] sm:$0xff] %v4961_v59  ;;  %7946 = vst [vmem:[#allocation62_spill] sm:$0xff] %v4964_v56  ;;  %2175 = vrot.lane.b32.xlu0 %v4934_v54, %s3393_s29  ;;  %v4984_v33 = vmul.f32 %v4824_v5, %v3237_v57  ;;  %v931_v4 = vadd.f32 %v899_v43, %v7952_v44  ;;  %v4987_v21 = vmul.f32 0.6931472, %v3239_v39  ;;  %v4989_v46 = vmul.f32 0.5, %v1551_v51  ;;  %v4997_v56 = vpop.permute.xlu1 %1727  ;;  %v7957_v59 = vld [vmem:[#allocation13_spill] sm:$0xff] }
  0xdd   : > { %7947 = vst [vmem:[#allocation59_spill] sm:$0xff] %v4967_v29  ;;  %7948 = vst [vmem:[#allocation56_spill] sm:$0xff] %v4970_v41  ;;  %v932_v11 = vadd.f32 %v900_v53, %v7955_v27  ;;  %v7529_v36 = vrot.slane %v4950_v12, 7  ;;  %v325_v2 = vsub.f32 1.0, %v293_v52  ;;  %3240 = vlog2.f32 %v324_v49  ;;  %v1726_v57 = vpop.permute.xlu0 %1725  ;;  %v7960_v53 = vld [vmem:[#allocation15_spill] sm:$0xff]  ;;  %v7963_v44 = vld [vmem:[#allocation60_spill] sm:$0xff] }
  0xde   : > { %7951 = vst [vmem:[#allocation111_spill] sm:$0xff] %v4984_v33  ;;  %7953 = vst [vmem:[#allocation25_spill] sm:$0xff] %v4987_v21  ;;  %v4995_v26 = vsel %vm1741_vm5, %v1718_v10, %v4900_v3  ;;  %v5001_v43 = vadd.f32 %v4973_v32, %v7957_v59  ;;  %v5004_v51 = vmul.f32 0.5, %v1552_v35  ;;  %v5008_v52 = vadd.f32 %v4984_v33, %v7960_v53 }
  0xdf   : > { %7954 = vst [vmem:[#allocation112_spill] sm:$0xff] %v4989_v46  ;;  %7956 = vst [vmem:[#allocation20_spill] sm:$0xff] %v4995_v26  ;;  %v7962_v49 = vsub.f32 0.0, %v4561_v42  ;;  %v7964_v27 = vrot.slane %v7963_v44, 7  ;;  %3242 = vlog2.f32 %v325_v2  ;;  %2181 = vrot.lane.b32.xlu1 %v4730_v50, %s3393_s29  ;;  %v7965_v35 = vsub.f32 0.0, %v4563_v30  ;;  %v5040_v30 = vld [vmem:[%s3515_s26 + $0xe8] sm:$0xff] }
  0xe0   : > { %7958 = vst [vmem:[#allocation113_spill] sm:$0xff] %v5001_v43  ;;  %7959 = vst [vmem:[#allocation114_spill] sm:$0xff] %v5004_v51  ;;  %2179 = vrot.lane.b32.xlu0 %v4704_v40, %s3393_s29  ;;  %v963_v42 = vsub.f32 %v931_v4, %v4684_v22  ;;  %v5059_v2 = vsel %vm1741_vm5, %v1722_v28, %v1724_v24  ;;  %v5064_v22 = vld [vmem:[%s3515_s26 + $0xb0] sm:$0xff] }
  0xe1   : > { %7961 = vst [vmem:[#allocation115_spill] sm:$0xff] %v5008_v52  ;;  %v2639_v10 = vmul.f32 %v7962_v49, %v4973_v32  ;;  %v462_v43 = vsel %vm7640_vm0, %v7964_v27, %v7529_v36  ;;  %v2640_v39 = vmul.f32 %v7965_v35, %v4984_v33  ;;  %v7966_v49 = vrot.slane %v4987_v21, 7  ;;  %7970 = vst [vmem:[#allocation117_spill] sm:$0xff] %v5040_v30  ;;  %v5044_v35 = vld [vmem:[%s3515_s26 + $0xb8] sm:$0xff] }
  0xe2   : > { %v7967_v52 = vrot.slane %v4223_v20, 7  ;;  %v964_v27 = vsub.f32 %v932_v11, %v4711_v7  ;;  %v5034_v36 = vadd.f32 %v462_v43, %v4950_v12  ;;  %v5048_v20 = vsel %vm1741_vm5, %v1724_v24, %v5044_v35  ;;  %v5054_v11 = vpop.permute.xlu1 %1731  ;;  %v1730_v43 = vpop.permute.xlu0 %1729  ;;  %7973 = vst [vmem:[#allocation120_spill] sm:$0xff] %v5059_v2  ;;  %v7975_v24 = vld [vmem:[#allocation66_spill] sm:$0xff]  ;;  %v7978_v7 = vld [vmem:[#allocation17_spill] sm:$0xff] }
  0xe3   : > { %7971 = vst [vmem:[#allocation118_spill] sm:$0xff] %v5048_v20  ;;  %v294_v20 = vmin.f32 %v5064_v22, 0.999999  ;;  %2274 = vrot.lane.b32.xlu1 %v4537_v62, %s3394_s30  ;;  %v7979_v4 = vrot.slane %v7978_v7, 1  ;;  %v7984_v33 = vld [vmem:[#allocation10_spill] sm:$0xff] }
  0xe4   : > { %v464_v44 = vsel %vm7640_vm0, %v7967_v52, %v7966_v49  ;;  %7968 = vst [vmem:[#allocation60_spill] sm:$0xff] %v5034_v36  ;;  %v5052_v52 = vsel %vm1741_vm5, %v4900_v3, %v1722_v28  ;;  %v5069_v3 = vsel %vm1741_vm5, %v1726_v57, %v4997_v56  ;;  %2272 = vrot.lane.b32.xlu0 %v4542_v63, %s3394_s30  ;;  %v7977_v49 = vrot.slane %v4976_v14, 1 }
  0xe5   : > { %v5037_v26 = vadd.f32 %v464_v44, %v4987_v21  ;;  %7972 = vst [vmem:[#allocation119_spill] sm:$0xff] %v5052_v52  ;;  %7974 = vst [vmem:[#allocation121_spill] sm:$0xff] %v5069_v3  ;;  %v5076_v28 = vadd.f32 %v2639_v10, %v7975_v24  ;;  %v1011_v44 = vmul.f32 1.442695, %v963_v42  ;;  %v1013_v57 = vmul.f32 1.442695, %v964_v27 }
  0xe6   : > { %v1326_v2 = vsel %vm1276_vm3, %v7979_v4, %v7977_v49  ;;  %v7980_v46 = vrot.slane %v5034_v36, 6  ;;  %v7981_v52 = vld [vmem:[#allocation8_spill] sm:$0xff]  ;;  %v7985_v32 = vrot.slane %v7984_v33, 6  ;;  %v7986_v42 = vrot.slane %v5040_v30, 1  ;;  %v5098_v4 = vpop.permute.xlu1 %1735  ;;  %v1734_v27 = vpop.permute.xlu0 %1733  ;;  %v8006_v3 = vld [vmem:[#allocation65_spill] sm:$0xff] }
  0xe7   : > { %7969 = vst [vmem:[#allocation116_spill] sm:$0xff] %v5037_v26  ;;  %7976 = vst [vmem:[#allocation66_spill] sm:$0xff] %v5076_v28  ;;  %v7982_v41 = vrot.slane %v7981_v52, 6  ;;  %v7983_v29 = vrot.slane %v5037_v26, 6  ;;  %v7987_v24 = vld [vmem:[#allocation16_spill] sm:$0xff]  ;;  %v7991_v33 = vrot.slane %v4897_v6, 7  ;;  %v3241_v14 = vpop.eup %3240  ;;  %2278 = vrot.lane.b32.xlu1 %v4602_v8, %s3394_s30  ;;  %3244 = vpow2.f32 %v1011_v44 }
  0xe8   : > { %v7988_v28 = vrot.slane %v7987_v24, 1  ;;  %v7994_v52 = vrot.slane %v4953_v0, 7  ;;  %v7995_v24 = vld [vmem:[#allocation4_spill] sm:$0xff]  ;;  %2276 = vrot.lane.b32.xlu0 %v4607_v13, %s3394_s30  ;;  %3246 = vpow2.f32 %v1013_v57  ;;  %v5157_v57 = vsel %vm1741_vm5, %v4997_v56, %v1730_v43 }
  0xe9   : > { %v623_v62 = vsel %vm7641_vm1, %v7982_v41, %v7980_v46  ;;  %v625_v10 = vsel %vm7641_vm1, %v7985_v32, %v7983_v29  ;;  %v7992_v46 = vld [vmem:[#allocation5_spill] sm:$0xff]  ;;  %v7997_v30 = vld [vmem:[#allocation68_spill] sm:$0xff]  ;;  %v8011_v56 = vrot.slane %v4317_v15, 7  ;;  %v8013_v15 = vld [vmem:[#allocation18_spill] sm:$0xff] }
  0xea   : > { %v1328_v7 = vsel %vm1276_vm3, %v7988_v28, %v7986_v42  ;;  %v5101_v49 = vadd.f32 %v623_v62, %v5034_v36  ;;  %v5104_v41 = vadd.f32 %v625_v10, %v5037_v26  ;;  %v7993_v29 = vrot.slane %v7992_v46, 7  ;;  %v5140_v36 = vpop.permute.xlu0 %1737 }
  0xeb   : > { %v7996_v28 = vrot.slane %v7995_v24, 7  ;;  %v5117_v62 = vadd.f32 %v2640_v39, %v7997_v30  ;;  %v295_v10 = vmin.f32 %v5044_v35, 0.999999  ;;  %v326_v26 = vsub.f32 1.0, %v294_v20  ;;  %v3243_v39 = vpop.eup %3242  ;;  %v5130_v30 = vld [vmem:[%s3515_s26 + $0xc0] sm:$0xff]  ;;  %v7999_v20 = vld [vmem:[#allocation42_spill] sm:$0xff]  ;;  %2282 = vrot.lane.b32.xlu1 %v4658_v55, %s3394_s30 }
  0xec   : > { %7989 = vst [vmem:[#allocation17_spill] sm:$0xff] %v5101_v49  ;;  %7990 = vst [vmem:[#allocation8_spill] sm:$0xff] %v5104_v41  ;;  %v1406_v32 = vsel %vm7640_vm0, %v7993_v29, %v7991_v33  ;;  %v7547_v33 = vrot.slane %v5101_v49, 4  ;;  %v5127_v29 = vmul.f32 0.6931472, %v3241_v14  ;;  %v8000_v24 = vand.u32 1023, %v7999_v20  ;;  %2280 = vrot.lane.b32.xlu0 %v4663_v60, %s3394_s30 }
  0xed   : > { %v1408_v42 = vsel %vm7640_vm0, %v7996_v28, %v7994_v52  ;;  %7998 = vst [vmem:[#allocation10_spill] sm:$0xff] %v5117_v62  ;;  %v1553_v13 = vsub.f32 %v1326_v2, %v1406_v32  ;;  %v1740_v28 = vpop.permute.xlu1 %1739  ;;  %v8003_v14 = vld [vmem:[#allocation64_spill] sm:$0xff]  ;;  %v8005_v52 = vrot.slane %v5104_v41, 4  ;;  %v8007_v20 = vrot.slane %v8006_v3, 4 }
  0xee   : > { %vm5136_vm7 = vcmp.lt.s32.totalorder %v8000_v24, 32  ;;  %v1554_v44 = vsub.f32 %v1328_v7, %v1408_v42  ;;  %v8004_v46 = vrot.slane %v8003_v14, 4  ;;  %v5152_v51 = vmul.f32 0.6931472, %v3243_v39 }
  0xef   : > { %v786_v24 = vsel %vm754_vm2, %v8007_v20, %v8005_v52  ;;  %v7546_v2 = vrot.slane %v5127_v29, 7  ;;  %v5161_v7 = vsel %vm1741_vm5, %v5140_v36, %v1740_v28  ;;  %v327_v32 = vsub.f32 1.0, %v295_v10  ;;  %v5189_v10 = vld [vmem:[%s3515_s26 + $0xf0] sm:$0xff]  ;;  %v1807_v20 = vpop.permute.xlu0 %1806  ;;  %2286 = vrot.lane.b32.xlu1 %v4617_v58, %s3394_s30 }
  0xf0   : > { %v784_v62 = vsel %vm754_vm2, %v8004_v46, %v7547_v33  ;;  %8008 = vst [vmem:[#allocation16_spill] sm:$0xff] %v5161_v7  ;;  %3248 = vlog2.f32 %v326_v26  ;;  %v5171_v42 = vadd.f32 %v786_v24, %v5104_v41  ;;  %v7548_v26 = vrot.slane %v5152_v51, 7  ;;  %v8014_v24 = vld [vmem:[#allocation11_spill] sm:$0xff]  ;;  %2284 = vrot.lane.b32.xlu0 %v4716_v9, %s3394_s30  ;;  %v8043_v41 = vld [vmem:[#allocation45_spill] sm:$0xff] }
  0xf1   : > { %v5168_v3 = vadd.f32 %v784_v62, %v5101_v49  ;;  %v466_v46 = vsel %vm7640_vm0, %v8011_v56, %v7546_v2  ;;  %v5181_v55 = vsel %vm1741_vm5, %v1730_v43, %v5054_v11  ;;  %v5186_v62 = vmul.f32 0.5, %v1553_v13  ;;  %v1809_v52 = vpop.permute.xlu1 %1808 }
  0xf2   : > { %8010 = vst [vmem:[#allocation4_spill] sm:$0xff] %v5171_v42  ;;  %v5184_v60 = vadd.f32 %v466_v46, %v5127_v29  ;;  %v902_v56 = vadd.f32 %v5171_v42, %v8014_v24  ;;  %v8015_v43 = vrot.slane %v4329_v31, 7  ;;  %v5201_v13 = vmul.f32 0.5, %v1554_v44  ;;  %v8018_v44 = vld [vmem:[#allocation29_spill] sm:$0xff] }
  0xf3   : > { %8009 = vst [vmem:[#allocation5_spill] sm:$0xff] %v5168_v3  ;;  %v901_v14 = vadd.f32 %v5168_v3, %v8013_v15  ;;  %v5205_v2 = vsel %vm1741_vm5, %v5054_v11, %v1734_v27  ;;  %v1871_v33 = vsel %vm1870_vm6, %v1807_v20, %v1809_v52  ;;  %v1931_v15 = vsel %vm1870_vm6, %v4542_v63, %v1807_v20  ;;  %v8019_v20 = vld [vmem:[#allocation31_spill] sm:$0xff]  ;;  %v8022_v11 = vld [vmem:[#allocation24_spill] sm:$0xff]  ;;  %v8037_v3 = vld [vmem:[#allocation82_spill] sm:$0xff] }
  0xf4   : > { %8012 = vst [vmem:[#allocation68_spill] sm:$0xff] %v5184_v60  ;;  %v468_v46 = vsel %vm7640_vm0, %v8015_v43, %v7548_v26  ;;  %8016 = vst [vmem:[#allocation64_spill] sm:$0xff] %v5205_v2  ;;  %3250 = vlog2.f32 %v327_v32  ;;  %v5212_v24 = vsel %vm1741_vm5, %v1734_v27, %v5098_v4  ;;  %v1999_v31 = vsub.f32 %v4527_v1, %v1931_v15  ;;  %v3245_v15 = vpop.eup %3244 }
  0xf5   : > { %8017 = vst [vmem:[#allocation65_spill] sm:$0xff] %v5212_v24  ;;  %v2000_v43 = vsub.f32 %v4573_v47, %v1871_v33  ;;  %v933_v26 = vadd.f32 %v901_v14, %v8018_v44  ;;  %v934_v32 = vadd.f32 %v902_v56, %v8019_v20  ;;  %v5224_v39 = vadd.f32 %v468_v46, %v5152_v51  ;;  %v1813_v33 = vpop.permute.xlu1 %1812  ;;  %v1811_v24 = vpop.permute.xlu0 %1810 }
  0xf6   : > { %v2031_v7 = vmul.f32 0.5, %v1999_v31  ;;  %v8021_v9 = vrot.slane %v5189_v10, 1  ;;  %v8023_v2 = vrot.slane %v8022_v11, 1  ;;  %v3247_v56 = vpop.eup %3246  ;;  %v1872_v46 = vsel %vm1870_vm6, %v1809_v52, %v1811_v24  ;;  %2290 = vrot.lane.b32.xlu1 %v4765_v48, %s3394_s30  ;;  %2288 = vrot.lane.b32.xlu0 %v4755_v17, %s3394_s30 }
  0xf7   : > { %8020 = vst [vmem:[#allocation18_spill] sm:$0xff] %v5224_v39  ;;  %v2032_v47 = vmul.f32 0.5, %v2000_v43  ;;  %v1873_v44 = vsel %vm1870_vm6, %v1811_v24, %v1813_v33  ;;  %v965_v31 = vsub.f32 %v933_v26, %v4950_v12  ;;  %v8024_v43 = vrot.slane %v5184_v60, 6  ;;  %v5255_v26 = vld [vmem:[%s3515_s26 + $0xf8] sm:$0xff] }
  0xf8   : > { %v5233_v14 = vsel %vm1276_vm3, %v8023_v2, %v8021_v9  ;;  %v8025_v20 = vrot.slane %v4372_v61, 6  ;;  %v8026_v27 = vsub.f32 %v4527_v1, %v4542_v63  ;;  %v2001_v11 = vsub.f32 %v4568_v19, %v1872_v46  ;;  %v8027_v9 = vld [vmem:[#allocation41_spill] sm:$0xff] }
  0xf9   : > { %v2002_v52 = vsub.f32 %v8027_v9, %v1873_v44  ;;  %v5260_v1 = vsel %vm1741_vm5, %v1740_v28, %v5255_v26  ;;  %v966_v63 = vsub.f32 %v934_v32, %v4987_v21  ;;  %v1015_v19 = vmul.f32 1.442695, %v965_v31  ;;  %v1817_v48 = vpop.permute.xlu1 %1816  ;;  %v1815_v44 = vpop.permute.xlu0 %1814 }
  0xfa   : > { %v627_v42 = vsel %vm7641_vm1, %v8025_v20, %v8024_v43  ;;  %v2095_v2 = vsel %vm5136_vm7, %v8026_v27, %v2031_v7  ;;  %v3249_v24 = vpop.eup %3248  ;;  %8028 = vst [vmem:[#allocation11_spill] sm:$0xff] %v5260_v1  ;;  %v2730_v27 = vsub.f32 0.0, %v2032_v47  ;;  %v2033_v46 = vmul.f32 0.5, %v2001_v11  ;;  %v8031_v1 = vld [vmem:[#allocation49_spill] sm:$0xff]  ;;  %2294 = vrot.lane.b32.xlu1 %v4721_v37, %s3394_s30  ;;  %2292 = vrot.lane.b32.xlu0 %v4647_v16, %s3394_s30 }
  0xfb   : > { %v5265_v43 = vmul.f32 %v4934_v54, %v3245_v15  ;;  %v5268_v20 = vadd.f32 %v627_v42, %v5184_v60  ;;  %v2729_v9 = vsub.f32 0.0, %v2095_v2  ;;  %v1874_v61 = vsel %vm1870_vm6, %v1813_v33, %v1815_v44  ;;  %v8036_v15 = vld [vmem:[#allocation79_spill] sm:$0xff] }
  0xfc   : > { %v1875_v28 = vsel %vm1870_vm6, %v1815_v44, %v1817_v48  ;;  %v8032_v32 = vand.u32 1023, %v8031_v1  ;;  %v5279_v47 = vmul.f32 %v4687_v25, %v3247_v56  ;;  %v2034_v11 = vmul.f32 0.5, %v2002_v52  ;;  %v8040_v56 = vld [vmem:[#allocation69_spill] sm:$0xff] }
  0xfd   : > { %8029 = vst [vmem:[#allocation29_spill] sm:$0xff] %v5265_v43  ;;  %8030 = vst [vmem:[#allocation31_spill] sm:$0xff] %v5268_v20  ;;  %v2003_v7 = vsub.f32 %v8036_v15, %v1874_v61  ;;  %v2004_v42 = vsub.f32 %v8037_v3, %v1875_v28  ;;  %v5287_v33 = vmul.f32 0.6931472, %v3249_v24  ;;  %3252 = vpow2.f32 %v1015_v19  ;;  %v8042_v3 = vld [vmem:[#allocation43_spill] sm:$0xff]  ;;  %v1821_v16 = vpop.permute.xlu1 %1820  ;;  %v1819_v24 = vpop.permute.xlu0 %1818 }
  0xfe   : > { %vm5274_vm8 = vcmp.ge.s32.totalorder %v8032_v32, 992  ;;  %8035 = vst [vmem:[#allocation24_spill] sm:$0xff] %v5279_v47  ;;  %v3251_v2 = vpop.eup %3250  ;;  %v1017_v44 = vmul.f32 1.442695, %v966_v63  ;;  %v8039_v32 = vrot.slane %v5224_v39, 6  ;;  %v8041_v1 = vrot.slane %v8040_v56, 6  ;;  %2298 = vrot.lane.b32.xlu1 %v4867_v38, %s3394_s30  ;;  %2296 = vrot.lane.b32.xlu0 %v4844_v34, %s3394_s30 }
  0xff   : > { %8038 = vst [vmem:[#allocation41_spill] sm:$0xff] %v5287_v33  ;;  %v5296_v28 = vmul.f32 %v2730_v27, %v8042_v3  ;;  %v2731_v37 = vsub.f32 0.0, %v2033_v46  ;;  %v2035_v15 = vmul.f32 0.5, %v2003_v7  ;;  %v2036_v60 = vmul.f32 0.5, %v2004_v42  ;;  %v8047_v27 = vld [vmem:[#allocation34_spill] sm:$0xff] }
 0x100   : > { %v629_v52 = vsel %vm7641_vm1, %v8041_v1, %v8039_v32  ;;  %v5299_v49 = vmul.f32 %v2729_v9, %v8043_v41  ;;  %v1876_v63 = vsel %vm1870_vm6, %v1817_v48, %v1819_v24  ;;  %v1877_v19 = vsel %vm1870_vm6, %v1819_v24, %v1821_v16  ;;  %v8045_v32 = vld [vmem:[#allocation83_spill] sm:$0xff]  ;;  %v8050_v16 = vld [vmem:[#allocation81_spill] sm:$0xff] }
 0x101   : > { %v5304_v56 = vadd.f32 %v629_v52, %v5224_v39  ;;  %v2732_v1 = vsub.f32 0.0, %v2034_v11  ;;  %v2005_v61 = vsub.f32 %v8045_v32, %v1876_v63  ;;  %v8046_v7 = vrot.slane %v5268_v20, 4  ;;  %v8051_v63 = vld [vmem:[#allocation47_spill] sm:$0xff]  ;;  %v1825_v3 = vpop.permute.xlu1 %1824  ;;  %v1823_v41 = vpop.permute.xlu0 %1822 }
 0x102   : > { %v8048_v46 = vrot.slane %v8047_v27, 4  ;;  %v5316_v9 = vmul.f32 0.6931472, %v3251_v2  ;;  %v2733_v42 = vsub.f32 0.0, %v2035_v15  ;;  %v2734_v52 = vsub.f32 0.0, %v2036_v60  ;;  %2302 = vrot.lane.b32.xlu1 %v4824_v5, %s3394_s30  ;;  %2300 = vrot.lane.b32.xlu0 %v4941_v18, %s3394_s30 }
 0x103   : > { %8044 = vst [vmem:[#allocation79_spill] sm:$0xff] %v5304_v56  ;;  %v2006_v11 = vsub.f32 %v8050_v16, %v1877_v19  ;;  %v7556_v24 = vrot.slane %v5304_v56, 4  ;;  %v5321_v32 = vmul.f32 %v2731_v37, %v8051_v63  ;;  %v1974_v38 = vsub.f32 %v4617_v58, %v1877_v19  ;;  %v8053_v58 = vld [vmem:[#allocation35_spill] sm:$0xff]  ;;  %v8055_v19 = vld [vmem:[#allocation50_spill] sm:$0xff] }
 0x104   : > { %v788_v48 = vsel %vm754_vm2, %v8048_v46, %v8046_v7  ;;  %8049 = vst [vmem:[#allocation82_spill] sm:$0xff] %v5316_v9  ;;  %v2037_v34 = vmul.f32 0.5, %v2005_v61  ;;  %3254 = vpow2.f32 %v1017_v44  ;;  %v1878_v7 = vsel %vm1870_vm6, %v1823_v41, %v1825_v3 }
 0x105   : > { %v2038_v27 = vmul.f32 0.5, %v2006_v11  ;;  %v1932_v2 = vsel %vm1870_vm6, %v4755_v17, %v1823_v41  ;;  %v5328_v60 = vadd.f32 %v788_v48, %v5268_v20  ;;  %v2008_v37 = vsub.f32 %v4782_v45, %v1878_v7  ;;  %v8056_v48 = vld [vmem:[#allocation54_spill] sm:$0xff]  ;;  %v8057_v45 = vld [vmem:[#allocation55_spill] sm:$0xff]  ;;  %v1829_v20 = vpop.permute.xlu1 %1828 }
 0x106   : > { %v2007_v15 = vsub.f32 %v4644_v23, %v1932_v2  ;;  %v8054_v44 = vrot.slane %v8053_v58, 4  ;;  %v2764_v46 = vmul.f32 %v2732_v1, %v8055_v19  ;;  %v5344_v16 = vmul.f32 %v2733_v42, %v8056_v48  ;;  %2185 = vrot.lane.b32.xlu1 %v4953_v0, %s3393_s29  ;;  %2183 = vrot.lane.b32.xlu0 %v4897_v6, %s3393_s29  ;;  %v8069_v19 = vld [vmem:[#allocation32_spill] sm:$0xff] }
 0x107   : > { %8052 = vst [vmem:[#allocation69_spill] sm:$0xff] %v5328_v60  ;;  %v5347_v11 = vmul.f32 %v2734_v52, %v8057_v45  ;;  %v2070_v18 = vsel %vm5274_vm8, %v1974_v38, %v2038_v27  ;;  %v2735_v2 = vsub.f32 0.0, %v2037_v34  ;;  %v2040_v58 = vmul.f32 0.5, %v2008_v37  ;;  %v8059_v52 = vld [vmem:[#allocation26_spill] sm:$0xff]  ;;  %v8063_v37 = vld [vmem:[#allocation19_spill] sm:$0xff] }
 0x108   : > { %v790_v61 = vsel %vm754_vm2, %v8054_v44, %v7556_v24  ;;  %v2039_v63 = vmul.f32 0.5, %v2007_v15  ;;  %v1827_v44 = vpop.permute.xlu0 %1826  ;;  %v3253_v24 = vpop.eup %3252  ;;  %v903_v45 = vadd.f32 %v5328_v60, %v8059_v52  ;;  %v8060_v7 = vsub.f32 %v4644_v23, %v4755_v17  ;;  %v8061_v27 = vld [vmem:[#allocation94_spill] sm:$0xff]  ;;  %v8065_v17 = vld [vmem:[#allocation97_spill] sm:$0xff] }
 0x109   : > { %v1879_v41 = vsel %vm1870_vm6, %v1825_v3, %v1827_v44  ;;  %v1880_v1 = vsel %vm1870_vm6, %v1827_v44, %v1829_v20  ;;  %v5355_v42 = vadd.f32 %v790_v61, %v5304_v56  ;;  %v2738_v34 = vsub.f32 0.0, %v2040_v58 }
 0x10a   : > { %v2103_v38 = vsel %vm5136_vm7, %v8060_v7, %v2039_v63  ;;  %v2009_v15 = vsub.f32 %v8061_v27, %v1879_v41  ;;  %v8062_v3 = vrot.slane %v5287_v33, 7  ;;  %v8064_v61 = vrot.slane %v8063_v37, 7  ;;  %v8067_v7 = vld [vmem:[#allocation72_spill] sm:$0xff]  ;;  %v1833_v37 = vpop.permute.xlu1 %1832  ;;  %2189 = vrot.lane.b32.xlu1 %v5044_v35, %s3393_s29  ;;  %2187 = vrot.lane.b32.xlu0 %v5064_v22, %s3393_s29 }
 0x10b   : > { %8058 = vst [vmem:[#allocation83_spill] sm:$0xff] %v5355_v42  ;;  %v2736_v52 = vsub.f32 0.0, %v2070_v18  ;;  %v2737_v23 = vsub.f32 0.0, %v2103_v38  ;;  %v2010_v48 = vsub.f32 %v8065_v17, %v1880_v1  ;;  %v8066_v63 = vrot.slane %v5316_v9, 7  ;;  %v8071_v38 = vld [vmem:[#allocation71_spill] sm:$0xff] }
 0x10c   : > { %v470_v44 = vsel %vm7640_vm0, %v8064_v61, %v8062_v3  ;;  %v8068_v41 = vrot.slane %v8067_v7, 7  ;;  %v5383_v27 = vmul.f32 %v2735_v2, %v7957_v59  ;;  %v2770_v60 = vmul.f32 %v2738_v34, %v8069_v19  ;;  %v1831_v39 = vpop.permute.xlu0 %1830  ;;  %v8077_v59 = vld [vmem:[#allocation91_spill] sm:$0xff] }
 0x10d   : > { %v2041_v56 = vmul.f32 0.5, %v2009_v15  ;;  %v5387_v18 = vmul.f32 %v4704_v40, %v3253_v24  ;;  %v2769_v1 = vmul.f32 %v2737_v23, %v8071_v38  ;;  %v2042_v3 = vmul.f32 0.5, %v2010_v48  ;;  %v8073_v15 = vld [vmem:[#allocation102_spill] sm:$0xff] }
 0x10e   : > { %v5380_v58 = vsel %vm7640_vm0, %v8068_v41, %v8066_v63  ;;  %v1881_v61 = vsel %vm1870_vm6, %v1829_v20, %v1831_v39  ;;  %v1882_v17 = vsel %vm1870_vm6, %v1831_v39, %v1833_v37  ;;  %v3255_v63 = vpop.eup %3254  ;;  %v5393_v7 = vadd.f32 %v2770_v60, %v5296_v28  ;;  %v8072_v41 = vld [vmem:[#allocation98_spill] sm:$0xff]  ;;  %v8075_v60 = vld [vmem:[#allocation84_spill] sm:$0xff]  ;;  %2306 = vrot.lane.b32.xlu1 %v4687_v25, %s3394_s30 }
 0x10f   : > { %8070 = vst [vmem:[#allocation34_spill] sm:$0xff] %v5387_v18  ;;  %v2739_v2 = vsub.f32 0.0, %v2041_v56  ;;  %v2011_v34 = vsub.f32 %v8072_v41, %v1881_v61  ;;  %v2012_v19 = vsub.f32 %v8073_v15, %v1882_v17  ;;  %v5402_v24 = vmul.f32 %v2736_v52, %v7960_v53  ;;  %v8074_v28 = vld [vmem:[#allocation30_spill] sm:$0xff]  ;;  %v1837_v17 = vpop.permute.xlu1 %1836  ;;  %v8076_v15 = vld [vmem:[#allocation36_spill] sm:$0xff]  ;;  %2304 = vrot.lane.b32.xlu0 %v4934_v54, %s3394_s30 }
 0x110   : > { %v5405_v39 = vadd.f32 %v2769_v1, %v5299_v49  ;;  %v2740_v20 = vsub.f32 0.0, %v2042_v3  ;;  %v904_v56 = vadd.f32 %v5355_v42, %v8074_v28  ;;  %v1835_v41 = vpop.permute.xlu0 %1834  ;;  %v935_v38 = vadd.f32 %v903_v45, %v8076_v15  ;;  %v8081_v28 = vld [vmem:[#allocation40_spill] sm:$0xff] }
 0x111   : > { %v2771_v48 = vmul.f32 %v2739_v2, %v8075_v60  ;;  %v2043_v23 = vmul.f32 0.5, %v2011_v34  ;;  %v2044_v61 = vmul.f32 0.5, %v2012_v19  ;;  %v1883_v52 = vsel %vm1870_vm6, %v1833_v37, %v1835_v41  ;;  %v8079_v37 = vld [vmem:[#allocation105_spill] sm:$0xff] }
 0x112   : > { %v2772_v21 = vmul.f32 %v2740_v20, %v8077_v59  ;;  %v1884_v53 = vsel %vm1870_vm6, %v1835_v41, %v1837_v17  ;;  %v5415_v49 = vmul.f32 %v4730_v50, %v3255_v63  ;;  %v2013_v34 = vsub.f32 %v8079_v37, %v1883_v52  ;;  %v8080_v20 = vld [vmem:[#allocation100_spill] sm:$0xff]  ;;  %2310 = vrot.lane.b32.xlu1 %v4730_v50, %s3394_s30 }
 0x113   : > { %v5418_v1 = vadd.f32 %v2771_v48, %v5321_v32  ;;  %v2741_v3 = vsub.f32 0.0, %v2043_v23  ;;  %v2742_v2 = vsub.f32 0.0, %v2044_v61  ;;  %v1982_v19 = vsub.f32 %v4824_v5, %v1884_v53  ;;  %v8082_v32 = vld [vmem:[#allocation103_spill] sm:$0xff]  ;;  %v8083_v23 = vld [vmem:[#allocation108_spill] sm:$0xff]  ;;  %v1841_v41 = vpop.permute.xlu1 %1840  ;;  %2308 = vrot.lane.b32.xlu0 %v4704_v40, %s3394_s30 }
 0x114   : > { %8078 = vst [vmem:[#allocation81_spill] sm:$0xff] %v5415_v49  ;;  %v5425_v45 = vadd.f32 %v2772_v21, %v2764_v46  ;;  %v2014_v63 = vsub.f32 %v8080_v20, %v1884_v53  ;;  %v936_v17 = vadd.f32 %v904_v56, %v8081_v28  ;;  %v1839_v5 = vpop.permute.xlu0 %1838  ;;  %v967_v15 = vsub.f32 %v935_v38, %v5127_v29  ;;  %v8086_v37 = vld [vmem:[#allocation12_spill] sm:$0xff] }
 0x115   : > { %v2773_v48 = vmul.f32 %v2741_v3, %v8082_v32  ;;  %v2774_v61 = vmul.f32 %v2742_v2, %v8083_v23  ;;  %v5434_v59 = vadd.f32 %v470_v44, %v5287_v33  ;;  %v2045_v60 = vmul.f32 0.5, %v2013_v34  ;;  %v8085_v3 = vld [vmem:[#allocation107_spill] sm:$0xff] }
 0x116   : > { %v2046_v21 = vmul.f32 0.5, %v2014_v63  ;;  %v1885_v46 = vsel %vm1870_vm6, %v1839_v5, %v1841_v41  ;;  %v1933_v53 = vsel %vm1870_vm6, %v4934_v54, %v1839_v5  ;;  %v1019_v20 = vmul.f32 1.442695, %v967_v15  ;;  %2314 = vrot.lane.b32.xlu1 %v4953_v0, %s3394_s30 }
 0x117   : > { %8084 = vst [vmem:[#allocation35_spill] sm:$0xff] %v5434_v59  ;;  %v5440_v56 = vadd.f32 %v2773_v48, %v5344_v16  ;;  %v5443_v52 = vadd.f32 %v2774_v61, %v5347_v11  ;;  %v2015_v2 = vsub.f32 %v8085_v3, %v1933_v53  ;;  %v2016_v38 = vsub.f32 %v8086_v37, %v1885_v46  ;;  %v1845_v48 = vpop.permute.xlu1 %1844  ;;  %v8088_v46 = vld [vmem:[#allocation57_spill] sm:$0xff] }
 0x118   : > { %v2078_v44 = vsel %vm5274_vm8, %v1982_v19, %v2046_v21  ;;  %v2743_v34 = vsub.f32 0.0, %v2045_v60  ;;  %v968_v16 = vsub.f32 %v936_v17, %v5152_v51  ;;  %v1843_v61 = vpop.permute.xlu0 %1842  ;;  %v5456_v5 = vadd.f32 %v5380_v58, %v5316_v9  ;;  %v8089_v21 = vld [vmem:[#allocation111_spill] sm:$0xff]  ;;  %2312 = vrot.lane.b32.xlu0 %v4897_v6, %s3394_s30 }
 0x119   : > { %v2744_v63 = vsub.f32 0.0, %v2078_v44  ;;  %v2047_v11 = vmul.f32 0.5, %v2015_v2  ;;  %v2048_v28 = vmul.f32 0.5, %v2016_v38  ;;  %v1886_v19 = vsel %vm1870_vm6, %v1841_v41, %v1843_v61  ;;  %v8091_v38 = vld [vmem:[#allocation59_spill] sm:$0xff] }
 0x11a   : > { %8087 = vst [vmem:[#allocation26_spill] sm:$0xff] %v5456_v5  ;;  %v2775_v53 = vmul.f32 %v2743_v34, %v8088_v46  ;;  %v1887_v60 = vsel %vm1870_vm6, %v1843_v61, %v1845_v48  ;;  %3256 = vpow2.f32 %v1019_v20  ;;  %v8090_v17 = vsub.f32 %v8085_v3, %v4934_v54  ;;  %v8092_v34 = vld [vmem:[#allocation56_spill] sm:$0xff]  ;;  %2318 = vrot.lane.b32.xlu1 %v5044_v35, %s3394_s30 }
 0x11b   : > { %v2776_v37 = vmul.f32 %v2744_v63, %v8089_v21  ;;  %v2746_v2 = vsub.f32 0.0, %v2048_v28  ;;  %v2017_v44 = vsub.f32 %v8091_v38, %v1886_v19  ;;  %v2018_v20 = vsub.f32 %v8092_v34, %v1887_v60  ;;  %v1849_v28 = vpop.permute.xlu1 %1848 }
 0x11c   : > { %v2111_v15 = vsel %vm5136_vm7, %v8090_v17, %v2047_v11  ;;  %v5471_v58 = vadd.f32 %v2775_v53, %v5383_v27  ;;  %v1021_v63 = vmul.f32 1.442695, %v968_v16  ;;  %v1847_v61 = vpop.permute.xlu0 %1846  ;;  %v7564_v19 = vrot.slane %v5434_v59, 6  ;;  %2316 = vrot.lane.b32.xlu0 %v5064_v22, %s3394_s30 }
 0x11d   : > { %v2745_v41 = vsub.f32 0.0, %v2111_v15  ;;  %v5477_v54 = vadd.f32 %v2776_v37, %v5402_v24  ;;  %v2778_v3 = vmul.f32 %v2746_v2, %v5279_v47  ;;  %v2049_v11 = vmul.f32 0.5, %v2017_v44  ;;  %v8094_v37 = vld [vmem:[#allocation20_spill] sm:$0xff]  ;;  %v8096_v44 = vld [vmem:[#allocation119_spill] sm:$0xff] }
 0x11e   : > { %v2050_v53 = vmul.f32 0.5, %v2018_v20  ;;  %3258 = vpow2.f32 %v1021_v63  ;;  %v1888_v60 = vsel %vm1870_vm6, %v1845_v48, %v1847_v61  ;;  %v1889_v24 = vsel %vm1870_vm6, %v1847_v61, %v1849_v28 }
 0x11f   : > { %v2777_v27 = vmul.f32 %v2745_v41, %v5265_v43  ;;  %v5484_v17 = vadd.f32 %v5393_v7, %v2778_v3  ;;  %v2747_v16 = vsub.f32 0.0, %v2049_v11  ;;  %v2019_v15 = vsub.f32 %v8094_v37, %v1888_v60  ;;  %v8097_v7 = vld [vmem:[#allocation37_spill] sm:$0xff]  ;;  %v1853_v3 = vpop.permute.xlu1 %1852 }
 0x120   : > { %v2748_v38 = vsub.f32 0.0, %v2050_v53  ;;  %v2020_v41 = vsub.f32 %v8096_v44, %v1889_v24  ;;  %v8098_v48 = vrot.slane %v8097_v7, 6  ;;  %v1851_v61 = vpop.permute.xlu0 %1850  ;;  %v8100_v53 = vld [vmem:[#allocation92_spill] sm:$0xff]  ;;  %v8103_v7 = vld [vmem:[#allocation73_spill] sm:$0xff]  ;;  %2191 = vrot.lane.b32.xlu0 %v5130_v30, %s3393_s29 }
 0x121   : > { %8093 = vst [vmem:[#allocation94_spill] sm:$0xff] %v5484_v17  ;;  %v5491_v2 = vadd.f32 %v5405_v39, %v2777_v27  ;;  %v2779_v20 = vmul.f32 %v2747_v16, %v5387_v18  ;;  %v2051_v63 = vmul.f32 0.5, %v2019_v15  ;;  %v7563_v39 = vrot.slane %v5456_v5, 6 }
 0x122   : > { %v631_v34 = vsel %vm7641_vm1, %v8098_v48, %v7564_v19  ;;  %v5509_v27 = vsel %vm1741_vm5, %v5098_v4, %v5140_v36  ;;  %v8101_v60 = vsub.f32 0.0, %v8100_v53  ;;  %v2780_v37 = vmul.f32 %v2748_v38, %v5415_v49  ;;  %v5525_v4 = vld [vmem:[%s3515_s26 + $0xc8] sm:$0xff]  ;;  %v8105_v38 = vld [vmem:[#allocation77_spill] sm:$0xff] }
 0x123   : > { %8095 = vst [vmem:[#allocation19_spill] sm:$0xff] %v5491_v2  ;;  %v5504_v11 = vadd.f32 %v631_v34, %v5434_v59  ;;  %v2052_v16 = vmul.f32 0.5, %v2020_v41  ;;  %v5516_v15 = vadd.f32 %v5418_v1, %v2779_v20  ;;  %v2749_v44 = vsub.f32 0.0, %v2051_v63  ;;  %2193 = vrot.lane.b32.xlu1 %v5525_v4, %s3393_s29  ;;  %v5556_v63 = vpop.permute.xlu1 %1856  ;;  %v5596_v59 = vld [vmem:[%s3515_s26 + $0xd0] sm:$0xff] }
 0x124   : > { %v2641_v24 = vmul.f32 %v8101_v60, %v5265_v43  ;;  %v8104_v48 = vrot.slane %v8103_v7, 6  ;;  %v3257_v53 = vpop.eup %3256  ;;  %v5531_v41 = vadd.f32 %v8105_v38, %v5265_v43  ;;  %v5534_v1 = vadd.f32 %v5425_v45, %v2780_v37  ;;  %v8109_v7 = vld [vmem:[#allocation76_spill] sm:$0xff]  ;;  %v8112_v37 = vld [vmem:[#allocation23_spill] sm:$0xff]  ;;  %v5558_v43 = vpop.permute.xlu0 %1854  ;;  %2195 = vrot.lane.b32.xlu0 %v5596_v59, %s3393_s29 }
 0x125   : > { %8099 = vst [vmem:[#allocation97_spill] sm:$0xff] %v5504_v11  ;;  %8102 = vst [vmem:[#allocation72_spill] sm:$0xff] %v5516_v15  ;;  %v7566_v36 = vrot.slane %v5504_v11, 4  ;;  %v5543_v60 = vmul.f32 %v4897_v6, %v3257_v53  ;;  %v8111_v45 = vrot.slane %v5255_v26, 1  ;;  %v8114_v53 = vld [vmem:[#allocation99_spill] sm:$0xff]  ;;  %v2750_v23 = vsub.f32 0.0, %v2052_v16 }
 0x126   : > { %v633_v34 = vsel %vm7641_vm1, %v8104_v48, %v7563_v39  ;;  %8106 = vst [vmem:[#allocation98_spill] sm:$0xff] %v5534_v1  ;;  %v8110_v48 = vrot.slane %v8109_v7, 4  ;;  %v8113_v39 = vrot.slane %v8112_v37, 1  ;;  %v8115_v21 = vsub.f32 0.0, %v8114_v53 }
 0x127   : > { %v5537_v20 = vadd.f32 %v633_v34, %v5456_v5  ;;  %8108 = vst [vmem:[#allocation30_spill] sm:$0xff] %v5543_v60  ;;  %v5568_v37 = vsel %vm1870_vm6, %v1849_v28, %v1851_v61  ;;  %v2781_v32 = vmul.f32 %v2749_v44, %v5543_v60  ;;  %v8122_v5 = vld [vmem:[#allocation46_spill] sm:$0xff]  ;;  %v5593_v44 = vsel %vm1870_vm6, %v1851_v61, %v1853_v3  ;;  %v5626_v15 = vpop.permute.xlu1 %1860 }
 0x128   : > { %v792_v38 = vsel %vm754_vm2, %v8110_v48, %v7566_v36  ;;  %v1332_v34 = vsel %vm1276_vm3, %v8113_v39, %v8111_v45  ;;  %v2642_v46 = vmul.f32 %v8115_v21, %v5279_v47  ;;  %v8117_v39 = vld [vmem:[#allocation22_spill] sm:$0xff]  ;;  %v3259_v53 = vpop.eup %3258  ;;  %v5614_v61 = vpop.permute.xlu0 %1858 }
 0x129   : > { %8107 = vst [vmem:[#allocation102_spill] sm:$0xff] %v5537_v20  ;;  %v7571_v7 = vrot.slane %v5537_v20, 4  ;;  %v5565_v48 = vadd.f32 %v792_v38, %v5504_v11  ;;  %v5572_v45 = vadd.f32 %v8117_v39, %v5279_v47  ;;  %v8118_v36 = vld [vmem:[#allocation78_spill] sm:$0xff]  ;;  %v8120_v38 = vld [vmem:[#allocation80_spill] sm:$0xff]  ;;  %v8123_v47 = vrot.slane %v5064_v22, 7 }
 0x12a   : > { %v5575_v19 = vadd.f32 %v8118_v36, %v2641_v24  ;;  %v8119_v21 = vld [vmem:[#allocation106_spill] sm:$0xff]  ;;  %v8121_v11 = vrot.slane %v8120_v38, 4  ;;  %v8124_v24 = vld [vmem:[#allocation7_spill] sm:$0xff]  ;;  %v5601_v38 = vmul.f32 %v4953_v0, %v3259_v53  ;;  %v8134_v53 = vld [vmem:[#allocation112_spill] sm:$0xff] }
 0x12b   : > { %8116 = vst [vmem:[#allocation36_spill] sm:$0xff] %v5565_v48  ;;  %2197 = vrot.lane.b32.xlu1 %v8119_v21, %s3393_s29  ;;  %v905_v39 = vadd.f32 %v5565_v48, %v8122_v5  ;;  %v8125_v36 = vrot.slane %v8124_v24, 7  ;;  %v8129_v24 = vrot.slane %v5044_v35, 7  ;;  %v8135_v1 = vsub.f32 0.0, %v8134_v53 }
 0x12c   : > { %v794_v28 = vsel %vm754_vm2, %v8121_v11, %v7571_v7  ;;  %8126 = vst [vmem:[#allocation105_spill] sm:$0xff] %v5601_v38  ;;  %v5604_v11 = vadd.f32 %v5440_v56, %v2781_v32  ;;  %v8132_v7 = vld [vmem:[#allocation38_spill] sm:$0xff] }
 0x12d   : > { %v1410_v16 = vsel %vm7640_vm0, %v8125_v36, %v8123_v47  ;;  %v5607_v5 = vadd.f32 %v794_v28, %v5537_v20  ;;  %v8130_v47 = vld [vmem:[#allocation6_spill] sm:$0xff]  ;;  %v5617_v48 = vadd.f32 %v8132_v7, %v2642_v46  ;;  %v2643_v42 = vmul.f32 %v8135_v1, %v5387_v18  ;;  %v8141_v46 = vld [vmem:[#allocation85_spill] sm:$0xff] }
 0x12e   : > { %8127 = vst [vmem:[#allocation100_spill] sm:$0xff] %v5604_v11  ;;  %v8131_v36 = vrot.slane %v8130_v47, 7  ;;  %v8136_v32 = vld [vmem:[#allocation114_spill] sm:$0xff]  ;;  %v8138_v11 = vld [vmem:[#allocation48_spill] sm:$0xff]  ;;  %v8139_v47 = vld [vmem:[#allocation87_spill] sm:$0xff]  ;;  %v1555_v53 = vsub.f32 %v5233_v14, %v1410_v16 }
 0x12f   : > { %8128 = vst [vmem:[#allocation40_spill] sm:$0xff] %v5607_v5  ;;  %8133 = vst [vmem:[#allocation107_spill] sm:$0xff] %v5617_v48  ;;  %v8137_v56 = vsub.f32 0.0, %v8136_v32  ;;  %v937_v20 = vadd.f32 %v905_v39, %v8138_v11  ;;  %v906_v7 = vadd.f32 %v5607_v5, %v8141_v46  ;;  %v8142_v1 = vld [vmem:[#allocation117_spill] sm:$0xff]  ;;  %v8143_v32 = vld [vmem:[#allocation96_spill] sm:$0xff] }
 0x130   : > { %v1412_v3 = vsel %vm7640_vm0, %v8131_v36, %v8129_v24  ;;  %v5630_v24 = vadd.f32 %v8139_v47, %v5387_v18  ;;  %v2782_v36 = vmul.f32 %v2750_v23, %v5601_v38  ;;  %2201 = vrot.lane.b32.xlu1 %v8142_v1, %s3393_s29  ;;  %v296_v47 = vmin.f32 %v5130_v30, 0.999999  ;;  %v8145_v18 = vld [vmem:[#allocation110_spill] sm:$0xff]  ;;  %v8147_v46 = vld [vmem:[#allocation51_spill] sm:$0xff] }
 0x131   : > { %v2644_v28 = vmul.f32 %v8137_v56, %v5415_v49  ;;  %v5640_v56 = vadd.f32 %v8143_v32, %v5415_v49  ;;  %v969_v39 = vsub.f32 %v937_v20, %v5287_v33  ;;  %v1556_v11 = vsub.f32 %v1332_v34, %v1412_v3  ;;  %2199 = vrot.lane.b32.xlu0 %v8145_v18, %s3393_s29  ;;  %v8148_v16 = vld [vmem:[#allocation118_spill] sm:$0xff]  ;;  %v5653_v32 = vpop.permute.xlu0 %1862  ;;  %v8149_v49 = vld [vmem:[#allocation52_spill] sm:$0xff]  ;;  %v8151_v34 = vld [vmem:[#allocation53_spill] sm:$0xff] }
 0x132   : > { %8140 = vst [vmem:[#allocation12_spill] sm:$0xff] %v5630_v24  ;;  %v5647_v23 = vadd.f32 %v5443_v52, %v2782_v36  ;;  %v938_v14 = vadd.f32 %v906_v7, %v8147_v46  ;;  %v2022_v5 = vsub.f32 %v8148_v16, %v5593_v44  ;;  %v297_v24 = vmin.f32 %v5525_v4, 0.999999  ;;  %v8309_v31 = vld [vmem:[#allocation36_spill] sm:$0xff] }
 0x133   : > { %8144 = vst [vmem:[#allocation59_spill] sm:$0xff] %v5640_v56  ;;  %v5656_v20 = vadd.f32 %v8149_v49, %v2643_v42  ;;  %v5659_v3 = vadd.f32 %v8151_v34, %v2644_v28  ;;  %v1023_v33 = vmul.f32 1.442695, %v969_v39  ;;  %v328_v56 = vsub.f32 1.0, %v296_v47  ;;  %v8154_v28 = vld [vmem:[#allocation120_spill] sm:$0xff]  ;;  %v5675_v47 = vpop.permute.xlu1 %1864 }
 0x134   : > { %8146 = vst [vmem:[#allocation56_spill] sm:$0xff] %v5647_v23  ;;  %v8153_v52 = vsub.f32 0.0, %v5186_v62  ;;  %v970_v7 = vsub.f32 %v938_v14, %v5316_v9  ;;  %v5665_v46 = vmul.f32 0.5, %v1555_v53  ;;  %v329_v16 = vsub.f32 1.0, %v297_v24  ;;  %2205 = vrot.lane.b32.xlu1 %v5255_v26, %s3393_s29  ;;  %v8155_v24 = vld [vmem:[#allocation28_spill] sm:$0xff] }
 0x135   : > { %8150 = vst [vmem:[#allocation20_spill] sm:$0xff] %v5656_v20  ;;  %8152 = vst [vmem:[#allocation119_spill] sm:$0xff] %v5659_v3  ;;  %3260 = vpow2.f32 %v1023_v33  ;;  %v5669_v42 = vmul.f32 0.5, %v1556_v11  ;;  %v1990_v49 = vsub.f32 %v5044_v35, %v5593_v44  ;;  %v2021_v39 = vsub.f32 %v8154_v28, %v5568_v37  ;;  %2203 = vrot.lane.b32.xlu0 %v5189_v10, %s3393_s29  ;;  %v5688_v34 = vpop.permute.xlu0 %1866 }
 0x136   : > { %v2645_v36 = vmul.f32 %v8153_v52, %v5543_v60  ;;  %v1025_v62 = vmul.f32 1.442695, %v970_v7  ;;  %v2054_v53 = vmul.f32 0.5, %v2022_v5  ;;  %3262 = vlog2.f32 %v328_v56  ;;  %v8157_v5 = vld [vmem:[#allocation27_spill] sm:$0xff] }
 0x137   : > { %v8156_v14 = vrot.slane %v8155_v24, 1  ;;  %3264 = vlog2.f32 %v329_v16  ;;  %v1413_v11 = vrot.slane %v5130_v30, 7  ;;  %v1415_v44 = vrot.slane %v5525_v4, 7 }
 0x138   : > { %v1892_v37 = vsel %vm1870_vm6, %v5558_v43, %v5556_v63  ;;  %3266 = vpow2.f32 %v1025_v62  ;;  %v8158_v56 = vrot.slane %v8157_v5, 1  ;;  %v1934_v7 = vsel %vm1870_vm6, %v5130_v30, %v5558_v43  ;;  %2322 = vrot.lane.b32.xlu1 %v5525_v4, %s3394_s30  ;;  %v8163_v43 = vld [vmem:[#allocation109_spill] sm:$0xff] }
 0x139   : > { %v1365_v33 = vsel %vm1276_vm3, %v8156_v14, %v5130_v30  ;;  %v298_v16 = vmin.f32 %v5596_v59, 0.999999  ;;  %v8159_v28 = vsub.f32 0.0, %v5201_v13  ;;  %v8160_v14 = vld [vmem:[#allocation9_spill] sm:$0xff]  ;;  %v8162_v5 = vrot.slane %v4687_v25, 7  ;;  %2320 = vrot.lane.b32.xlu0 %v5130_v30, %s3394_s30 }
 0x13a   : > { %v1366_v52 = vsel %vm1276_vm3, %v8158_v56, %v5525_v4  ;;  %v8161_v62 = vrot.slane %v8160_v14, 7  ;;  %v299_v9 = vmin.f32 %v8119_v21, 0.999999  ;;  %v5714_v3 = vadd.f32 %v8163_v43, %v5543_v60  ;;  %v8168_v60 = vld [vmem:[#allocation39_spill] sm:$0xff] }
 0x13b   : > { %v2646_v24 = vmul.f32 %v8159_v28, %v5601_v38  ;;  %v1416_v56 = vsel %vm7640_vm0, %v8162_v5, %v1415_v44  ;;  %v2053_v20 = vmul.f32 0.5, %v2021_v39  ;;  %v2086_v13 = vsel %vm5274_vm8, %v1990_v49, %v2054_v53  ;;  %v8165_v28 = vld [vmem:[#allocation121_spill] sm:$0xff]  ;;  %v5719_v44 = vpop.permute.xlu1 %1868  ;;  %v8166_v5 = vld [vmem:[#allocation3_spill] sm:$0xff]  ;;  %v8169_v49 = vld [vmem:[#allocation14_spill] sm:$0xff] }
 0x13c   : > { %v1414_v23 = vsel %vm7640_vm0, %v8161_v62, %v1413_v11  ;;  %8164 = vst [vmem:[#allocation37_spill] sm:$0xff] %v5714_v3  ;;  %v2023_v14 = vsub.f32 %v8165_v28, %v1934_v7  ;;  %v1558_v62 = vsub.f32 %v1366_v52, %v1416_v56  ;;  %v330_v25 = vsub.f32 1.0, %v298_v16  ;;  %2326 = vrot.lane.b32.xlu1 %v8119_v21, %s3394_s30  ;;  %v5739_v52 = vpop.permute.xlu0 %2143 }
 0x13d   : > { %v1557_v11 = vsub.f32 %v1365_v33, %v1414_v23  ;;  %v331_v17 = vsub.f32 1.0, %v299_v9  ;;  %v5722_v48 = vadd.f32 %v8166_v5, %v2645_v36  ;;  %v5727_v39 = vadd.s32 24, %v8168_v60  ;;  %v8171_v9 = vld [vmem:[#allocation62_spill] sm:$0xff]  ;;  %8173 = vst [vmem:[#allocation76_spill] sm:$0xff] %v5739_v52  ;;  %2324 = vrot.lane.b32.xlu0 %v5596_v59, %s3394_s30 }
 0x13e   : > { %v5733_v53 = vadd.f32 %v8169_v49, %v5601_v38  ;;  %v5736_v33 = vadd.f32 %v8171_v9, %v2646_v24  ;;  %v2024_v36 = vsub.f32 %v5157_v57, %v1892_v37  ;;  %3268 = vlog2.f32 %v330_v25 }
 0x13f   : > { %8167 = vst [vmem:[#allocation92_spill] sm:$0xff] %v5722_v48  ;;  %v2751_v60 = vsub.f32 0.0, %v2053_v20  ;;  %v2752_v7 = vsub.f32 0.0, %v2086_v13  ;;  %v2055_v16 = vmul.f32 0.5, %v2023_v14  ;;  %3270 = vlog2.f32 %v331_v17  ;;  %v3261_v5 = vpop.eup %3260  ;;  %v8175_v13 = vld [vmem:[#allocation33_spill] sm:$0xff] }
 0x140   : > { %8170 = vst [vmem:[#allocation73_spill] sm:$0xff] %v5733_v53  ;;  %8172 = vst [vmem:[#allocation77_spill] sm:$0xff] %v5736_v33  ;;  %v1525_v43 = vsub.f32 %v5130_v30, %v1414_v23  ;;  %v1526_v49 = vsub.f32 %v5525_v4, %v1416_v56  ;;  %v1589_v2 = vmul.f32 0.5, %v1557_v11  ;;  %v1590_v24 = vmul.f32 0.5, %v1558_v62  ;;  %v3263_v9 = vpop.eup %3262  ;;  %2330 = vrot.lane.b32.xlu1 %v8142_v1, %s3394_s30 }
 0x141   : > { %v5746_v57 = vmul.f32 %v5064_v22, %v3261_v5  ;;  %vm1243_vm9 = vcmp.eq.s32.totalorder %v5727_v39, 31  ;;  %v1417_v37 = vrot.slane %v5596_v59, 7  ;;  %v5753_v17 = vsel %vm1870_vm6, %v5556_v63, %v5614_v61  ;;  %v3265_v23 = vpop.eup %3264  ;;  %v5772_v63 = vpop.permute.xlu1 %2145  ;;  %2328 = vrot.lane.b32.xlu0 %v8145_v18, %s3394_s30 }
 0x142   : > { %v5757_v20 = vmul.f32 0.6931472, %v3263_v9  ;;  %v5759_v56 = vmul.f32 0.5, %v2024_v36  ;;  %v8176_v14 = vrot.slane %v8175_v13, 1  ;;  %v5770_v62 = vsel %vm1870_vm6, %v5614_v61, %v5626_v15  ;;  %8177 = vst [vmem:[#allocation99_spill] sm:$0xff] %v5772_v63  ;;  %v3267_v25 = vpop.eup %3266 }
 0x143   : > { %8174 = vst [vmem:[#allocation23_spill] sm:$0xff] %v5746_v57  ;;  %v2783_v36 = vmul.f32 %v2751_v60, %v5746_v57  ;;  %v5777_v5 = vmul.f32 0.6931472, %v3265_v23  ;;  %v8178_v9 = vsub.f32 %v8165_v28, %v5130_v30  ;;  %v8179_v61 = vrot.slane %v8119_v21, 1  ;;  %v5807_v28 = vpop.permute.xlu0 %2147 }
 0x144   : > { %v5765_v11 = vsel %vm1276_vm3, %v8176_v14, %v5596_v59  ;;  %v5787_v14 = vld [vmem:[%s3515_s26 + $0xd8] sm:$0xff]  ;;  %v5796_v52 = vmul.f32 %v5044_v35, %v3267_v25  ;;  %v473_v60 = vrot.slane %v5757_v20, 7  ;;  %v5801_v30 = vsel %vm1243_vm9, %v1525_v43, %v1589_v2  ;;  %8181 = vst [vmem:[#allocation78_spill] sm:$0xff] %v5807_v28  ;;  %2334 = vrot.lane.b32.xlu1 %v5255_v26, %s3394_s30 }
 0x145   : > { %v5784_v13 = vsel %vm5136_vm7, %v8178_v9, %v2055_v16  ;;  %v5793_v38 = vsel %vm1276_vm3, %v8179_v61, %v5787_v14  ;;  %v5805_v8 = vsel %vm1243_vm9, %v1526_v49, %v1590_v24  ;;  %v5810_v21 = vadd.f32 %v5471_v58, %v2783_v36  ;;  %v8184_v43 = vld [vmem:[#allocation86_spill] sm:$0xff]  ;;  %2332 = vrot.lane.b32.xlu0 %v5189_v10, %s3394_s30  ;;  %v5843_v58 = vpop.permute.xlu1 %2149 }
 0x146   : > { %8180 = vst [vmem:[#allocation22_spill] sm:$0xff] %v5796_v52  ;;  %v475_v16 = vrot.slane %v5777_v5, 7  ;;  %v8183_v23 = vrot.slane %v4704_v40, 7  ;;  %v1419_v9 = vrot.slane %v5787_v14, 7  ;;  %v2784_v2 = vmul.f32 %v2752_v7, %v5796_v52  ;;  %v8186_v40 = vld [vmem:[#allocation90_spill] sm:$0xff]  ;;  %8189 = vst [vmem:[#allocation46_spill] sm:$0xff] %v5843_v58 }
 0x147   : > { %8182 = vst [vmem:[#allocation106_spill] sm:$0xff] %v5810_v21  ;;  %v8185_v49 = vrot.slane %v8184_v43, 7  ;;  %v301_v33 = vmin.f32 %v8142_v1, 0.999999 }
 0x148   : > { %v5816_v25 = vsel %vm7640_vm0, %v8183_v23, %v1417_v37  ;;  %v8187_v37 = vrot.slane %v8186_v40, 7  ;;  %v3269_v43 = vpop.eup %3268 }
 0x149   : > { %v474_v24 = vsel %vm7640_vm0, %v8185_v49, %v473_v60  ;;  %v5836_v60 = vadd.f32 %v5477_v54, %v2784_v2  ;;  %v1559_v40 = vsub.f32 %v5765_v11, %v5816_v25  ;;  %v5848_v21 = vmul.f32 0.6931472, %v3269_v43 }
 0x14a   : > { %v476_v61 = vsel %vm7640_vm0, %v8187_v37, %v475_v16  ;;  %v553_v23 = vadd.f32 %v474_v24, %v5757_v20  ;;  %v3271_v16 = vpop.eup %3270  ;;  %v8190_v24 = vsub.f32 0.0, %v5665_v46  ;;  %v8191_v54 = vrot.slane %v4730_v50, 7  ;;  %v5863_v46 = vpop.permute.xlu0 %2151 }
 0x14b   : > { %8188 = vst [vmem:[#allocation80_spill] sm:$0xff] %v5836_v60  ;;  %v554_v49 = vadd.f32 %v476_v61, %v5777_v5  ;;  %v8192_v61 = vld [vmem:[#allocation113_spill] sm:$0xff]  ;;  %v5859_v60 = vmul.f32 0.6931472, %v3271_v16  ;;  %8194 = vst [vmem:[#allocation6_spill] sm:$0xff] %v5863_v46  ;;  %v477_v50 = vrot.slane %v5848_v21, 7 }
 0x14c   : > { %v2647_v37 = vmul.f32 %v8190_v24, %v5746_v57  ;;  %v634_v7 = vrot.slane %v553_v23, 6  ;;  %v5853_v2 = vsel %vm7640_vm0, %v8191_v54, %v1419_v9  ;;  %v5857_v36 = vadd.f32 %v8192_v61, %v5746_v57  ;;  %v8195_v24 = vld [vmem:[#allocation93_spill] sm:$0xff]  ;;  %v8197_v61 = vld [vmem:[#allocation95_spill] sm:$0xff] }
 0x14d   : > { %v636_v11 = vrot.slane %v554_v49, 6  ;;  %v8196_v43 = vrot.slane %v8195_v24, 6  ;;  %v300_v54 = vmin.f32 %v8145_v18, 0.999999  ;;  %v8198_v57 = vrot.slane %v8197_v61, 6  ;;  %v8199_v24 = vld [vmem:[#allocation66_spill] sm:$0xff] }
 0x14e   : > { %8193 = vst [vmem:[#allocation7_spill] sm:$0xff] %v5857_v36  ;;  %v479_v58 = vrot.slane %v5859_v60, 7  ;;  %v1560_v46 = vsub.f32 %v5793_v38, %v5853_v2  ;;  %v5879_v63 = vadd.f32 %v8199_v24, %v2647_v37  ;;  %v8202_v61 = vld [vmem:[#allocation25_spill] sm:$0xff]  ;;  %v1591_v37 = vmul.f32 0.5, %v1559_v40  ;;  %v8212_v40 = vld [vmem:[#allocation60_spill] sm:$0xff] }
 0x14f   : > { %v635_v28 = vsel %vm7641_vm1, %v8196_v43, %v634_v7  ;;  %v637_v16 = vsel %vm7641_vm1, %v8198_v57, %v636_v11  ;;  %v8201_v43 = vrot.slane %v4950_v12, 7  ;;  %v8203_v53 = vrot.slane %v8202_v61, 7  ;;  %v5889_v11 = vpop.permute.xlu1 %2153  ;;  %v8207_v24 = vld [vmem:[#allocation101_spill] sm:$0xff] }
 0x150   : > { %v714_v36 = vadd.f32 %v635_v28, %v553_v23  ;;  %8200 = vst [vmem:[#allocation38_spill] sm:$0xff] %v5879_v63  ;;  %v715_v7 = vadd.f32 %v637_v16, %v554_v49  ;;  %v332_v23 = vsub.f32 1.0, %v300_v54  ;;  %8204 = vst [vmem:[#allocation112_spill] sm:$0xff] %v5889_v11  ;;  %v333_v12 = vsub.f32 1.0, %v301_v33 }
 0x151   : > { %v478_v9 = vsel %vm7640_vm0, %v8201_v43, %v477_v50  ;;  %v480_v57 = vsel %vm7640_vm0, %v8203_v53, %v479_v58  ;;  %v8205_v50 = vld [vmem:[#allocation115_spill] sm:$0xff]  ;;  %v8208_v43 = vrot.slane %v8207_v24, 4  ;;  %v5899_v58 = vpop.permute.xlu0 %2155  ;;  %v8213_v3 = vrot.slane %v8212_v40, 6 }
 0x152   : > { %v795_v48 = vrot.slane %v714_v36, 4  ;;  %v555_v28 = vadd.f32 %v478_v9, %v5848_v21  ;;  %v797_v38 = vrot.slane %v715_v7, 4  ;;  %v556_v49 = vadd.f32 %v480_v57, %v5859_v60  ;;  %8209 = vst [vmem:[#allocation48_spill] sm:$0xff] %v5899_v58  ;;  %v8210_v9 = vld [vmem:[#allocation104_spill] sm:$0xff]  ;;  %v8214_v24 = vld [vmem:[#allocation67_spill] sm:$0xff] }
 0x153   : > { %v5894_v16 = vadd.f32 %v8205_v50, %v5796_v52  ;;  %3272 = vlog2.f32 %v332_v23  ;;  %v8211_v54 = vrot.slane %v8210_v9, 4  ;;  %v1423_v23 = vrot.slane %v8142_v1, 7  ;;  %v8215_v9 = vld [vmem:[#allocation116_spill] sm:$0xff]  ;;  %v5925_v40 = vpop.permute.xlu1 %2157 }
 0x154   : > { %v796_v61 = vsel %vm754_vm2, %v8208_v43, %v795_v48  ;;  %v638_v53 = vrot.slane %v555_v28, 6  ;;  %v640_v57 = vrot.slane %v556_v49, 6  ;;  %3274 = vlog2.f32 %v333_v12  ;;  %v8218_v12 = vld [vmem:[#allocation58_spill] sm:$0xff] }
 0x155   : > { %8206 = vst [vmem:[#allocation114_spill] sm:$0xff] %v5894_v16  ;;  %v798_v63 = vsel %vm754_vm2, %v8211_v54, %v797_v38  ;;  %v875_v11 = vadd.f32 %v796_v61, %v714_v36  ;;  %v5908_v16 = vld [vmem:[%s3515_s26 + $0xe0] sm:$0xff]  ;;  %v8216_v58 = vrot.slane %v8215_v9, 6  ;;  %v1592_v54 = vmul.f32 0.5, %v1560_v46 }
 0x156   : > { %v876_v33 = vadd.f32 %v798_v63, %v715_v7  ;;  %v639_v50 = vsel %vm7641_vm1, %v8213_v3, %v638_v53  ;;  %v1421_v48 = vrot.slane %v5908_v16, 7  ;;  %v5919_v63 = vsel %vm1870_vm6, %v5626_v15, %v5653_v32 }
 0x157   : > { %v907_v43 = vadd.f32 %v875_v11, %v8214_v24  ;;  %v641_v36 = vsel %vm7641_vm1, %v8216_v58, %v640_v57  ;;  %v716_v38 = vadd.f32 %v639_v50, %v555_v28  ;;  %v8217_v3 = vsub.f32 0.0, %v5669_v42  ;;  %v8219_v11 = vld [vmem:[#allocation63_spill] sm:$0xff]  ;;  %v8222_v42 = vld [vmem:[#allocation61_spill] sm:$0xff] }
 0x158   : > { %v908_v61 = vadd.f32 %v876_v33, %v8218_v12  ;;  %v717_v53 = vadd.f32 %v641_v36, %v556_v49  ;;  %v8220_v28 = vrot.slane %v8145_v18, 1  ;;  %v8221_v15 = vrot.slane %v4897_v6, 7  ;;  %v5937_v33 = vld [vmem:[%s3515_s26 + $0xe8] sm:$0xff]  ;;  %v5946_v36 = vpop.permute.xlu0 %2159  ;;  %v8225_v12 = vld [vmem:[#allocation17_spill] sm:$0xff] }
 0x159   : > { %v2648_v7 = vmul.f32 %v8217_v3, %v5796_v52  ;;  %v939_v24 = vadd.f32 %v907_v43, %v8219_v11  ;;  %v799_v9 = vrot.slane %v716_v38, 4  ;;  %v8223_v46 = vrot.slane %v8142_v1, 1  ;;  %v8231_v52 = vld [vmem:[#allocation64_spill] sm:$0xff] }
 0x15a   : > { %v1369_v58 = vsel %vm1276_vm3, %v8220_v28, %v5908_v16  ;;  %v1422_v57 = vsel %vm7640_vm0, %v8221_v15, %v1421_v48  ;;  %v940_v50 = vadd.f32 %v908_v61, %v8222_v42  ;;  %v801_v3 = vrot.slane %v717_v53, 4  ;;  %v8228_v28 = vld [vmem:[#allocation8_spill] sm:$0xff] }
 0x15b   : > { %v1370_v49 = vsel %vm1276_vm3, %v8223_v46, %v5937_v33  ;;  %v8224_v43 = vrot.slane %v4953_v0, 7  ;;  %v971_v6 = vsub.f32 %v939_v24, %v5757_v20  ;;  %v8226_v48 = vrot.slane %v8225_v12, 4 }
 0x15c   : > { %v8227_v11 = vsub.f32 %v5596_v59, %v5816_v25  ;;  %v1896_v0 = vsel %vm1870_vm6, %v5653_v32, %v5675_v47  ;;  %v8229_v15 = vrot.slane %v8228_v28, 4  ;;  %v1561_v42 = vsub.f32 %v1369_v58, %v1422_v57 }
 0x15d   : > { %v1424_v18 = vsel %vm7640_vm0, %v8224_v43, %v1423_v23  ;;  %v800_v61 = vsel %vm754_vm2, %v8226_v48, %v799_v9  ;;  %v972_v23 = vsub.f32 %v940_v50, %v5777_v5  ;;  %v1027_v9 = vmul.f32 1.442695, %v971_v6  ;;  %v3273_v12 = vpop.eup %3272  ;;  %v8230_v48 = vld [vmem:[#allocation5_spill] sm:$0xff]  ;;  %v5971_v50 = vpop.permute.xlu1 %2161 }
 0x15e   : > { %v5957_v1 = vsel %vm1243_vm9, %v8227_v11, %v1591_v37  ;;  %v802_v20 = vsel %vm754_vm2, %v8229_v15, %v801_v3  ;;  %v877_v24 = vadd.f32 %v800_v61, %v716_v38  ;;  %v1562_v43 = vsub.f32 %v1370_v49, %v1424_v18  ;;  %v3275_v28 = vpop.eup %3274  ;;  %v8232_v38 = vld [vmem:[#allocation4_spill] sm:$0xff]  ;;  %v8235_v15 = vld [vmem:[#allocation65_spill] sm:$0xff] }
 0x15f   : > { %v878_v46 = vadd.f32 %v802_v20, %v717_v53  ;;  %v2028_v25 = vsub.f32 %v5509_v27, %v1896_v0  ;;  %v1029_v37 = vmul.f32 1.442695, %v972_v23  ;;  %v2026_v32 = vsub.f32 %v8231_v52, %v5770_v62  ;;  %v8233_v27 = vld [vmem:[#allocation21_spill] sm:$0xff]  ;;  %v5980_v0 = vpop.permute.xlu0 %2163  ;;  %v8234_v52 = vld [vmem:[#allocation70_spill] sm:$0xff] }
 0x160   : > { %v909_v11 = vadd.f32 %v877_v24, %v8230_v48  ;;  %v1529_v5 = vsub.f32 %v5908_v16, %v1422_v57  ;;  %3276 = vpow2.f32 %v1027_v9  ;;  %v5974_v3 = vmul.f32 0.6931472, %v3273_v12  ;;  %v8236_v24 = vld [vmem:[#allocation10_spill] sm:$0xff] }
 0x161   : > { %v910_v58 = vadd.f32 %v878_v46, %v8232_v38  ;;  %v1530_v53 = vsub.f32 %v5937_v33, %v1424_v18  ;;  %3278 = vpow2.f32 %v1029_v37  ;;  %v5978_v6 = vmul.f32 0.6931472, %v3275_v28 }
 0x162   : > { %v941_v49 = vadd.f32 %v909_v11, %v8233_v27  ;;  %v1593_v61 = vmul.f32 0.5, %v1561_v42  ;;  %v481_v57 = vrot.slane %v5974_v3, 7  ;;  %v1594_v23 = vmul.f32 0.5, %v1562_v43  ;;  %v6029_v27 = vld [vmem:[%s3515_s26 + $0xf0] sm:$0xff] }
 0x163   : > { %v942_v62 = vadd.f32 %v910_v58, %v8234_v52  ;;  %v2027_v20 = vsub.f32 %v8235_v15, %v5919_v63  ;;  %v5987_v9 = vadd.f32 %v8236_v24, %v2648_v7  ;;  %v8238_v46 = vsub.f32 %v5787_v14, %v5853_v2 }
 0x164   : > { %v973_v18 = vsub.f32 %v941_v49, %v5848_v21  ;;  %v483_v12 = vrot.slane %v5978_v6, 7  ;;  %v8239_v43 = vsub.f32 %v5181_v55, %v5753_v17  ;;  %v6004_v7 = vmul.f32 0.5, %v2026_v32  ;;  %v6017_v55 = vpop.permute.xlu1 %2165  ;;  %v6032_v49 = vpop.permute.xlu0 %2167 }
 0x165   : > { %8237 = vst [vmem:[#allocation87_spill] sm:$0xff] %v5987_v9  ;;  %v5995_v42 = vsel %vm1243_vm9, %v8238_v46, %v1592_v54  ;;  %v974_v37 = vsub.f32 %v942_v62, %v5859_v60  ;;  %v8240_v21 = vrot.slane %v5127_v29, 7  ;;  %v8241_v54 = vrot.slane %v5152_v51, 7 }
 0x166   : > { %v6002_v63 = vmul.f32 0.5, %v8239_v43  ;;  %v1031_v48 = vmul.f32 1.442695, %v973_v18  ;;  %v6015_v60 = vsel %vm1243_vm9, %v1529_v5, %v1593_v61  ;;  %v6022_v29 = vsel %vm1243_vm9, %v1530_v53, %v1594_v23 }
 0x167   : > { %v482_v2 = vsel %vm7640_vm0, %v8240_v21, %v481_v57  ;;  %v484_v11 = vsel %vm7640_vm0, %v8241_v54, %v483_v12  ;;  %v1033_v17 = vmul.f32 1.442695, %v974_v37  ;;  %v6024_v38 = vmul.f32 0.5, %v2027_v20  ;;  %v8242_v57 = vld [vmem:[#allocation68_spill] sm:$0xff] }
 0x168   : > { %v557_v28 = vadd.f32 %v482_v2, %v5974_v3  ;;  %v558_v32 = vadd.f32 %v484_v11, %v5978_v6  ;;  %3280 = vpow2.f32 %v1031_v48  ;;  %v6026_v58 = vmul.f32 0.5, %v2028_v25  ;;  %v3332_v2 = vld [vmem:[%s3515_s26 + $0xc0] sm:$0xff]  ;;  %v6062_v11 = vpop.permute.xlu1 %2169  ;;  %v6079_v54 = vpop.permute.xlu0 %2171 }
 0x169   : > { %v302_v5 = vmin.f32 %v6029_v27, 0.999999  ;;  %3282 = vpow2.f32 %v1033_v17  ;;  %v303_v52 = vmin.f32 %v5255_v26, 0.999999  ;;  %v6038_v53 = vsel %vm1870_vm6, %v5675_v47, %v5688_v34  ;;  %v8244_v47 = vld [vmem:[#allocation18_spill] sm:$0xff]  ;;  %8250 = vst [vmem:[#allocation96_spill] sm:$0xff] %v6079_v54 }
 0x16a   : > { %v642_v51 = vrot.slane %v557_v28, 6  ;;  %v644_v61 = vrot.slane %v558_v32, 6  ;;  %v8243_v23 = vrot.slane %v8242_v57, 6  ;;  %v6048_v20 = vsel %vm1870_vm6, %v5688_v34, %v5719_v44  ;;  %v3277_v24 = vpop.eup %3276  ;;  %v8262_v54 = vld [vmem:[#allocation59_spill] sm:$0xff] }
 0x16b   : > { %v8245_v12 = vrot.slane %v8244_v47, 6  ;;  %v3279_v21 = vpop.eup %3278  ;;  %v6057_v48 = vmul.f32 %v3332_v2, %v3277_v24  ;;  %v335_v57 = vsub.f32 1.0, %v303_v52  ;;  %v8248_v24 = vsub.f32 0.0, %v5801_v30 }
 0x16c   : > { %v643_v15 = vsel %vm7641_vm1, %v8243_v23, %v642_v51  ;;  %v6065_v17 = vmul.f32 %v5525_v4, %v3279_v21  ;;  %v8253_v52 = vrot.slane %v5189_v10, 1  ;;  %v6102_v18 = vpop.permute.xlu1 %2173 }
 0x16d   : > { %v645_v37 = vsel %vm7641_vm1, %v8245_v12, %v644_v61  ;;  %8246 = vst [vmem:[#allocation85_spill] sm:$0xff] %v6057_v48  ;;  %v6067_v51 = vadd.f32 %v643_v15, %v557_v28  ;;  %v334_v61 = vsub.f32 1.0, %v302_v5  ;;  %v1077_v23 = vadd.f32 %v5531_v41, %v6057_v48  ;;  %8257 = vst [vmem:[#allocation110_spill] sm:$0xff] %v6102_v18 }
 0x16e   : > { %8247 = vst [vmem:[#allocation117_spill] sm:$0xff] %v6065_v17  ;;  %v2649_v47 = vmul.f32 %v8248_v24, %v6057_v48  ;;  %v8249_v12 = vsub.f32 0.0, %v5784_v13  ;;  %v6077_v44 = vadd.f32 %v645_v37, %v558_v32  ;;  %v1086_v4 = vadd.f32 %v5572_v45, %v6065_v17  ;;  %v8254_v37 = vld [vmem:[#allocation19_spill] sm:$0xff] }
 0x16f   : > { %v8251_v28 = vsub.f32 0.0, %v5805_v8  ;;  %v8252_v41 = vsub.f32 0.0, %v5759_v56  ;;  %v6093_v13 = vsel %vm1276_vm3, %v8253_v52, %v6029_v27  ;;  %v1078_v32 = vrot.slane %v1077_v23, 4  ;;  %v8255_v8 = vld [vmem:[#allocation107_spill] sm:$0xff] }
 0x170   : > { %v2785_v2 = vmul.f32 %v8249_v12, %v6057_v48  ;;  %v2659_v15 = vadd.f32 %v5575_v19, %v2649_v47  ;;  %v1425_v45 = vrot.slane %v6029_v27, 7  ;;  %v1087_v24 = vrot.slane %v1086_v4, 4  ;;  %v8261_v48 = vld [vmem:[#allocation12_spill] sm:$0xff] }
 0x171   : > { %v2650_v5 = vmul.f32 %v8251_v28, %v6065_v17  ;;  %v2786_v30 = vmul.f32 %v8252_v41, %v6065_v17  ;;  %v8256_v28 = vld [vmem:[#allocation94_spill] sm:$0xff]  ;;  %v803_v56 = vrot.slane %v6067_v51, 4  ;;  %v1079_v43 = vadd.f32 %v1078_v32, %v1077_v23  ;;  %v6110_v23 = vpop.permute.xlu0 %2175 }
 0x172   : > { %v2795_v21 = vadd.f32 %v8254_v37, %v2785_v2  ;;  %v3281_v41 = vpop.eup %3280  ;;  %v2660_v10 = vrot.slane %v2659_v15, 4  ;;  %v805_v52 = vrot.slane %v6077_v44, 4  ;;  %v1088_v47 = vadd.f32 %v1087_v24, %v1086_v4  ;;  %8260 = vst [vmem:[#allocation52_spill] sm:$0xff] %v6110_v23 }
 0x173   : > { %v2668_v12 = vadd.f32 %v8255_v8, %v2650_v5  ;;  %v2804_v34 = vadd.f32 %v8256_v28, %v2786_v30  ;;  %v3283_v19 = vpop.eup %3282  ;;  %v6105_v25 = vmul.f32 %v5596_v59, %v3281_v41  ;;  %v1080_v5 = vrot.slane %v1079_v43, 2  ;;  %v6117_v59 = vld [vmem:[%s3515_s26 + $0xf8] sm:$0xff] }
 0x174   : > { %v2796_v46 = vrot.slane %v2795_v21, 4  ;;  %v2661_v30 = vadd.f32 %v2660_v10, %v2659_v15  ;;  %v6108_v28 = vmul.f32 %v5787_v14, %v3283_v19  ;;  %v1089_v32 = vrot.slane %v1088_v47, 2 }
 0x175   : > { %v2669_v2 = vrot.slane %v2668_v12, 4  ;;  %v2805_v37 = vrot.slane %v2804_v34, 4  ;;  %8258 = vst [vmem:[#allocation51_spill] sm:$0xff] %v6105_v25  ;;  %v1095_v4 = vadd.f32 %v8261_v48, %v6105_v25  ;;  %v1081_v24 = vadd.f32 %v1080_v5, %v1079_v43  ;;  %v8264_v48 = vld [vmem:[#allocation31_spill] sm:$0xff] }
 0x176   : > { %v2797_v8 = vadd.f32 %v2796_v46, %v2795_v21  ;;  %8259 = vst [vmem:[#allocation118_spill] sm:$0xff] %v6108_v28  ;;  %v1104_v9 = vadd.f32 %v8262_v54, %v6108_v28  ;;  %3284 = vlog2.f32 %v334_v61  ;;  %v1427_v46 = vrot.slane %v6117_v59, 7  ;;  %v8266_v54 = vld [vmem:[#allocation79_spill] sm:$0xff] }
 0x177   : > { %v2670_v62 = vadd.f32 %v2669_v2, %v2668_v12  ;;  %v2806_v17 = vadd.f32 %v2805_v37, %v2804_v34  ;;  %v1090_v15 = vadd.f32 %v1089_v32, %v1088_v47  ;;  %v2662_v14 = vrot.slane %v2661_v30, 2  ;;  %v6132_v2 = vpop.permute.xlu1 %2177 }
 0x178   : > { %v1096_v21 = vrot.slane %v1095_v4, 4  ;;  %v8263_v41 = vrot.slane %v5255_v26, 1  ;;  %v1105_v12 = vrot.slane %v1104_v9, 4  ;;  %v8265_v43 = vrot.slane %v8264_v48, 4  ;;  %8268 = vst [vmem:[#allocation53_spill] sm:$0xff] %v6132_v2 }
 0x179   : > { %v8267_v61 = vrot.slane %v8266_v54, 4  ;;  %3286 = vlog2.f32 %v335_v57  ;;  %v2671_v47 = vrot.slane %v2670_v62, 2  ;;  %v2798_v37 = vrot.slane %v2797_v8, 2 }
 0x17a   : > { %v6124_v34 = vsel %vm1276_vm3, %v8263_v41, %v6117_v59  ;;  %v804_v10 = vsel %vm754_vm2, %v8265_v43, %v803_v56  ;;  %v2807_v5 = vrot.slane %v2806_v17, 2  ;;  %v1097_v32 = vadd.f32 %v1096_v21, %v1095_v4 }
 0x17b   : > { %v806_v19 = vsel %vm754_vm2, %v8267_v61, %v805_v52  ;;  %v1082_v26 = vrot.slane %v1081_v24, 1  ;;  %v1106_v23 = vadd.f32 %v1105_v12, %v1104_v9  ;;  %v8269_v41 = vrot.slane %v5064_v22, 7  ;;  %v6144_v52 = vpop.permute.xlu0 %2179 }
 0x17c   : > { %v8270_v56 = vrot.slane %v5044_v35, 7  ;;  %8271 = vst [vmem:[#allocation120_spill] sm:$0xff] %v6144_v52  ;;  %v1091_v57 = vrot.slane %v1090_v15, 1  ;;  %v6146_v43 = vadd.f32 %v2662_v14, %v2661_v30  ;;  %v1098_v54 = vrot.slane %v1097_v32, 2  ;;  %v8274_v52 = vld [vmem:[#allocation20_spill] sm:$0xff] }
 0x17d   : > { %v6137_v18 = vsel %vm7640_vm0, %v8269_v41, %v1425_v45  ;;  %v1107_v9 = vrot.slane %v1106_v23, 2  ;;  %v8272_v22 = vsub.f32 0.0, %v5957_v1  ;;  %v879_v21 = vadd.f32 %v804_v10, %v6067_v51  ;;  %v6163_v1 = vpop.permute.xlu1 %2181 }
 0x17e   : > { %v6142_v48 = vsel %vm7640_vm0, %v8270_v56, %v1427_v46  ;;  %v880_v35 = vadd.f32 %v806_v19, %v6077_v44  ;;  %v6155_v46 = vadd.f32 %v2671_v47, %v2670_v62  ;;  %v2799_v12 = vadd.f32 %v2798_v37, %v2797_v8  ;;  %8275 = vst [vmem:[#allocation28_spill] sm:$0xff] %v6163_v1 }
 0x17f   : > { %v2651_v45 = vmul.f32 %v8272_v22, %v6105_v25  ;;  %v6157_v61 = vadd.f32 %v2807_v5, %v2806_v17  ;;  %v1099_v30 = vadd.f32 %v1098_v54, %v1097_v32  ;;  %v1083_v14 = vadd.f32 %v1082_v26, %v1081_v24  ;;  %v6173_v37 = vpop.permute.xlu0 %2272  ;;  %v8280_v26 = vld [vmem:[#allocation69_spill] sm:$0xff] }
 0x180   : > { %v1108_v41 = vadd.f32 %v1107_v9, %v1106_v23  ;;  %v8273_v56 = vsub.f32 0.0, %v5995_v42  ;;  %v1092_v22 = vadd.f32 %v1091_v57, %v1090_v15  ;;  %v2664_v51 = vrot.slane %v6146_v43, 1  ;;  %v3285_v8 = vpop.eup %3284  ;;  %v8277_v23 = vld [vmem:[#allocation119_spill] sm:$0xff]  ;;  %v8279_v15 = vld [vmem:[#allocation72_spill] sm:$0xff] }
 0x181   : > { %v2677_v2 = vadd.f32 %v8274_v52, %v2651_v45  ;;  %v1100_v44 = vrot.slane %v1099_v30, 1  ;;  %v8276_v62 = vsub.f32 0.0, %v6002_v63  ;;  %v8278_v42 = vsub.f32 0.0, %v6004_v7  ;;  %v8281_v57 = vld [vmem:[#allocation83_spill] sm:$0xff] }
 0x182   : > { %v2652_v4 = vmul.f32 %v8273_v56, %v6108_v28  ;;  %v1109_v10 = vrot.slane %v1108_v41, 1  ;;  %v911_v52 = vadd.f32 %v879_v21, %v8280_v26  ;;  %v912_v54 = vadd.f32 %v880_v35, %v8281_v57  ;;  %v8284_v7 = vld [vmem:[#allocation75_spill] sm:$0xff]  ;;  %v6183_v21 = vpop.permute.xlu1 %2274 }
 0x183   : > { %v2787_v17 = vmul.f32 %v8276_v62, %v6105_v25  ;;  %v2678_v24 = vrot.slane %v2677_v2, 4  ;;  %v2788_v47 = vmul.f32 %v8278_v42, %v6108_v28  ;;  %v1101_v5 = vadd.f32 %v1100_v44, %v1099_v30  ;;  %v3287_v63 = vpop.eup %3286  ;;  %v8282_v62 = vld [vmem:[#allocation98_spill] sm:$0xff]  ;;  %v6189_v57 = vpop.permute.xlu0 %2276 }
 0x184   : > { %v2686_v19 = vadd.f32 %v8277_v23, %v2652_v4  ;;  %v1110_v9 = vadd.f32 %v1109_v10, %v1108_v41  ;;  %v8283_v23 = vld [vmem:[#allocation74_spill] sm:$0xff]  ;;  %v944_v42 = vadd.f32 %v912_v54, %v8284_v7  ;;  %v6181_v28 = vmul.f32 0.6931472, %v3285_v8 }
 0x185   : > { %v2813_v32 = vadd.f32 %v8279_v15, %v2787_v17  ;;  %v2679_v45 = vadd.f32 %v2678_v24, %v2677_v2  ;;  %v2822_v25 = vadd.f32 %v8282_v62, %v2788_v47  ;;  %v943_v1 = vadd.f32 %v911_v52, %v8283_v23 }
 0x186   : > { %v2687_v56 = vrot.slane %v2686_v19, 4  ;;  %v2800_v30 = vrot.slane %v2799_v12, 1  ;;  %v976_v2 = vsub.f32 %v944_v42, %v5978_v6  ;;  %v6187_v10 = vmul.f32 0.6931472, %v3287_v63  ;;  %v8285_v63 = vld [vmem:[#allocation41_spill] sm:$0xff]  ;;  %v6201_v42 = vpop.permute.xlu1 %2278 }
 0x187   : > { %v2814_v4 = vrot.slane %v2813_v32, 4  ;;  %v2680_v44 = vrot.slane %v2679_v45, 2  ;;  %v2823_v15 = vrot.slane %v2822_v25, 4  ;;  %v975_v41 = vsub.f32 %v943_v1, %v5974_v3 }
 0x188   : > { %v2688_v17 = vadd.f32 %v2687_v56, %v2686_v19  ;;  %v1155_v24 = vcombine.low %v1083_v14, %v1092_v22  ;;  %v1156_v47 = vcombine.low %v1101_v5, %v1110_v9  ;;  %v1037_v62 = vmul.f32 1.442695, %v976_v2  ;;  %v8287_v5 = vld [vmem:[#allocation44_spill] sm:$0xff] }
 0x189   : > { %v2815_v35 = vadd.f32 %v2814_v4, %v2813_v32  ;;  %v2824_v52 = vadd.f32 %v2823_v15, %v2822_v25  ;;  %v1035_v54 = vmul.f32 1.442695, %v975_v41  ;;  %v485_v19 = vrot.slane %v6181_v28, 7 }
 0x18a   : > { %v2689_v26 = vrot.slane %v2688_v17, 2  ;;  %v2673_v56 = vrot.slane %v6155_v46, 1  ;;  %v2809_v32 = vrot.slane %v6157_v61, 1  ;;  %v2681_v3 = vadd.f32 %v2680_v44, %v2679_v45  ;;  %v8288_v45 = vld [vmem:[#allocation82_spill] sm:$0xff] }
 0x18b   : > { %v2816_v8 = vrot.slane %v2815_v35, 2  ;;  %v2825_v1 = vrot.slane %v2824_v52, 2  ;;  %3288 = vpow2.f32 %v1035_v54  ;;  %v8286_v14 = vrot.slane %v8285_v63, 7 }
 0x18c   : > { %v487_v25 = vrot.slane %v6187_v10, 7  ;;  %v1165_v9 = vrot.slane %v1155_v24, %v8287_v5  ;;  %v2665_v4 = vadd.f32 %v2664_v51, %v6146_v43  ;;  %v1172_v23 = vrot.slane %v1156_v47, %v8287_v5  ;;  %v6211_v51 = vpop.permute.xlu0 %2280 }
 0x18d   : > { %v2817_v6 = vadd.f32 %v2816_v8, %v2815_v35  ;;  %v486_v22 = vsel %vm7640_vm0, %v8286_v14, %v485_v19  ;;  %v2690_v7 = vadd.f32 %v2689_v26, %v2688_v17  ;;  %v2801_v15 = vadd.f32 %v2800_v30, %v2799_v12  ;;  %v8290_v19 = vld [vmem:[#allocation16_spill] sm:$0xff]  ;;  %v8294_v14 = vld [vmem:[#allocation26_spill] sm:$0xff] }
 0x18e   : > { %3290 = vpow2.f32 %v1037_v62  ;;  %v8289_v44 = vrot.slane %v8288_v45, 7  ;;  %v559_v41 = vadd.f32 %v486_v22, %v6181_v28  ;;  %v2674_v2 = vadd.f32 %v2673_v56, %v6155_v46  ;;  %v6229_v45 = vpop.permute.xlu1 %2282 }
 0x18f   : > { %v2826_v8 = vadd.f32 %v2825_v1, %v2824_v52  ;;  %v1563_v43 = vsub.f32 %v6093_v13, %v6137_v18  ;;  %v2810_v17 = vadd.f32 %v2809_v32, %v6157_v61  ;;  %v2682_v12 = vrot.slane %v2681_v3, 1  ;;  %v8292_v52 = vld [vmem:[#allocation35_spill] sm:$0xff] }
 0x190   : > { %v488_v35 = vsel %vm7640_vm0, %v8289_v44, %v487_v25  ;;  %v2818_v30 = vrot.slane %v2817_v6, 1  ;;  %v646_v47 = vrot.slane %v559_v41, 6  ;;  %v2691_v26 = vrot.slane %v2690_v7, 1 }
 0x191   : > { %v560_v24 = vadd.f32 %v488_v35, %v6187_v10  ;;  %v1187_v54 = vcombine.low %v1165_v9, %v1172_v23  ;;  %v2029_v63 = vsub.f32 %v8290_v19, %v6038_v53  ;;  %v6217_v46 = vsel %vm7640_vm0, %v2665_v4, %v2801_v15  ;;  %v8296_v35 = vld [vmem:[#allocation11_spill] sm:$0xff]  ;;  %v8324_v19 = vld [vmem:[#allocation46_spill] sm:$0xff] }
 0x192   : > { %8291 = vst [vmem:[#allocation27_spill] sm:$0xff] %v6217_v46  ;;  %v8293_v56 = vrot.slane %v8292_v52, 6  ;;  %v1532_v1 = vsub.f32 %v6117_v59, %v6142_v48  ;;  %v1564_v61 = vsub.f32 %v6124_v34, %v6142_v48  ;;  %v2827_v32 = vrot.slane %v2826_v8, 1  ;;  %v6479_v46 = vld [vmem:[%s3515_s26 + $0x78] sm:$0xff] }
 0x193   : > { %v648_v62 = vrot.slane %v560_v24, 6  ;;  %v8295_v22 = vrot.slane %v8294_v14, 6  ;;  %v1595_v23 = vmul.f32 0.5, %v1563_v43  ;;  %v2683_v4 = vadd.f32 %v2682_v12, %v2681_v3  ;;  %8347 = vst [vmem:[#allocation67_spill] sm:$0xff] %v6479_v46 }
 0x194   : > { %v647_v13 = vsel %vm7641_vm1, %v8293_v56, %v646_v47  ;;  %v2819_v15 = vadd.f32 %v2818_v30, %v2817_v6  ;;  %v2030_v47 = vsub.f32 %v8296_v35, %v6048_v20  ;;  %v6234_v52 = vsel %vm7640_vm0, %v2674_v2, %v2810_v17  ;;  %v8299_v2 = vld [vmem:[#allocation97_spill] sm:$0xff] }
 0x195   : > { %v649_v25 = vsel %vm7641_vm1, %v8295_v22, %v648_v62  ;;  %v720_v9 = vadd.f32 %v647_v13, %v559_v41  ;;  %8297 = vst [vmem:[#allocation9_spill] sm:$0xff] %v6234_v52  ;;  %v6236_v56 = vadd.f32 %v2691_v26, %v2690_v7  ;;  %v6239_v34 = vrot.slane %v1187_v54, %v8287_v5  ;;  %v6241_v62 = vpop.permute.xlu0 %2284  ;;  %v3289_v41 = vpop.eup %3288  ;;  %v6474_v52 = vld [vmem:[%s3515_s26 + $0x50] sm:$0xff] }
 0x196   : > { %v721_v44 = vadd.f32 %v649_v25, %v560_v24  ;;  %v1596_v13 = vmul.f32 0.5, %v1564_v61  ;;  %v1998_v3 = vsub.f32 %v6117_v59, %v6048_v20  ;;  %v2062_v6 = vmul.f32 0.5, %v2030_v47  ;;  %v8303_v20 = vld [vmem:[#allocation102_spill] sm:$0xff]  ;;  %v6279_v47 = vpop.permute.xlu1 %2286  ;;  %8346 = vst [vmem:[#allocation60_spill] sm:$0xff] %v6474_v52 }
 0x197   : > { %v807_v48 = vrot.slane %v720_v9, 4  ;;  %v2828_v24 = vadd.f32 %v2827_v32, %v2826_v8  ;;  %v6246_v12 = vmul.f32 %v5908_v16, %v3289_v41  ;;  %v8300_v7 = vrot.slane %v8299_v2, 4  ;;  %v8312_v2 = vld [vmem:[#allocation92_spill] sm:$0xff] }
 0x198   : > { %v809_v43 = vrot.slane %v721_v44, 4  ;;  %v8301_v30 = vsub.f32 %v6029_v27, %v6137_v18  ;;  %v3291_v54 = vpop.eup %3290  ;;  %v6259_v61 = vsel %vm7640_vm0, %v2683_v4, %v2819_v15  ;;  %v8304_v8 = vrot.slane %v8303_v20, 4  ;;  %v8306_v18 = vld [vmem:[#allocation37_spill] sm:$0xff]  ;;  %v8316_v20 = vld [vmem:[#allocation88_spill] sm:$0xff] }
 0x199   : > { %8298 = vst [vmem:[#allocation109_spill] sm:$0xff] %v6246_v12  ;;  %v808_v17 = vsel %vm754_vm2, %v8300_v7, %v807_v48  ;;  %8302 = vst [vmem:[#allocation121_spill] sm:$0xff] %v6259_v61  ;;  %v6266_v14 = vsel %vm5274_vm8, %v1998_v3, %v2062_v6  ;;  %v6269_v22 = vmul.f32 %v5937_v33, %v3291_v54  ;;  %v8308_v15 = vsub.f32 0.0, %v6024_v38  ;;  %v8310_v3 = vld [vmem:[#allocation73_spill] sm:$0xff]  ;;  %v6405_v61 = vld [vmem:[%s3515_s26 + $0x28] sm:$0xff] }
 0x19a   : > { %v6256_v26 = vsel %vm1243_vm9, %v8301_v30, %v1595_v23  ;;  %v810_v16 = vsel %vm754_vm2, %v8304_v8, %v809_v43  ;;  %v881_v32 = vadd.f32 %v808_v17, %v720_v9  ;;  %v1113_v25 = vadd.f32 %v8306_v18, %v6246_v12  ;;  %v6293_v17 = vpop.permute.xlu0 %2288  ;;  %v8315_v30 = vld [vmem:[#allocation40_spill] sm:$0xff] }
 0x19b   : > { %8305 = vst [vmem:[#allocation3_spill] sm:$0xff] %v6269_v22  ;;  %v8307_v23 = vsub.f32 0.0, %v6015_v60  ;;  %v2789_v35 = vmul.f32 %v8308_v15, %v6246_v12  ;;  %v882_v9 = vadd.f32 %v810_v16, %v721_v44  ;;  %v6284_v33 = vsel %vm1243_vm9, %v1532_v1, %v1596_v13  ;;  %v8314_v1 = vld [vmem:[#allocation100_spill] sm:$0xff] }
 0x19c   : > { %v913_v48 = vadd.f32 %v881_v32, %v8309_v31  ;;  %v1114_v43 = vrot.slane %v1113_v25, 4  ;;  %v1122_v60 = vadd.f32 %v8310_v3, %v6269_v22  ;;  %v8311_v6 = vsub.f32 0.0, %v6022_v29  ;;  %v8318_v31 = vld [vmem:[#allocation56_spill] sm:$0xff]  ;;  %v8319_v3 = vld [vmem:[#allocation89_spill] sm:$0xff] }
 0x19d   : > { %v2653_v4 = vmul.f32 %v8307_v23, %v6246_v12  ;;  %v8313_v44 = vsub.f32 0.0, %v6026_v58  ;;  %v2831_v13 = vadd.f32 %v8314_v1, %v2789_v35  ;;  %v914_v54 = vadd.f32 %v882_v9, %v8315_v30  ;;  %v8317_v23 = vld [vmem:[#allocation77_spill] sm:$0xff]  ;;  %v6305_v1 = vpop.permute.xlu1 %2290 }
 0x19e   : > { %v2654_v38 = vmul.f32 %v8311_v6, %v6269_v22  ;;  %v945_v8 = vadd.f32 %v913_v48, %v8316_v20  ;;  %v1115_v16 = vadd.f32 %v1114_v43, %v1113_v25  ;;  %v1123_v32 = vrot.slane %v1122_v60, 4 }
 0x19f   : > { %v2695_v7 = vadd.f32 %v8312_v2, %v2653_v4  ;;  %v2790_v39 = vmul.f32 %v8313_v44, %v6269_v22  ;;  %v2832_v15 = vrot.slane %v2831_v13, 4  ;;  %v946_v6 = vadd.f32 %v914_v54, %v8319_v3  ;;  %v8350_v22 = vld [vmem:[#allocation87_spill] sm:$0xff] }
 0x1a0   : > { %v2704_v29 = vadd.f32 %v8317_v23, %v2654_v38  ;;  %v977_v2 = vsub.f32 %v945_v8, %v6181_v28  ;;  %v1116_v58 = vrot.slane %v1115_v16, 2  ;;  %v1124_v44 = vadd.f32 %v1123_v32, %v1122_v60 }
 0x1a1   : > { %v2696_v18 = vrot.slane %v2695_v7, 4  ;;  %v2840_v4 = vadd.f32 %v8318_v31, %v2790_v39  ;;  %v2833_v9 = vadd.f32 %v2832_v15, %v2831_v13  ;;  %v978_v25 = vsub.f32 %v946_v6, %v6187_v10  ;;  %v6308_v39 = vpop.permute.xlu0 %2292 }
 0x1a2   : > { %v2705_v35 = vrot.slane %v2704_v29, 4  ;;  %v1039_v43 = vmul.f32 1.442695, %v977_v2  ;;  %v1117_v30 = vadd.f32 %v1116_v58, %v1115_v16  ;;  %v1125_v38 = vrot.slane %v1124_v44, 2  ;;  %v8322_v2 = vld [vmem:[#allocation76_spill] sm:$0xff] }
 0x1a3   : > { %v2697_v41 = vadd.f32 %v2696_v18, %v2695_v7  ;;  %v2841_v48 = vrot.slane %v2840_v4, 4  ;;  %v2834_v54 = vrot.slane %v2833_v9, 2  ;;  %v1041_v28 = vmul.f32 1.442695, %v978_v25 }
 0x1a4   : > { %v2706_v23 = vadd.f32 %v2705_v35, %v2704_v29  ;;  %3292 = vpow2.f32 %v1039_v43  ;;  %v1118_v60 = vrot.slane %v1117_v30, 1  ;;  %v1126_v7 = vadd.f32 %v1125_v38, %v1124_v44  ;;  %v8323_v44 = vld [vmem:[#allocation78_spill] sm:$0xff]  ;;  %v8327_v38 = vld [vmem:[#allocation112_spill] sm:$0xff] }
 0x1a5   : > { %v2698_v20 = vrot.slane %v2697_v41, 2  ;;  %v2842_v31 = vadd.f32 %v2841_v48, %v2840_v4  ;;  %v2835_v13 = vadd.f32 %v2834_v54, %v2833_v9  ;;  %3294 = vpow2.f32 %v1041_v28  ;;  %v6317_v4 = vpop.permute.xlu1 %2294  ;;  %v8325_v35 = vld [vmem:[#allocation6_spill] sm:$0xff]  ;;  %v6340_v48 = vpop.permute.xlu0 %2296 }
 0x1a6   : > { %v2707_v8 = vrot.slane %v2706_v23, 2  ;;  %v6312_v10 = vsel %vm7640_vm0, %v6236_v56, %v2828_v24  ;;  %v1127_v16 = vrot.slane %v1126_v7, 1  ;;  %v2061_v15 = vmul.f32 0.5, %v2029_v63  ;;  %8326 = vst [vmem:[#allocation14_spill] sm:$0xff] %v6340_v48 }
 0x1a7   : > { %v2699_v32 = vadd.f32 %v2698_v20, %v2697_v41  ;;  %v2843_v18 = vrot.slane %v2842_v31, 2  ;;  %8320 = vst [vmem:[#allocation39_spill] sm:$0xff] %v6312_v10  ;;  %v1119_v3 = vadd.f32 %v1118_v60, %v1117_v30  ;;  %v8321_v41 = vld [vmem:[#allocation99_spill] sm:$0xff]  ;;  %v2624_v53 = vsub.f32 0.0, %v6284_v33  ;;  %v6358_v60 = vld [vmem:[%s3515_s26 + $0x38] sm:$0xff] }
 0x1a8   : > { %v2708_v29 = vadd.f32 %v2707_v8, %v2706_v23  ;;  %v6322_v58 = vsel %vm7642_vm10, %v8322_v2, %v8321_v41  ;;  %v6327_v56 = vsel %vm7642_vm10, %v8321_v41, %v8323_v44  ;;  %v1128_v24 = vadd.f32 %v1127_v16, %v1126_v7  ;;  %v6348_v23 = vld [vmem:[%s3515_s26] sm:$0xff]  ;;  %v6366_v16 = vld [vmem:[%s3515_s26 + $0x10] sm:$0xff]  ;;  %v8328_v41 = vld [vmem:[#allocation48_spill] sm:$0xff] }
 0x1a9   : > { %v2844_v6 = vadd.f32 %v2843_v18, %v2842_v31  ;;  %v6333_v63 = vsel %vm7642_vm10, %v8323_v44, %v8324_v19  ;;  %v6338_v9 = vsel %vm7642_vm10, %v8324_v19, %v8325_v35  ;;  %v2700_v25 = vrot.slane %v2699_v32, 1  ;;  %v6353_v31 = vld [vmem:[%s3515_s26 + $0x8] sm:$0xff]  ;;  %v6377_v19 = vld [vmem:[%s3515_s26 + $0x18] sm:$0xff] }
 0x1aa   : > { %v2709_v43 = vrot.slane %v2708_v29, 1  ;;  %v2836_v30 = vrot.slane %v2835_v13, 1  ;;  %v6345_v33 = vsel %vm7642_vm10, %v8325_v35, %v8327_v38  ;;  %v2759_v20 = vsub.f32 0.0, %v2061_v15 }
 0x1ab   : > { %v6363_v7 = vsel %vm7642_vm10, %v5925_v40, %v6358_v60  ;;  %v1157_v8 = vcombine.low %v1119_v3, %v1128_v24  ;;  %v2845_v18 = vrot.slane %v2844_v6, 1  ;;  %v6373_v2 = vsel %vm7642_vm10, %v8327_v38, %v8328_v41  ;;  %v6382_v3 = vld [vmem:[%s3515_s26 + $0x20] sm:$0xff]  ;;  %v6391_v38 = vpop.permute.xlu1 %2298 }
 0x1ac   : > { %v2760_v44 = vsub.f32 0.0, %v6266_v14  ;;  %v6389_v15 = vsel %vm7642_vm10, %v8328_v41, %v5925_v40  ;;  %8329 = vst [vmem:[#allocation62_spill] sm:$0xff] %v6391_v38  ;;  %v6393_v14 = vadd.f32 %v2700_v25, %v2699_v32  ;;  %v6395_v54 = vadd.f32 %v2709_v43, %v2708_v29  ;;  %v6419_v29 = vpop.permute.xlu0 %2300  ;;  %v8338_v41 = vld [vmem:[#allocation7_spill] sm:$0xff]  ;;  %v6451_v40 = vld [vmem:[%s3515_s26 + $0x48] sm:$0xff] }
 0x1ad   : > { %v6397_v10 = vadd.f32 %v2836_v30, %v2835_v13  ;;  %v6412_v32 = vsel %vm7642_vm10, %v5946_v36, %v5971_v50  ;;  %v6417_v13 = vsel %vm7642_vm10, %v5971_v50, %v5980_v0  ;;  %8334 = vst [vmem:[#allocation93_spill] sm:$0xff] %v6419_v29  ;;  %v6422_v25 = vrot.slane %v1157_v8, %v8287_v5  ;;  %v6427_v30 = vld [vmem:[%s3515_s26 + $0x30] sm:$0xff]  ;;  %v6496_v29 = vld [vmem:[%s3515_s26 + $0x60] sm:$0xff] }
 0x1ae   : > { %v3293_v28 = vpop.eup %3292  ;;  %8330 = vst [vmem:[#allocation33_spill] sm:$0xff] %v6393_v14  ;;  %8331 = vst [vmem:[#allocation86_spill] sm:$0xff] %v6395_v54  ;;  %v6424_v43 = vadd.f32 %v2845_v18, %v2844_v6  ;;  %v6434_v36 = vsel %vm7642_vm10, %v5980_v0, %v6017_v55  ;;  %v8339_v6 = vsub.f32 0.0, %v6256_v26  ;;  %v6463_v26 = vsel %vm7642_vm10, %v6032_v49, %v6062_v11  ;;  %v8343_v54 = vld [vmem:[#allocation38_spill] sm:$0xff] }
 0x1af   : > { %8332 = vst [vmem:[#allocation90_spill] sm:$0xff] %v6397_v10  ;;  %v6402_v24 = vmul.f32 %v6029_v27, %v3293_v28  ;;  %v3295_v27 = vpop.eup %3294  ;;  %8336 = vst [vmem:[#allocation66_spill] sm:$0xff] %v6434_v36  ;;  %v6446_v28 = vld [vmem:[%s3515_s26 + $0x40] sm:$0xff]  ;;  %v8345_v14 = vld [vmem:[#allocation106_spill] sm:$0xff] }
 0x1b0   : > { %8335 = vst [vmem:[#allocation95_spill] sm:$0xff] %v6424_v43  ;;  %v6437_v50 = vmul.f32 %v6117_v59, %v3295_v27  ;;  %v6458_v27 = vsel %vm7642_vm10, %v6017_v55, %v6032_v49  ;;  %8341 = vst [vmem:[#allocation101_spill] sm:$0xff] %v6463_v26  ;;  %v6469_v59 = vpop.permute.xlu1 %2302  ;;  %v8357_v49 = vld [vmem:[#allocation42_spill] sm:$0xff] }
 0x1b1   : > { %8333 = vst [vmem:[#allocation113_spill] sm:$0xff] %v6402_v24  ;;  %v1131_v35 = vadd.f32 %v8338_v41, %v6402_v24  ;;  %v2655_v8 = vmul.f32 %v8339_v6, %v6402_v24  ;;  %v2791_v18 = vmul.f32 %v2759_v20, %v6402_v24  ;;  %8340 = vst [vmem:[#allocation115_spill] sm:$0xff] %v6458_v27  ;;  %v8342_v41 = vld [vmem:[#allocation114_spill] sm:$0xff] }
 0x1b2   : > { %8337 = vst [vmem:[#allocation25_spill] sm:$0xff] %v6437_v50  ;;  %v1140_v6 = vadd.f32 %v8342_v41, %v6437_v50  ;;  %v2656_v0 = vmul.f32 %v2624_v53, %v6437_v50  ;;  %8344 = vst [vmem:[#allocation104_spill] sm:$0xff] %v6469_v59  ;;  %v2792_v55 = vmul.f32 %v2760_v44, %v6437_v50  ;;  %v8348_v41 = vld [vmem:[#allocation110_spill] sm:$0xff]  ;;  %v6487_v44 = vpop.permute.xlu0 %2183 }
 0x1b3   : > { %v1132_v20 = vrot.slane %v1131_v35, 4  ;;  %v2713_v43 = vadd.f32 %v8343_v54, %v2655_v8  ;;  %v2849_v10 = vadd.f32 %v8345_v14, %v2791_v18  ;;  %v6484_v53 = vsel %vm7642_vm10, %v8348_v41, %v6479_v46  ;;  %8351 = vst [vmem:[#allocation58_spill] sm:$0xff] %v6487_v44  ;;  %v8352_v18 = vld [vmem:[#allocation80_spill] sm:$0xff]  ;;  %v6491_v59 = vld [vmem:[%s3515_s26 + $0x58] sm:$0xff]  ;;  %8354 = vst [vmem:[#allocation61_spill] sm:$0xff] %v6496_v29 }
 0x1b4   : > { %8349 = vst [vmem:[#allocation116_spill] sm:$0xff] %v6484_v53  ;;  %v1141_v8 = vrot.slane %v1140_v6, 4  ;;  %v2722_v12 = vadd.f32 %v8350_v22, %v2656_v0  ;;  %v2858_v50 = vadd.f32 %v8352_v18, %v2792_v55  ;;  %8353 = vst [vmem:[#allocation63_spill] sm:$0xff] %v6491_v59  ;;  %v8355_v22 = vld [vmem:[#allocation96_spill] sm:$0xff]  ;;  %v1213_v59 = vadd.s32 128, %v8357_v49  ;;  %v6539_v53 = vld [vmem:[%s3515_s26 + $0x70] sm:$0xff] }
 0x1b5   : > { %v1133_v54 = vadd.f32 %v1132_v20, %v1131_v35  ;;  %v2714_v24 = vrot.slane %v2713_v43, 4  ;;  %v2850_v14 = vrot.slane %v2849_v10, 4  ;;  %v6503_v0 = vsel %vm7642_vm10, %v6062_v11, %v8355_v22  ;;  %v6516_v35 = vld [vmem:[%s3515_s26 + $0x68] sm:$0xff]  ;;  %v6556_v29 = vld [vmem:[%s3515_s26 + $0x90] sm:$0xff] }
 0x1b6   : > { %v1142_v38 = vadd.f32 %v1141_v8, %v1140_v6  ;;  %v2723_v48 = vrot.slane %v2722_v12, 4  ;;  %8356 = vst [vmem:[#allocation17_spill] sm:$0xff] %v6503_v0  ;;  %v2859_v52 = vrot.slane %v2858_v50, 4  ;;  %v6511_v6 = vsel %vm7642_vm10, %v8355_v22, %v8348_v41  ;;  %v6513_v8 = vpop.permute.xlu1 %2185  ;;  %8359 = vst [vmem:[#allocation5_spill] sm:$0xff] %v6516_v35 }
 0x1b7   : > { %v1134_v20 = vrot.slane %v1133_v54, 2  ;;  %v2715_v55 = vadd.f32 %v2714_v24, %v2713_v43  ;;  %v2851_v18 = vadd.f32 %v2850_v14, %v2849_v10  ;;  %8358 = vst [vmem:[#allocation8_spill] sm:$0xff] %v6513_v8  ;;  %v8360_v24 = vld [vmem:[#allocation53_spill] sm:$0xff]  ;;  %v8361_v43 = vld [vmem:[#allocation52_spill] sm:$0xff]  ;;  %v1220_v44 = vand.u32 31, %v8357_v49  ;;  %v6536_v10 = vpop.permute.xlu0 %2187  ;;  %8368 = vst [vmem:[#allocation65_spill] sm:$0xff] %v6556_v29 }
 0x1b8   : > { %v1143_v36 = vrot.slane %v1142_v38, 2  ;;  %v2724_v11 = vadd.f32 %v2723_v48, %v2722_v12  ;;  %v8362_v14 = vld [vmem:[#allocation120_spill] sm:$0xff]  ;;  %8366 = vst [vmem:[#allocation21_spill] sm:$0xff] %v6536_v10  ;;  %v1221_v46 = vand.u32 31, %v1213_v59  ;;  %v6543_v35 = vadd.f32 %v2859_v52, %v2858_v50 }
 0x1b9   : > { %v1135_v27 = vadd.f32 %v1134_v20, %v1133_v54  ;;  %v6523_v54 = vsel %vm7642_vm10, %v8361_v43, %v8360_v24  ;;  %v6528_v20 = vsel %vm7642_vm10, %v8360_v24, %v8362_v14  ;;  %v8364_v12 = vld [vmem:[#allocation28_spill] sm:$0xff]  ;;  %v2716_v43 = vrot.slane %v2715_v55, 2 }
 0x1ba   : > { %8363 = vst [vmem:[#allocation64_spill] sm:$0xff] %v6528_v20  ;;  %v1144_v22 = vadd.f32 %v1143_v36, %v1142_v38  ;;  %v6533_v48 = vsel %vm7642_vm10, %v8362_v14, %v8364_v12  ;;  %v2852_v8 = vrot.slane %v2851_v18, 2  ;;  %8367 = vst [vmem:[#allocation70_spill] sm:$0xff] %v6543_v35  ;;  %v6546_v14 = vld [vmem:[%s3515_s26 + $0x80] sm:$0xff]  ;;  %v2725_v0 = vrot.slane %v2724_v11, 2  ;;  %v6551_v10 = vld [vmem:[%s3515_s26 + $0x88] sm:$0xff]  ;;  %v6572_v26 = vpop.permute.xlu1 %2189 }
 0x1bb   : > { %v1136_v41 = vrot.slane %v1135_v27, 1  ;;  %8365 = vst [vmem:[#allocation4_spill] sm:$0xff] %v6533_v48  ;;  %vm6564_vm12 = vcmp.eq.s32.totalorder %v1220_v44, 0  ;;  %v6574_v12 = vadd.f32 %v2716_v43, %v2715_v55  ;;  %vm6578_vm13 = vcmp.eq.s32.totalorder %v1221_v46, 0  ;;  %v6591_v43 = vpop.permute.xlu0 %2304 }
 0x1bc   : > { %v1145_v36 = vrot.slane %v1144_v22, 1  ;;  %v6576_v59 = vadd.f32 %v2852_v8, %v2851_v18  ;;  %vm6586_vm14 = vcmp.eq.s32.totalorder %v1220_v44, 31  ;;  %v6594_v18 = vadd.f32 %v2725_v0, %v2724_v11 }
 0x1bd   : > { %v1137_v38 = vadd.f32 %v1136_v41, %v1135_v27  ;;  %v2337_v27 = vsel %vm7649_vm11, %v6173_v37, %v6183_v21  ;;  %v1214_v41 = vadd.s32 256, %v8357_v49  ;;  %8371 = vst [vmem:[#allocation10_spill] sm:$0xff] %v6574_v12  ;;  %vm6596_vm15 = vcmp.eq.s32.totalorder %v1221_v46, 31 }
 0x1be   : > { %v1146_v52 = vadd.f32 %v1145_v36, %v1144_v22  ;;  %8372 = vst [vmem:[#allocation68_spill] sm:$0xff] %v6576_v59  ;;  %v2397_v22 = vsel %vm7649_vm11, %v6348_v23, %v6173_v37  ;;  %8377 = vst [vmem:[#allocation18_spill] sm:$0xff] %v6594_v18  ;;  %v2466_v37 = vsub.f32 %v6327_v56, %v2337_v27  ;;  %v1215_v44 = vadd.s32 384, %v8357_v49 }
 0x1bf   : > { %v2465_v55 = vsub.f32 %v6322_v58, %v2397_v22  ;;  %v1222_v59 = vand.u32 31, %v1214_v41  ;;  %v2434_v12 = vsub.f32 %v6353_v31, %v2337_v27  ;;  %v2338_v46 = vsel %vm7649_vm11, %v6183_v21, %v6189_v57  ;;  %v6618_v27 = vpop.permute.xlu1 %2306 }
 0x1c0   : > { %v1158_v36 = vcombine.low %v1137_v38, %v1146_v52  ;;  %v2433_v52 = vsub.f32 %v6348_v23, %v2397_v22  ;;  %v2498_v0 = vmul.f32 0.5, %v2466_v37  ;;  %v1223_v11 = vand.u32 31, %v1215_v44 }
 0x1c1   : > { %v2497_v48 = vmul.f32 0.5, %v2465_v55  ;;  %vm6611_vm2 = vcmp.eq.s32.totalorder %v1222_v59, 0  ;;  %v2339_v41 = vsel %vm7649_vm11, %v6189_v57, %v6201_v42  ;;  %vm6636_vm4 = vcmp.eq.s32.totalorder %v1222_v59, 31 }
 0x1c2   : > { %v1186_v38 = vrot.slane %v1158_v36, %v8287_v5  ;;  %v2530_v21 = vsel %vm6596_vm15, %v2434_v12, %v2498_v0  ;;  %vm6632_vm3 = vcmp.eq.s32.totalorder %v1223_v11, 0  ;;  %v8387_v55 = vsub.f32 %v6327_v56, %v6353_v31 }
 0x1c3   : > { %v2529_v35 = vsel %vm6586_vm14, %v2433_v52, %v2497_v48  ;;  %vm6646_vm5 = vcmp.eq.s32.totalorder %v1223_v11, 31  ;;  %v2468_v56 = vsub.f32 %v6338_v9, %v2339_v41  ;;  %v2436_v37 = vsub.f32 %v6377_v19, %v2339_v41  ;;  %v8390_v52 = vld [vmem:[#allocation45_spill] sm:$0xff] }
 0x1c4   : > { %v1188_v18 = vcombine.low %v6422_v25, %v1186_v38  ;;  %v8382_v25 = vsub.f32 %v6322_v58, %v6348_v23  ;;  %v2562_v12 = vsel %vm6578_vm13, %v8387_v55, %v2530_v21  ;;  %v1216_v44 = vadd.s32 512, %v8357_v49  ;;  %v6675_v55 = vpop.permute.xlu1 %2310 }
 0x1c5   : > { %v2866_v59 = vsub.f32 0.0, %v2562_v12  ;;  %v1217_v38 = vadd.s32 640, %v8357_v49  ;;  %v2500_v21 = vmul.f32 0.5, %v2468_v56  ;;  %v2341_v41 = vsel %vm7649_vm11, %v6211_v51, %v6229_v45 }
 0x1c6   : > { %v2561_v48 = vsel %vm6564_vm12, %v8382_v25, %v2529_v35  ;;  %v1202_v36 = vrot.slane %v1188_v18, %v8287_v5  ;;  %v6650_v35 = vpop.permute.xlu0 %2308  ;;  %v2435_v5 = vsub.f32 %v6366_v16, %v2338_v46  ;;  %v2467_v18 = vsub.f32 %v6333_v63, %v2338_v46  ;;  %v8391_v46 = vld [vmem:[#allocation43_spill] sm:$0xff] }
 0x1c7   : > { %v2865_v58 = vsub.f32 0.0, %v2561_v48  ;;  %v2340_v25 = vsel %vm7649_vm11, %v6201_v42, %v6211_v51  ;;  %v6670_v48 = vmul.f32 %v2866_v59, %v8391_v46  ;;  %v8392_v59 = vsub.f32 %v6333_v63, %v6366_v16  ;;  %v8401_v46 = vld [vmem:[#allocation47_spill] sm:$0xff] }
 0x1c8   : > { %v1203_v31 = vcombine.low %v6239_v34, %v1202_v36  ;;  %v2499_v11 = vmul.f32 0.5, %v2467_v18  ;;  %v1224_v34 = vand.u32 31, %v1216_v44  ;;  %v1225_v36 = vand.u32 31, %v1217_v38 }
 0x1c9   : > { %v6664_v0 = vmul.f32 %v2865_v58, %v8390_v52  ;;  %v2532_v58 = vsel %vm6646_vm5, %v2436_v37, %v2500_v21  ;;  %v2437_v42 = vsub.f32 %v6382_v3, %v2340_v25  ;;  %v2469_v18 = vsub.f32 %v6345_v33, %v2340_v25  ;;  %v8400_v21 = vld [vmem:[#allocation49_spill] sm:$0xff] }
 0x1ca   : > { %1205 = vst [vmem:[%s238_s6] sm:$0xff] %v1203_v31  ;;  %v2531_v12 = vsel %vm6636_vm4, %v2435_v5, %v2499_v11  ;;  %v8393_v51 = vsub.f32 %v6338_v9, %v6377_v19  ;;  %vm6693_vm6 = vcmp.eq.s32.totalorder %v1224_v34, 0  ;;  %v8394_v5 = vmov 0  ;;  %v6698_v44 = vpop.permute.xlu0 %2312 }
 0x1cb   : > { %v2563_v56 = vsel %vm6611_vm2, %v8392_v59, %v2531_v12  ;;  %v8395_v5 = vsel %vm6693_vm6, 4294967295, %v8394_v5  ;;  %v2438_v37 = vsub.f32 %v6405_v61, %v2341_v41  ;;  %vm6700_vm7 = vcmp.eq.s32.totalorder %v1225_v36, 0 }
 0x1cc   : > { %v2564_v31 = vsel %vm6632_vm3, %v8393_v51, %v2532_v58  ;;  %v2867_v38 = vsub.f32 0.0, %v2563_v56  ;;  %v8396_v63 = vmov 0  ;;  %vm6704_vm8 = vcmp.eq.s32.totalorder %v1224_v34, 31 }
 0x1cd   : > { %v2868_v52 = vsub.f32 0.0, %v2564_v31  ;;  %v8397_v63 = vsel %vm6700_vm7, 4294967295, %v8396_v63  ;;  %v8398_v16 = vmov 0  ;;  %v2470_v9 = vsub.f32 %v6373_v2, %v2341_v41 }
 0x1ce   : > { %v8399_v16 = vsel %vm6704_vm8, 4294967295, %v8398_v16  ;;  %v2501_v19 = vmul.f32 0.5, %v2469_v18  ;;  %v1218_v11 = vadd.s32 768, %v8357_v49  ;;  %v1227_v25 = vand.u32 31, %v8400_v21  ;;  %v8404_v18 = vld [vmem:[#allocation50_spill] sm:$0xff] }
 0x1cf   : > { %v6712_v12 = vmul.f32 %v2867_v38, %v8401_v46  ;;  %vm6714_vm9 = vcmp.eq.s32.totalorder %v1225_v36, 31  ;;  %v2342_v34 = vsel %vm7649_vm11, %v6229_v45, %v6241_v62  ;;  %v2343_v41 = vsel %vm7649_vm11, %v6241_v62, %v6279_v47  ;;  %v6729_v36 = vpop.permute.xlu1 %2314 }
 0x1d0   : > { %v6725_v59 = vmul.f32 %v2868_v52, %v8404_v18  ;;  %v2502_v49 = vmul.f32 0.5, %v2470_v9  ;;  %v2533_v56 = vsel %vm6704_vm8, %v2437_v42, %v2501_v19  ;;  %v1226_v51 = vand.u32 31, %v1218_v11  ;;  %v8417_v18 = vld [vmem:[#allocation54_spill] sm:$0xff] }
 0x1d1   : > { %v8405_v31 = vsub.f32 %v6345_v33, %v6382_v3  ;;  %vm6736_vm0 = vcmp.eq.s32.totalorder %v1227_v25, 0  ;;  %v8406_v38 = vmov 0  ;;  %vm6740_vm1 = vcmp.eq.s32.totalorder %v1227_v25, 31  ;;  %v6752_v3 = vpop.permute.xlu0 %2316 }
 0x1d2   : > { %v8407_v38 = vsel %vm6736_vm0, 4294967295, %v8406_v38  ;;  %v8409_v62 = vmov 0  ;;  %v2439_v47 = vsub.f32 %v6427_v30, %v2342_v34  ;;  %v2534_v42 = vsel %vm6714_vm9, %v2438_v37, %v2502_v49  ;;  %8415 = vst [vmem:[#allocation12_spill] sm:$0xff] %v6752_v3 }
 0x1d3   : > { %v2565_v45 = vsel %vm6693_vm6, %v8405_v31, %v2533_v56  ;;  %8408 = vst [vmem:[#allocation19_spill] sm:$0xff] %v8407_v38  ;;  %v8410_v62 = vsel %vm6740_vm1, 4294967295, %v8409_v62  ;;  %vm6747_vm10 = vcmp.eq.s32.totalorder %v1226_v51, 0  ;;  %v8412_v9 = vmov 0  ;;  %v8473_v38 = vld [vmem:[#allocation4_spill] sm:$0xff] }
 0x1d4   : > { %8411 = vst [vmem:[#allocation107_spill] sm:$0xff] %v8410_v62  ;;  %v2869_v52 = vsub.f32 0.0, %v2565_v45  ;;  %v8413_v9 = vsel %vm6747_vm10, 4294967295, %v8412_v9  ;;  %v2440_v33 = vsub.f32 %v6358_v60, %v2343_v41  ;;  %v8416_v19 = vsub.f32 %v6373_v2, %v6405_v61  ;;  %v8420_v45 = vld [vmem:[#allocation55_spill] sm:$0xff] }
 0x1d5   : > { %8414 = vst [vmem:[#allocation94_spill] sm:$0xff] %v8413_v9  ;;  %v2471_v21 = vsub.f32 %v6389_v15, %v2342_v34  ;;  %v2472_v25 = vsub.f32 %v6363_v7, %v2343_v41  ;;  %v2344_v37 = vsel %vm7649_vm11, %v6293_v17, %v6305_v1  ;;  %vm6767_vm6 = vcmp.eq.s32.totalorder %v1226_v51, 31 }
 0x1d6   : > { %v2566_v11 = vsel %vm6700_vm7, %v8416_v19, %v2534_v42  ;;  %v6765_v49 = vmul.f32 %v2869_v52, %v8417_v18  ;;  %v2398_v61 = vsel %vm7649_vm11, %v6446_v28, %v6293_v17  ;;  %v2442_v41 = vsub.f32 %v6451_v40, %v2344_v37 }
 0x1d7   : > { %v2870_v46 = vsub.f32 0.0, %v2566_v11  ;;  %v2503_v2 = vmul.f32 0.5, %v2471_v21  ;;  %v2504_v34 = vmul.f32 0.5, %v2472_v25  ;;  %v2473_v31 = vsub.f32 %v6412_v32, %v2398_v61  ;;  %v6784_v11 = vpop.permute.xlu1 %2318 }
 0x1d8   : > { %v2441_v52 = vsub.f32 %v6446_v28, %v2398_v61  ;;  %v2474_v51 = vsub.f32 %v6417_v13, %v2344_v37  ;;  %v2345_v19 = vsel %vm7649_vm11, %v6305_v1, %v6308_v39  ;;  %8421 = vst [vmem:[#allocation59_spill] sm:$0xff] %v6784_v11  ;;  %v8422_v37 = vsub.f32 %v6389_v15, %v6427_v30  ;;  %v8426_v15 = vld [vmem:[#allocation66_spill] sm:$0xff]  ;;  %v8436_v11 = vld [vmem:[#allocation71_spill] sm:$0xff] }
 0x1d9   : > { %v6777_v42 = vmul.f32 %v2870_v46, %v8420_v45  ;;  %v2535_v17 = vsel %vm6767_vm6, %v2439_v47, %v2503_v2  ;;  %v2536_v21 = vsel %vm6740_vm1, %v2440_v33, %v2504_v34  ;;  %v2505_v25 = vmul.f32 0.5, %v2473_v31  ;;  %v8424_v2 = vld [vmem:[#allocation60_spill] sm:$0xff]  ;;  %v6804_v34 = vpop.permute.xlu0 %2191 }
 0x1da   : > { %v2346_v46 = vsel %vm7649_vm11, %v6308_v39, %v6317_v4  ;;  %v2567_v18 = vsel %vm6747_vm10, %v8422_v37, %v2535_v17  ;;  %v8423_v1 = vsub.f32 %v6363_v7, %v6358_v60  ;;  %v2506_v61 = vmul.f32 0.5, %v2474_v51  ;;  %8425 = vst [vmem:[#allocation31_spill] sm:$0xff] %v6804_v34  ;;  %v8428_v51 = vld [vmem:[#allocation115_spill] sm:$0xff]  ;;  %v8429_v37 = vld [vmem:[#allocation14_spill] sm:$0xff] }
 0x1db   : > { %v2443_v33 = vsub.f32 %v8424_v2, %v2345_v19  ;;  %v2871_v31 = vsub.f32 0.0, %v2567_v18  ;;  %v2537_v39 = vsel %vm6586_vm14, %v2441_v52, %v2505_v25  ;;  %v2475_v30 = vsub.f32 %v8426_v15, %v2345_v19 }
 0x1dc   : > { %v2568_v47 = vsel %vm6736_vm0, %v8423_v1, %v2536_v21  ;;  %v2538_v17 = vsel %vm6596_vm15, %v2442_v41, %v2506_v61  ;;  %v8427_v60 = vsub.f32 %v6412_v32, %v6446_v28  ;;  %v2476_v21 = vsub.f32 %v8428_v51, %v2346_v46  ;;  %v8430_v1 = vld [vmem:[#allocation13_spill] sm:$0xff]  ;;  %v8432_v32 = vld [vmem:[#allocation63_spill] sm:$0xff] }
 0x1dd   : > { %v2872_v45 = vsub.f32 0.0, %v2568_v47  ;;  %v2347_v18 = vsel %vm7649_vm11, %v6317_v4, %v8429_v37  ;;  %v6821_v47 = vmul.f32 %v2871_v31, %v8430_v1  ;;  %v8431_v52 = vsub.f32 %v6417_v13, %v6451_v40  ;;  %v6832_v4 = vpop.permute.xlu1 %2193  ;;  %v8435_v31 = vld [vmem:[#allocation15_spill] sm:$0xff]  ;;  %v8437_v13 = vld [vmem:[#allocation61_spill] sm:$0xff] }
 0x1de   : > { %v2569_v7 = vsel %vm6564_vm12, %v8427_v60, %v2537_v39  ;;  %v2444_v28 = vsub.f32 %v8432_v32, %v2346_v46  ;;  %v2507_v61 = vmul.f32 0.5, %v2475_v30  ;;  %v2508_v39 = vmul.f32 0.5, %v2476_v21  ;;  %v8433_v60 = vld [vmem:[#allocation62_spill] sm:$0xff]  ;;  %8434 = vst [vmem:[#allocation79_spill] sm:$0xff] %v6832_v4  ;;  %v6846_v4 = vpop.permute.xlu0 %2195 }
 0x1df   : > { %v2570_v41 = vsel %vm6578_vm13, %v8431_v52, %v2538_v17  ;;  %v2873_v19 = vsub.f32 0.0, %v2569_v7  ;;  %v2348_v34 = vsel %vm7649_vm11, %v8429_v37, %v8433_v60  ;;  %v6835_v1 = vmul.f32 %v2872_v45, %v8435_v31  ;;  %v8438_v17 = vld [vmem:[#allocation101_spill] sm:$0xff]  ;;  %v8439_v52 = vld [vmem:[#allocation32_spill] sm:$0xff] }
 0x1e0   : > { %v2874_v25 = vsub.f32 0.0, %v2570_v41  ;;  %v2445_v3 = vsub.f32 %v8437_v13, %v2347_v18  ;;  %v2477_v7 = vsub.f32 %v8438_v17, %v2347_v18  ;;  %v2539_v30 = vsel %vm6636_vm4, %v2443_v33, %v2507_v61  ;;  %v8440_v37 = vld [vmem:[#allocation17_spill] sm:$0xff] }
 0x1e1   : > { %v2905_v40 = vmul.f32 %v2873_v19, %v8436_v11  ;;  %v2540_v21 = vsel %vm6646_vm5, %v2444_v28, %v2508_v39  ;;  %v2478_v41 = vsub.f32 %v8440_v37, %v2348_v34  ;;  %v8441_v45 = vsub.f32 %v8426_v15, %v8424_v2  ;;  %v8443_v33 = vld [vmem:[#allocation5_spill] sm:$0xff] }
 0x1e2   : > { %v2906_v46 = vmul.f32 %v2874_v25, %v8439_v52  ;;  %v8442_v18 = vsub.f32 %v8428_v51, %v8432_v32  ;;  %v2446_v25 = vsub.f32 %v8443_v33, %v2348_v34  ;;  %v2509_v61 = vmul.f32 0.5, %v2477_v7  ;;  %v8445_v32 = vld [vmem:[#allocation104_spill] sm:$0xff] }
 0x1e3   : > { %v2571_v11 = vsel %vm6611_vm2, %v8441_v45, %v2539_v30  ;;  %v6860_v28 = vadd.f32 %v2905_v40, %v6664_v0  ;;  %v2510_v52 = vmul.f32 0.5, %v2478_v41  ;;  %v8444_v30 = vld [vmem:[#allocation93_spill] sm:$0xff]  ;;  %v8446_v7 = vld [vmem:[#allocation84_spill] sm:$0xff]  ;;  %v8447_v40 = vld [vmem:[#allocation91_spill] sm:$0xff] }
 0x1e4   : > { %v2572_v19 = vsel %vm6632_vm3, %v8442_v18, %v2540_v21  ;;  %v2875_v39 = vsub.f32 0.0, %v2571_v11  ;;  %v6863_v2 = vadd.f32 %v2906_v46, %v6670_v48  ;;  %v2541_v15 = vsel %vm6704_vm8, %v2445_v3, %v2509_v61  ;;  %v6882_v46 = vpop.permute.xlu1 %2197 }
 0x1e5   : > { %v2876_v31 = vsub.f32 0.0, %v2572_v19  ;;  %v2349_v51 = vsel %vm7649_vm11, %v8433_v60, %v8444_v30  ;;  %v2350_v34 = vsel %vm7649_vm11, %v8444_v30, %v8445_v32  ;;  %v2542_v41 = vsel %vm6714_vm9, %v2446_v25, %v2510_v52  ;;  %v8451_v19 = vld [vmem:[#allocation58_spill] sm:$0xff]  ;;  %v8452_v25 = vld [vmem:[#allocation28_spill] sm:$0xff] }
 0x1e6   : > { %v2907_v0 = vmul.f32 %v2875_v39, %v8446_v7  ;;  %v8448_v48 = vsub.f32 %v8438_v17, %v8437_v13  ;;  %vm8449_vm8 = vnez %v8395_v5  ;;  %v8450_v60 = vsub.f32 %v8440_v37, %v8443_v33  ;;  %v8454_v39 = vld [vmem:[#allocation67_spill] sm:$0xff]  ;;  %v8456_v32 = vld [vmem:[#allocation116_spill] sm:$0xff] }
 0x1e7   : > { %v2908_v21 = vmul.f32 %v2876_v31, %v8447_v40  ;;  %v2447_v18 = vsub.f32 %v6539_v53, %v2349_v51  ;;  %vm8453_vm11 = vcmask 1039360   ;;  %v2448_v37 = vsub.f32 %v8454_v39, %v2350_v34  ;;  %v6900_v31 = vpop.permute.xlu0 %2199  ;;  %v8457_v40 = vld [vmem:[#allocation8_spill] sm:$0xff] }
 0x1e8   : > { %v2573_v3 = vsel %vm8449_vm8, %v8448_v48, %v2541_v15  ;;  %v2574_v45 = vsel %vm6700_vm7, %v8450_v60, %v2542_v41  ;;  %v6893_v13 = vsel %vm8453_vm11, %v8452_v25, %v8451_v19  ;;  %v6896_v17 = vadd.f32 %v2907_v0, %v6712_v12  ;;  %v8455_v15 = vld [vmem:[#allocation103_spill] sm:$0xff]  ;;  %v8458_v0 = vld [vmem:[#allocation108_spill] sm:$0xff]  ;;  %vm8459_vm7 = vmmov %vm8453_vm11 }
 0x1e9   : > { %v2877_v11 = vsub.f32 0.0, %v2573_v3  ;;  %v2878_v61 = vsub.f32 0.0, %v2574_v45  ;;  %v2479_v33 = vsub.f32 %v6511_v6, %v2349_v51  ;;  %v6903_v52 = vadd.f32 %v2908_v21, %v6725_v59  ;;  %v6914_v3 = vld [vmem:[%s3515_s26 + $0x98] sm:$0xff]  ;;  %v6930_v45 = vld [vmem:[%s3515_s26 + $0xa0] sm:$0xff] }
 0x1ea   : > { %v2480_v7 = vsub.f32 %v8456_v32, %v2350_v34  ;;  %v6910_v12 = vsel %vm8453_vm11, %v8451_v19, %v8457_v40  ;;  %v2420_v51 = vsub.f32 %v6893_v13, %v6914_v3  ;;  %v6919_v59 = vld [vmem:[%s3515_s26 + $0xb8] sm:$0xff]  ;;  %v8460_v19 = vld [vmem:[#allocation21_spill] sm:$0xff]  ;;  %vm8461_vm11 = vmmov %vm8459_vm7 }
 0x1eb   : > { %v2909_v30 = vmul.f32 %v2877_v11, %v8455_v15  ;;  %v2910_v41 = vmul.f32 %v2878_v61, %v8458_v0  ;;  %v2511_v48 = vmul.f32 0.5, %v2479_v33  ;;  %v6924_v34 = vsel %vm8459_vm7, %v6572_v26, %v6919_v59  ;;  %v8470_v0 = vld [vmem:[#allocation111_spill] sm:$0xff] }
 0x1ec   : > { %v2512_v60 = vmul.f32 0.5, %v2480_v7  ;;  %v6937_v25 = vsel %vm8461_vm11, %v8457_v40, %v8460_v19  ;;  %v6949_v15 = vsel %vm8459_vm7, %v8460_v19, %v6572_v26  ;;  %vm8463_vm11 = vcmask 7168   ;;  %v6981_v19 = vpop.permute.xlu0 %2203 }
 0x1ed   : > { %v6927_v21 = vadd.f32 %v2909_v30, %v6765_v49  ;;  %v6940_v61 = vadd.f32 %v2910_v41, %v6777_v42  ;;  %v2543_v33 = vsel %vm6767_vm6, %v2447_v18, %v2511_v48  ;;  %v6951_v30 = vpop.permute.xlu1 %2201  ;;  %v8462_v42 = vsub.f32 %v6511_v6, %v6539_v53  ;;  %v6961_v18 = vld [vmem:[%s3515_s26 + $0xa8] sm:$0xff]  ;;  %v6974_v53 = vld [vmem:[%s3515_s26 + $0xb0] sm:$0xff]  ;;  %vm8465_vm7 = vmmov %vm8463_vm11  ;;  %8466 = vst [vmem:[#allocation20_spill] sm:$0xff] %v6981_v19 }
 0x1ee   : > { %v2544_v7 = vsel %vm6740_vm1, %v2448_v37, %v2512_v60  ;;  %v2351_v26 = vsel %vm8463_vm11, %v6591_v43, %v6618_v27  ;;  %v8464_v41 = vsub.f32 %v8456_v32, %v8454_v39  ;;  %v2399_v60 = vsel %vm8465_vm7, %v6546_v14, %v6591_v43  ;;  %v8467_v32 = vld [vmem:[#allocation64_spill] sm:$0xff]  ;;  %vm8469_vm11 = vmmov %vm8465_vm7 }
 0x1ef   : > { %v2575_v40 = vsel %vm6747_vm10, %v8462_v42, %v2543_v33  ;;  %v2450_v42 = vsub.f32 %v6551_v10, %v2351_v26  ;;  %v2481_v39 = vsub.f32 %v6523_v54, %v2399_v60  ;;  %v2482_v49 = vsub.f32 %v8467_v32, %v2351_v26 }
 0x1f0   : > { %v2576_v37 = vsel %vm6736_vm0, %v8464_v41, %v2544_v7  ;;  %v2879_v48 = vsub.f32 0.0, %v2575_v40  ;;  %v8468_v7 = vld [vmem:[#allocation57_spill] sm:$0xff]  ;;  %v2449_v41 = vsub.f32 %v6546_v14, %v2399_v60  ;;  %v2352_v6 = vsel %vm8469_vm11, %v6618_v27, %v6650_v35  ;;  %vm8471_vm0 = vmmov %vm8465_vm7 }
 0x1f1   : > { %v2880_v33 = vsub.f32 0.0, %v2576_v37  ;;  %v2353_v43 = vsel %vm8465_vm7, %v6650_v35, %v6675_v55  ;;  %v2513_v11 = vmul.f32 0.5, %v2481_v39  ;;  %v2514_v19 = vmul.f32 0.5, %v2482_v49  ;;  %v8472_v60 = vld [vmem:[#allocation65_spill] sm:$0xff]  ;;  %v7004_v62 = vpop.permute.xlu1 %2205  ;;  %vm8480_vm11 = vmmov %vm8471_vm0 }
 0x1f2   : > { %v2911_v40 = vmul.f32 %v2879_v48, %v8468_v7  ;;  %v2354_v26 = vsel %vm8471_vm0, %v6675_v55, %v6698_v44  ;;  %v2451_v7 = vsub.f32 %v8472_v60, %v2352_v6  ;;  %v2483_v9 = vsub.f32 %v8473_v38, %v2352_v6  ;;  %vm8482_vm7 = vmmov %vm8471_vm0 }
 0x1f3   : > { %v2912_v37 = vmul.f32 %v2880_v33, %v8470_v0  ;;  %v2484_v27 = vsub.f32 %v6893_v13, %v2353_v43  ;;  %v2545_v35 = vsel %vm6586_vm14, %v2449_v41, %v2513_v11  ;;  %v2546_v49 = vsel %vm6596_vm15, %v2450_v42, %v2514_v19  ;;  %v7024_v42 = vpop.permute.xlu0 %2320 }
 0x1f4   : > { %v6999_v48 = vadd.f32 %v2911_v40, %v6821_v47  ;;  %v2452_v0 = vsub.f32 %v6914_v3, %v2353_v43  ;;  %v2355_v55 = vsel %vm8471_vm0, %v6698_v44, %v6729_v36  ;;  %v8474_v47 = vsub.f32 %v6523_v54, %v6546_v14  ;;  %v8477_v43 = vld [vmem:[#allocation24_spill] sm:$0xff] }
 0x1f5   : > { %v8475_v6 = vsub.f32 %v8467_v32, %v6551_v10  ;;  %v2515_v33 = vmul.f32 0.5, %v2483_v9  ;;  %v2516_v19 = vmul.f32 0.5, %v2484_v27  ;;  %v2453_v44 = vsub.f32 %v6930_v45, %v2354_v26  ;;  %v8476_v9 = vld [vmem:[#allocation29_spill] sm:$0xff] }
 0x1f6   : > { %v2577_v13 = vsel %vm6564_vm12, %v8474_v47, %v2545_v35  ;;  %v2454_v40 = vsub.f32 %v6961_v18, %v2355_v55  ;;  %v2485_v10 = vsub.f32 %v6910_v12, %v2354_v26  ;;  %v2486_v32 = vsub.f32 %v6937_v25, %v2355_v55  ;;  %v7043_v26 = vpop.permute.xlu1 %2322 }
 0x1f7   : > { %v2578_v11 = vsel %vm6578_vm13, %v8475_v6, %v2546_v49  ;;  %v2881_v3 = vsub.f32 0.0, %v2577_v13  ;;  %v2547_v54 = vsel %vm6636_vm4, %v2451_v7, %v2515_v33  ;;  %v2548_v14 = vsel %vm6646_vm5, %v2452_v0, %v2516_v19  ;;  %v8479_v33 = vld [vmem:[#allocation12_spill] sm:$0xff]  ;;  %v8483_v19 = vld [vmem:[#allocation34_spill] sm:$0xff] }
 0x1f8   : > { %v2882_v39 = vsub.f32 0.0, %v2578_v11  ;;  %v8478_v35 = vsub.f32 %v8473_v38, %v8472_v60  ;;  %v2580_v7 = vsel %vm6632_vm3, %v2420_v51, %v2548_v14  ;;  %v2517_v0 = vmul.f32 0.5, %v2485_v10  ;;  %v8481_v60 = vld [vmem:[#allocation59_spill] sm:$0xff] }
 0x1f9   : > { %v2913_v41 = vmul.f32 %v2881_v3, %v8476_v9  ;;  %v2884_v13 = vsub.f32 0.0, %v2580_v7  ;;  %v2518_v6 = vmul.f32 0.5, %v2486_v32  ;;  %v7046_v55 = vadd.f32 %v2912_v37, %v6835_v1 }
 0x1fa   : > { %v2914_v27 = vmul.f32 %v2882_v39, %v8477_v43  ;;  %v2579_v49 = vsel %vm6611_vm2, %v8478_v35, %v2547_v54  ;;  %v2356_v38 = vsel %vm8480_vm11, %v6729_v36, %v8479_v33  ;;  %v2357_v51 = vsel %vm8482_vm7, %v8479_v33, %v8481_v60  ;;  %v8484_v39 = vld [vmem:[#allocation81_spill] sm:$0xff]  ;;  %v3358_v60 = vld [vmem:[%s3515_s26 + $0xc0] sm:$0xff] }
 0x1fb   : > { %v2883_v47 = vsub.f32 0.0, %v2579_v49  ;;  %v7049_v11 = vadd.f32 %v6860_v28, %v2913_v41  ;;  %v2916_v54 = vmul.f32 %v2884_v13, %v8484_v39  ;;  %vm8485_vm0 = vnez %v8399_v16  ;;  %v7063_v28 = vpop.permute.xlu0 %2324  ;;  %v8493_v49 = vld [vmem:[#allocation30_spill] sm:$0xff]  ;;  %v7113_v39 = vld [vmem:[%s3515_s26 + $0xd0] sm:$0xff] }
 0x1fc   : > { %v2549_v14 = vsel %vm8485_vm0, %v2453_v44, %v2517_v0  ;;  %v2550_v1 = vsel %vm6714_vm9, %v2454_v40, %v2518_v6  ;;  %v7066_v37 = vadd.f32 %v6863_v2, %v2914_v27  ;;  %v8486_v36 = vsub.f32 %v6910_v12, %v6930_v45  ;;  %v2327_v6 = vpop.permute.xlu1 %2326 }
 0x1fd   : > { %v2915_v3 = vmul.f32 %v2883_v47, %v8483_v19  ;;  %v8487_v32 = vsub.f32 %v6937_v25, %v6961_v18  ;;  %vm8488_vm11 = vnez %v8397_v63  ;;  %v2455_v9 = vsub.f32 %v6974_v53, %v2356_v38  ;;  %v8489_v25 = vld [vmem:[#allocation79_spill] sm:$0xff]  ;;  %v8494_v47 = vld [vmem:[#allocation105_spill] sm:$0xff]  ;;  %v3359_v19 = vld [vmem:[%s3515_s26 + $0xc8] sm:$0xff] }
 0x1fe   : > { %v2581_v10 = vsel %vm8449_vm8, %v8486_v36, %v2549_v14  ;;  %v2456_v12 = vsub.f32 %v6919_v59, %v2357_v51  ;;  %v2487_v45 = vsub.f32 %v6949_v15, %v2356_v38  ;;  %v2488_v43 = vsub.f32 %v6924_v34, %v2357_v51  ;;  %v8490_v18 = vld [vmem:[#allocation31_spill] sm:$0xff] }
 0x1ff   : > { %v2582_v44 = vsel %vm8488_vm11, %v8487_v32, %v2550_v1  ;;  %v7080_v40 = vadd.f32 %v6896_v17, %v2915_v3  ;;  %v2885_v2 = vsub.f32 0.0, %v2581_v10  ;;  %vm8491_vm7 = vcmask 1039360   ;;  %v2329_v1 = vpop.permute.xlu0 %2328 }
 0x200   : > { %v2886_v41 = vsub.f32 0.0, %v2582_v44  ;;  %v7088_v27 = vsel %vm8491_vm7, %v8490_v18, %v8489_v25  ;;  %vm8492_vm11 = vmmov %vm8491_vm7  ;;  %v7096_v35 = vadd.f32 %v6903_v52, %v2916_v54  ;;  %v2519_v33 = vmul.f32 0.5, %v2487_v45  ;;  %v3361_v44 = vld [vmem:[%s3515_s26 + $0xd8] sm:$0xff]  ;;  %v8502_v45 = vld [vmem:[#allocation19_spill] sm:$0xff] }
 0x201   : > { %v7093_v17 = vsel %vm8492_vm11, %v8489_v25, %v6846_v4  ;;  %v2917_v7 = vmul.f32 %v2885_v2, %v8493_v49  ;;  %vm8495_vm8 = vmmov %vm8491_vm7  ;;  %v2520_v38 = vmul.f32 0.5, %v2488_v43  ;;  %v2425_v51 = vsub.f32 %v7088_v27, %v3358_v60  ;;  %v8504_v25 = vld [vmem:[#allocation20_spill] sm:$0xff]  ;;  %v7160_v49 = vld [vmem:[%s3515_s26 + $0xe0] sm:$0xff] }
 0x202   : > { %v2918_v13 = vmul.f32 %v2886_v41, %v8494_v47  ;;  %v7103_v0 = vsel %vm8495_vm8, %v6846_v4, %v6882_v46  ;;  %v2426_v52 = vsub.f32 %v7093_v17, %v3359_v19  ;;  %vm8496_vm8 = vmmov %vm8491_vm7  ;;  %v2551_v36 = vsel %vm6767_vm6, %v2455_v9, %v2519_v33  ;;  %v7147_v9 = vld [vmem:[%s3515_s26 + $0xf8] sm:$0xff]  ;;  %v7172_v47 = vld [vmem:[%s3515_s26 + $0xe8] sm:$0xff] }
 0x203   : > { %v7110_v3 = vadd.f32 %v6927_v21, %v2917_v7  ;;  %v2427_v4 = vsub.f32 %v7103_v0, %v7113_v39  ;;  %v7120_v54 = vsel %vm8496_vm8, %v6882_v46, %v6900_v31  ;;  %vm8497_vm11 = vmmov %vm8491_vm7  ;;  %v2552_v32 = vsel %vm6740_vm1, %v2456_v12, %v2520_v38 }
 0x204   : > { %v7125_v14 = vsel %vm8497_vm11, %v6900_v31, %v6951_v30  ;;  %v7128_v21 = vadd.f32 %v6940_v61, %v2918_v13  ;;  %v2428_v46 = vsub.f32 %v7120_v54, %v3361_v44  ;;  %v8499_v2 = vsub.f32 %v6949_v15, %v6974_v53  ;;  %v8500_v31 = vld [vmem:[#allocation94_spill] sm:$0xff]  ;;  %vm8505_vm11 = vmmov %vm8496_vm8  ;;  %v7177_v13 = vld [vmem:[%s3515_s26 + $0xf0] sm:$0xff] }
 0x205   : > { %v8501_v61 = vsub.f32 %v6924_v34, %v6919_v59  ;;  %vm8503_vm7 = vnez %v8502_v45  ;;  %v7152_v12 = vsel %vm8496_vm8, %v7004_v62, %v7147_v9  ;;  %v7157_v15 = vsel %vm8505_vm11, %v6951_v30, %v8504_v25  ;;  %v2333_v59 = vpop.permute.xlu0 %2332 }
 0x206   : > { %v2583_v41 = vsel %vm6747_vm10, %v8499_v2, %v2551_v36  ;;  %v2331_v36 = vpop.permute.xlu1 %2330  ;;  %v8509_v2 = vld [vmem:[#allocation22_spill] sm:$0xff]  ;;  %v8522_v16 = vsub.f32 %v7157_v15, %v7172_v47  ;;  %v8528_v56 = vsub.f32 %v7152_v12, %v7147_v9 }
 0x207   : > { %v2584_v43 = vsel %vm8503_vm7, %v8501_v61, %v2552_v32  ;;  %v2887_v53 = vsub.f32 0.0, %v2583_v41  ;;  %vm8506_vm7 = vmmov %vm8496_vm8  ;;  %vm8507_vm8 = vcmask 7168  }
 0x208   : > { %v2888_v18 = vsub.f32 0.0, %v2584_v43  ;;  %v7167_v34 = vsel %vm8506_vm7, %v8504_v25, %v7004_v62  ;;  %v2358_v38 = vsel %vm8507_vm8, %v7024_v42, %v7043_v26  ;;  %v8508_v62 = vld [vmem:[#allocation23_spill] sm:$0xff]  ;;  %vm8510_vm7 = vmmov %vm8507_vm8 }
 0x209   : > { %v2919_v32 = vmul.f32 %v2887_v53, %v8508_v62  ;;  %v2400_v61 = vsel %vm8510_vm7, %v3358_v60, %v7024_v42  ;;  %v2458_v43 = vsub.f32 %v3359_v19, %v2358_v38  ;;  %v2490_v30 = vsub.f32 %v7093_v17, %v2358_v38  ;;  %vm8511_vm11 = vmmov %vm8510_vm7 }
 0x20a   : > { %v2920_v41 = vmul.f32 %v2888_v18, %v8509_v2  ;;  %v2457_v25 = vsub.f32 %v3358_v60, %v2400_v61  ;;  %v2489_v7 = vsub.f32 %v7088_v27, %v2400_v61  ;;  %v2359_v33 = vsel %vm8511_vm11, %v7043_v26, %v7063_v28  ;;  %vm8512_vm8 = vmmov %vm8510_vm7  ;;  %v8517_v2 = vld [vmem:[#allocation117_spill] sm:$0xff] }
 0x20b   : > { %v7194_v45 = vadd.f32 %v6999_v48, %v2919_v32  ;;  %v2360_v42 = vsel %vm8512_vm8, %v7063_v28, %v2327_v6  ;;  %v2459_v60 = vsub.f32 %v7113_v39, %v2359_v33  ;;  %v2522_v27 = vmul.f32 0.5, %v2490_v30  ;;  %vm8513_vm11 = vmmov %vm8510_vm7 }
 0x20c   : > { %v7197_v53 = vadd.f32 %v7046_v55, %v2920_v41  ;;  %v2521_v19 = vmul.f32 0.5, %v2489_v7  ;;  %v2460_v18 = vsub.f32 %v3361_v44, %v2360_v42  ;;  %v2491_v17 = vsub.f32 %v7103_v0, %v2359_v33  ;;  %vm8514_vm10 = vmmov %vm8510_vm7  ;;  %v2335_v44 = vpop.permute.xlu1 %2334 }
 0x20d   : > { %v2492_v38 = vsub.f32 %v7120_v54, %v2360_v42  ;;  %v2361_v26 = vsel %vm8510_vm7, %v2327_v6, %v2329_v1  ;;  %v2362_v48 = vsel %vm8513_vm11, %v2329_v1, %v2331_v36  ;;  %v2363_v62 = vsel %vm8514_vm10, %v2331_v36, %v2333_v59  ;;  %vm8515_vm10 = vmmov %vm8510_vm7 }
 0x20e   : > { %v2553_v55 = vsel %vm6586_vm14, %v2457_v25, %v2521_v19  ;;  %v2554_v28 = vsel %vm6596_vm15, %v2458_v43, %v2522_v27  ;;  %v2523_v39 = vmul.f32 0.5, %v2491_v17  ;;  %v2461_v7 = vsub.f32 %v7160_v49, %v2361_v26  ;;  %v8519_v27 = vld [vmem:[#allocation118_spill] sm:$0xff] }
 0x20f   : > { %v2585_v0 = vsel %vm6564_vm12, %v2425_v51, %v2553_v55  ;;  %v2586_v6 = vsel %vm6578_vm13, %v2426_v52, %v2554_v28  ;;  %v2524_v54 = vmul.f32 0.5, %v2492_v38  ;;  %v2462_v1 = vsub.f32 %v7172_v47, %v2362_v48  ;;  %v8516_v52 = vld [vmem:[#allocation85_spill] sm:$0xff]  ;;  %v8525_v47 = vld [vmem:[#allocation3_spill] sm:$0xff] }
 0x210   : > { %v2889_v30 = vsub.f32 0.0, %v2585_v0  ;;  %v2890_v33 = vsub.f32 0.0, %v2586_v6  ;;  %v2555_v29 = vsel %vm6636_vm4, %v2459_v60, %v2523_v39  ;;  %v2493_v8 = vsub.f32 %v7125_v14, %v2361_v26  ;;  %v8518_v60 = vld [vmem:[#allocation51_spill] sm:$0xff] }
 0x211   : > { %v2556_v36 = vsel %vm6646_vm5, %v2460_v18, %v2524_v54  ;;  %v2587_v50 = vsel %vm6611_vm2, %v2427_v4, %v2555_v29  ;;  %v2494_v51 = vsub.f32 %v7157_v15, %v2362_v48  ;;  %v2364_v24 = vsel %vm8515_vm10, %v2333_v59, %v2335_v44 }
 0x212   : > { %v2921_v32 = vmul.f32 %v2889_v30, %v8516_v52  ;;  %v2922_v41 = vmul.f32 %v2890_v33, %v8517_v2  ;;  %v2588_v57 = vsel %vm6632_vm3, %v2428_v46, %v2556_v36  ;;  %v2891_v61 = vsub.f32 0.0, %v2587_v50 }
 0x213   : > { %v2892_v43 = vsub.f32 0.0, %v2588_v57  ;;  %v2525_v25 = vmul.f32 0.5, %v2493_v8  ;;  %v2526_v42 = vmul.f32 0.5, %v2494_v51  ;;  %v2463_v23 = vsub.f32 %v7177_v13, %v2363_v62 }
 0x214   : > { %v2931_v20 = vadd.f32 %v7049_v11, %v2921_v32  ;;  %v2940_v4 = vadd.f32 %v7066_v37, %v2922_v41  ;;  %v2923_v19 = vmul.f32 %v2891_v61, %v8518_v60  ;;  %v2464_v59 = vsub.f32 %v7147_v9, %v2364_v24 }
 0x215   : > { %v2924_v18 = vmul.f32 %v2892_v43, %v8519_v27  ;;  %v2557_v22 = vsel %vm8485_vm0, %v2461_v7, %v2525_v25  ;;  %v2558_v46 = vsel %vm6714_vm9, %v2462_v1, %v2526_v42  ;;  %v2495_v17 = vsub.f32 %v7167_v34, %v2363_v62  ;;  %v8533_v27 = vld [vmem:[#allocation27_spill] sm:$0xff] }
 0x216   : > { %v2932_v38 = vrot.slane %v2931_v20, 4  ;;  %v2941_v26 = vrot.slane %v2940_v4, 4  ;;  %v2949_v11 = vadd.f32 %v7080_v40, %v2923_v19  ;;  %v8520_v37 = vsub.f32 %v7125_v14, %v7160_v49  ;;  %v8524_v49 = vld [vmem:[#allocation109_spill] sm:$0xff] }
 0x217   : > { %vm8521_vm12 = vnez %v8395_v5  ;;  %v2958_v55 = vadd.f32 %v7096_v35, %v2924_v18  ;;  %vm8523_vm13 = vnez %v8397_v63  ;;  %v2496_v62 = vsub.f32 %v7152_v12, %v2364_v24  ;;  %v8532_v19 = vld [vmem:[#allocation25_spill] sm:$0xff] }
 0x218   : > { %v2589_v48 = vsel %vm8521_vm12, %v8520_v37, %v2557_v22  ;;  %v2590_v58 = vsel %vm8523_vm13, %v8522_v16, %v2558_v46  ;;  %vm3017_vm14 = vcmask 1042432   ;;  %v2933_v39 = vadd.f32 %v2932_v38, %v2931_v20  ;;  %v8535_v22 = vld [vmem:[#allocation9_spill] sm:$0xff] }
 0x219   : > { %v2893_v28 = vsub.f32 0.0, %v2589_v48  ;;  %v2942_v40 = vadd.f32 %v2941_v26, %v2940_v4  ;;  %v2950_v7 = vrot.slane %v2949_v11, 4  ;;  %v2894_v44 = vsub.f32 0.0, %v2590_v58  ;;  %v8531_v4 = vld [vmem:[#allocation113_spill] sm:$0xff] }
 0x21a   : > { %v2959_v14 = vrot.slane %v2958_v55, 4  ;;  %v2527_v0 = vmul.f32 0.5, %v2495_v17  ;;  %v2528_v6 = vmul.f32 0.5, %v2496_v62  ;;  %v2934_v35 = vrot.slane %v2933_v39, 2 }
 0x21b   : > { %v2925_v5 = vmul.f32 %v2893_v28, %v8524_v49  ;;  %v2943_v54 = vrot.slane %v2942_v40, 2  ;;  %v2951_v15 = vadd.f32 %v2950_v7, %v2949_v11  ;;  %v2926_v63 = vmul.f32 %v2894_v44, %v8525_v47  ;;  %v8541_v44 = vld [vmem:[#allocation39_spill] sm:$0xff] }
 0x21c   : > { %v2960_v1 = vadd.f32 %v2959_v14, %v2958_v55  ;;  %v2559_v33 = vsel %vm6767_vm6, %v2463_v23, %v2527_v0  ;;  %v2560_v29 = vsel %vm6740_vm1, %v2464_v59, %v2528_v6  ;;  %v2935_v8 = vadd.f32 %v2934_v35, %v2933_v39  ;;  %v8537_v55 = vld [vmem:[#allocation121_spill] sm:$0xff]  ;;  %v8539_v39 = vld [vmem:[#allocation70_spill] sm:$0xff]  ;;  %v8546_v47 = vld [vmem:[#allocation95_spill] sm:$0xff] }
 0x21d   : > { %v2967_v30 = vadd.f32 %v7110_v3, %v2925_v5  ;;  %v2944_v36 = vadd.f32 %v2943_v54, %v2942_v40  ;;  %v2952_v50 = vrot.slane %v2951_v15, 2  ;;  %v2976_v51 = vadd.f32 %v7128_v21, %v2926_v63  ;;  %v8529_v3 = vld [vmem:[#allocation19_spill] sm:$0xff]  ;;  %v8547_v63 = vld [vmem:[#allocation86_spill] sm:$0xff] }
 0x21e   : > { %v2961_v24 = vrot.slane %v2960_v1, 2  ;;  %v8526_v32 = vsub.f32 %v7167_v34, %v7177_v13  ;;  %vm8527_vm15 = vnez %v8500_v31  ;;  %vm8530_vm2 = vnez %v8529_v3 }
 0x21f   : > { %v2968_v52 = vrot.slane %v2967_v30, 4  ;;  %v2592_v10 = vsel %vm8530_vm2, %v8528_v56, %v2560_v29  ;;  %v2936_v41 = vrot.slane %v2935_v8, 1  ;;  %v2945_v57 = vrot.slane %v2944_v36, 1 }
 0x220   : > { %v2591_v2 = vsel %vm8527_vm15, %v8526_v32, %v2559_v33  ;;  %v2953_v61 = vadd.f32 %v2952_v50, %v2951_v15  ;;  %v2977_v43 = vrot.slane %v2976_v51, 4  ;;  %v2962_v21 = vadd.f32 %v2961_v24, %v2960_v1  ;;  %v8543_v15 = vld [vmem:[#allocation90_spill] sm:$0xff] }
 0x221   : > { %v2969_v25 = vadd.f32 %v2968_v52, %v2967_v30  ;;  %v2895_v42 = vsub.f32 0.0, %v2591_v2  ;;  %v2896_v23 = vsub.f32 0.0, %v2592_v10  ;;  %v2937_v20 = vadd.f32 %v2936_v41, %v2935_v8  ;;  %v8549_v33 = vld [vmem:[#allocation10_spill] sm:$0xff]  ;;  %v8551_v52 = vld [vmem:[#allocation68_spill] sm:$0xff] }
 0x222   : > { %v2946_v34 = vadd.f32 %v2945_v57, %v2944_v36  ;;  %v2954_v13 = vrot.slane %v2953_v61, 1  ;;  %v2978_v31 = vadd.f32 %v2977_v43, %v2976_v51  ;;  %v2963_v9 = vrot.slane %v2962_v21, 1  ;;  %v8550_v51 = vld [vmem:[#allocation18_spill] sm:$0xff] }
 0x223   : > { %v2970_v12 = vrot.slane %v2969_v25, 2  ;;  %v2927_v60 = vmul.f32 %v2895_v42, %v8531_v4  ;;  %v2928_v59 = vmul.f32 %v2896_v23, %v8532_v19  ;;  %vm8534_vm1 = vcmask 1041408  }
 0x224   : > { %v3009_v18 = vsel %vm8534_vm1, %v8533_v27, %v2937_v20  ;;  %vm8536_vm3 = vmmov %vm8534_vm1  ;;  %v2955_v17 = vadd.f32 %v2954_v13, %v2953_v61  ;;  %v2979_v38 = vrot.slane %v2978_v31, 2  ;;  %v2964_v37 = vadd.f32 %v2963_v9, %v2962_v21 }
 0x225   : > { %v3010_v46 = vsel %vm8536_vm3, %v8535_v22, %v2946_v34  ;;  %v3018_v26 = vsel %vm3017_vm14, %v3009_v18, 0.0  ;;  %v2971_v48 = vadd.f32 %v2970_v12, %v2969_v25  ;;  %vm8538_vm4 = vmmov %vm8534_vm1  ;;  %v2985_v28 = vadd.f32 %v7194_v45, %v2927_v60  ;;  %v8544_v45 = vld [vmem:[#allocation33_spill] sm:$0xff] }
 0x226   : > { %v3019_v11 = vsel %vm3017_vm14, %v3010_v46, 0.0  ;;  %3026 = vst [vmem:[%s7276_s11] sm:$0xff] %v3018_v26  ;;  %v3011_v16 = vsel %vm8538_vm4, %v8537_v55, %v2955_v17  ;;  %v2980_v58 = vadd.f32 %v2979_v38, %v2978_v31  ;;  %v2994_v62 = vadd.f32 %v7197_v53, %v2928_v59  ;;  %vm8542_vm5 = vmmov %vm8534_vm1 }
 0x227   : > { %3027 = vst [vmem:[%s7276_s11 + $0x8] sm:$0xff] %v3019_v11  ;;  %v8540_v40 = vrot.slane %v8539_v39, 2  ;;  %v3012_v14 = vsel %vm8542_vm5, %v8541_v44, %v2964_v37  ;;  %v3020_v49 = vsel %vm3017_vm14, %v3011_v16, 0.0  ;;  %v2972_v5 = vrot.slane %v2971_v48, 1  ;;  %vm8552_vm0 = vmmov %vm8534_vm1 }
 0x228   : > { %v3021_v0 = vsel %vm3017_vm14, %v3012_v14, 0.0  ;;  %3028 = vst [vmem:[%s7276_s11 + $0x10] sm:$0xff] %v3020_v49  ;;  %v2981_v6 = vrot.slane %v2980_v58, 1  ;;  %v2986_v35 = vrot.slane %v2985_v28, 4  ;;  %v2995_v54 = vrot.slane %v2994_v62, 4  ;;  %vm8553_vm8 = vmmov %vm8552_vm0 }
 0x229   : > { %v2862_v7 = vadd.f32 %v8540_v40, %v8539_v39  ;;  %vm8545_vm6 = vcmask 1040384   ;;  %3029 = vst [vmem:[%s7276_s11 + $0x18] sm:$0xff] %v3021_v0  ;;  %v2973_v30 = vadd.f32 %v2972_v5, %v2971_v48  ;;  %v2718_v29 = vrot.slane %v8549_v33, 1  ;;  %vm8556_vm10 = vmmov %vm8552_vm0 }
 0x22a   : > { %v3005_v53 = vsel %vm8545_vm6, %v8544_v45, %v8543_v15  ;;  %vm8548_vm9 = vmmov %vm8545_vm6  ;;  %v2982_v8 = vadd.f32 %v2981_v6, %v2980_v58  ;;  %v2987_v36 = vadd.f32 %v2986_v35, %v2985_v28  ;;  %v2996_v50 = vadd.f32 %v2995_v54, %v2994_v62 }
 0x22b   : > { %v3006_v1 = vsel %vm8548_vm9, %v8547_v63, %v8546_v47  ;;  %v2727_v24 = vrot.slane %v8550_v51, 1  ;;  %v2854_v32 = vrot.slane %v8551_v52, 1  ;;  %v2863_v2 = vrot.slane %v2862_v7, 1  ;;  %vm8554_vm7 = vmmov %vm8545_vm6 }
 0x22c   : > { %v3013_v56 = vsel %vm8552_vm0, %v3005_v53, %v2973_v30  ;;  %v3014_v3 = vsel %vm8553_vm8, %v3006_v1, %v2982_v8  ;;  %v2988_v41 = vrot.slane %v2987_v36, 2  ;;  %v2997_v57 = vrot.slane %v2996_v50, 2  ;;  %vm8555_vm11 = vmmov %vm8545_vm6 }
 0x22d   : > { %v3022_v10 = vsel %vm3017_vm14, %v3013_v56, 0.0  ;;  %v3023_v61 = vsel %vm3017_vm14, %v3014_v3, 0.0  ;;  %v2719_v25 = vadd.f32 %v2718_v29, %v8549_v33  ;;  %v2728_v42 = vadd.f32 %v2727_v24, %v8550_v51  ;;  %vm8557_vm12 = vmmov %vm8552_vm0 }
 0x22e   : > { %3030 = vst [vmem:[%s7276_s11 + $0x20] sm:$0xff] %v3022_v10  ;;  %3031 = vst [vmem:[%s7276_s11 + $0x28] sm:$0xff] %v3023_v61  ;;  %v2989_v43 = vadd.f32 %v2988_v41, %v2987_v36  ;;  %v2998_v21 = vadd.f32 %v2997_v57, %v2996_v50  ;;  %v2855_v23 = vadd.f32 %v2854_v32, %v8551_v52 }
 0x22f   : > { %v2864_v20 = vadd.f32 %v2863_v2, %v2862_v7 }
 0x230   : > { %v2990_v34 = vrot.slane %v2989_v43, 1  ;;  %v2999_v13 = vrot.slane %v2998_v21, 1  ;;  %v3007_v12 = vsel %vm8554_vm7, %v2719_v25, %v2855_v23 }
 0x231   : > { %v3008_v4 = vsel %vm8555_vm11, %v2728_v42, %v2864_v20 }
 0x232   : > { %v2991_v31 = vadd.f32 %v2990_v34, %v2989_v43  ;;  %v3000_v9 = vadd.f32 %v2999_v13, %v2998_v21 }
 0x234   : > { %v3015_v60 = vsel %vm8556_vm10, %v3007_v12, %v2991_v31  ;;  %v3016_v19 = vsel %vm8557_vm12, %v3008_v4, %v3000_v9 }
 0x235   : > { %v3024_v59 = vsel %vm3017_vm14, %v3015_v60, 0.0  ;;  %v3025_v27 = vsel %vm3017_vm14, %v3016_v19, 0.0 }
 0x236   : > { %3032 = vst [vmem:[%s7276_s11 + $0x30] sm:$0xff] %v3024_v59  ;;  %3033 = vst [vmem:[%s7276_s11 + $0x38] sm:$0xff] %v3025_v27 }
 0x237 PF: > { %p10_p9 = scmp.ge.s32.totalorder %s3427_s13, 4   ;;  %s8558_s9 = smov %s3384_s10 }
 0x238   : > { %s8559_s10 = smov %s3436_s16  ;;  %s8560_s11 = smov %s3427_s13 }
 0x239   :  { %12 = sbr.rel (!%p10_p9) target bundleno = 2 (0x2), region = 94 }

</bundles_post_ra>
